<compile_context>
chip_gen: v6e
topology: v6e:2x2x1
jax: 0.10.0
libtpu: 0.0.40
codegen_flags: <defaults>
</compile_context>

<pallas_src>
import functools

import jax
import jax.numpy as jnp
from jax import lax
from jax.experimental import pallas as pl
from jax.experimental.pallas import tpu as pltpu

CP = 128           # padded channel / feature width (lane-dense)
KSZ = 5            # conv kernel size
H_IN = 28          # architecture requires 28x28 inputs (=> 20*4*4 = 320 flatten)
OH1, P1 = 24, 12   # conv1 output spatial / pool1 output spatial
OH2, P2 = 8, 4     # conv2 output spatial / pool2 output spatial
NT2 = KSZ * 3      # 15 packed conv2 taps (two kw taps per K=256 matmul)


# ----------------------------------------------------------------------------
# Fused Pallas kernel
# ----------------------------------------------------------------------------
def _lenet_kernel(x_ref, w1_ref, b1_ref, w2_ref, b2_ref,
                  wf1_ref, bf1_ref, wc_ref, bc_ref,
                  out_ref,
                  c1_ref, p1_ref, c2_ref, p2_ref):
    nb = p1_ref.shape[0]          # batch block

    # ---- conv1: ONE lane-dense MXU matmul on the wrapper-built im2col patches.
    # rows = (n, oh, ow); K = 25*cin zero-padded to 128; lanes = padded out chans.
    c1_ref[...] = jnp.dot(x_ref[...], w1_ref[...],
                          preferred_element_type=jnp.float32)

    # ---- MaxPool2d(2) + bias + ReLU (bias commutes with max; padded chans stay 0)
    ev = c1_ref[pl.ds(0, nb * OH1 * P1, 2), :]                 # even ow rows
    od = c1_ref[pl.ds(1, nb * OH1 * P1, 2), :]                 # odd  ow rows
    m = jnp.maximum(ev, od)                                    # (nb*24*12, 128)
    m = m.reshape(nb * P1, 2 * P1, CP)                         # pair up oh
    m = jnp.maximum(m[:, 0:P1, :], m[:, P1:2 * P1, :])         # (nb*12,12,128)
    m = jnp.maximum(m + b1_ref[...], 0.0)
    p1_ref[...] = m.reshape(nb, P1, P1, CP)

    # ---- conv2: per-image register accumulation over 15 packed K=256 taps ----
    # acc is 64x128 f32 = 8 vregs per image strip; stored to scratch ONCE.
    for img in range(nb):
        acc = None
        for kh in range(KSZ):
            for p in range(3):
                kw0 = 2 * p
                a0 = p1_ref[img, kh:kh + OH2, kw0:kw0 + OH2, :]
                a0 = a0.reshape(OH2 * OH2, CP)
                if kw0 + 1 < KSZ:
                    a1 = p1_ref[img, kh:kh + OH2, kw0 + 1:kw0 + 1 + OH2, :]
                    a1 = a1.reshape(OH2 * OH2, CP)
                else:
                    a1 = a0                    # paired weight half is zero
                a = jnp.concatenate([a0, a1], axis=-1)         # (64, 256)
                contrib = jnp.dot(a, w2_ref[kh * 3 + p],
                                  preferred_element_type=jnp.float32)
                acc = contrib if acc is None else acc + contrib
        c2_ref[pl.ds(img * OH2 * OH2, OH2 * OH2), :] = acc

    # TODO(synk): Dropout(0.5) between conv2 and pool2 is an eval-mode no-op.

    # ---- MaxPool2d(2) + bias + ReLU ----
    ev = c2_ref[pl.ds(0, nb * OH2 * P2, 2), :]
    od = c2_ref[pl.ds(1, nb * OH2 * P2, 2), :]
    m = jnp.maximum(ev, od)                                    # (nb*8*4, 128)
    m = m.reshape(nb * P2, 2 * P2, CP)
    m = jnp.maximum(m[:, 0:P2, :], m[:, P2:2 * P2, :])         # (nb*4,4,128)
    m = jnp.maximum(m + b2_ref[...], 0.0)
    p2_ref[...] = m.reshape(nb, P2, P2, CP)

    # ---- fc1: Linear(320,50)+ReLU. torch's view(-1,320) flatten is folded into
    # the pre-permuted weight blocks wf1[(ph*4+pw)] of shape (128, 128).
    h = jnp.zeros((nb, CP), jnp.float32)
    for s in range(P2 * P2):
        ph, pw = s // P2, s % P2
        h = h + jnp.dot(p2_ref[:, ph, pw, :], wf1_ref[s],
                        preferred_element_type=jnp.float32)
    h = jnp.maximum(h + bf1_ref[...], 0.0)                     # (nb, 128)

    # ---- classifier: Linear(50, n_classes) + Softmax. The padded-lane mask is
    # pre-folded into bc (those lanes hold -1e30), so no iota/where here.
    logits = jnp.dot(h, wc_ref[...], preferred_element_type=jnp.float32)
    logits = logits + bc_ref[...]
    lmax = jnp.max(logits, axis=-1, keepdims=True)
    e = jnp.exp(logits - lmax)                                 # padded lanes -> 0
    denom = jnp.sum(e, axis=-1, keepdims=True)
    r = pl.reciprocal(denom, approx=True)                      # EUP vrcp
    r = r * (2.0 - denom * r)                                  # Newton step -> f32 exact
    out_ref[0] = e * r                                         # lane-dense (nb,128)


# ----------------------------------------------------------------------------
# Wrapper: one fused pallas_call, batch-parallel grid
# ----------------------------------------------------------------------------
def lenet_forward(params, x, *, n_classes):
    n, cin, h, w = x.shape
    assert (h, w) == (H_IN, H_IN), "Lenet head requires 28x28 inputs (320-dim flatten)"
    k1p = params["w1"].shape[0]                # padded im2col K for conv1

    # Wrapper-side im2col for conv1 (built alongside the channels-last transpose):
    # rows ordered (n, oh, ow); features ordered (kh, kw, cin); zero-padded K.
    x_nhwc = jnp.transpose(x, (0, 2, 3, 1))
    taps = [x_nhwc[:, kh:kh + OH1, kw:kw + OH1, :]
            for kh in range(KSZ) for kw in range(KSZ)]
    patches = jnp.stack(taps, axis=3).reshape(n * OH1 * OH1, KSZ * KSZ * cin)
    patches = jnp.pad(patches, ((0, 0), (0, k1p - KSZ * KSZ * cin)))

    # Batch blocking: keep >=2 grid steps whenever n >= 2 so the "parallel" grid
    # axis can use both v7x TensorCores; cap nb at 8 (~15 MB total VMEM at nb=8).
    if n == 1:
        nb = 1
    else:
        nb = min(8, max(1, n // 2))
        while n % nb != 0:
            nb -= 1
    grid = (n // nb,)

    probs_pad = pl.pallas_call(
        _lenet_kernel,
        out_shape=jax.ShapeDtypeStruct((n // nb, nb, CP), jnp.float32),
        grid=grid,
        in_specs=[
            pl.BlockSpec((nb * OH1 * OH1, k1p), lambda i: (i, 0)),    # im2col patches
            pl.BlockSpec((k1p, CP), lambda i: (0, 0)),                # w1 (im2col)
            pl.BlockSpec((1, CP), lambda i: (0, 0)),                  # b1
            pl.BlockSpec((NT2, 2 * CP, CP), lambda i: (0, 0, 0)),     # w2 (K=256 packed)
            pl.BlockSpec((1, CP), lambda i: (0, 0)),                  # b2
            pl.BlockSpec((P2 * P2, CP, CP), lambda i: (0, 0, 0)),     # wf1
            pl.BlockSpec((1, CP), lambda i: (0, 0)),                  # bf1
            pl.BlockSpec((CP, CP), lambda i: (0, 0)),                 # wc
            pl.BlockSpec((1, CP), lambda i: (0, 0)),                  # bc (mask folded)
        ],
        out_specs=pl.BlockSpec((1, nb, CP), lambda i: (i, 0, 0)),
        scratch_shapes=[
            pltpu.VMEM((nb * OH1 * OH1, CP), jnp.float32),   # conv1 pre-pool
            pltpu.VMEM((nb, P1, P1, CP), jnp.float32),       # pooled1 (conv2 input)
            pltpu.VMEM((nb * OH2 * OH2, CP), jnp.float32),   # conv2 pre-pool
            pltpu.VMEM((nb, P2, P2, CP), jnp.float32),       # pooled2 (fc1 input)
        ],
        compiler_params=pltpu.CompilerParams(
            dimension_semantics=("parallel",),
            vmem_limit_bytes=32 * 1024 * 1024),
    )(patches, params["w1"], params["b1"], params["w2"], params["b2"],
      params["wf1"], params["bf1"], params["wc"], params["bc"])

    # Slice the real classes out only at the very end (kernel store stays lane-dense).
    return probs_pad.reshape(n, CP)[:, :n_classes]


# ----------------------------------------------------------------------------
# Parameter preparation (done ONCE at init): transpose / permute / pack / pad
# torch-layout weights into the kernel's lane-dense layout.
# ----------------------------------------------------------------------------
def prepare_params(tp, in_channels, n_classes):
    assert n_classes <= CP
    cin = in_channels
    k1 = KSZ * KSZ * cin
    k1p = ((k1 + CP - 1) // CP) * CP

    def pad_to(a, shape):
        return jnp.pad(a, [(0, t - s) for s, t in zip(a.shape, shape)])

    # conv1 im2col weight: (Cout,Cin,kh,kw) -> rows ordered (kh,kw,cin), padded.
    w1 = jnp.transpose(tp["conv1_w"], (2, 3, 1, 0)).reshape(k1, 10)

    # conv2: per-tap (Cin=10 -> 128, Cout=20 -> 128), kw taps paired into K=256
    # blocks; the odd tap per row gets a zero bottom half.
    w2t = pad_to(jnp.transpose(tp["conv2_w"], (2, 3, 1, 0)), (KSZ, KSZ, CP, CP))
    packs = []
    for kh in range(KSZ):
        for p in range(3):
            kw0 = 2 * p
            top = w2t[kh, kw0]
            bot = w2t[kh, kw0 + 1] if kw0 + 1 < KSZ else jnp.zeros((CP, CP), jnp.float32)
            packs.append(jnp.concatenate([top, bot], axis=0))
    w2p = jnp.stack(packs, axis=0)                              # (15, 256, 128)

    # fc1: torch flatten order is (c, ph, pw); kernel uses (ph, pw, c[padded]) blocks.
    wf1 = jnp.transpose(tp["fc1_w"].reshape(50, 20, P2, P2),
                        (2, 3, 1, 0)).reshape(P2 * P2, 20, 50)
    wc = tp["cls_w"].T                                          # (50, n_classes)

    # classifier bias with the padded-class mask folded in (-1e30 -> exp == 0).
    bc = jnp.full((1, CP), -1e30, jnp.float32)
    bc = bc.at[0, :n_classes].set(tp["cls_b"])

    return {
        "w1": pad_to(w1, (k1p, CP)),
        "b1": pad_to(tp["conv1_b"].reshape(1, 10), (1, CP)),
        "w2": w2p,
        "b2": pad_to(tp["conv2_b"].reshape(1, 20), (1, CP)),
        "wf1": pad_to(wf1, (P2 * P2, CP, CP)),
        "bf1": pad_to(tp["fc1_b"].reshape(1, 50), (1, CP)),
        "wc": pad_to(wc, (CP, CP)),
        "bc": bc,
    }


def init_lenet_params(key, in_channels, n_classes):
    ks = jax.random.split(key, 8)
    scale = 0.2
    return {
        "conv1_w": scale * jax.random.normal(ks[0], (10, in_channels, KSZ, KSZ), jnp.float32),
        "conv1_b": scale * jax.random.normal(ks[1], (10,), jnp.float32),
        "conv2_w": scale * jax.random.normal(ks[2], (20, 10, KSZ, KSZ), jnp.float32),
        "conv2_b": scale * jax.random.normal(ks[3], (20,), jnp.float32),
        "fc1_w": scale * jax.random.normal(ks[4], (50, 320), jnp.float32),
        "fc1_b": scale * jax.random.normal(ks[5], (50,), jnp.float32),
        "cls_w": scale * jax.random.normal(ks[6], (n_classes, 50), jnp.float32),
        "cls_b": scale * jax.random.normal(ks[7], (n_classes,), jnp.float32),
    }


# ----------------------------------------------------------------------------
# Pure-JAX reference (torch semantics) for a correctness cross-check
# ----------------------------------------------------------------------------
def _reference_forward(tp, x, n_classes):
    dn = ("NCHW", "OIHW", "NCHW")
    y = lax.conv_general_dilated(x, tp["conv1_w"], (1, 1), "VALID", dimension_numbers=dn)
    y = y + tp["conv1_b"][None, :, None, None]
    y = lax.reduce_window(y, -jnp.inf, lax.max, (1, 1, 2, 2), (1, 1, 2, 2), "VALID")
    y = jnp.maximum(y, 0.0)
    y = lax.conv_general_dilated(y, tp["conv2_w"], (1, 1), "VALID", dimension_numbers=dn)
    y = y + tp["conv2_b"][None, :, None, None]
    y = lax.reduce_window(y, -jnp.inf, lax.max, (1, 1, 2, 2), (1, 1, 2, 2), "VALID")
    y = jnp.maximum(y, 0.0)
    y = y.reshape(y.shape[0], -1)                               # NCHW flatten -> 320
    y = jnp.maximum(y @ tp["fc1_w"].T + tp["fc1_b"], 0.0)
    y = y @ tp["cls_w"].T + tp["cls_b"]
    return jax.nn.softmax(y, axis=1)


if __name__ == "__main__":
    key = jax.random.PRNGKey(0)
    k_param, k_x = jax.random.split(key)

    in_channels, n_classes, batch = 1, 10, 2
    # 28x28 spatial is required by the architecture: ((28-4)/2 - 4)/2 = 4 -> 20*4*4 = 320
    x = jax.random.normal(k_x, (batch, in_channels, H_IN, H_IN), jnp.float32)

    torch_layout = init_lenet_params(k_param, in_channels, n_classes)
    params = prepare_params(torch_layout, in_channels, n_classes)   # done once, offline

    fwd = jax.jit(functools.partial(lenet_forward, n_classes=n_classes))
    out = jax.block_until_ready(fwd(params, x))

    assert out.shape == (batch, n_classes), out.shape
    # softmax rows sum to 1
    assert bool(jnp.allclose(jnp.sum(out, axis=1), 1.0, atol=1e-4))
    # cross-check against a pure-JAX reference of the torch module
    ref = _reference_forward(torch_layout, x, n_classes)
    assert bool(jnp.allclose(out, ref, atol=1e-3, rtol=1e-3))
    print("KERNEL_OK")
</pallas_src>

<mosaic_0001>
module attributes {stable_mosaic.version = 11 : i64} {
  func.func @_lenet_kernel(%arg0: i32, %arg1: memref<576x128xf32, #tpu.memory_space<vmem>>, %arg2: memref<128x128xf32, #tpu.memory_space<vmem>>, %arg3: memref<1x128xf32, #tpu.memory_space<vmem>>, %arg4: memref<15x256x128xf32, #tpu.memory_space<vmem>>, %arg5: memref<1x128xf32, #tpu.memory_space<vmem>>, %arg6: memref<16x128x128xf32, #tpu.memory_space<vmem>>, %arg7: memref<1x128xf32, #tpu.memory_space<vmem>>, %arg8: memref<128x128xf32, #tpu.memory_space<vmem>>, %arg9: memref<1x128xf32, #tpu.memory_space<vmem>>, %arg10: memref<1x1x128xf32, #tpu.memory_space<vmem>>, %arg11: memref<576x128xf32, #tpu.memory_space<vmem>>, %arg12: memref<1x12x12x128xf32, #tpu.memory_space<vmem>>, %arg13: memref<64x128xf32, #tpu.memory_space<vmem>>, %arg14: memref<1x4x4x128xf32, #tpu.memory_space<vmem>>) attributes {dimension_semantics = [#tpu.dimension_semantics<parallel>], iteration_bounds = array<i64: 2>, scalar_prefetch = 0 : i64, scratch_operands = 4 : i64, tpu.core_type = #tpu.core_type<tc>, window_params = [{transform_indices = @transform_0, window_bounds = array<i64: 576, 128>}, {pipeline_mode = #tpu.pipeline_mode<synchronous>, transform_indices = @transform_1, window_bounds = array<i64: 128, 128>}, {pipeline_mode = #tpu.pipeline_mode<synchronous>, transform_indices = @transform_2, window_bounds = array<i64: 1, 128>}, {pipeline_mode = #tpu.pipeline_mode<synchronous>, transform_indices = @transform_3, window_bounds = array<i64: 15, 256, 128>}, {pipeline_mode = #tpu.pipeline_mode<synchronous>, transform_indices = @transform_4, window_bounds = array<i64: 1, 128>}, {pipeline_mode = #tpu.pipeline_mode<synchronous>, transform_indices = @transform_5, window_bounds = array<i64: 16, 128, 128>}, {pipeline_mode = #tpu.pipeline_mode<synchronous>, transform_indices = @transform_6, window_bounds = array<i64: 1, 128>}, {pipeline_mode = #tpu.pipeline_mode<synchronous>, transform_indices = @transform_7, window_bounds = array<i64: 128, 128>}, {pipeline_mode = #tpu.pipeline_mode<synchronous>, transform_indices = @transform_8, window_bounds = array<i64: 1, 128>}, {transform_indices = @transform_9, window_bounds = array<i64: 1, 1, 128>}]} {
    %c0 = arith.constant 0 : index
    %c0_0 = arith.constant 0 : index
    %0 = vector.load %arg1[%c0, %c0_0] : memref<576x128xf32, #tpu.memory_space<vmem>>, vector<576x128xf32>
    %c0_1 = arith.constant 0 : index
    %c0_2 = arith.constant 0 : index
    %1 = vector.load %arg2[%c0_1, %c0_2] : memref<128x128xf32, #tpu.memory_space<vmem>>, vector<128x128xf32>
    %cst = arith.constant dense<0.000000e+00> : vector<576x128xf32>
    %2 = tpu.matmul %0, %1, %cst {dimension_numbers = #tpu.dot_dimension_numbers<[1], [0], [0], [1], [0, 0, 1, 1], [], []>} : vector<576x128xf32>, vector<128x128xf32>, vector<576x128xf32> -> vector<576x128xf32>
    %c0_3 = arith.constant 0 : index
    %c0_4 = arith.constant 0 : index
    %3 = vector.load %arg11[%c0_3, %c0_4] : memref<576x128xf32, #tpu.memory_space<vmem>>, vector<576x128xf32>
    tpu.vector_store %arg11[%c0_3, %c0_4], %2 {strides = array<i32>} : memref<576x128xf32, #tpu.memory_space<vmem>>, vector<576x128xf32>,
    %c0_5 = arith.constant 0 : index
    %c0_6 = arith.constant 0 : index
    %4 = tpu.strided_load %arg11[%c0_5, %c0_6] {strides = array<i32: 2, 1>} : memref<576x128xf32, #tpu.memory_space<vmem>>, vector<288x128xf32>
    %c1 = arith.constant 1 : index
    %c0_7 = arith.constant 0 : index
    %5 = tpu.strided_load %arg11[%c1, %c0_7] {strides = array<i32: 2, 1>} : memref<576x128xf32, #tpu.memory_space<vmem>>, vector<288x128xf32>
    %6 = arith.maximumf %4, %5 : vector<288x128xf32>
    %7 = vector.shape_cast %6 : vector<288x128xf32> to vector<12x24x128xf32>
    %8 = vector.extract_strided_slice %7 {offsets = [0, 0, 0], sizes = [12, 12, 128], strides = [1, 1, 1]} : vector<12x24x128xf32> to vector<12x12x128xf32>
    %9 = vector.extract_strided_slice %7 {offsets = [0, 12, 0], sizes = [12, 12, 128], strides = [1, 1, 1]} : vector<12x24x128xf32> to vector<12x12x128xf32>
    %10 = arith.maximumf %8, %9 : vector<12x12x128xf32>
    %c0_8 = arith.constant 0 : index
    %c0_9 = arith.constant 0 : index
    %11 = vector.load %arg3[%c0_8, %c0_9] : memref<1x128xf32, #tpu.memory_space<vmem>>, vector<1x128xf32>
    %12 = vector.shape_cast %11 : vector<1x128xf32> to vector<1x1x128xf32>
    %13 = vector.broadcast %12 : vector<1x1x128xf32> to vector<12x12x128xf32>
    %14 = arith.addf %10, %13 : vector<12x12x128xf32>
    %cst_10 = arith.constant 0.000000e+00 : f32
    %15 = vector.broadcast %cst_10 : f32 to vector<12x12x128xf32>
    %16 = arith.maximumf %14, %15 : vector<12x12x128xf32>
    %17 = vector.shape_cast %16 : vector<12x12x128xf32> to vector<1x12x12x128xf32>
    %c0_11 = arith.constant 0 : index
    %c0_12 = arith.constant 0 : index
    %c0_13 = arith.constant 0 : index
    %c0_14 = arith.constant 0 : index
    %18 = vector.load %arg12[%c0_11, %c0_12, %c0_13, %c0_14] : memref<1x12x12x128xf32, #tpu.memory_space<vmem>>, vector<1x12x12x128xf32>
    tpu.vector_store %arg12[%c0_11, %c0_12, %c0_13, %c0_14], %17 {strides = array<i32>} : memref<1x12x12x128xf32, #tpu.memory_space<vmem>>, vector<1x12x12x128xf32>,
    %c0_15 = arith.constant 0 : index
    %c0_16 = arith.constant 0 : index
    %c0_17 = arith.constant 0 : index
    %c0_18 = arith.constant 0 : index
    %19 = vector.load %arg12[%c0_15, %c0_16, %c0_17, %c0_18] : memref<1x12x12x128xf32, #tpu.memory_space<vmem>>, vector<1x8x8x128xf32>
    %20 = vector.shape_cast %19 : vector<1x8x8x128xf32> to vector<8x8x128xf32>
    %21 = vector.shape_cast %20 : vector<8x8x128xf32> to vector<64x128xf32>
    %c0_19 = arith.constant 0 : index
    %c0_20 = arith.constant 0 : index
    %c1_21 = arith.constant 1 : index
    %c0_22 = arith.constant 0 : index
    %22 = vector.load %arg12[%c0_19, %c0_20, %c1_21, %c0_22] : memref<1x12x12x128xf32, #tpu.memory_space<vmem>>, vector<1x8x8x128xf32>
    %23 = vector.shape_cast %22 : vector<1x8x8x128xf32> to vector<8x8x128xf32>
    %24 = vector.shape_cast %23 : vector<8x8x128xf32> to vector<64x128xf32>
    %25 = tpu.concatenate %21, %24 in 1 : vector<64x128xf32>, vector<64x128xf32> -> vector<64x256xf32>
    %c0_23 = arith.constant 0 : index
    %c0_24 = arith.constant 0 : index
    %c0_25 = arith.constant 0 : index
    %26 = vector.load %arg4[%c0_23, %c0_24, %c0_25] : memref<15x256x128xf32, #tpu.memory_space<vmem>>, vector<1x256x128xf32>
    %27 = vector.shape_cast %26 : vector<1x256x128xf32> to vector<256x128xf32>
    %cst_26 = arith.constant dense<0.000000e+00> : vector<64x128xf32>
    %28 = tpu.matmul %25, %27, %cst_26 {dimension_numbers = #tpu.dot_dimension_numbers<[1], [0], [0], [1], [0, 0, 1, 1], [], []>} : vector<64x256xf32>, vector<256x128xf32>, vector<64x128xf32> -> vector<64x128xf32>
    %c0_27 = arith.constant 0 : index
    %c0_28 = arith.constant 0 : index
    %c2 = arith.constant 2 : index
    %c0_29 = arith.constant 0 : index
    %29 = vector.load %arg12[%c0_27, %c0_28, %c2, %c0_29] : memref<1x12x12x128xf32, #tpu.memory_space<vmem>>, vector<1x8x8x128xf32>
    %30 = vector.shape_cast %29 : vector<1x8x8x128xf32> to vector<8x8x128xf32>
    %31 = vector.shape_cast %30 : vector<8x8x128xf32> to vector<64x128xf32>
    %c0_30 = arith.constant 0 : index
    %c0_31 = arith.constant 0 : index
    %c3 = arith.constant 3 : index
    %c0_32 = arith.constant 0 : index
    %32 = vector.load %arg12[%c0_30, %c0_31, %c3, %c0_32] : memref<1x12x12x128xf32, #tpu.memory_space<vmem>>, vector<1x8x8x128xf32>
    %33 = vector.shape_cast %32 : vector<1x8x8x128xf32> to vector<8x8x128xf32>
    %34 = vector.shape_cast %33 : vector<8x8x128xf32> to vector<64x128xf32>
    %35 = tpu.concatenate %31, %34 in 1 : vector<64x128xf32>, vector<64x128xf32> -> vector<64x256xf32>
    %c1_33 = arith.constant 1 : index
    %c0_34 = arith.constant 0 : index
    %c0_35 = arith.constant 0 : index
    %36 = vector.load %arg4[%c1_33, %c0_34, %c0_35] : memref<15x256x128xf32, #tpu.memory_space<vmem>>, vector<1x256x128xf32>
    %37 = vector.shape_cast %36 : vector<1x256x128xf32> to vector<256x128xf32>
    %cst_36 = arith.constant dense<0.000000e+00> : vector<64x128xf32>
    %38 = tpu.matmul %35, %37, %cst_36 {dimension_numbers = #tpu.dot_dimension_numbers<[1], [0], [0], [1], [0, 0, 1, 1], [], []>} : vector<64x256xf32>, vector<256x128xf32>, vector<64x128xf32> -> vector<64x128xf32>
    %39 = arith.addf %28, %38 : vector<64x128xf32>
    %c0_37 = arith.constant 0 : index
    %c0_38 = arith.constant 0 : index
    %c4 = arith.constant 4 : index
    %c0_39 = arith.constant 0 : index
    %40 = vector.load %arg12[%c0_37, %c0_38, %c4, %c0_39] : memref<1x12x12x128xf32, #tpu.memory_space<vmem>>, vector<1x8x8x128xf32>
    %41 = vector.shape_cast %40 : vector<1x8x8x128xf32> to vector<8x8x128xf32>
    %42 = vector.shape_cast %41 : vector<8x8x128xf32> to vector<64x128xf32>
    %43 = tpu.concatenate %42, %42 in 1 : vector<64x128xf32>, vector<64x128xf32> -> vector<64x256xf32>
    %c2_40 = arith.constant 2 : index
    %c0_41 = arith.constant 0 : index
    %c0_42 = arith.constant 0 : index
    %44 = vector.load %arg4[%c2_40, %c0_41, %c0_42] : memref<15x256x128xf32, #tpu.memory_space<vmem>>, vector<1x256x128xf32>
    %45 = vector.shape_cast %44 : vector<1x256x128xf32> to vector<256x128xf32>
    %cst_43 = arith.constant dense<0.000000e+00> : vector<64x128xf32>
    %46 = tpu.matmul %43, %45, %cst_43 {dimension_numbers = #tpu.dot_dimension_numbers<[1], [0], [0], [1], [0, 0, 1, 1], [], []>} : vector<64x256xf32>, vector<256x128xf32>, vector<64x128xf32> -> vector<64x128xf32>
    %47 = arith.addf %39, %46 : vector<64x128xf32>
    %c0_44 = arith.constant 0 : index
    %c1_45 = arith.constant 1 : index
    %c0_46 = arith.constant 0 : index
    %c0_47 = arith.constant 0 : index
    %48 = vector.load %arg12[%c0_44, %c1_45, %c0_46, %c0_47] : memref<1x12x12x128xf32, #tpu.memory_space<vmem>>, vector<1x8x8x128xf32>
    %49 = vector.shape_cast %48 : vector<1x8x8x128xf32> to vector<8x8x128xf32>
    %50 = vector.shape_cast %49 : vector<8x8x128xf32> to vector<64x128xf32>
    %c0_48 = arith.constant 0 : index
    %c1_49 = arith.constant 1 : index
    %c1_50 = arith.constant 1 : index
    %c0_51 = arith.constant 0 : index
    %51 = vector.load %arg12[%c0_48, %c1_49, %c1_50, %c0_51] : memref<1x12x12x128xf32, #tpu.memory_space<vmem>>, vector<1x8x8x128xf32>
    %52 = vector.shape_cast %51 : vector<1x8x8x128xf32> to vector<8x8x128xf32>
    %53 = vector.shape_cast %52 : vector<8x8x128xf32> to vector<64x128xf32>
    %54 = tpu.concatenate %50, %53 in 1 : vector<64x128xf32>, vector<64x128xf32> -> vector<64x256xf32>
    %c3_52 = arith.constant 3 : index
    %c0_53 = arith.constant 0 : index
    %c0_54 = arith.constant 0 : index
    %55 = vector.load %arg4[%c3_52, %c0_53, %c0_54] : memref<15x256x128xf32, #tpu.memory_space<vmem>>, vector<1x256x128xf32>
    %56 = vector.shape_cast %55 : vector<1x256x128xf32> to vector<256x128xf32>
    %cst_55 = arith.constant dense<0.000000e+00> : vector<64x128xf32>
    %57 = tpu.matmul %54, %56, %cst_55 {dimension_numbers = #tpu.dot_dimension_numbers<[1], [0], [0], [1], [0, 0, 1, 1], [], []>} : vector<64x256xf32>, vector<256x128xf32>, vector<64x128xf32> -> vector<64x128xf32>
    %58 = arith.addf %47, %57 : vector<64x128xf32>
    %c0_56 = arith.constant 0 : index
    %c1_57 = arith.constant 1 : index
    %c2_58 = arith.constant 2 : index
    %c0_59 = arith.constant 0 : index
    %59 = vector.load %arg12[%c0_56, %c1_57, %c2_58, %c0_59] : memref<1x12x12x128xf32, #tpu.memory_space<vmem>>, vector<1x8x8x128xf32>
    %60 = vector.shape_cast %59 : vector<1x8x8x128xf32> to vector<8x8x128xf32>
    %61 = vector.shape_cast %60 : vector<8x8x128xf32> to vector<64x128xf32>
    %c0_60 = arith.constant 0 : index
    %c1_61 = arith.constant 1 : index
    %c3_62 = arith.constant 3 : index
    %c0_63 = arith.constant 0 : index
    %62 = vector.load %arg12[%c0_60, %c1_61, %c3_62, %c0_63] : memref<1x12x12x128xf32, #tpu.memory_space<vmem>>, vector<1x8x8x128xf32>
    %63 = vector.shape_cast %62 : vector<1x8x8x128xf32> to vector<8x8x128xf32>
    %64 = vector.shape_cast %63 : vector<8x8x128xf32> to vector<64x128xf32>
    %65 = tpu.concatenate %61, %64 in 1 : vector<64x128xf32>, vector<64x128xf32> -> vector<64x256xf32>
    %c4_64 = arith.constant 4 : index
    %c0_65 = arith.constant 0 : index
    %c0_66 = arith.constant 0 : index
    %66 = vector.load %arg4[%c4_64, %c0_65, %c0_66] : memref<15x256x128xf32, #tpu.memory_space<vmem>>, vector<1x256x128xf32>
    %67 = vector.shape_cast %66 : vector<1x256x128xf32> to vector<256x128xf32>
    %cst_67 = arith.constant dense<0.000000e+00> : vector<64x128xf32>
    %68 = tpu.matmul %65, %67, %cst_67 {dimension_numbers = #tpu.dot_dimension_numbers<[1], [0], [0], [1], [0, 0, 1, 1], [], []>} : vector<64x256xf32>, vector<256x128xf32>, vector<64x128xf32> -> vector<64x128xf32>
    %69 = arith.addf %58, %68 : vector<64x128xf32>
    %c0_68 = arith.constant 0 : index
    %c1_69 = arith.constant 1 : index
    %c4_70 = arith.constant 4 : index
    %c0_71 = arith.constant 0 : index
    %70 = vector.load %arg12[%c0_68, %c1_69, %c4_70, %c0_71] : memref<1x12x12x128xf32, #tpu.memory_space<vmem>>, vector<1x8x8x128xf32>
    %71 = vector.shape_cast %70 : vector<1x8x8x128xf32> to vector<8x8x128xf32>
    %72 = vector.shape_cast %71 : vector<8x8x128xf32> to vector<64x128xf32>
    %73 = tpu.concatenate %72, %72 in 1 : vector<64x128xf32>, vector<64x128xf32> -> vector<64x256xf32>
    %c5 = arith.constant 5 : index
    %c0_72 = arith.constant 0 : index
    %c0_73 = arith.constant 0 : index
    %74 = vector.load %arg4[%c5, %c0_72, %c0_73] : memref<15x256x128xf32, #tpu.memory_space<vmem>>, vector<1x256x128xf32>
    %75 = vector.shape_cast %74 : vector<1x256x128xf32> to vector<256x128xf32>
    %cst_74 = arith.constant dense<0.000000e+00> : vector<64x128xf32>
    %76 = tpu.matmul %73, %75, %cst_74 {dimension_numbers = #tpu.dot_dimension_numbers<[1], [0], [0], [1], [0, 0, 1, 1], [], []>} : vector<64x256xf32>, vector<256x128xf32>, vector<64x128xf32> -> vector<64x128xf32>
    %77 = arith.addf %69, %76 : vector<64x128xf32>
    %c0_75 = arith.constant 0 : index
    %c2_76 = arith.constant 2 : index
    %c0_77 = arith.constant 0 : index
    %c0_78 = arith.constant 0 : index
    %78 = vector.load %arg12[%c0_75, %c2_76, %c0_77, %c0_78] : memref<1x12x12x128xf32, #tpu.memory_space<vmem>>, vector<1x8x8x128xf32>
    %79 = vector.shape_cast %78 : vector<1x8x8x128xf32> to vector<8x8x128xf32>
    %80 = vector.shape_cast %79 : vector<8x8x128xf32> to vector<64x128xf32>
    %c0_79 = arith.constant 0 : index
    %c2_80 = arith.constant 2 : index
    %c1_81 = arith.constant 1 : index
    %c0_82 = arith.constant 0 : index
    %81 = vector.load %arg12[%c0_79, %c2_80, %c1_81, %c0_82] : memref<1x12x12x128xf32, #tpu.memory_space<vmem>>, vector<1x8x8x128xf32>
    %82 = vector.shape_cast %81 : vector<1x8x8x128xf32> to vector<8x8x128xf32>
    %83 = vector.shape_cast %82 : vector<8x8x128xf32> to vector<64x128xf32>
    %84 = tpu.concatenate %80, %83 in 1 : vector<64x128xf32>, vector<64x128xf32> -> vector<64x256xf32>
    %c6 = arith.constant 6 : index
    %c0_83 = arith.constant 0 : index
    %c0_84 = arith.constant 0 : index
    %85 = vector.load %arg4[%c6, %c0_83, %c0_84] : memref<15x256x128xf32, #tpu.memory_space<vmem>>, vector<1x256x128xf32>
    %86 = vector.shape_cast %85 : vector<1x256x128xf32> to vector<256x128xf32>
    %cst_85 = arith.constant dense<0.000000e+00> : vector<64x128xf32>
    %87 = tpu.matmul %84, %86, %cst_85 {dimension_numbers = #tpu.dot_dimension_numbers<[1], [0], [0], [1], [0, 0, 1, 1], [], []>} : vector<64x256xf32>, vector<256x128xf32>, vector<64x128xf32> -> vector<64x128xf32>
    %88 = arith.addf %77, %87 : vector<64x128xf32>
    %c0_86 = arith.constant 0 : index
    %c2_87 = arith.constant 2 : index
    %c2_88 = arith.constant 2 : index
    %c0_89 = arith.constant 0 : index
    %89 = vector.load %arg12[%c0_86, %c2_87, %c2_88, %c0_89] : memref<1x12x12x128xf32, #tpu.memory_space<vmem>>, vector<1x8x8x128xf32>
    %90 = vector.shape_cast %89 : vector<1x8x8x128xf32> to vector<8x8x128xf32>
    %91 = vector.shape_cast %90 : vector<8x8x128xf32> to vector<64x128xf32>
    %c0_90 = arith.constant 0 : index
    %c2_91 = arith.constant 2 : index
    %c3_92 = arith.constant 3 : index
    %c0_93 = arith.constant 0 : index
    %92 = vector.load %arg12[%c0_90, %c2_91, %c3_92, %c0_93] : memref<1x12x12x128xf32, #tpu.memory_space<vmem>>, vector<1x8x8x128xf32>
    %93 = vector.shape_cast %92 : vector<1x8x8x128xf32> to vector<8x8x128xf32>
    %94 = vector.shape_cast %93 : vector<8x8x128xf32> to vector<64x128xf32>
    %95 = tpu.concatenate %91, %94 in 1 : vector<64x128xf32>, vector<64x128xf32> -> vector<64x256xf32>
    %c7 = arith.constant 7 : index
    %c0_94 = arith.constant 0 : index
    %c0_95 = arith.constant 0 : index
    %96 = vector.load %arg4[%c7, %c0_94, %c0_95] : memref<15x256x128xf32, #tpu.memory_space<vmem>>, vector<1x256x128xf32>
    %97 = vector.shape_cast %96 : vector<1x256x128xf32> to vector<256x128xf32>
    %cst_96 = arith.constant dense<0.000000e+00> : vector<64x128xf32>
    %98 = tpu.matmul %95, %97, %cst_96 {dimension_numbers = #tpu.dot_dimension_numbers<[1], [0], [0], [1], [0, 0, 1, 1], [], []>} : vector<64x256xf32>, vector<256x128xf32>, vector<64x128xf32> -> vector<64x128xf32>
    %99 = arith.addf %88, %98 : vector<64x128xf32>
    %c0_97 = arith.constant 0 : index
    %c2_98 = arith.constant 2 : index
    %c4_99 = arith.constant 4 : index
    %c0_100 = arith.constant 0 : index
    %100 = vector.load %arg12[%c0_97, %c2_98, %c4_99, %c0_100] : memref<1x12x12x128xf32, #tpu.memory_space<vmem>>, vector<1x8x8x128xf32>
    %101 = vector.shape_cast %100 : vector<1x8x8x128xf32> to vector<8x8x128xf32>
    %102 = vector.shape_cast %101 : vector<8x8x128xf32> to vector<64x128xf32>
    %103 = tpu.concatenate %102, %102 in 1 : vector<64x128xf32>, vector<64x128xf32> -> vector<64x256xf32>
    %c8 = arith.constant 8 : index
    %c0_101 = arith.constant 0 : index
    %c0_102 = arith.constant 0 : index
    %104 = vector.load %arg4[%c8, %c0_101, %c0_102] : memref<15x256x128xf32, #tpu.memory_space<vmem>>, vector<1x256x128xf32>
    %105 = vector.shape_cast %104 : vector<1x256x128xf32> to vector<256x128xf32>
    %cst_103 = arith.constant dense<0.000000e+00> : vector<64x128xf32>
    %106 = tpu.matmul %103, %105, %cst_103 {dimension_numbers = #tpu.dot_dimension_numbers<[1], [0], [0], [1], [0, 0, 1, 1], [], []>} : vector<64x256xf32>, vector<256x128xf32>, vector<64x128xf32> -> vector<64x128xf32>
    %107 = arith.addf %99, %106 : vector<64x128xf32>
    %c0_104 = arith.constant 0 : index
    %c3_105 = arith.constant 3 : index
    %c0_106 = arith.constant 0 : index
    %c0_107 = arith.constant 0 : index
    %108 = vector.load %arg12[%c0_104, %c3_105, %c0_106, %c0_107] : memref<1x12x12x128xf32, #tpu.memory_space<vmem>>, vector<1x8x8x128xf32>
    %109 = vector.shape_cast %108 : vector<1x8x8x128xf32> to vector<8x8x128xf32>
    %110 = vector.shape_cast %109 : vector<8x8x128xf32> to vector<64x128xf32>
    %c0_108 = arith.constant 0 : index
    %c3_109 = arith.constant 3 : index
    %c1_110 = arith.constant 1 : index
    %c0_111 = arith.constant 0 : index
    %111 = vector.load %arg12[%c0_108, %c3_109, %c1_110, %c0_111] : memref<1x12x12x128xf32, #tpu.memory_space<vmem>>, vector<1x8x8x128xf32>
    %112 = vector.shape_cast %111 : vector<1x8x8x128xf32> to vector<8x8x128xf32>
    %113 = vector.shape_cast %112 : vector<8x8x128xf32> to vector<64x128xf32>
    %114 = tpu.concatenate %110, %113 in 1 : vector<64x128xf32>, vector<64x128xf32> -> vector<64x256xf32>
    %c9 = arith.constant 9 : index
    %c0_112 = arith.constant 0 : index
    %c0_113 = arith.constant 0 : index
    %115 = vector.load %arg4[%c9, %c0_112, %c0_113] : memref<15x256x128xf32, #tpu.memory_space<vmem>>, vector<1x256x128xf32>
    %116 = vector.shape_cast %115 : vector<1x256x128xf32> to vector<256x128xf32>
    %cst_114 = arith.constant dense<0.000000e+00> : vector<64x128xf32>
    %117 = tpu.matmul %114, %116, %cst_114 {dimension_numbers = #tpu.dot_dimension_numbers<[1], [0], [0], [1], [0, 0, 1, 1], [], []>} : vector<64x256xf32>, vector<256x128xf32>, vector<64x128xf32> -> vector<64x128xf32>
    %118 = arith.addf %107, %117 : vector<64x128xf32>
    %c0_115 = arith.constant 0 : index
    %c3_116 = arith.constant 3 : index
    %c2_117 = arith.constant 2 : index
    %c0_118 = arith.constant 0 : index
    %119 = vector.load %arg12[%c0_115, %c3_116, %c2_117, %c0_118] : memref<1x12x12x128xf32, #tpu.memory_space<vmem>>, vector<1x8x8x128xf32>
    %120 = vector.shape_cast %119 : vector<1x8x8x128xf32> to vector<8x8x128xf32>
    %121 = vector.shape_cast %120 : vector<8x8x128xf32> to vector<64x128xf32>
    %c0_119 = arith.constant 0 : index
    %c3_120 = arith.constant 3 : index
    %c3_121 = arith.constant 3 : index
    %c0_122 = arith.constant 0 : index
    %122 = vector.load %arg12[%c0_119, %c3_120, %c3_121, %c0_122] : memref<1x12x12x128xf32, #tpu.memory_space<vmem>>, vector<1x8x8x128xf32>
    %123 = vector.shape_cast %122 : vector<1x8x8x128xf32> to vector<8x8x128xf32>
    %124 = vector.shape_cast %123 : vector<8x8x128xf32> to vector<64x128xf32>
    %125 = tpu.concatenate %121, %124 in 1 : vector<64x128xf32>, vector<64x128xf32> -> vector<64x256xf32>
    %c10 = arith.constant 10 : index
    %c0_123 = arith.constant 0 : index
    %c0_124 = arith.constant 0 : index
    %126 = vector.load %arg4[%c10, %c0_123, %c0_124] : memref<15x256x128xf32, #tpu.memory_space<vmem>>, vector<1x256x128xf32>
    %127 = vector.shape_cast %126 : vector<1x256x128xf32> to vector<256x128xf32>
    %cst_125 = arith.constant dense<0.000000e+00> : vector<64x128xf32>
    %128 = tpu.matmul %125, %127, %cst_125 {dimension_numbers = #tpu.dot_dimension_numbers<[1], [0], [0], [1], [0, 0, 1, 1], [], []>} : vector<64x256xf32>, vector<256x128xf32>, vector<64x128xf32> -> vector<64x128xf32>
    %129 = arith.addf %118, %128 : vector<64x128xf32>
    %c0_126 = arith.constant 0 : index
    %c3_127 = arith.constant 3 : index
    %c4_128 = arith.constant 4 : index
    %c0_129 = arith.constant 0 : index
    %130 = vector.load %arg12[%c0_126, %c3_127, %c4_128, %c0_129] : memref<1x12x12x128xf32, #tpu.memory_space<vmem>>, vector<1x8x8x128xf32>
    %131 = vector.shape_cast %130 : vector<1x8x8x128xf32> to vector<8x8x128xf32>
    %132 = vector.shape_cast %131 : vector<8x8x128xf32> to vector<64x128xf32>
    %133 = tpu.concatenate %132, %132 in 1 : vector<64x128xf32>, vector<64x128xf32> -> vector<64x256xf32>
    %c11 = arith.constant 11 : index
    %c0_130 = arith.constant 0 : index
    %c0_131 = arith.constant 0 : index
    %134 = vector.load %arg4[%c11, %c0_130, %c0_131] : memref<15x256x128xf32, #tpu.memory_space<vmem>>, vector<1x256x128xf32>
    %135 = vector.shape_cast %134 : vector<1x256x128xf32> to vector<256x128xf32>
    %cst_132 = arith.constant dense<0.000000e+00> : vector<64x128xf32>
    %136 = tpu.matmul %133, %135, %cst_132 {dimension_numbers = #tpu.dot_dimension_numbers<[1], [0], [0], [1], [0, 0, 1, 1], [], []>} : vector<64x256xf32>, vector<256x128xf32>, vector<64x128xf32> -> vector<64x128xf32>
    %137 = arith.addf %129, %136 : vector<64x128xf32>
    %c0_133 = arith.constant 0 : index
    %c4_134 = arith.constant 4 : index
    %c0_135 = arith.constant 0 : index
    %c0_136 = arith.constant 0 : index
    %138 = vector.load %arg12[%c0_133, %c4_134, %c0_135, %c0_136] : memref<1x12x12x128xf32, #tpu.memory_space<vmem>>, vector<1x8x8x128xf32>
    %139 = vector.shape_cast %138 : vector<1x8x8x128xf32> to vector<8x8x128xf32>
    %140 = vector.shape_cast %139 : vector<8x8x128xf32> to vector<64x128xf32>
    %c0_137 = arith.constant 0 : index
    %c4_138 = arith.constant 4 : index
    %c1_139 = arith.constant 1 : index
    %c0_140 = arith.constant 0 : index
    %141 = vector.load %arg12[%c0_137, %c4_138, %c1_139, %c0_140] : memref<1x12x12x128xf32, #tpu.memory_space<vmem>>, vector<1x8x8x128xf32>
    %142 = vector.shape_cast %141 : vector<1x8x8x128xf32> to vector<8x8x128xf32>
    %143 = vector.shape_cast %142 : vector<8x8x128xf32> to vector<64x128xf32>
    %144 = tpu.concatenate %140, %143 in 1 : vector<64x128xf32>, vector<64x128xf32> -> vector<64x256xf32>
    %c12 = arith.constant 12 : index
    %c0_141 = arith.constant 0 : index
    %c0_142 = arith.constant 0 : index
    %145 = vector.load %arg4[%c12, %c0_141, %c0_142] : memref<15x256x128xf32, #tpu.memory_space<vmem>>, vector<1x256x128xf32>
    %146 = vector.shape_cast %145 : vector<1x256x128xf32> to vector<256x128xf32>
    %cst_143 = arith.constant dense<0.000000e+00> : vector<64x128xf32>
    %147 = tpu.matmul %144, %146, %cst_143 {dimension_numbers = #tpu.dot_dimension_numbers<[1], [0], [0], [1], [0, 0, 1, 1], [], []>} : vector<64x256xf32>, vector<256x128xf32>, vector<64x128xf32> -> vector<64x128xf32>
    %148 = arith.addf %137, %147 : vector<64x128xf32>
    %c0_144 = arith.constant 0 : index
    %c4_145 = arith.constant 4 : index
    %c2_146 = arith.constant 2 : index
    %c0_147 = arith.constant 0 : index
    %149 = vector.load %arg12[%c0_144, %c4_145, %c2_146, %c0_147] : memref<1x12x12x128xf32, #tpu.memory_space<vmem>>, vector<1x8x8x128xf32>
    %150 = vector.shape_cast %149 : vector<1x8x8x128xf32> to vector<8x8x128xf32>
    %151 = vector.shape_cast %150 : vector<8x8x128xf32> to vector<64x128xf32>
    %c0_148 = arith.constant 0 : index
    %c4_149 = arith.constant 4 : index
    %c3_150 = arith.constant 3 : index
    %c0_151 = arith.constant 0 : index
    %152 = vector.load %arg12[%c0_148, %c4_149, %c3_150, %c0_151] : memref<1x12x12x128xf32, #tpu.memory_space<vmem>>, vector<1x8x8x128xf32>
    %153 = vector.shape_cast %152 : vector<1x8x8x128xf32> to vector<8x8x128xf32>
    %154 = vector.shape_cast %153 : vector<8x8x128xf32> to vector<64x128xf32>
    %155 = tpu.concatenate %151, %154 in 1 : vector<64x128xf32>, vector<64x128xf32> -> vector<64x256xf32>
    %c13 = arith.constant 13 : index
    %c0_152 = arith.constant 0 : index
    %c0_153 = arith.constant 0 : index
    %156 = vector.load %arg4[%c13, %c0_152, %c0_153] : memref<15x256x128xf32, #tpu.memory_space<vmem>>, vector<1x256x128xf32>
    %157 = vector.shape_cast %156 : vector<1x256x128xf32> to vector<256x128xf32>
    %cst_154 = arith.constant dense<0.000000e+00> : vector<64x128xf32>
    %158 = tpu.matmul %155, %157, %cst_154 {dimension_numbers = #tpu.dot_dimension_numbers<[1], [0], [0], [1], [0, 0, 1, 1], [], []>} : vector<64x256xf32>, vector<256x128xf32>, vector<64x128xf32> -> vector<64x128xf32>
    %159 = arith.addf %148, %158 : vector<64x128xf32>
    %c0_155 = arith.constant 0 : index
    %c4_156 = arith.constant 4 : index
    %c4_157 = arith.constant 4 : index
    %c0_158 = arith.constant 0 : index
    %160 = vector.load %arg12[%c0_155, %c4_156, %c4_157, %c0_158] : memref<1x12x12x128xf32, #tpu.memory_space<vmem>>, vector<1x8x8x128xf32>
    %161 = vector.shape_cast %160 : vector<1x8x8x128xf32> to vector<8x8x128xf32>
    %162 = vector.shape_cast %161 : vector<8x8x128xf32> to vector<64x128xf32>
    %163 = tpu.concatenate %162, %162 in 1 : vector<64x128xf32>, vector<64x128xf32> -> vector<64x256xf32>
    %c14 = arith.constant 14 : index
    %c0_159 = arith.constant 0 : index
    %c0_160 = arith.constant 0 : index
    %164 = vector.load %arg4[%c14, %c0_159, %c0_160] : memref<15x256x128xf32, #tpu.memory_space<vmem>>, vector<1x256x128xf32>
    %165 = vector.shape_cast %164 : vector<1x256x128xf32> to vector<256x128xf32>
    %cst_161 = arith.constant dense<0.000000e+00> : vector<64x128xf32>
    %166 = tpu.matmul %163, %165, %cst_161 {dimension_numbers = #tpu.dot_dimension_numbers<[1], [0], [0], [1], [0, 0, 1, 1], [], []>} : vector<64x256xf32>, vector<256x128xf32>, vector<64x128xf32> -> vector<64x128xf32>
    %167 = arith.addf %159, %166 : vector<64x128xf32>
    %c0_162 = arith.constant 0 : index
    %c0_163 = arith.constant 0 : index
    %168 = vector.load %arg13[%c0_162, %c0_163] : memref<64x128xf32, #tpu.memory_space<vmem>>, vector<64x128xf32>
    tpu.vector_store %arg13[%c0_162, %c0_163], %167 {strides = array<i32>} : memref<64x128xf32, #tpu.memory_space<vmem>>, vector<64x128xf32>,
    %c0_164 = arith.constant 0 : index
    %c0_165 = arith.constant 0 : index
    %169 = tpu.strided_load %arg13[%c0_164, %c0_165] {strides = array<i32: 2, 1>} : memref<64x128xf32, #tpu.memory_space<vmem>>, vector<32x128xf32>
    %c1_166 = arith.constant 1 : index
    %c0_167 = arith.constant 0 : index
    %170 = tpu.strided_load %arg13[%c1_166, %c0_167] {strides = array<i32: 2, 1>} : memref<64x128xf32, #tpu.memory_space<vmem>>, vector<32x128xf32>
    %171 = arith.maximumf %169, %170 : vector<32x128xf32>
    %172 = vector.shape_cast %171 : vector<32x128xf32> to vector<4x8x128xf32>
    %173 = vector.extract_strided_slice %172 {offsets = [0, 0, 0], sizes = [4, 4, 128], strides = [1, 1, 1]} : vector<4x8x128xf32> to vector<4x4x128xf32>
    %174 = vector.extract_strided_slice %172 {offsets = [0, 4, 0], sizes = [4, 4, 128], strides = [1, 1, 1]} : vector<4x8x128xf32> to vector<4x4x128xf32>
    %175 = arith.maximumf %173, %174 : vector<4x4x128xf32>
    %c0_168 = arith.constant 0 : index
    %c0_169 = arith.constant 0 : index
    %176 = vector.load %arg5[%c0_168, %c0_169] : memref<1x128xf32, #tpu.memory_space<vmem>>, vector<1x128xf32>
    %177 = vector.shape_cast %176 : vector<1x128xf32> to vector<1x1x128xf32>
    %178 = vector.broadcast %177 : vector<1x1x128xf32> to vector<4x4x128xf32>
    %179 = arith.addf %175, %178 : vector<4x4x128xf32>
    %cst_170 = arith.constant 0.000000e+00 : f32
    %180 = vector.broadcast %cst_170 : f32 to vector<4x4x128xf32>
    %181 = arith.maximumf %179, %180 : vector<4x4x128xf32>
    %182 = vector.shape_cast %181 : vector<4x4x128xf32> to vector<1x4x4x128xf32>
    %c0_171 = arith.constant 0 : index
    %c0_172 = arith.constant 0 : index
    %c0_173 = arith.constant 0 : index
    %c0_174 = arith.constant 0 : index
    %183 = vector.load %arg14[%c0_171, %c0_172, %c0_173, %c0_174] : memref<1x4x4x128xf32, #tpu.memory_space<vmem>>, vector<1x4x4x128xf32>
    tpu.vector_store %arg14[%c0_171, %c0_172, %c0_173, %c0_174], %182 {strides = array<i32>} : memref<1x4x4x128xf32, #tpu.memory_space<vmem>>, vector<1x4x4x128xf32>,
    %cst_175 = arith.constant 0.000000e+00 : f32
    %184 = vector.broadcast %cst_175 : f32 to vector<1x128xf32>
    %c0_176 = arith.constant 0 : index
    %c0_177 = arith.constant 0 : index
    %c0_178 = arith.constant 0 : index
    %c0_179 = arith.constant 0 : index
    %185 = vector.load %arg14[%c0_176, %c0_177, %c0_178, %c0_179] : memref<1x4x4x128xf32, #tpu.memory_space<vmem>>, vector<1x1x1x128xf32>
    %186 = vector.shape_cast %185 : vector<1x1x1x128xf32> to vector<1x128xf32>
    %c0_180 = arith.constant 0 : index
    %c0_181 = arith.constant 0 : index
    %c0_182 = arith.constant 0 : index
    %187 = vector.load %arg6[%c0_180, %c0_181, %c0_182] : memref<16x128x128xf32, #tpu.memory_space<vmem>>, vector<1x128x128xf32>
    %188 = vector.shape_cast %187 : vector<1x128x128xf32> to vector<128x128xf32>
    %cst_183 = arith.constant dense<0.000000e+00> : vector<1x128xf32>
    %189 = tpu.matmul %186, %188, %cst_183 {dimension_numbers = #tpu.dot_dimension_numbers<[1], [0], [0], [1], [0, 0, 1, 1], [], []>} : vector<1x128xf32>, vector<128x128xf32>, vector<1x128xf32> -> vector<1x128xf32>
    %190 = arith.addf %184, %189 : vector<1x128xf32>
    %c0_184 = arith.constant 0 : index
    %c0_185 = arith.constant 0 : index
    %c1_186 = arith.constant 1 : index
    %c0_187 = arith.constant 0 : index
    %191 = vector.load %arg14[%c0_184, %c0_185, %c1_186, %c0_187] : memref<1x4x4x128xf32, #tpu.memory_space<vmem>>, vector<1x1x1x128xf32>
    %192 = vector.shape_cast %191 : vector<1x1x1x128xf32> to vector<1x128xf32>
    %c1_188 = arith.constant 1 : index
    %c0_189 = arith.constant 0 : index
    %c0_190 = arith.constant 0 : index
    %193 = vector.load %arg6[%c1_188, %c0_189, %c0_190] : memref<16x128x128xf32, #tpu.memory_space<vmem>>, vector<1x128x128xf32>
    %194 = vector.shape_cast %193 : vector<1x128x128xf32> to vector<128x128xf32>
    %cst_191 = arith.constant dense<0.000000e+00> : vector<1x128xf32>
    %195 = tpu.matmul %192, %194, %cst_191 {dimension_numbers = #tpu.dot_dimension_numbers<[1], [0], [0], [1], [0, 0, 1, 1], [], []>} : vector<1x128xf32>, vector<128x128xf32>, vector<1x128xf32> -> vector<1x128xf32>
    %196 = arith.addf %190, %195 : vector<1x128xf32>
    %c0_192 = arith.constant 0 : index
    %c0_193 = arith.constant 0 : index
    %c2_194 = arith.constant 2 : index
    %c0_195 = arith.constant 0 : index
    %197 = vector.load %arg14[%c0_192, %c0_193, %c2_194, %c0_195] : memref<1x4x4x128xf32, #tpu.memory_space<vmem>>, vector<1x1x1x128xf32>
    %198 = vector.shape_cast %197 : vector<1x1x1x128xf32> to vector<1x128xf32>
    %c2_196 = arith.constant 2 : index
    %c0_197 = arith.constant 0 : index
    %c0_198 = arith.constant 0 : index
    %199 = vector.load %arg6[%c2_196, %c0_197, %c0_198] : memref<16x128x128xf32, #tpu.memory_space<vmem>>, vector<1x128x128xf32>
    %200 = vector.shape_cast %199 : vector<1x128x128xf32> to vector<128x128xf32>
    %cst_199 = arith.constant dense<0.000000e+00> : vector<1x128xf32>
    %201 = tpu.matmul %198, %200, %cst_199 {dimension_numbers = #tpu.dot_dimension_numbers<[1], [0], [0], [1], [0, 0, 1, 1], [], []>} : vector<1x128xf32>, vector<128x128xf32>, vector<1x128xf32> -> vector<1x128xf32>
    %202 = arith.addf %196, %201 : vector<1x128xf32>
    %c0_200 = arith.constant 0 : index
    %c0_201 = arith.constant 0 : index
    %c3_202 = arith.constant 3 : index
    %c0_203 = arith.constant 0 : index
    %203 = vector.load %arg14[%c0_200, %c0_201, %c3_202, %c0_203] : memref<1x4x4x128xf32, #tpu.memory_space<vmem>>, vector<1x1x1x128xf32>
    %204 = vector.shape_cast %203 : vector<1x1x1x128xf32> to vector<1x128xf32>
    %c3_204 = arith.constant 3 : index
    %c0_205 = arith.constant 0 : index
    %c0_206 = arith.constant 0 : index
    %205 = vector.load %arg6[%c3_204, %c0_205, %c0_206] : memref<16x128x128xf32, #tpu.memory_space<vmem>>, vector<1x128x128xf32>
    %206 = vector.shape_cast %205 : vector<1x128x128xf32> to vector<128x128xf32>
    %cst_207 = arith.constant dense<0.000000e+00> : vector<1x128xf32>
    %207 = tpu.matmul %204, %206, %cst_207 {dimension_numbers = #tpu.dot_dimension_numbers<[1], [0], [0], [1], [0, 0, 1, 1], [], []>} : vector<1x128xf32>, vector<128x128xf32>, vector<1x128xf32> -> vector<1x128xf32>
    %208 = arith.addf %202, %207 : vector<1x128xf32>
    %c0_208 = arith.constant 0 : index
    %c1_209 = arith.constant 1 : index
    %c0_210 = arith.constant 0 : index
    %c0_211 = arith.constant 0 : index
    %209 = vector.load %arg14[%c0_208, %c1_209, %c0_210, %c0_211] : memref<1x4x4x128xf32, #tpu.memory_space<vmem>>, vector<1x1x1x128xf32>
    %210 = vector.shape_cast %209 : vector<1x1x1x128xf32> to vector<1x128xf32>
    %c4_212 = arith.constant 4 : index
    %c0_213 = arith.constant 0 : index
    %c0_214 = arith.constant 0 : index
    %211 = vector.load %arg6[%c4_212, %c0_213, %c0_214] : memref<16x128x128xf32, #tpu.memory_space<vmem>>, vector<1x128x128xf32>
    %212 = vector.shape_cast %211 : vector<1x128x128xf32> to vector<128x128xf32>
    %cst_215 = arith.constant dense<0.000000e+00> : vector<1x128xf32>
    %213 = tpu.matmul %210, %212, %cst_215 {dimension_numbers = #tpu.dot_dimension_numbers<[1], [0], [0], [1], [0, 0, 1, 1], [], []>} : vector<1x128xf32>, vector<128x128xf32>, vector<1x128xf32> -> vector<1x128xf32>
    %214 = arith.addf %208, %213 : vector<1x128xf32>
    %c0_216 = arith.constant 0 : index
    %c1_217 = arith.constant 1 : index
    %c1_218 = arith.constant 1 : index
    %c0_219 = arith.constant 0 : index
    %215 = vector.load %arg14[%c0_216, %c1_217, %c1_218, %c0_219] : memref<1x4x4x128xf32, #tpu.memory_space<vmem>>, vector<1x1x1x128xf32>
    %216 = vector.shape_cast %215 : vector<1x1x1x128xf32> to vector<1x128xf32>
    %c5_220 = arith.constant 5 : index
    %c0_221 = arith.constant 0 : index
    %c0_222 = arith.constant 0 : index
    %217 = vector.load %arg6[%c5_220, %c0_221, %c0_222] : memref<16x128x128xf32, #tpu.memory_space<vmem>>, vector<1x128x128xf32>
    %218 = vector.shape_cast %217 : vector<1x128x128xf32> to vector<128x128xf32>
    %cst_223 = arith.constant dense<0.000000e+00> : vector<1x128xf32>
    %219 = tpu.matmul %216, %218, %cst_223 {dimension_numbers = #tpu.dot_dimension_numbers<[1], [0], [0], [1], [0, 0, 1, 1], [], []>} : vector<1x128xf32>, vector<128x128xf32>, vector<1x128xf32> -> vector<1x128xf32>
    %220 = arith.addf %214, %219 : vector<1x128xf32>
    %c0_224 = arith.constant 0 : index
    %c1_225 = arith.constant 1 : index
    %c2_226 = arith.constant 2 : index
    %c0_227 = arith.constant 0 : index
    %221 = vector.load %arg14[%c0_224, %c1_225, %c2_226, %c0_227] : memref<1x4x4x128xf32, #tpu.memory_space<vmem>>, vector<1x1x1x128xf32>
    %222 = vector.shape_cast %221 : vector<1x1x1x128xf32> to vector<1x128xf32>
    %c6_228 = arith.constant 6 : index
    %c0_229 = arith.constant 0 : index
    %c0_230 = arith.constant 0 : index
    %223 = vector.load %arg6[%c6_228, %c0_229, %c0_230] : memref<16x128x128xf32, #tpu.memory_space<vmem>>, vector<1x128x128xf32>
    %224 = vector.shape_cast %223 : vector<1x128x128xf32> to vector<128x128xf32>
    %cst_231 = arith.constant dense<0.000000e+00> : vector<1x128xf32>
    %225 = tpu.matmul %222, %224, %cst_231 {dimension_numbers = #tpu.dot_dimension_numbers<[1], [0], [0], [1], [0, 0, 1, 1], [], []>} : vector<1x128xf32>, vector<128x128xf32>, vector<1x128xf32> -> vector<1x128xf32>
    %226 = arith.addf %220, %225 : vector<1x128xf32>
    %c0_232 = arith.constant 0 : index
    %c1_233 = arith.constant 1 : index
    %c3_234 = arith.constant 3 : index
    %c0_235 = arith.constant 0 : index
    %227 = vector.load %arg14[%c0_232, %c1_233, %c3_234, %c0_235] : memref<1x4x4x128xf32, #tpu.memory_space<vmem>>, vector<1x1x1x128xf32>
    %228 = vector.shape_cast %227 : vector<1x1x1x128xf32> to vector<1x128xf32>
    %c7_236 = arith.constant 7 : index
    %c0_237 = arith.constant 0 : index
    %c0_238 = arith.constant 0 : index
    %229 = vector.load %arg6[%c7_236, %c0_237, %c0_238] : memref<16x128x128xf32, #tpu.memory_space<vmem>>, vector<1x128x128xf32>
    %230 = vector.shape_cast %229 : vector<1x128x128xf32> to vector<128x128xf32>
    %cst_239 = arith.constant dense<0.000000e+00> : vector<1x128xf32>
    %231 = tpu.matmul %228, %230, %cst_239 {dimension_numbers = #tpu.dot_dimension_numbers<[1], [0], [0], [1], [0, 0, 1, 1], [], []>} : vector<1x128xf32>, vector<128x128xf32>, vector<1x128xf32> -> vector<1x128xf32>
    %232 = arith.addf %226, %231 : vector<1x128xf32>
    %c0_240 = arith.constant 0 : index
    %c2_241 = arith.constant 2 : index
    %c0_242 = arith.constant 0 : index
    %c0_243 = arith.constant 0 : index
    %233 = vector.load %arg14[%c0_240, %c2_241, %c0_242, %c0_243] : memref<1x4x4x128xf32, #tpu.memory_space<vmem>>, vector<1x1x1x128xf32>
    %234 = vector.shape_cast %233 : vector<1x1x1x128xf32> to vector<1x128xf32>
    %c8_244 = arith.constant 8 : index
    %c0_245 = arith.constant 0 : index
    %c0_246 = arith.constant 0 : index
    %235 = vector.load %arg6[%c8_244, %c0_245, %c0_246] : memref<16x128x128xf32, #tpu.memory_space<vmem>>, vector<1x128x128xf32>
    %236 = vector.shape_cast %235 : vector<1x128x128xf32> to vector<128x128xf32>
    %cst_247 = arith.constant dense<0.000000e+00> : vector<1x128xf32>
    %237 = tpu.matmul %234, %236, %cst_247 {dimension_numbers = #tpu.dot_dimension_numbers<[1], [0], [0], [1], [0, 0, 1, 1], [], []>} : vector<1x128xf32>, vector<128x128xf32>, vector<1x128xf32> -> vector<1x128xf32>
    %238 = arith.addf %232, %237 : vector<1x128xf32>
    %c0_248 = arith.constant 0 : index
    %c2_249 = arith.constant 2 : index
    %c1_250 = arith.constant 1 : index
    %c0_251 = arith.constant 0 : index
    %239 = vector.load %arg14[%c0_248, %c2_249, %c1_250, %c0_251] : memref<1x4x4x128xf32, #tpu.memory_space<vmem>>, vector<1x1x1x128xf32>
    %240 = vector.shape_cast %239 : vector<1x1x1x128xf32> to vector<1x128xf32>
    %c9_252 = arith.constant 9 : index
    %c0_253 = arith.constant 0 : index
    %c0_254 = arith.constant 0 : index
    %241 = vector.load %arg6[%c9_252, %c0_253, %c0_254] : memref<16x128x128xf32, #tpu.memory_space<vmem>>, vector<1x128x128xf32>
    %242 = vector.shape_cast %241 : vector<1x128x128xf32> to vector<128x128xf32>
    %cst_255 = arith.constant dense<0.000000e+00> : vector<1x128xf32>
    %243 = tpu.matmul %240, %242, %cst_255 {dimension_numbers = #tpu.dot_dimension_numbers<[1], [0], [0], [1], [0, 0, 1, 1], [], []>} : vector<1x128xf32>, vector<128x128xf32>, vector<1x128xf32> -> vector<1x128xf32>
    %244 = arith.addf %238, %243 : vector<1x128xf32>
    %c0_256 = arith.constant 0 : index
    %c2_257 = arith.constant 2 : index
    %c2_258 = arith.constant 2 : index
    %c0_259 = arith.constant 0 : index
    %245 = vector.load %arg14[%c0_256, %c2_257, %c2_258, %c0_259] : memref<1x4x4x128xf32, #tpu.memory_space<vmem>>, vector<1x1x1x128xf32>
    %246 = vector.shape_cast %245 : vector<1x1x1x128xf32> to vector<1x128xf32>
    %c10_260 = arith.constant 10 : index
    %c0_261 = arith.constant 0 : index
    %c0_262 = arith.constant 0 : index
    %247 = vector.load %arg6[%c10_260, %c0_261, %c0_262] : memref<16x128x128xf32, #tpu.memory_space<vmem>>, vector<1x128x128xf32>
    %248 = vector.shape_cast %247 : vector<1x128x128xf32> to vector<128x128xf32>
    %cst_263 = arith.constant dense<0.000000e+00> : vector<1x128xf32>
    %249 = tpu.matmul %246, %248, %cst_263 {dimension_numbers = #tpu.dot_dimension_numbers<[1], [0], [0], [1], [0, 0, 1, 1], [], []>} : vector<1x128xf32>, vector<128x128xf32>, vector<1x128xf32> -> vector<1x128xf32>
    %250 = arith.addf %244, %249 : vector<1x128xf32>
    %c0_264 = arith.constant 0 : index
    %c2_265 = arith.constant 2 : index
    %c3_266 = arith.constant 3 : index
    %c0_267 = arith.constant 0 : index
    %251 = vector.load %arg14[%c0_264, %c2_265, %c3_266, %c0_267] : memref<1x4x4x128xf32, #tpu.memory_space<vmem>>, vector<1x1x1x128xf32>
    %252 = vector.shape_cast %251 : vector<1x1x1x128xf32> to vector<1x128xf32>
    %c11_268 = arith.constant 11 : index
    %c0_269 = arith.constant 0 : index
    %c0_270 = arith.constant 0 : index
    %253 = vector.load %arg6[%c11_268, %c0_269, %c0_270] : memref<16x128x128xf32, #tpu.memory_space<vmem>>, vector<1x128x128xf32>
    %254 = vector.shape_cast %253 : vector<1x128x128xf32> to vector<128x128xf32>
    %cst_271 = arith.constant dense<0.000000e+00> : vector<1x128xf32>
    %255 = tpu.matmul %252, %254, %cst_271 {dimension_numbers = #tpu.dot_dimension_numbers<[1], [0], [0], [1], [0, 0, 1, 1], [], []>} : vector<1x128xf32>, vector<128x128xf32>, vector<1x128xf32> -> vector<1x128xf32>
    %256 = arith.addf %250, %255 : vector<1x128xf32>
    %c0_272 = arith.constant 0 : index
    %c3_273 = arith.constant 3 : index
    %c0_274 = arith.constant 0 : index
    %c0_275 = arith.constant 0 : index
    %257 = vector.load %arg14[%c0_272, %c3_273, %c0_274, %c0_275] : memref<1x4x4x128xf32, #tpu.memory_space<vmem>>, vector<1x1x1x128xf32>
    %258 = vector.shape_cast %257 : vector<1x1x1x128xf32> to vector<1x128xf32>
    %c12_276 = arith.constant 12 : index
    %c0_277 = arith.constant 0 : index
    %c0_278 = arith.constant 0 : index
    %259 = vector.load %arg6[%c12_276, %c0_277, %c0_278] : memref<16x128x128xf32, #tpu.memory_space<vmem>>, vector<1x128x128xf32>
    %260 = vector.shape_cast %259 : vector<1x128x128xf32> to vector<128x128xf32>
    %cst_279 = arith.constant dense<0.000000e+00> : vector<1x128xf32>
    %261 = tpu.matmul %258, %260, %cst_279 {dimension_numbers = #tpu.dot_dimension_numbers<[1], [0], [0], [1], [0, 0, 1, 1], [], []>} : vector<1x128xf32>, vector<128x128xf32>, vector<1x128xf32> -> vector<1x128xf32>
    %262 = arith.addf %256, %261 : vector<1x128xf32>
    %c0_280 = arith.constant 0 : index
    %c3_281 = arith.constant 3 : index
    %c1_282 = arith.constant 1 : index
    %c0_283 = arith.constant 0 : index
    %263 = vector.load %arg14[%c0_280, %c3_281, %c1_282, %c0_283] : memref<1x4x4x128xf32, #tpu.memory_space<vmem>>, vector<1x1x1x128xf32>
    %264 = vector.shape_cast %263 : vector<1x1x1x128xf32> to vector<1x128xf32>
    %c13_284 = arith.constant 13 : index
    %c0_285 = arith.constant 0 : index
    %c0_286 = arith.constant 0 : index
    %265 = vector.load %arg6[%c13_284, %c0_285, %c0_286] : memref<16x128x128xf32, #tpu.memory_space<vmem>>, vector<1x128x128xf32>
    %266 = vector.shape_cast %265 : vector<1x128x128xf32> to vector<128x128xf32>
    %cst_287 = arith.constant dense<0.000000e+00> : vector<1x128xf32>
    %267 = tpu.matmul %264, %266, %cst_287 {dimension_numbers = #tpu.dot_dimension_numbers<[1], [0], [0], [1], [0, 0, 1, 1], [], []>} : vector<1x128xf32>, vector<128x128xf32>, vector<1x128xf32> -> vector<1x128xf32>
    %268 = arith.addf %262, %267 : vector<1x128xf32>
    %c0_288 = arith.constant 0 : index
    %c3_289 = arith.constant 3 : index
    %c2_290 = arith.constant 2 : index
    %c0_291 = arith.constant 0 : index
    %269 = vector.load %arg14[%c0_288, %c3_289, %c2_290, %c0_291] : memref<1x4x4x128xf32, #tpu.memory_space<vmem>>, vector<1x1x1x128xf32>
    %270 = vector.shape_cast %269 : vector<1x1x1x128xf32> to vector<1x128xf32>
    %c14_292 = arith.constant 14 : index
    %c0_293 = arith.constant 0 : index
    %c0_294 = arith.constant 0 : index
    %271 = vector.load %arg6[%c14_292, %c0_293, %c0_294] : memref<16x128x128xf32, #tpu.memory_space<vmem>>, vector<1x128x128xf32>
    %272 = vector.shape_cast %271 : vector<1x128x128xf32> to vector<128x128xf32>
    %cst_295 = arith.constant dense<0.000000e+00> : vector<1x128xf32>
    %273 = tpu.matmul %270, %272, %cst_295 {dimension_numbers = #tpu.dot_dimension_numbers<[1], [0], [0], [1], [0, 0, 1, 1], [], []>} : vector<1x128xf32>, vector<128x128xf32>, vector<1x128xf32> -> vector<1x128xf32>
    %274 = arith.addf %268, %273 : vector<1x128xf32>
    %c0_296 = arith.constant 0 : index
    %c3_297 = arith.constant 3 : index
    %c3_298 = arith.constant 3 : index
    %c0_299 = arith.constant 0 : index
    %275 = vector.load %arg14[%c0_296, %c3_297, %c3_298, %c0_299] : memref<1x4x4x128xf32, #tpu.memory_space<vmem>>, vector<1x1x1x128xf32>
    %276 = vector.shape_cast %275 : vector<1x1x1x128xf32> to vector<1x128xf32>
    %c15 = arith.constant 15 : index
    %c0_300 = arith.constant 0 : index
    %c0_301 = arith.constant 0 : index
    %277 = vector.load %arg6[%c15, %c0_300, %c0_301] : memref<16x128x128xf32, #tpu.memory_space<vmem>>, vector<1x128x128xf32>
    %278 = vector.shape_cast %277 : vector<1x128x128xf32> to vector<128x128xf32>
    %cst_302 = arith.constant dense<0.000000e+00> : vector<1x128xf32>
    %279 = tpu.matmul %276, %278, %cst_302 {dimension_numbers = #tpu.dot_dimension_numbers<[1], [0], [0], [1], [0, 0, 1, 1], [], []>} : vector<1x128xf32>, vector<128x128xf32>, vector<1x128xf32> -> vector<1x128xf32>
    %280 = arith.addf %274, %279 : vector<1x128xf32>
    %c0_303 = arith.constant 0 : index
    %c0_304 = arith.constant 0 : index
    %281 = vector.load %arg7[%c0_303, %c0_304] : memref<1x128xf32, #tpu.memory_space<vmem>>, vector<1x128xf32>
    %282 = arith.addf %280, %281 : vector<1x128xf32>
    %cst_305 = arith.constant 0.000000e+00 : f32
    %283 = vector.broadcast %cst_305 : f32 to vector<1x128xf32>
    %284 = arith.maximumf %282, %283 : vector<1x128xf32>
    %c0_306 = arith.constant 0 : index
    %c0_307 = arith.constant 0 : index
    %285 = vector.load %arg8[%c0_306, %c0_307] : memref<128x128xf32, #tpu.memory_space<vmem>>, vector<128x128xf32>
    %cst_308 = arith.constant dense<0.000000e+00> : vector<1x128xf32>
    %286 = tpu.matmul %284, %285, %cst_308 {dimension_numbers = #tpu.dot_dimension_numbers<[1], [0], [0], [1], [0, 0, 1, 1], [], []>} : vector<1x128xf32>, vector<128x128xf32>, vector<1x128xf32> -> vector<1x128xf32>
    %c0_309 = arith.constant 0 : index
    %c0_310 = arith.constant 0 : index
    %287 = vector.load %arg9[%c0_309, %c0_310] : memref<1x128xf32, #tpu.memory_space<vmem>>, vector<1x128xf32>
    %288 = arith.addf %286, %287 : vector<1x128xf32>
    %cst_311 = arith.constant dense<0xFF800000> : vector<1xf32>
    %289 = vector.multi_reduction <maximumf>, %288, %cst_311 [1] : vector<1x128xf32> to vector<1xf32>
    %290 = vector.shape_cast %289 : vector<1xf32> to vector<1x1xf32>
    %291 = vector.broadcast %290 : vector<1x1xf32> to vector<1x128xf32>
    %292 = arith.subf %288, %291 : vector<1x128xf32>
    %293 = math.exp %292 : vector<1x128xf32>
    %cst_312 = arith.constant dense<0.000000e+00> : vector<1xf32>
    %294 = vector.multi_reduction <add>, %293, %cst_312 [1] : vector<1x128xf32> to vector<1xf32>
    %295 = vector.shape_cast %294 : vector<1xf32> to vector<1x1xf32>
    %296 = tpu.reciprocal %295 {approx = true} : vector<1x1xf32> -> vector<1x1xf32>
    %297 = arith.mulf %295, %296 : vector<1x1xf32>
    %cst_313 = arith.constant 2.000000e+00 : f32
    %298 = vector.broadcast %cst_313 : f32 to vector<1x1xf32>
    %299 = arith.subf %298, %297 : vector<1x1xf32>
    %300 = arith.mulf %296, %299 : vector<1x1xf32>
    %301 = vector.broadcast %300 : vector<1x1xf32> to vector<1x128xf32>
    %302 = arith.mulf %293, %301 : vector<1x128xf32>
    %c0_314 = arith.constant 0 : index
    %c0_315 = arith.constant 0 : index
    %c0_316 = arith.constant 0 : index
    %303 = vector.load %arg10[%c0_314, %c0_315, %c0_316] : memref<1x1x128xf32, #tpu.memory_space<vmem>>, vector<1x1x128xf32>
    %304 = vector.shape_cast %303 : vector<1x1x128xf32> to vector<1x128xf32>
    %305 = vector.shape_cast %302 : vector<1x128xf32> to vector<1x1x128xf32>
    tpu.vector_store %arg10[%c0_314, %c0_315, %c0_316], %305 {strides = array<i32>} : memref<1x1x128xf32, #tpu.memory_space<vmem>>, vector<1x1x128xf32>,
    return
  }
  func.func @transform_0(%arg0: i32) -> (i32, i32) {
    %c0_i32 = arith.constant 0 : i32
    %c0_i32_0 = arith.constant 0 : i32
    return %arg0, %c0_i32 : i32, i32
  }
  func.func @transform_1(%arg0: i32) -> (i32, i32) {
    %c0_i32 = arith.constant 0 : i32
    %c0_i32_0 = arith.constant 0 : i32
    %c0_i32_1 = arith.constant 0 : i32
    return %c0_i32, %c0_i32_0 : i32, i32
  }
  func.func @transform_2(%arg0: i32) -> (i32, i32) {
    %c0_i32 = arith.constant 0 : i32
    %c0_i32_0 = arith.constant 0 : i32
    %c0_i32_1 = arith.constant 0 : i32
    return %c0_i32, %c0_i32_0 : i32, i32
  }
  func.func @transform_3(%arg0: i32) -> (i32, i32, i32) {
    %c0_i32 = arith.constant 0 : i32
    %c0_i32_0 = arith.constant 0 : i32
    %c0_i32_1 = arith.constant 0 : i32
    %c0_i32_2 = arith.constant 0 : i32
    return %c0_i32, %c0_i32_0, %c0_i32_1 : i32, i32, i32
  }
  func.func @transform_4(%arg0: i32) -> (i32, i32) {
    %c0_i32 = arith.constant 0 : i32
    %c0_i32_0 = arith.constant 0 : i32
    %c0_i32_1 = arith.constant 0 : i32
    return %c0_i32, %c0_i32_0 : i32, i32
  }
  func.func @transform_5(%arg0: i32) -> (i32, i32, i32) {
    %c0_i32 = arith.constant 0 : i32
    %c0_i32_0 = arith.constant 0 : i32
    %c0_i32_1 = arith.constant 0 : i32
    %c0_i32_2 = arith.constant 0 : i32
    return %c0_i32, %c0_i32_0, %c0_i32_1 : i32, i32, i32
  }
  func.func @transform_6(%arg0: i32) -> (i32, i32) {
    %c0_i32 = arith.constant 0 : i32
    %c0_i32_0 = arith.constant 0 : i32
    %c0_i32_1 = arith.constant 0 : i32
    return %c0_i32, %c0_i32_0 : i32, i32
  }
  func.func @transform_7(%arg0: i32) -> (i32, i32) {
    %c0_i32 = arith.constant 0 : i32
    %c0_i32_0 = arith.constant 0 : i32
    %c0_i32_1 = arith.constant 0 : i32
    return %c0_i32, %c0_i32_0 : i32, i32
  }
  func.func @transform_8(%arg0: i32) -> (i32, i32) {
    %c0_i32 = arith.constant 0 : i32
    %c0_i32_0 = arith.constant 0 : i32
    %c0_i32_1 = arith.constant 0 : i32
    return %c0_i32, %c0_i32_0 : i32, i32
  }
  func.func @transform_9(%arg0: i32) -> (i32, i32, i32) {
    %c0_i32 = arith.constant 0 : i32
    %c0_i32_0 = arith.constant 0 : i32
    %c0_i32_1 = arith.constant 0 : i32
    return %arg0, %c0_i32, %c0_i32_0 : i32, i32, i32
  }
}

</mosaic_0001>

<bundles_post_ra>
// kernel: lenet_forward.1
= control target key start
LH: loop header
LB: loop body
LE: loop exit
PB: predicated region body
PF: predicated region fallthrough
CT: control target
= control target key end

     0   :  { %14 = vsyncpa [#allocation7], 0  ;;  %s11681_s0 = inlined_call_operand.vmem [shape: f32[1152,128], index: 0, kind: input, shape index: {}]   ;;  %s11682_s1 = inlined_call_operand.vmem [shape: f32[128,128], index: 1, kind: input, shape index: {}]   ;;  %s11683_s2 = inlined_call_operand.vmem [shape: f32[1,128], index: 2, kind: input, shape index: {}]   ;;  %s11684_s3 = inlined_call_operand.vmem [shape: f32[15,256,128], index: 3, kind: input, shape index: {}]   ;;  %s11685_s4 = inlined_call_operand.vmem [shape: f32[1,128], index: 4, kind: input, shape index: {}]   ;;  %s11686_s5 = inlined_call_operand.vmem [shape: f32[16,128,128], index: 5, kind: input, shape index: {}]   ;;  %s11687_s6 = inlined_call_operand.vmem [shape: f32[1,128], index: 6, kind: input, shape index: {}]   ;;  %s11688_s7 = inlined_call_operand.vmem [shape: f32[128,128], index: 7, kind: input, shape index: {}]   ;;  %s11689_s8 = inlined_call_operand.vmem [shape: f32[1,128], index: 8, kind: input, shape index: {}]   ;;  %s11690_s9 = inlined_call_operand.hbm [shape: f32[2,1,128], index: 9, kind: output, shape index: {}]  }
   0x1   :  { %16 = vsyncpa [#allocation7 + $0x1], 0  ;;  %s8133_s30 = smov 0   ;;  %s8135_s10 = smov 0  }
   0x2   :  { %s8137_s11 = smov 0   ;;  %s8139_s12 = smov 0  }
   0x3 LB: > { %s8154_s13 = sadd.s32 4294967295, %s8078_s12   ;;  %s5321_s14 = sadd.s32 4294967294, %s8078_s12   ;;  %s8078_s12 = sphi %s8139_s12, %s11741_s12   ;;  %s8074_s11 = sphi %s8137_s11, %s11740_s11   ;;  %s8070_s10 = sphi %s8135_s10, %s11739_s10   ;;  %s8066_s30 = sphi %s8133_s30, %s11738_s30  }
   0x4   : > { %s8158_s15 = sadd.s32 1, %s8078_s12   ;;  %s223_s16 = sadd.s32 1, %s8074_s11 }
   0x5   : > { %s220_s17 = ssub.s32 %s8078_s12, %s8158_s15  ;;  %p233_p0 = scmp.ne.s32.totalorder %s8074_s11, %s8070_s10 }
   0x6   : > { %p221_p1 = scmp.eq.s32.totalorder %s220_s17, 0  ;;  %p234_p2 = scmp.eq.s32.totalorder %s8154_s13, 1 }
   0x7   : > { %p239_p3 = scmp.ne.s32.totalorder %s8070_s10, %s8066_s30  ;;  %p240_p4 = scmp.eq.s32.totalorder %s5321_s14, 1 }
   0x8   : > { %s8169_s18 = scalar_select %p221_p1, %s8074_s11, %s223_s16  }
   0x9   : > { %p8171_p5 = por %p234_p2, %p233_p0  ;;  %p8175_p6 = por %p240_p4, %p239_p3 }
   0xa   : > { %p5324_p7 = scmp.ge.s32.totalorder %s8078_s12, 1  ;;  %p291_p8 = scmp.lt.s32.totalorder %s8078_s12, 3 }
   0xc   : > { %p292_p9 = pnand %p5324_p7, %p291_p8 }
   0xe   : > { %295 = sbr.rel (%p292_p9) target bundleno = 1868 (0x74c), region = 56 }
  0x13   : > { %v419_v0 = vld [vmem:[%s11682_s1 + $0x78] sm:$0xff]  ;;  %v418_v1 = vld [vmem:[%s11682_s1 + $0x70] sm:$0xff]  ;;  %s326_s25 = smul.u32 72, %s8154_s13  ;;  %v417_v2 = vld [vmem:[%s11682_s1 + $0x68] sm:$0xff]  ;;  %vm1120_vm0 = vcmask 1043456   ;;  %vm8081_vm1 = vmmov 0  }
  0x14   : > { %7236 = vmatprep.subr.mxu0 %v419_v0  ;;  %v416_v3 = vld [vmem:[%s11682_s1 + $0x60] sm:$0xff]  ;;  %v415_v4 = vld [vmem:[%s11682_s1 + $0x58] sm:$0xff]  ;;  %v414_v5 = vld [vmem:[%s11682_s1 + $0x50] sm:$0xff]  ;;  %vm5237_vm2 = vcmask 1040384   ;;  %s324_s26 = sand.u32 1, %s8070_s10   ;;  %s6016_s27 = sshll.u32 %s8154_s13, 4 }
  0x15   : > { %7237 = vmatpush3.msra.mxu0 %v419_v0  ;;  %p327_p10 = scmp.lt.s32.totalorder %s326_s25, 143  ;;  %v413_v7 = vld [vmem:[%s11682_s1 + $0x48] sm:$0xff]  ;;  %v412_v8 = vld [vmem:[%s11682_s1 + $0x40] sm:$0xff]  ;;  %v411_v9 = vld [vmem:[%s11682_s1 + $0x38] sm:$0xff]  ;;  %s325_s28 = scalar_lea.vmem [#allocation6], %s324_s26 }
  0x16   : > { %7238 = vmatprep.subr.mxu0 %v418_v1  ;;  %v410_v10 = vld [vmem:[%s11682_s1 + $0x30] sm:$0xff]  ;;  %v409_v11 = vld [vmem:[%s11682_s1 + $0x28] sm:$0xff]  ;;  %v408_v12 = vld [vmem:[%s11682_s1 + $0x20] sm:$0xff]  ;;  %s5264_s16 = scalar_lea.hbm %s11690_s9, %s6016_s27  ;;  %s8082_s22 = smov [#allocation6]  }
  0x17   : > { %7239 = vmatpush3.msra.mxu0 %v418_v1  ;;  %s11743_s25 = smov (!%p327_p10, %s326_s25), 143  ;;  %v407_v13 = vld [vmem:[%s11682_s1 + $0x18] sm:$0xff]  ;;  %v406_v14 = vld [vmem:[%s11682_s1 + $0x10] sm:$0xff]  ;;  %v405_v15 = vld [vmem:[%s11682_s1 + $0x8] sm:$0xff] }
  0x18   : > { %7240 = vmatprep.subr.mxu0 %v417_v2  ;;  %s5325_s17 = sshll.u32 %s11743_s25, 3  ;;  %v404_v16 = vld [vmem:[%s11682_s1] sm:$0xff]  ;;  %v5358_v55 = vld [vmem:[%s11684_s3 + $0x1f8] sm:$0xff]  ;;  %v5357_v57 = vld [vmem:[%s11684_s3 + $0x1f0] sm:$0xff]  ;;  %s5266_s25 = sshll.u32 %s325_s28, 4  ;;  %s5267_s25 = int_to_ptr.vmem [resolvable:$true] %s5266_s25 }
  0x19   : > { %7241 = vmatpush3.msra.mxu0 %v417_v2  ;;  %s8200_s23 = scalar_lea.vmem %s11681_s0, %s5325_s17  ;;  %6107 = vmatprep.subr.mxu1 %v5358_v55  ;;  %v5342_v56 = vld [vmem:[%s11684_s3 + $0x178] sm:$0xff]  ;;  %v5341_v59 = vld [vmem:[%s11684_s3 + $0x170] sm:$0xff]  ;;  %v5356_v61 = vld [vmem:[%s11684_s3 + $0x1e8] sm:$0xff]  ;;  %s5254_s17 = scalar_lea.sflag [#allocation7], %s324_s26 }
  0x1a   : > { %7242 = vmatprep.subr.mxu0 %v416_v3  ;;  %v332_v6 = vld [vmem:[%s8200_s23] sm:$0xff]  ;;  %v333_v17 = vld [vmem:[%s8200_s23 + $0x8] sm:$0xff]  ;;  %v334_v18 = vld [vmem:[%s8200_s23 + $0x10] sm:$0xff]  ;;  %6108 = vmatpush3.msra.mxu1 %v5342_v56  ;;  %s8018_s21 = scalar_lea.vmem %s5267_s25, 16 }
  0x1b   : > { %7243 = vmatpush3.msra.mxu0 %v416_v3  ;;  %7268 = vmatprep.mubr.f32.mxu0 %v332_v6  ;;  %v335_v19 = vld [vmem:[%s8200_s23 + $0x18] sm:$0xff]  ;;  %v336_v20 = vld [vmem:[%s8200_s23 + $0x20] sm:$0xff]  ;;  %v337_v21 = vld [vmem:[%s8200_s23 + $0x28] sm:$0xff]  ;;  %p8019_p11 = scmp.ne.s32.totalorder %s5267_s25, %s8018_s21 }
  0x1c   : > { %7244 = vmatprep.subr.mxu0 %v415_v4  ;;  %v338_v22 = vld [vmem:[%s8200_s23 + $0x30] sm:$0xff]  ;;  %v339_v23 = vld [vmem:[%s8200_s23 + $0x38] sm:$0xff]  ;;  %v340_v24 = vld [vmem:[%s8200_s23 + $0x40] sm:$0xff]  ;;  %6109 = vmatprep.subr.mxu1 %v5357_v57 }
  0x1d   : > { %7245 = vmatpush3.msra.mxu0 %v415_v4  ;;  %v341_v25 = vld [vmem:[%s8200_s23 + $0x48] sm:$0xff]  ;;  %v342_v26 = vld [vmem:[%s8200_s23 + $0x50] sm:$0xff]  ;;  %v343_v27 = vld [vmem:[%s8200_s23 + $0x58] sm:$0xff]  ;;  %6110 = vmatpush3.msra.mxu1 %v5341_v59  ;;  %p8020_p12 = pnand %p8019_p11, %p8171_p5 }
  0x1e   : > { %7246 = vmatprep.subr.mxu0 %v414_v5  ;;  %v344_v28 = vld [vmem:[%s8200_s23 + $0x60] sm:$0xff]  ;;  %v345_v29 = vld [vmem:[%s8200_s23 + $0x68] sm:$0xff]  ;;  %v346_v30 = vld [vmem:[%s8200_s23 + $0x70] sm:$0xff]  ;;  %6111 = vmatprep.subr.mxu1 %v5356_v61 }
  0x1f   : > { %7247 = vmatpush3.msra.mxu0 %v414_v5  ;;  %v347_v31 = vld [vmem:[%s8200_s23 + $0x78] sm:$0xff]  ;;  %v348_v32 = vld [vmem:[%s8200_s23 + $0x80] sm:$0xff]  ;;  %v349_v33 = vld [vmem:[%s8200_s23 + $0x88] sm:$0xff]  ;;  %p8021_p13 = pneg %p8020_p12 }
  0x20   : > { %7248 = vmatprep.subr.mxu0 %v413_v7  ;;  %v350_v34 = vld [vmem:[%s8200_s23 + $0x90] sm:$0xff]  ;;  %v351_v35 = vld [vmem:[%s8200_s23 + $0x98] sm:$0xff]  ;;  %v352_v36 = vld [vmem:[%s8200_s23 + $0xa0] sm:$0xff] }
  0x21   : > { %7249 = vmatpush3.msra.mxu0 %v413_v7  ;;  %v353_v37 = vld [vmem:[%s8200_s23 + $0xa8] sm:$0xff]  ;;  %v354_v38 = vld [vmem:[%s8200_s23 + $0xb0] sm:$0xff]  ;;  %v355_v39 = vld [vmem:[%s8200_s23 + $0xb8] sm:$0xff] }
  0x22   : > { %7250 = vmatprep.subr.mxu0 %v412_v8  ;;  %v356_v40 = vld [vmem:[%s8200_s23 + $0xc0] sm:$0xff]  ;;  %v357_v41 = vld [vmem:[%s8200_s23 + $0xc8] sm:$0xff]  ;;  %v358_v42 = vld [vmem:[%s8200_s23 + $0xd0] sm:$0xff] }
  0x23   : > { %7251 = vmatpush3.msra.mxu0 %v412_v8  ;;  %v359_v43 = vld [vmem:[%s8200_s23 + $0xd8] sm:$0xff]  ;;  %v360_v44 = vld [vmem:[%s8200_s23 + $0xe0] sm:$0xff]  ;;  %v361_v45 = vld [vmem:[%s8200_s23 + $0xe8] sm:$0xff] }
  0x24   : > { %7252 = vmatprep.subr.mxu0 %v411_v9  ;;  %v362_v46 = vld [vmem:[%s8200_s23 + $0xf0] sm:$0xff]  ;;  %v363_v47 = vld [vmem:[%s8200_s23 + $0xf8] sm:$0xff]  ;;  %v364_v48 = vld [vmem:[%s8200_s23 + $0x100] sm:$0xff] }
  0x25   : > { %7253 = vmatpush3.msra.mxu0 %v411_v9  ;;  %v365_v49 = vld [vmem:[%s8200_s23 + $0x108] sm:$0xff]  ;;  %v366_v50 = vld [vmem:[%s8200_s23 + $0x110] sm:$0xff]  ;;  %v367_v51 = vld [vmem:[%s8200_s23 + $0x118] sm:$0xff] }
  0x26   : > { %7254 = vmatprep.subr.mxu0 %v410_v10  ;;  %v368_v52 = vld [vmem:[%s8200_s23 + $0x120] sm:$0xff]  ;;  %v369_v53 = vld [vmem:[%s8200_s23 + $0x128] sm:$0xff]  ;;  %v370_v54 = vld [vmem:[%s8200_s23 + $0x130] sm:$0xff] }
  0x27   : > { %7255 = vmatpush3.msra.mxu0 %v410_v10  ;;  %v371_v58 = vld [vmem:[%s8200_s23 + $0x138] sm:$0xff]  ;;  %v372_v60 = vld [vmem:[%s8200_s23 + $0x140] sm:$0xff]  ;;  %v5340_v62 = vld [vmem:[%s11684_s3 + $0x168] sm:$0xff] }
  0x28   : > { %7256 = vmatprep.subr.mxu0 %v409_v11  ;;  %6112 = vmatpush3.msra.mxu1 %v5340_v62  ;;  %v5355_v63 = vld [vmem:[%s11684_s3 + $0x1e0] sm:$0xff]  ;;  %v373_v0 = vld [vmem:[%s8200_s23 + $0x148] sm:$0xff]  ;;  %v374_v2 = vld [vmem:[%s8200_s23 + $0x150] sm:$0xff] }
  0x29   : > { %7257 = vmatpush3.msra.mxu0 %v409_v11  ;;  %6113 = vmatprep.subr.mxu1 %v5355_v63  ;;  %v5339_v1 = vld [vmem:[%s11684_s3 + $0x160] sm:$0xff]  ;;  %v5354_v3 = vld [vmem:[%s11684_s3 + $0x1d8] sm:$0xff]  ;;  %v5353_v5 = vld [vmem:[%s11684_s3 + $0x1d0] sm:$0xff] }
  0x2a   : > { %7258 = vmatprep.subr.mxu0 %v408_v12  ;;  %6114 = vmatpush3.msra.mxu1 %v5339_v1  ;;  %v5338_v4 = vld [vmem:[%s11684_s3 + $0x158] sm:$0xff]  ;;  %v5337_v7 = vld [vmem:[%s11684_s3 + $0x150] sm:$0xff]  ;;  %v376_v8 = vld [vmem:[%s8200_s23 + $0x160] sm:$0xff] }
  0x2b   : > { %7259 = vmatpush3.msra.mxu0 %v408_v12  ;;  %6115 = vmatprep.subr.mxu1 %v5354_v3  ;;  %v375_v6 = vld [vmem:[%s8200_s23 + $0x158] sm:$0xff]  ;;  %v5352_v9 = vld [vmem:[%s11684_s3 + $0x1c8] sm:$0xff]  ;;  %v5343_v55 = vld [vmem:[%s11684_s3 + $0x180] sm:$0xff] }
  0x2c   : > { %7260 = vmatprep.subr.mxu0 %v407_v13  ;;  %6116 = vmatpush3.msra.mxu1 %v5338_v4  ;;  %v5486_v10 = vld [vmem:[%s11684_s3 + $0x5f8] sm:$0xff]  ;;  %v5336_v11 = vld [vmem:[%s11684_s3 + $0x148] sm:$0xff]  ;;  %v5477_v56 = vld [vmem:[%s11684_s3 + $0x5b0] sm:$0xff] }
  0x2d   : > { %7261 = vmatpush3.msra.mxu0 %v407_v13  ;;  %6117 = vmatprep.subr.mxu1 %v5353_v5  ;;  %v5470_v12 = vld [vmem:[%s11684_s3 + $0x578] sm:$0xff]  ;;  %v5351_v13 = vld [vmem:[%s11684_s3 + $0x1c0] sm:$0xff]  ;;  %v5476_v61 = vld [vmem:[%s11684_s3 + $0x5a8] sm:$0xff] }
  0x2e   : > { %7262 = vmatprep.subr.mxu0 %v406_v14  ;;  %6118 = vmatpush3.msra.mxu1 %v5337_v7  ;;  %v387_v57 = vld [vmem:[%s8200_s23 + $0x1b8] sm:$0xff]  ;;  %v388_v59 = vld [vmem:[%s8200_s23 + $0x1c0] sm:$0xff]  ;;  %v5460_v62 = vld [vmem:[%s11684_s3 + $0x528] sm:$0xff] }
  0x2f   : > { %7263 = vmatpush3.msra.mxu0 %v406_v14  ;;  %6119 = vmatprep.subr.mxu1 %v5352_v9  ;;  %v5485_v14 = vld [vmem:[%s11684_s3 + $0x5f0] sm:$0xff]  ;;  %v389_v63 = vld [vmem:[%s8200_s23 + $0x1c8] sm:$0xff]  ;;  %v5474_v3 = vld [vmem:[%s11684_s3 + $0x598] sm:$0xff] }
  0x30   : > { %7264 = vmatprep.subr.mxu0 %v405_v15  ;;  %6120 = vmatpush3.msra.mxu1 %v5336_v11  ;;  %v390_v1 = vld [vmem:[%s8200_s23 + $0x1d0] sm:$0xff]  ;;  %v5458_v4 = vld [vmem:[%s11684_s3 + $0x518] sm:$0xff]  ;;  %v392_v7 = vld [vmem:[%s8200_s23 + $0x1e0] sm:$0xff] }
  0x31   : > { %7265 = vmatpush3.msra.mxu0 %v405_v15  ;;  %v377_v15 = vld [vmem:[%s8200_s23 + $0x168] sm:$0xff]  ;;  %6121 = vmatprep.subr.mxu1 %v5351_v13  ;;  %v391_v5 = vld [vmem:[%s8200_s23 + $0x1d8] sm:$0xff]  ;;  %v394_v13 = vld [vmem:[%s8200_s23 + $0x1f0] sm:$0xff] }
  0x32   : > { %7266 = vmatprep.subr.mxu0 %v404_v16  ;;  %v5472_v9 = vld [vmem:[%s11684_s3 + $0x588] sm:$0xff] }
  0x33   : > { %7267 = vmatpush3.msra.mxu0 %v404_v16  ;;  %v5335_v16 = vld [vmem:[%s11684_s3 + $0x140] sm:$0xff]  ;;  %v393_v11 = vld [vmem:[%s8200_s23 + $0x1e8] sm:$0xff] }
  0x34   : > { %7269 = vmatmul.mubr.f32.vlgmr.msra.gmra.mxu0 %v333_v17  ;;  %6387 = vmatprep.subr.mxu0 %v5486_v10  ;;  %v5469_v17 = vld [vmem:[%s11684_s3 + $0x570] sm:$0xff]  ;;  %v5456_v10 = vld [vmem:[%s11684_s3 + $0x508] sm:$0xff] }
  0x35   : > { %7271 = vmatprep.mubr.f32.mxu0 %v334_v18  ;;  %6388 = vmatpush3.msra.mxu0 %v5470_v12  ;;  %v378_v18 = vld [vmem:[%s8200_s23 + $0x170] sm:$0xff]  ;;  %v5471_v12 = vld [vmem:[%s11684_s3 + $0x580] sm:$0xff] }
  0x36   : > { %6389 = vmatprep.subr.mxu0 %v5485_v14  ;;  %6122 = vmatpush3.msra.mxu1 %v5335_v16  ;;  %v5455_v14 = vld [vmem:[%s11684_s3 + $0x500] sm:$0xff] }
  0x37   : > { %6390 = vmatpush3.msra.mxu0 %v5469_v17  ;;  %v396_v16 = vld [vmem:[%s8200_s23 + $0x200] sm:$0xff]  ;;  %v397_v17 = vld [vmem:[%s8200_s23 + $0x208] sm:$0xff] }
  0x38   : > { %7272 = vmatmul.mubr.f32.gmra.mxu0 %v335_v19  ;;  %v5350_v19 = vld [vmem:[%s11684_s3 + $0x1b8] sm:$0xff] }
  0x39   : > { %7274 = vmatprep.mubr.f32.mxu0 %v336_v20  ;;  %v5484_v20 = vld [vmem:[%s11684_s3 + $0x5e8] sm:$0xff]  ;;  %6123 = vmatprep.subr.mxu1 %v5350_v19  ;;  %v399_v19 = vld [vmem:[%s8200_s23 + $0x218] sm:$0xff] }
  0x3a   : > { %6391 = vmatprep.subr.mxu0 %v5484_v20  ;;  %v400_v20 = vld [vmem:[%s8200_s23 + $0x220] sm:$0xff] }
  0x3c   : > { %7275 = vmatmul.mubr.f32.gmra.mxu0 %v337_v21  ;;  %v5334_v21 = vld [vmem:[%s11684_s3 + $0x138] sm:$0xff] }
  0x3d   : > { %7277 = vmatprep.mubr.f32.mxu0 %v338_v22  ;;  %v5468_v22 = vld [vmem:[%s11684_s3 + $0x568] sm:$0xff]  ;;  %6124 = vmatpush3.msra.mxu1 %v5334_v21 }
  0x3e   : > { %6392 = vmatpush3.msra.mxu0 %v5468_v22  ;;  %v401_v21 = vld [vmem:[%s8200_s23 + $0x228] sm:$0xff]  ;;  %v402_v22 = vld [vmem:[%s8200_s23 + $0x230] sm:$0xff] }
  0x40   : > { %7278 = vmatmul.mubr.f32.gmra.mxu0 %v339_v23  ;;  %v5349_v23 = vld [vmem:[%s11684_s3 + $0x1b0] sm:$0xff] }
  0x41   : > { %7280 = vmatprep.mubr.f32.mxu0 %v340_v24  ;;  %v5483_v24 = vld [vmem:[%s11684_s3 + $0x5e0] sm:$0xff]  ;;  %6125 = vmatprep.subr.mxu1 %v5349_v23  ;;  %v403_v23 = vld [vmem:[%s8200_s23 + $0x238] sm:$0xff] }
  0x42   : > { %6393 = vmatprep.subr.mxu0 %v5483_v24  ;;  %v1331_v24 = vld [vmem:[%s11684_s3 + $0xf8] sm:$0xff] }
  0x44   : > { %7281 = vmatmul.mubr.f32.gmra.mxu0 %v341_v25  ;;  %v379_v25 = vld [vmem:[%s8200_s23 + $0x178] sm:$0xff] }
  0x45   : > { %7283 = vmatprep.mubr.f32.mxu0 %v342_v26  ;;  %v5333_v26 = vld [vmem:[%s11684_s3 + $0x130] sm:$0xff] }
  0x46   : > { %6126 = vmatpush3.msra.mxu1 %v5333_v26 }
  0x48   : > { %7284 = vmatmul.mubr.f32.gmra.mxu0 %v343_v27  ;;  %v380_v27 = vld [vmem:[%s8200_s23 + $0x180] sm:$0xff] }
  0x49   : > { %7286 = vmatprep.mubr.f32.mxu0 %v344_v28  ;;  %v5467_v28 = vld [vmem:[%s11684_s3 + $0x560] sm:$0xff] }
  0x4a   : > { %6394 = vmatpush3.msra.mxu0 %v5467_v28 }
  0x4c   : > { %7287 = vmatmul.mubr.f32.gmra.mxu0 %v345_v29  ;;  %v5348_v29 = vld [vmem:[%s11684_s3 + $0x1a8] sm:$0xff] }
  0x4d   : > { %7289 = vmatprep.mubr.f32.mxu0 %v346_v30  ;;  %v5482_v30 = vld [vmem:[%s11684_s3 + $0x5d8] sm:$0xff]  ;;  %6127 = vmatprep.subr.mxu1 %v5348_v29 }
  0x4e   : > { %6395 = vmatprep.subr.mxu0 %v5482_v30 }
  0x50   : > { %7290 = vmatmul.mubr.f32.gmra.mxu0 %v347_v31  ;;  %v5332_v31 = vld [vmem:[%s11684_s3 + $0x128] sm:$0xff] }
  0x51   : > { %7292 = vmatprep.mubr.f32.mxu0 %v348_v32  ;;  %v5466_v32 = vld [vmem:[%s11684_s3 + $0x558] sm:$0xff]  ;;  %6128 = vmatpush3.msra.mxu1 %v5332_v31 }
  0x52   : > { %6396 = vmatpush3.msra.mxu0 %v5466_v32 }
  0x54   : > { %7293 = vmatmul.mubr.f32.gmra.mxu0 %v349_v33  ;;  %v381_v33 = vld [vmem:[%s8200_s23 + $0x188] sm:$0xff] }
  0x55   : > { %7295 = vmatprep.mubr.f32.mxu0 %v350_v34  ;;  %v5347_v34 = vld [vmem:[%s11684_s3 + $0x1a0] sm:$0xff] }
  0x56   : > { %6129 = vmatprep.subr.mxu1 %v5347_v34 }
  0x58   : > { %7296 = vmatmul.mubr.f32.gmra.mxu0 %v351_v35  ;;  %v382_v35 = vld [vmem:[%s8200_s23 + $0x190] sm:$0xff] }
  0x59   : > { %7298 = vmatprep.mubr.f32.mxu0 %v352_v36  ;;  %v5481_v36 = vld [vmem:[%s11684_s3 + $0x5d0] sm:$0xff] }
  0x5a   : > { %6397 = vmatprep.subr.mxu0 %v5481_v36 }
  0x5c   : > { %7299 = vmatmul.mubr.f32.gmra.mxu0 %v353_v37  ;;  %v5331_v37 = vld [vmem:[%s11684_s3 + $0x120] sm:$0xff] }
  0x5d   : > { %7301 = vmatprep.mubr.f32.mxu0 %v354_v38  ;;  %v5465_v38 = vld [vmem:[%s11684_s3 + $0x550] sm:$0xff]  ;;  %6130 = vmatpush3.msra.mxu1 %v5331_v37 }
  0x5e   : > { %6398 = vmatpush3.msra.mxu0 %v5465_v38 }
  0x60   : > { %7302 = vmatmul.mubr.f32.gmra.mxu0 %v355_v39  ;;  %v5346_v39 = vld [vmem:[%s11684_s3 + $0x198] sm:$0xff] }
  0x61   : > { %7304 = vmatprep.mubr.f32.mxu0 %v356_v40  ;;  %v5480_v40 = vld [vmem:[%s11684_s3 + $0x5c8] sm:$0xff]  ;;  %6131 = vmatprep.subr.mxu1 %v5346_v39 }
  0x62   : > { %6399 = vmatprep.subr.mxu0 %v5480_v40 }
  0x64   : > { %7305 = vmatmul.mubr.f32.gmra.mxu0 %v357_v41  ;;  %v383_v41 = vld [vmem:[%s8200_s23 + $0x198] sm:$0xff] }
  0x65   : > { %7307 = vmatprep.mubr.f32.mxu0 %v358_v42  ;;  %v5330_v42 = vld [vmem:[%s11684_s3 + $0x118] sm:$0xff] }
  0x66   : > { %6132 = vmatpush3.msra.mxu1 %v5330_v42 }
  0x68   : > { %7308 = vmatmul.mubr.f32.gmra.mxu0 %v359_v43  ;;  %v384_v43 = vld [vmem:[%s8200_s23 + $0x1a0] sm:$0xff] }
  0x69   : > { %7310 = vmatprep.mubr.f32.mxu0 %v360_v44  ;;  %v5464_v44 = vld [vmem:[%s11684_s3 + $0x548] sm:$0xff] }
  0x6a   : > { %6400 = vmatpush3.msra.mxu0 %v5464_v44 }
  0x6c   : > { %7311 = vmatmul.mubr.f32.gmra.mxu0 %v361_v45  ;;  %v5345_v45 = vld [vmem:[%s11684_s3 + $0x190] sm:$0xff] }
  0x6d   : > { %7313 = vmatprep.mubr.f32.mxu0 %v362_v46  ;;  %v5479_v46 = vld [vmem:[%s11684_s3 + $0x5c0] sm:$0xff]  ;;  %6133 = vmatprep.subr.mxu1 %v5345_v45 }
  0x6e   : > { %6401 = vmatprep.subr.mxu0 %v5479_v46 }
  0x70   : > { %7314 = vmatmul.mubr.f32.gmra.mxu0 %v363_v47  ;;  %v5329_v47 = vld [vmem:[%s11684_s3 + $0x110] sm:$0xff] }
  0x71   : > { %7316 = vmatprep.mubr.f32.mxu0 %v364_v48  ;;  %v5463_v48 = vld [vmem:[%s11684_s3 + $0x540] sm:$0xff]  ;;  %6134 = vmatpush3.msra.mxu1 %v5329_v47 }
  0x72   : > { %6402 = vmatpush3.msra.mxu0 %v5463_v48 }
  0x74   : > { %7317 = vmatmul.mubr.f32.gmra.mxu0 %v365_v49  ;;  %v385_v49 = vld [vmem:[%s8200_s23 + $0x1a8] sm:$0xff] }
  0x75   : > { %7319 = vmatprep.mubr.f32.mxu0 %v366_v50  ;;  %v5344_v50 = vld [vmem:[%s11684_s3 + $0x188] sm:$0xff] }
  0x76   : > { %6135 = vmatprep.subr.mxu1 %v5344_v50 }
  0x78   : > { %7320 = vmatmul.mubr.f32.gmra.mxu0 %v367_v51  ;;  %v386_v51 = vld [vmem:[%s8200_s23 + $0x1b0] sm:$0xff] }
  0x79   : > { %7322 = vmatprep.mubr.f32.mxu0 %v368_v52  ;;  %v5478_v52 = vld [vmem:[%s11684_s3 + $0x5b8] sm:$0xff] }
  0x7a   : > { %6403 = vmatprep.subr.mxu0 %v5478_v52 }
  0x7c   : > { %7323 = vmatmul.mubr.f32.gmra.mxu0 %v369_v53  ;;  %v5328_v53 = vld [vmem:[%s11684_s3 + $0x108] sm:$0xff] }
  0x7d   : > { %7325 = vmatprep.mubr.f32.mxu0 %v370_v54  ;;  %v5462_v54 = vld [vmem:[%s11684_s3 + $0x538] sm:$0xff]  ;;  %6136 = vmatpush3.msra.mxu1 %v5328_v53 }
  0x7e   : > { %6404 = vmatpush3.msra.mxu0 %v5462_v54  ;;  %6137 = vmatprep.subr.mxu1 %v5343_v55 }
  0x7f   : > { %6405 = vmatprep.subr.mxu0 %v5477_v56 }
  0x80   : > { %7326 = vmatmul.mubr.f32.gmra.mxu0 %v371_v58  ;;  %v5327_v58 = vld [vmem:[%s11684_s3 + $0x100] sm:$0xff] }
  0x81   : > { %7328 = vmatprep.mubr.f32.mxu0 %v372_v60  ;;  %v5461_v60 = vld [vmem:[%s11684_s3 + $0x530] sm:$0xff]  ;;  %6138 = vmatpush3.msra.mxu1 %v5327_v58 }
  0x82   : > { %6406 = vmatpush3.msra.mxu0 %v5461_v60  ;;  %6163 = vmatprep.subr.mxu1 %v1331_v24  ;;  %v1314_v24 = vld [vmem:[%s11684_s3 + $0x70] sm:$0xff] }
  0x83   : > { %6407 = vmatprep.subr.mxu0 %v5476_v61 }
  0x84   : > { %7329 = vmatmul.mubr.f32.gmra.mxu0 %v373_v0  ;;  %v5475_v0 = vld [vmem:[%s11684_s3 + $0x5a0] sm:$0xff] }
  0x85   : > { %7331 = vmatprep.mubr.f32.mxu0 %v374_v2  ;;  %v5459_v2 = vld [vmem:[%s11684_s3 + $0x520] sm:$0xff]  ;;  %6408 = vmatpush3.msra.mxu0 %v5460_v62 }
  0x86   : > { %6409 = vmatprep.subr.mxu0 %v5475_v0 }
  0x87   : > { %6410 = vmatpush3.msra.mxu0 %v5459_v2 }
  0x88   : > { %7332 = vmatmul.mubr.f32.gmra.mxu0 %v375_v6  ;;  %v5473_v6 = vld [vmem:[%s11684_s3 + $0x590] sm:$0xff]  ;;  %6411 = vmatprep.subr.mxu0 %v5474_v3 }
  0x89   : > { %7334 = vmatprep.mubr.f32.mxu0 %v376_v8  ;;  %v5457_v8 = vld [vmem:[%s11684_s3 + $0x510] sm:$0xff]  ;;  %6412 = vmatpush3.msra.mxu0 %v5458_v4 }
  0x8a   : > { %6413 = vmatprep.subr.mxu0 %v5473_v6 }
  0x8b   : > { %6414 = vmatpush3.msra.mxu0 %v5457_v8 }
  0x8c   : > { %7335 = vmatmul.mubr.f32.gmra.mxu0 %v377_v15  ;;  %6415 = vmatprep.subr.mxu0 %v5472_v9  ;;  %v395_v15 = vld [vmem:[%s8200_s23 + $0x1f8] sm:$0xff] }
  0x8d   : > { %7337 = vmatprep.mubr.f32.mxu0 %v378_v18  ;;  %6416 = vmatpush3.msra.mxu0 %v5456_v10  ;;  %v398_v18 = vld [vmem:[%s8200_s23 + $0x210] sm:$0xff]  ;;  %s8022_s23 = sshll.u32 %s8082_s22, 4  ;;  %s8023_s23 = int_to_ptr.vmem [resolvable:$false] %s8022_s23 }
  0x8e   : > { %6417 = vmatprep.subr.mxu0 %v5471_v12  ;;  %s8024_s13 = scalar_lea.vmem %s8023_s23, 32  ;;  %p8025_p0 = scmp.lt.s32.totalorder %s5267_s25, %s8023_s23 }
  0x8f   : > { %6418 = vmatpush3.msra.mxu0 %v5455_v14  ;;  %p8026_p1 = scmp.lt.s32.totalorder %s8024_s13, %s8018_s21 }
  0x90   : > { %7338 = vmatmul.mubr.f32.gmra.mxu0 %v379_v25  ;;  %v5550_v25 = vld [vmem:[%s11684_s3 + $0x7f8] sm:$0xff] }
  0x91   : > { %7340 = vmatprep.mubr.f32.mxu0 %v380_v27  ;;  %6499 = vmatprep.subr.mxu0 %v5550_v25  ;;  %p8027_p2 = por %p8026_p1, %p8025_p0 }
  0x93   : > { %p8028_p3 = pnand %p8027_p2, %p8021_p13 }
  0x94   : > { %7341 = vmatmul.mubr.f32.gmra.mxu0 %v381_v33 }
  0x95   : > { %7343 = vmatprep.mubr.f32.mxu0 %v382_v35 }
  0x98   : > { %7344 = vmatmul.mubr.f32.gmra.mxu0 %v383_v41 }
  0x99   : > { %7346 = vmatprep.mubr.f32.mxu0 %v384_v43 }
  0x9c   : > { %7347 = vmatmul.mubr.f32.gmra.mxu0 %v385_v49  ;;  %v8508_v49 = vld [vmem:[%s11683_s2] ss:$0 sm:$0xff] }
  0x9d   : > { %7349 = vmatprep.mubr.f32.mxu0 %v386_v51 }
  0xa0   : > { %7350 = vmatmul.mubr.f32.gmra.mxu0 %v387_v57 }
  0xa1   : > { %7352 = vmatprep.mubr.f32.mxu0 %v388_v59 }
  0xa4   : > { %7353 = vmatmul.mubr.f32.gmra.mxu0 %v389_v63 }
  0xa5   : > { %7355 = vmatprep.mubr.f32.mxu0 %v390_v1 }
  0xa8   : > { %7356 = vmatmul.mubr.f32.gmra.mxu0 %v391_v5 }
  0xa9   : > { %7358 = vmatprep.mubr.f32.mxu0 %v392_v7 }
  0xac   : > { %7359 = vmatmul.mubr.f32.gmra.mxu0 %v393_v11 }
  0xad   : > { %7361 = vmatprep.mubr.f32.mxu0 %v394_v13 }
  0xb0   : > { %7362 = vmatmul.mubr.f32.gmra.mxu0 %v395_v15 }
  0xb1   : > { %7364 = vmatprep.mubr.f32.mxu0 %v396_v16 }
  0xb4   : > { %7365 = vmatmul.mubr.f32.gmra.mxu0 %v397_v17  ;;  %v1315_v17 = vld [vmem:[%s11684_s3 + $0x78] sm:$0xff] }
  0xb5   : > { %7367 = vmatprep.mubr.f32.mxu0 %v398_v18 }
  0xb8   : > { %7368 = vmatmul.mubr.f32.gmra.mxu0 %v399_v19 }
  0xb9   : > { %7370 = vmatprep.mubr.f32.mxu0 %v400_v20 }
  0xbc   : > { %7371 = vmatmul.mubr.f32.gmra.mxu0 %v401_v21 }
  0xbd   : > { %7373 = vmatprep.mubr.f32.mxu0 %v402_v22  ;;  %v1330_v22 = vld [vmem:[%s11684_s3 + $0xf0] sm:$0xff] }
  0xc0   : > { %7374 = vmatmul.mubr.f32.gmra.mxu0 %v403_v23 }
  0xf4   : > { %v7270_v26 = vpop.f32.mrf.mxu0 }
  0xf5   : > { %846 = vst [vmem:[#allocation2 + $0x8] sm:$0xff] %v7270_v26 }
  0xf6   : > { %v486_v27 = vpop.f32.mrf.mxu0 }
  0xf7   : > { %845 = vst [vmem:[#allocation2] sm:$0xff] %v486_v27  ;;  %v1329_v27 = vld [vmem:[%s11684_s3 + $0xe8] sm:$0xff] }
  0xf8   : > { %v7273_v28 = vpop.f32.mrf.mxu0 }
  0xf9   : > { %848 = vst [vmem:[#allocation2 + $0x18] sm:$0xff] %v7273_v28 }
  0xfa   : > { %v496_v29 = vpop.f32.mrf.mxu0 }
  0xfb   : > { %847 = vst [vmem:[#allocation2 + $0x10] sm:$0xff] %v496_v29  ;;  %v1313_v29 = vld [vmem:[%s11684_s3 + $0x68] sm:$0xff] }
  0xfc   : > { %v7276_v30 = vpop.f32.mrf.mxu0 }
  0xfd   : > { %850 = vst [vmem:[#allocation2 + $0x28] sm:$0xff] %v7276_v30 }
  0xfe   : > { %v506_v31 = vpop.f32.mrf.mxu0  ;;  %v917_v41 = vld [vmem:[#allocation2] ss:$2 sm:$0xff]  ;;  %v989_v42 = vld [vmem:[#allocation2 + $0x1] ss:$2 sm:$0xff] }
  0xff   : > { %849 = vst [vmem:[#allocation2 + $0x20] sm:$0xff] %v506_v31  ;;  %v1060_v47 = vmax.f32 %v917_v41, %v989_v42  ;;  %v1311_v42 = vld [vmem:[%s11684_s3 + $0x58] sm:$0xff] }
 0x100   : > { %v7279_v32 = vpop.f32.mrf.mxu0 }
 0x101   : > { %852 = vst [vmem:[#allocation2 + $0x38] sm:$0xff] %v7279_v32 }
 0x102   : > { %v919_v33 = vld [vmem:[#allocation2 + $0x10] ss:$2 sm:$0xff]  ;;  %v991_v34 = vld [vmem:[#allocation2 + $0x11] ss:$2 sm:$0xff]  ;;  %v516_v35 = vpop.f32.mrf.mxu0 }
 0x103   : > { %851 = vst [vmem:[#allocation2 + $0x30] sm:$0xff] %v516_v35  ;;  %v1061_v37 = vmax.f32 %v919_v33, %v991_v34  ;;  %v1328_v33 = vld [vmem:[%s11684_s3 + $0xe0] sm:$0xff] }
 0x104   : > { %v7282_v36 = vpop.f32.mrf.mxu0 }
 0x105   : > { %854 = vst [vmem:[#allocation2 + $0x48] sm:$0xff] %v7282_v36  ;;  %v1121_v45 = vrot.slane %v1061_v37, 4 }
 0x106   : > { %v921_v38 = vld [vmem:[#allocation2 + $0x20] ss:$2 sm:$0xff]  ;;  %v993_v39 = vld [vmem:[#allocation2 + $0x21] ss:$2 sm:$0xff]  ;;  %v526_v40 = vpop.f32.mrf.mxu0 }
 0x107   : > { %v1062_v43 = vmax.f32 %v921_v38, %v993_v39  ;;  %853 = vst [vmem:[#allocation2 + $0x40] sm:$0xff] %v526_v40  ;;  %v1327_v39 = vld [vmem:[%s11684_s3 + $0xd8] sm:$0xff] }
 0x108   : > { %v7285_v44 = vpop.f32.mrf.mxu0 }
 0x109   : > { %v1122_v46 = vrot.slane %v1062_v43, 4  ;;  %856 = vst [vmem:[#allocation2 + $0x58] sm:$0xff] %v7285_v44 }
 0x10a   : > { %v536_v48 = vpop.f32.mrf.mxu0  ;;  %v923_v2 = vld [vmem:[#allocation2 + $0x30] ss:$2 sm:$0xff]  ;;  %v995_v3 = vld [vmem:[#allocation2 + $0x31] ss:$2 sm:$0xff] }
 0x10b   : > { %855 = vst [vmem:[#allocation2 + $0x50] sm:$0xff] %v536_v48  ;;  %v1123_v50 = vsel %vm1120_vm0, %v1121_v45, %v1122_v46  ;;  %v1182_v51 = vmax.f32 %v1061_v37, %v1122_v46  ;;  %v1063_v8 = vmax.f32 %v923_v2, %v995_v3  ;;  %v1312_v37 = vld [vmem:[%s11684_s3 + $0x60] sm:$0xff]  ;;  %v1326_v45 = vld [vmem:[%s11684_s3 + $0xd0] sm:$0xff]  ;;  %v1309_v2 = vld [vmem:[%s11684_s3 + $0x48] sm:$0xff] }
 0x10c   : > { %v7288_v52 = vpop.f32.mrf.mxu0  ;;  %v1181_v53 = vmax.f32 %v1060_v47, %v1123_v50  ;;  %v5533_v3 = vld [vmem:[%s11684_s3 + $0x770] sm:$0xff] }
 0x10d   : > { %858 = vst [vmem:[#allocation2 + $0x68] sm:$0xff] %v7288_v52  ;;  %v1213_v54 = vadd.f32 %v8508_v49, %v1182_v51  ;;  %v1310_v51 = vld [vmem:[%s11684_s3 + $0x50] sm:$0xff]  ;;  %v1325_v52 = vld [vmem:[%s11684_s3 + $0xc8] sm:$0xff] }
 0x10e   : > { %v925_v55 = vld [vmem:[#allocation2 + $0x40] ss:$2 sm:$0xff]  ;;  %v997_v56 = vld [vmem:[#allocation2 + $0x41] ss:$2 sm:$0xff]  ;;  %v546_v57 = vpop.f32.mrf.mxu0  ;;  %v8513_v58 = vadd.f32 %v8508_v49, %v1181_v53  ;;  %v5534_v53 = vld [vmem:[%s11684_s3 + $0x778] sm:$0xff] }
 0x10f   : > { %857 = vst [vmem:[#allocation2 + $0x60] sm:$0xff] %v546_v57  ;;  %v1237_v59 = vmax.f32 %v1213_v54, 0.0  ;;  %v1064_v62 = vmax.f32 %v925_v55, %v997_v56 }
 0x110   : > { %v7291_v60 = vpop.f32.mrf.mxu0  ;;  %v1236_v61 = vmax.f32 %v8513_v58, 0.0  ;;  %v5372_v58 = vld [vmem:[%s11684_s3 + $0x268] sm:$0xff] }
 0x111   : > { %860 = vst [vmem:[#allocation2 + $0x78] sm:$0xff] %v7291_v60  ;;  %1261 = vst [vmem:[#allocation3 + $0x8] sm:$0xf] %v1237_v59  ;;  %v1124_v6 = vrot.slane %v1064_v62, 4 }
 0x112   : > { %v927_v63 = vld [vmem:[#allocation2 + $0x50] ss:$2 sm:$0xff]  ;;  %v999_v0 = vld [vmem:[#allocation2 + $0x51] ss:$2 sm:$0xff]  ;;  %v556_v1 = vpop.f32.mrf.mxu0  ;;  %1260 = vst [vmem:[#allocation3] sm:$0xff] %v1236_v61 }
 0x113   : > { %v1065_v4 = vmax.f32 %v927_v63, %v999_v0  ;;  %859 = vst [vmem:[#allocation2 + $0x70] sm:$0xff] %v556_v1  ;;  %v5549_v0 = vld [vmem:[%s11684_s3 + $0x7f0] sm:$0xff] }
 0x114   : > { %v7294_v5 = vpop.f32.mrf.mxu0 }
 0x115   : > { %v1125_v7 = vrot.slane %v1065_v4, 4  ;;  %862 = vst [vmem:[#allocation2 + $0x88] sm:$0xff] %v7294_v5 }
 0x116   : > { %v566_v9 = vpop.f32.mrf.mxu0  ;;  %v929_v34 = vld [vmem:[#allocation2 + $0x60] ss:$2 sm:$0xff]  ;;  %v1001_v35 = vld [vmem:[#allocation2 + $0x61] ss:$2 sm:$0xff] }
 0x117   : > { %861 = vst [vmem:[#allocation2 + $0x80] sm:$0xff] %v566_v9  ;;  %v1126_v10 = vsel %vm1120_vm0, %v1124_v6, %v1125_v7  ;;  %v1184_v11 = vmax.f32 %v1064_v62, %v1125_v7  ;;  %v1066_v43 = vmax.f32 %v929_v34, %v1001_v35  ;;  %v1324_v6 = vld [vmem:[%s11684_s3 + $0xc0] sm:$0xff] }
 0x118   : > { %v7297_v12 = vpop.f32.mrf.mxu0  ;;  %v1183_v13 = vmax.f32 %v1063_v8, %v1126_v10  ;;  %v1308_v7 = vld [vmem:[%s11684_s3 + $0x40] sm:$0xff]  ;;  %v5548_v8 = vld [vmem:[%s11684_s3 + $0x7e8] sm:$0xff]  ;;  %v1323_v10 = vld [vmem:[%s11684_s3 + $0xb8] sm:$0xff] }
 0x119   : > { %864 = vst [vmem:[#allocation2 + $0x98] sm:$0xff] %v7297_v12  ;;  %v1340_v14 = vld [vmem:[#allocation3 + $0x3] sm:$0xff]  ;;  %v1215_v16 = vadd.f32 %v8508_v49, %v1184_v11  ;;  %v1307_v11 = vld [vmem:[%s11684_s3 + $0x38] sm:$0xff] }
 0x11a   : > { %v1332_v15 = vld [vmem:[#allocation3 + $0x2] sm:$0xff]  ;;  %v931_v18 = vld [vmem:[#allocation2 + $0x70] ss:$2 sm:$0xff]  ;;  %v1003_v19 = vld [vmem:[#allocation2 + $0x71] ss:$2 sm:$0xff]  ;;  %v576_v20 = vpop.f32.mrf.mxu0  ;;  %1445 = vmatprep.mubr.f32.mxu1 %v1340_v14  ;;  %v8524_v21 = vadd.f32 %v8508_v49, %v1183_v13 }
 0x11b   : > { %863 = vst [vmem:[#allocation2 + $0x90] sm:$0xff] %v576_v20  ;;  %1446 = vmatmul.mubr.f32.vlgmr.msra.gmra.mxu1 %v1332_v15  ;;  %v1239_v23 = vmax.f32 %v1215_v16, 0.0  ;;  %v1067_v28 = vmax.f32 %v931_v18, %v1003_v19  ;;  %v5532_v12 = vld [vmem:[%s11684_s3 + $0x768] sm:$0xff]  ;;  %v5547_v16 = vld [vmem:[%s11684_s3 + $0x7e0] sm:$0xff] }
 0x11c   : > { %v7300_v25 = vpop.f32.mrf.mxu0  ;;  %v1238_v26 = vmax.f32 %v8524_v21, 0.0  ;;  %6164 = vmatpush3.msra.mxu1 %v1315_v17  ;;  %v5531_v20 = vld [vmem:[%s11684_s3 + $0x760] sm:$0xff] }
 0x11d   : > { %866 = vst [vmem:[#allocation2 + $0xa8] sm:$0xff] %v7300_v25  ;;  %1263 = vst [vmem:[#allocation3 + $0x18] sm:$0xf] %v1239_v23  ;;  %6165 = vmatprep.subr.mxu1 %v1330_v22  ;;  %v1127_v40 = vrot.slane %v1067_v28, 4  ;;  %v1322_v23 = vld [vmem:[%s11684_s3 + $0xb0] sm:$0xff] }
 0x11e   : > { %v933_v30 = vld [vmem:[#allocation2 + $0x80] ss:$2 sm:$0xff]  ;;  %v1005_v31 = vld [vmem:[#allocation2 + $0x81] ss:$2 sm:$0xff]  ;;  %v586_v32 = vpop.f32.mrf.mxu0  ;;  %1262 = vst [vmem:[#allocation3 + $0x10] sm:$0xff] %v1238_v26  ;;  %6166 = vmatpush3.msra.mxu1 %v1314_v24  ;;  %v5546_v24 = vld [vmem:[%s11684_s3 + $0x7d8] sm:$0xff] }
 0x11f   : > { %v1068_v36 = vmax.f32 %v933_v30, %v1005_v31  ;;  %865 = vst [vmem:[#allocation2 + $0xa0] sm:$0xff] %v586_v32  ;;  %6167 = vmatprep.subr.mxu1 %v1329_v27  ;;  %v1321_v32 = vld [vmem:[%s11684_s3 + $0xa8] sm:$0xff] }
 0x120   : > { %v7303_v38 = vpop.f32.mrf.mxu0  ;;  %6168 = vmatpush3.msra.mxu1 %v1313_v29  ;;  %v5530_v29 = vld [vmem:[%s11684_s3 + $0x758] sm:$0xff] }
 0x121   : > { %v1128_v41 = vrot.slane %v1068_v36, 4  ;;  %868 = vst [vmem:[#allocation2 + $0xb8] sm:$0xff] %v7303_v38  ;;  %6169 = vmatprep.subr.mxu1 %v1328_v33  ;;  %v5545_v33 = vld [vmem:[%s11684_s3 + $0x7d0] sm:$0xff]  ;;  %v1305_v38 = vld [vmem:[%s11684_s3 + $0x28] sm:$0xff] }
 0x122   : > { %v596_v44 = vpop.f32.mrf.mxu0  ;;  %6170 = vmatpush3.msra.mxu1 %v1312_v37  ;;  %v935_v17 = vld [vmem:[#allocation2 + $0x90] ss:$2 sm:$0xff]  ;;  %v1007_v18 = vld [vmem:[#allocation2 + $0x91] ss:$2 sm:$0xff] }
 0x123   : > { %867 = vst [vmem:[#allocation2 + $0xb0] sm:$0xff] %v596_v44  ;;  %v1129_v46 = vsel %vm1120_vm0, %v1127_v40, %v1128_v41  ;;  %v1186_v47 = vmax.f32 %v1067_v28, %v1128_v41  ;;  %6171 = vmatprep.subr.mxu1 %v1327_v39  ;;  %v1306_v28 = vld [vmem:[%s11684_s3 + $0x30] sm:$0xff]  ;;  %v1069_v30 = vmax.f32 %v935_v17, %v1007_v18  ;;  %v1320_v39 = vld [vmem:[%s11684_s3 + $0xa0] sm:$0xff] }
 0x124   : > { %v7306_v48 = vpop.f32.mrf.mxu0  ;;  %v1185_v50 = vmax.f32 %v1066_v43, %v1129_v46  ;;  %6172 = vmatpush3.msra.mxu1 %v1311_v42  ;;  %v5529_v40 = vld [vmem:[%s11684_s3 + $0x750] sm:$0xff] }
 0x125   : > { %870 = vst [vmem:[#allocation2 + $0xc8] sm:$0xff] %v7306_v48  ;;  %v1341_v54 = vld [vmem:[#allocation3 + $0x13] sm:$0xff]  ;;  %v1217_v57 = vadd.f32 %v8508_v49, %v1186_v47  ;;  %6173 = vmatprep.subr.mxu1 %v1326_v45 }
 0x126   : > { %v2070_v55 = vld [vmem:[#allocation3 + $0x14] sm:$0xff]  ;;  %v937_v59 = vld [vmem:[#allocation2 + $0xa0] ss:$2 sm:$0xff]  ;;  %v1009_v60 = vld [vmem:[#allocation2 + $0xa1] ss:$2 sm:$0xff]  ;;  %v606_v62 = vpop.f32.mrf.mxu0  ;;  %1450 = vmatprep.mubr.f32.mxu1 %v1341_v54  ;;  %v8568_v63 = vadd.f32 %v8508_v49, %v1185_v50  ;;  %6174 = vmatpush3.msra.mxu1 %v1310_v51 }
 0x127   : > { %v1333_v56 = vld [vmem:[#allocation3 + $0x12] sm:$0xff]  ;;  %2175 = vmatprep.mubr.f32.mxu0 %v2070_v55  ;;  %869 = vst [vmem:[#allocation2 + $0xc0] sm:$0xff] %v606_v62  ;;  %v1241_v1 = vmax.f32 %v1217_v57, 0.0  ;;  %v1070_v9 = vmax.f32 %v937_v59, %v1009_v60  ;;  %6175 = vmatprep.subr.mxu1 %v1325_v52  ;;  %v5544_v50 = vld [vmem:[%s11684_s3 + $0x7c8] sm:$0xff]  ;;  %v1304_v52 = vld [vmem:[%s11684_s3 + $0x20] sm:$0xff] }
 0x128   : > { %1451 = vmatmul.mubr.f32.gmra.mxu1 %v1333_v56  ;;  %2176 = vmatmul.mubr.f32.vlgmr.msra.gmra.mxu0 %v2070_v55  ;;  %v7309_v4 = vpop.f32.mrf.mxu0  ;;  %v1240_v5 = vmax.f32 %v8568_v63, 0.0  ;;  %v1319_v56 = vld [vmem:[%s11684_s3 + $0x98] sm:$0xff]  ;;  %v5543_v59 = vld [vmem:[%s11684_s3 + $0x7c0] sm:$0xff]  ;;  %v1318_v62 = vld [vmem:[%s11684_s3 + $0x90] sm:$0xff] }
 0x129   : > { %6500 = vmatpush3.msra.mxu0 %v5534_v53  ;;  %872 = vst [vmem:[#allocation2 + $0xd8] sm:$0xff] %v7309_v4  ;;  %1265 = vst [vmem:[#allocation3 + $0x28] sm:$0xf] %v1241_v1  ;;  %6176 = vmatpush3.msra.mxu1 %v1309_v2  ;;  %v1130_v25 = vrot.slane %v1070_v9, 4  ;;  %v5528_v53 = vld [vmem:[%s11684_s3 + $0x748] sm:$0xff]  ;;  %v1303_v57 = vld [vmem:[%s11684_s3 + $0x18] sm:$0xff] }
 0x12a   : > { %6501 = vmatprep.subr.mxu0 %v5549_v0  ;;  %v939_v13 = vld [vmem:[#allocation2 + $0xb0] ss:$2 sm:$0xff]  ;;  %v1011_v14 = vld [vmem:[#allocation2 + $0xb1] ss:$2 sm:$0xff]  ;;  %v616_v15 = vpop.f32.mrf.mxu0  ;;  %1264 = vst [vmem:[#allocation3 + $0x20] sm:$0xff] %v1240_v5  ;;  %6177 = vmatprep.subr.mxu1 %v1324_v6  ;;  %v5527_v1 = vld [vmem:[%s11684_s3 + $0x740] sm:$0xff] }
 0x12b   : > { %6502 = vmatpush3.msra.mxu0 %v5533_v3  ;;  %v1071_v19 = vmax.f32 %v939_v13, %v1011_v14  ;;  %871 = vst [vmem:[#allocation2 + $0xd0] sm:$0xff] %v616_v15  ;;  %6178 = vmatpush3.msra.mxu1 %v1308_v7  ;;  %v1302_v0 = vld [vmem:[%s11684_s3 + $0x10] sm:$0xff]  ;;  %v5542_v6 = vld [vmem:[%s11684_s3 + $0x7b8] sm:$0xff]  ;;  %v5368_v63 = vld [vmem:[%s11684_s3 + $0x248] sm:$0xff] }
 0x12c   : > { %6503 = vmatprep.subr.mxu0 %v5548_v8  ;;  %v7312_v22 = vpop.f32.mrf.mxu0  ;;  %6179 = vmatprep.subr.mxu1 %v1323_v10  ;;  %v5526_v10 = vld [vmem:[%s11684_s3 + $0x738] sm:$0xff]  ;;  %v5541_v13 = vld [vmem:[%s11684_s3 + $0x7b0] sm:$0xff] }
 0x12d   : > { %6504 = vmatpush3.msra.mxu0 %v5532_v12  ;;  %v1131_v27 = vrot.slane %v1071_v19, 4  ;;  %874 = vst [vmem:[#allocation2 + $0xe8] sm:$0xff] %v7312_v22  ;;  %6180 = vmatpush3.msra.mxu1 %v1307_v11  ;;  %v1317_v12 = vld [vmem:[%s11684_s3 + $0x88] sm:$0xff]  ;;  %v5525_v17 = vld [vmem:[%s11684_s3 + $0x730] sm:$0xff] }
 0x12e   : > { %6505 = vmatprep.subr.mxu0 %v5547_v16  ;;  %v626_v31 = vpop.f32.mrf.mxu0  ;;  %6181 = vmatprep.subr.mxu1 %v1322_v23  ;;  %v941_v7 = vld [vmem:[#allocation2 + $0xc0] ss:$2 sm:$0xff]  ;;  %v1013_v8 = vld [vmem:[#allocation2 + $0xc1] ss:$2 sm:$0xff] }
 0x12f   : > { %6506 = vmatpush3.msra.mxu0 %v5531_v20  ;;  %873 = vst [vmem:[#allocation2 + $0xe0] sm:$0xff] %v626_v31  ;;  %v1132_v34 = vsel %vm1120_vm0, %v1130_v25, %v1131_v27  ;;  %v1188_v35 = vmax.f32 %v1070_v9, %v1131_v27  ;;  %6182 = vmatpush3.msra.mxu1 %v1306_v28  ;;  %v1301_v16 = vld [vmem:[%s11684_s3 + $0x8] sm:$0xff]  ;;  %v1316_v20 = vld [vmem:[%s11684_s3 + $0x80] sm:$0xff] }
 0x130   : > { %6507 = vmatprep.subr.mxu0 %v5546_v24  ;;  %v7315_v36 = vpop.f32.mrf.mxu0  ;;  %v1187_v37 = vmax.f32 %v1069_v30, %v1132_v34  ;;  %6183 = vmatprep.subr.mxu1 %v1321_v32  ;;  %v1072_v18 = vmax.f32 %v941_v7, %v1013_v8  ;;  %v5540_v22 = vld [vmem:[%s11684_s3 + $0x7a8] sm:$0xff]  ;;  %v1300_v28 = vld [vmem:[%s11684_s3] sm:$0xff] }
 0x131   : > { %6508 = vmatpush3.msra.mxu0 %v5530_v29  ;;  %876 = vst [vmem:[#allocation2 + $0xf8] sm:$0xff] %v7315_v36  ;;  %v8634_v41 = vld [vmem:[#allocation3 + $0x23] sm:$0xff]  ;;  %v1219_v44 = vadd.f32 %v8508_v49, %v1188_v35  ;;  %6184 = vmatpush3.msra.mxu1 %v1305_v38  ;;  %v5390_v29 = vld [vmem:[%s11684_s3 + $0x2f8] sm:$0xff] }
 0x132   : > { %v2071_v42 = vld [vmem:[#allocation3 + $0x24] sm:$0xff]  ;;  %6509 = vmatprep.subr.mxu0 %v5545_v33  ;;  %v943_v45 = vld [vmem:[#allocation2 + $0xd0] ss:$2 sm:$0xff]  ;;  %v1015_v46 = vld [vmem:[#allocation2 + $0xd1] ss:$2 sm:$0xff]  ;;  %v636_v47 = vpop.f32.mrf.mxu0  ;;  %1455 = vmatprep.mubr.f32.mxu1 %v8634_v41  ;;  %v8641_v48 = vadd.f32 %v8508_v49, %v1187_v37 }
 0x133   : > { %v8636_v43 = vld [vmem:[#allocation3 + $0x22] sm:$0xff]  ;;  %2180 = vmatprep.mubr.f32.mxu0 %v2071_v42  ;;  %875 = vst [vmem:[#allocation2 + $0xf0] sm:$0xff] %v636_v47  ;;  %v1243_v51 = vmax.f32 %v1219_v44, 0.0  ;;  %6510 = vmatpush3.msra.mxu0 %v5529_v40  ;;  %v1073_v60 = vmax.f32 %v943_v45, %v1015_v46  ;;  %v5538_v46 = vld [vmem:[%s11684_s3 + $0x798] sm:$0xff] }
 0x134   : > { %1456 = vmatmul.mubr.f32.gmra.mxu1 %v8636_v43  ;;  %2181 = vmatmul.mubr.f32.gmra.mxu0 %v2071_v42  ;;  %v7318_v54 = vpop.f32.mrf.mxu0  ;;  %v1242_v55 = vmax.f32 %v8641_v48, 0.0  ;;  %v5524_v30 = vld [vmem:[%s11684_s3 + $0x728] sm:$0xff]  ;;  %v5523_v42 = vld [vmem:[%s11684_s3 + $0x720] sm:$0xff]  ;;  %v5613_v48 = vld [vmem:[%s11684_s3 + $0x9f0] sm:$0xff] }
 0x135   : > { %878 = vst [vmem:[#allocation2 + $0x108] sm:$0xff] %v7318_v54  ;;  %1267 = vst [vmem:[#allocation3 + $0x38] sm:$0xf] %v1243_v51  ;;  %6185 = vmatprep.subr.mxu1 %v1320_v39  ;;  %6511 = vmatprep.subr.mxu0 %v5544_v50  ;;  %v1133_v14 = vrot.slane %v1073_v60, 4  ;;  %v5539_v39 = vld [vmem:[%s11684_s3 + $0x7a0] sm:$0xff]  ;;  %v5522_v50 = vld [vmem:[%s11684_s3 + $0x718] sm:$0xff] }
 0x136   : > { %v945_v2 = vld [vmem:[#allocation2 + $0xe0] ss:$2 sm:$0xff]  ;;  %v1017_v3 = vld [vmem:[#allocation2 + $0xe1] ss:$2 sm:$0xff]  ;;  %v646_v4 = vpop.f32.mrf.mxu0  ;;  %1266 = vst [vmem:[#allocation3 + $0x30] sm:$0xff] %v1242_v55  ;;  %6186 = vmatpush3.msra.mxu1 %v1304_v52  ;;  %6512 = vmatpush3.msra.mxu0 %v5528_v53  ;;  %v5537_v54 = vld [vmem:[%s11684_s3 + $0x790] sm:$0xff] }
 0x137   : > { %v1074_v9 = vmax.f32 %v945_v2, %v1017_v3  ;;  %877 = vst [vmem:[#allocation2 + $0x100] sm:$0xff] %v646_v4  ;;  %6187 = vmatprep.subr.mxu1 %v1319_v56  ;;  %6513 = vmatprep.subr.mxu0 %v5543_v59  ;;  %v5520_v3 = vld [vmem:[%s11684_s3 + $0x708] sm:$0xff]  ;;  %v5535_v7 = vld [vmem:[%s11684_s3 + $0x780] sm:$0xff] }
 0x138   : > { %v7321_v11 = vpop.f32.mrf.mxu0  ;;  %6188 = vmatpush3.msra.mxu1 %v1303_v57  ;;  %6514 = vmatpush3.msra.mxu0 %v5527_v1 }
 0x139   : > { %v1134_v15 = vrot.slane %v1074_v9, 4  ;;  %880 = vst [vmem:[#allocation2 + $0x118] sm:$0xff] %v7321_v11  ;;  %6189 = vmatprep.subr.mxu1 %v1318_v62  ;;  %6515 = vmatprep.subr.mxu0 %v5542_v6 }
 0x13a   : > { %v656_v19 = vpop.f32.mrf.mxu0  ;;  %6190 = vmatpush3.msra.mxu1 %v1302_v0  ;;  %6516 = vmatpush3.msra.mxu0 %v5526_v10  ;;  %v947_v56 = vld [vmem:[#allocation2 + $0xf0] ss:$2 sm:$0xff]  ;;  %v1019_v57 = vld [vmem:[#allocation2 + $0xf1] ss:$2 sm:$0xff]  ;;  %v5536_v0 = vld [vmem:[%s11684_s3 + $0x788] sm:$0xff] }
 0x13b   : > { %879 = vst [vmem:[#allocation2 + $0x110] sm:$0xff] %v656_v19  ;;  %v1135_v23 = vsel %vm1120_vm0, %v1133_v14, %v1134_v15  ;;  %v1190_v24 = vmax.f32 %v1073_v60, %v1134_v15  ;;  %6191 = vmatprep.subr.mxu1 %v1317_v12  ;;  %6517 = vmatprep.subr.mxu0 %v5541_v13  ;;  %v5521_v60 = vld [vmem:[%s11684_s3 + $0x710] sm:$0xff]  ;;  %v5519_v12 = vld [vmem:[%s11684_s3 + $0x700] sm:$0xff] }
 0x13c   : > { %v7324_v25 = vpop.f32.mrf.mxu0  ;;  %v1189_v27 = vmax.f32 %v1072_v18, %v1135_v23  ;;  %6192 = vmatpush3.msra.mxu1 %v1301_v16  ;;  %6518 = vmatpush3.msra.mxu0 %v5525_v17  ;;  %v1075_v4 = vmax.f32 %v947_v56, %v1019_v57 }
 0x13d   : > { %882 = vst [vmem:[#allocation2 + $0x128] sm:$0xff] %v7324_v25  ;;  %v8708_v31 = vld [vmem:[#allocation3 + $0x33] sm:$0xff]  ;;  %v1221_v34 = vadd.f32 %v8508_v49, %v1190_v24  ;;  %6193 = vmatprep.subr.mxu1 %v1316_v20  ;;  %6519 = vmatprep.subr.mxu0 %v5540_v22 }
 0x13e   : > { %v2072_v32 = vld [vmem:[#allocation3 + $0x34] sm:$0xff]  ;;  %v949_v35 = vld [vmem:[#allocation2 + $0x100] ss:$2 sm:$0xff]  ;;  %v1021_v36 = vld [vmem:[#allocation2 + $0x101] ss:$2 sm:$0xff]  ;;  %v666_v37 = vpop.f32.mrf.mxu0  ;;  %1460 = vmatprep.mubr.f32.mxu1 %v8708_v31  ;;  %v8715_v38 = vadd.f32 %v8508_v49, %v1189_v27  ;;  %6194 = vmatpush3.msra.mxu1 %v1300_v28 }
 0x13f   : > { %v8710_v33 = vld [vmem:[#allocation3 + $0x32] sm:$0xff]  ;;  %2185 = vmatprep.mubr.f32.mxu0 %v2072_v32  ;;  %881 = vst [vmem:[#allocation2 + $0x120] sm:$0xff] %v666_v37  ;;  %v1245_v40 = vmax.f32 %v1221_v34, 0.0  ;;  %6520 = vmatpush3.msra.mxu0 %v5524_v30  ;;  %v1076_v47 = vmax.f32 %v949_v35, %v1021_v36 }
 0x140   : > { %1461 = vmatmul.mubr.f32.gmra.mxu1 %v8710_v33  ;;  %2186 = vmatmul.mubr.f32.gmra.mxu0 %v2072_v32  ;;  %v7327_v44 = vpop.f32.mrf.mxu0  ;;  %v1244_v45 = vmax.f32 %v8715_v38, 0.0  ;;  %v5614_v22 = vld [vmem:[%s11684_s3 + $0x9f8] sm:$0xff]  ;;  %v5365_v38 = vld [vmem:[%s11684_s3 + $0x230] sm:$0xff] }
 0x141   : > { %884 = vst [vmem:[#allocation2 + $0x138] sm:$0xff] %v7327_v44  ;;  %1269 = vst [vmem:[#allocation3 + $0x48] sm:$0xf] %v1245_v40  ;;  %6219 = vmatprep.subr.mxu1 %v5390_v29  ;;  %6521 = vmatprep.subr.mxu0 %v5539_v39  ;;  %v1136_v1 = vrot.slane %v1076_v47, 4 }
 0x142   : > { %v951_v51 = vld [vmem:[#allocation2 + $0x110] ss:$2 sm:$0xff]  ;;  %v1023_v52 = vld [vmem:[#allocation2 + $0x111] ss:$2 sm:$0xff]  ;;  %v676_v53 = vpop.f32.mrf.mxu0  ;;  %1268 = vst [vmem:[#allocation3 + $0x40] sm:$0xff] %v1244_v45  ;;  %6522 = vmatpush3.msra.mxu0 %v5523_v42 }
 0x143   : > { %v1077_v59 = vmax.f32 %v951_v51, %v1023_v52  ;;  %883 = vst [vmem:[#allocation2 + $0x130] sm:$0xff] %v676_v53  ;;  %6523 = vmatprep.subr.mxu0 %v5538_v46 }
 0x144   : > { %v7330_v62 = vpop.f32.mrf.mxu0  ;;  %6524 = vmatpush3.msra.mxu0 %v5522_v50 }
 0x145   : > { %v1137_v2 = vrot.slane %v1077_v59, 4  ;;  %886 = vst [vmem:[#allocation2 + $0x148] sm:$0xff] %v7330_v62  ;;  %6525 = vmatprep.subr.mxu0 %v5537_v54 }
 0x146   : > { %v686_v6 = vpop.f32.mrf.mxu0  ;;  %6526 = vmatpush3.msra.mxu0 %v5521_v60  ;;  %v953_v32 = vld [vmem:[#allocation2 + $0x120] ss:$2 sm:$0xff]  ;;  %v1025_v34 = vld [vmem:[#allocation2 + $0x121] ss:$2 sm:$0xff] }
 0x147   : > { %885 = vst [vmem:[#allocation2 + $0x140] sm:$0xff] %v686_v6  ;;  %v1138_v8 = vsel %vm1120_vm0, %v1136_v1, %v1137_v2  ;;  %v1192_v9 = vmax.f32 %v1076_v47, %v1137_v2  ;;  %6527 = vmatprep.subr.mxu0 %v5536_v0  ;;  %v1078_v40 = vmax.f32 %v953_v32, %v1025_v34 }
 0x148   : > { %v7333_v10 = vpop.f32.mrf.mxu0  ;;  %v1191_v11 = vmax.f32 %v1075_v4, %v1138_v8  ;;  %6528 = vmatpush3.msra.mxu0 %v5520_v3 }
 0x149   : > { %888 = vst [vmem:[#allocation2 + $0x158] sm:$0xff] %v7333_v10  ;;  %v8752_v13 = vld [vmem:[#allocation3 + $0x43] sm:$0xff]  ;;  %v1223_v16 = vadd.f32 %v8508_v49, %v1192_v9  ;;  %6529 = vmatprep.subr.mxu0 %v5535_v7 }
 0x14a   : > { %v2073_v14 = vld [vmem:[#allocation3 + $0x44] sm:$0xff]  ;;  %v955_v17 = vld [vmem:[#allocation2 + $0x130] ss:$2 sm:$0xff]  ;;  %v1027_v18 = vld [vmem:[#allocation2 + $0x131] ss:$2 sm:$0xff]  ;;  %v696_v19 = vpop.f32.mrf.mxu0  ;;  %1465 = vmatprep.mubr.f32.mxu1 %v8752_v13  ;;  %v8759_v20 = vadd.f32 %v8508_v49, %v1191_v11  ;;  %6530 = vmatpush3.msra.mxu0 %v5519_v12 }
 0x14b   : > { %v8754_v15 = vld [vmem:[#allocation3 + $0x42] sm:$0xff]  ;;  %2190 = vmatprep.mubr.f32.mxu0 %v2073_v14  ;;  %887 = vst [vmem:[#allocation2 + $0x150] sm:$0xff] %v696_v19  ;;  %v1247_v23 = vmax.f32 %v1223_v16, 0.0  ;;  %v1079_v27 = vmax.f32 %v955_v17, %v1027_v18  ;;  %6611 = vmatprep.subr.mxu0 %v5614_v22 }
 0x14c   : > { %1466 = vmatmul.mubr.f32.gmra.mxu1 %v8754_v15  ;;  %2191 = vmatmul.mubr.f32.gmra.mxu0 %v2073_v14  ;;  %v7336_v24 = vpop.f32.mrf.mxu0  ;;  %v1246_v25 = vmax.f32 %v8759_v20, 0.0 }
 0x14d   : > { %890 = vst [vmem:[#allocation2 + $0x168] sm:$0xff] %v7336_v24  ;;  %1271 = vst [vmem:[#allocation3 + $0x58] sm:$0xf] %v1247_v23  ;;  %v1139_v37 = vrot.slane %v1079_v27, 4 }
 0x14e   : > { %v957_v28 = vld [vmem:[#allocation2 + $0x140] ss:$2 sm:$0xff]  ;;  %v1029_v29 = vld [vmem:[#allocation2 + $0x141] ss:$2 sm:$0xff]  ;;  %v706_v30 = vpop.f32.mrf.mxu0  ;;  %1270 = vst [vmem:[#allocation3 + $0x50] sm:$0xff] %v1246_v25 }
 0x14f   : > { %v1080_v35 = vmax.f32 %v957_v28, %v1029_v29  ;;  %889 = vst [vmem:[#allocation2 + $0x160] sm:$0xff] %v706_v30 }
 0x150   : > { %v7339_v36 = vpop.f32.mrf.mxu0 }
 0x151   : > { %v1140_v39 = vrot.slane %v1080_v35, 4  ;;  %892 = vst [vmem:[#allocation2 + $0x178] sm:$0xff] %v7339_v36 }
 0x152   : > { %v716_v42 = vpop.f32.mrf.mxu0  ;;  %v959_v7 = vld [vmem:[#allocation2 + $0x150] ss:$2 sm:$0xff]  ;;  %v1031_v8 = vld [vmem:[#allocation2 + $0x151] ss:$2 sm:$0xff] }
 0x153   : > { %891 = vst [vmem:[#allocation2 + $0x170] sm:$0xff] %v716_v42  ;;  %v1141_v44 = vsel %vm1120_vm0, %v1139_v37, %v1140_v39  ;;  %v1194_v46 = vmax.f32 %v1079_v27, %v1140_v39  ;;  %v1081_v14 = vmax.f32 %v959_v7, %v1031_v8 }
 0x154   : > { %v7342_v47 = vpop.f32.mrf.mxu0  ;;  %v1193_v50 = vmax.f32 %v1078_v40, %v1141_v44 }
 0x155   : > { %894 = vst [vmem:[#allocation2 + $0x188] sm:$0xff] %v7342_v47  ;;  %v8769_v51 = vld [vmem:[#allocation3 + $0x53] sm:$0xff]  ;;  %v1225_v54 = vadd.f32 %v8508_v49, %v1194_v46 }
 0x156   : > { %v8771_v52 = vld [vmem:[#allocation3 + $0x54] sm:$0xff]  ;;  %v961_v56 = vld [vmem:[#allocation2 + $0x160] ss:$2 sm:$0xff]  ;;  %v1033_v57 = vld [vmem:[#allocation2 + $0x161] ss:$2 sm:$0xff]  ;;  %v726_v59 = vpop.f32.mrf.mxu0  ;;  %1470 = vmatprep.mubr.f32.mxu1 %v8769_v51  ;;  %v1224_v60 = vadd.f32 %v8508_v49, %v1193_v50 }
 0x157   : > { %v8773_v53 = vld [vmem:[#allocation3 + $0x52] sm:$0xff]  ;;  %2195 = vmatprep.mubr.f32.mxu0 %v8771_v52  ;;  %893 = vst [vmem:[#allocation2 + $0x180] sm:$0xff] %v726_v59  ;;  %v1249_v62 = vmax.f32 %v1225_v54, 0.0  ;;  %v1082_v2 = vmax.f32 %v961_v56, %v1033_v57 }
 0x158   : > { %1471 = vmatmul.mubr.f32.gmra.mxu1 %v8773_v53  ;;  %2196 = vmatmul.mubr.f32.gmra.mxu0 %v8771_v52  ;;  %v7345_v0 = vpop.f32.mrf.mxu0  ;;  %v8781_v1 = vmax.f32 %v1224_v60, 0.0 }
 0x159   : > { %896 = vst [vmem:[#allocation2 + $0x198] sm:$0xff] %v7345_v0  ;;  %1273 = vst [vmem:[#allocation3 + $0x68] sm:$0xf] %v1249_v62  ;;  %v1142_v11 = vrot.slane %v1082_v2, 4 }
 0x15a   : > { %v963_v3 = vld [vmem:[#allocation2 + $0x170] ss:$2 sm:$0xff]  ;;  %v1035_v4 = vld [vmem:[#allocation2 + $0x171] ss:$2 sm:$0xff]  ;;  %v736_v6 = vpop.f32.mrf.mxu0  ;;  %1272 = vst [vmem:[#allocation3 + $0x60] sm:$0xff] %v8781_v1 }
 0x15b   : > { %v1083_v9 = vmax.f32 %v963_v3, %v1035_v4  ;;  %895 = vst [vmem:[#allocation2 + $0x190] sm:$0xff] %v736_v6 }
 0x15c   : > { %v7348_v10 = vpop.f32.mrf.mxu0 }
 0x15d   : > { %v1143_v12 = vrot.slane %v1083_v9, 4  ;;  %898 = vst [vmem:[#allocation2 + $0x1a8] sm:$0xff] %v7348_v10 }
 0x15e   : > { %v746_v16 = vpop.f32.mrf.mxu0  ;;  %v965_v40 = vld [vmem:[#allocation2 + $0x180] ss:$2 sm:$0xff]  ;;  %v1037_v42 = vld [vmem:[#allocation2 + $0x181] ss:$2 sm:$0xff] }
 0x15f   : > { %897 = vst [vmem:[#allocation2 + $0x1a0] sm:$0xff] %v746_v16  ;;  %v1144_v17 = vsel %vm1120_vm0, %v1142_v11, %v1143_v12  ;;  %v1196_v18 = vmax.f32 %v1082_v2, %v1143_v12  ;;  %v1084_v56 = vmax.f32 %v965_v40, %v1037_v42 }
 0x160   : > { %v1195_v19 = vmax.f32 %v1081_v14, %v1144_v17  ;;  %v7351_v22 = vpop.f32.mrf.mxu0  ;;  %v1292_v14 = vld [vmem:[#allocation3 + $0x1] sm:$0xff] }
 0x161   : > { %v8785_v23 = vld [vmem:[#allocation3 + $0x63] sm:$0xff]  ;;  %v1227_v28 = vadd.f32 %v8508_v49, %v1196_v18  ;;  %900 = vst [vmem:[#allocation2 + $0x1b8] sm:$0xff] %v7351_v22  ;;  %v5374_v22 = vld [vmem:[%s11684_s3 + $0x278] sm:$0xff] }
 0x162   : > { %v8787_v24 = vld [vmem:[#allocation3 + $0x64] sm:$0xff]  ;;  %v967_v29 = vld [vmem:[#allocation2 + $0x190] ss:$2 sm:$0xff]  ;;  %v1039_v30 = vld [vmem:[#allocation2 + $0x191] ss:$2 sm:$0xff]  ;;  %1475 = vmatprep.mubr.f32.mxu1 %v8785_v23  ;;  %v1226_v32 = vadd.f32 %v8508_v49, %v1195_v19  ;;  %v756_v34 = vpop.f32.mrf.mxu0 }
 0x163   : > { %v8789_v27 = vld [vmem:[#allocation3 + $0x62] sm:$0xff]  ;;  %2200 = vmatprep.mubr.f32.mxu0 %v8787_v24  ;;  %v1085_v35 = vmax.f32 %v967_v29, %v1039_v30  ;;  %v1251_v36 = vmax.f32 %v1227_v28, 0.0  ;;  %899 = vst [vmem:[#allocation2 + $0x1b0] sm:$0xff] %v756_v34  ;;  %v5389_v30 = vld [vmem:[%s11684_s3 + $0x2f0] sm:$0xff] }
 0x164   : > { %1476 = vmatmul.mubr.f32.gmra.mxu1 %v8789_v27  ;;  %2201 = vmatmul.mubr.f32.gmra.mxu0 %v8787_v24  ;;  %v8797_v37 = vmax.f32 %v1226_v32, 0.0  ;;  %v7354_v39 = vpop.f32.mrf.mxu0 }
 0x165   : > { %1275 = vst [vmem:[#allocation3 + $0x78] sm:$0xf] %v1251_v36  ;;  %902 = vst [vmem:[#allocation2 + $0x1c8] sm:$0xff] %v7354_v39  ;;  %v1145_v50 = vrot.slane %v1085_v35, 4  ;;  %v8826_v36 = vld [vmem:[#allocation3 + $0x11] sm:$0xff] }
 0x166   : > { %v969_v44 = vld [vmem:[#allocation2 + $0x1a0] ss:$2 sm:$0xff]  ;;  %v1041_v46 = vld [vmem:[#allocation2 + $0x1a1] ss:$2 sm:$0xff]  ;;  %1274 = vst [vmem:[#allocation3 + $0x70] sm:$0xff] %v8797_v37  ;;  %v766_v47 = vpop.f32.mrf.mxu0  ;;  %v5373_v39 = vld [vmem:[%s11684_s3 + $0x270] sm:$0xff] }
 0x167   : > { %v1086_v54 = vmax.f32 %v969_v44, %v1041_v46  ;;  %901 = vst [vmem:[#allocation2 + $0x1c0] sm:$0xff] %v766_v47  ;;  %v5388_v46 = vld [vmem:[%s11684_s3 + $0x2e8] sm:$0xff] }
 0x168   : > { %v7357_v57 = vpop.f32.mrf.mxu0 }
 0x169   : > { %v1146_v59 = vrot.slane %v1086_v54, 4  ;;  %904 = vst [vmem:[#allocation2 + $0x1d8] sm:$0xff] %v7357_v57  ;;  %v5371_v57 = vld [vmem:[%s11684_s3 + $0x260] sm:$0xff] }
 0x16a   : > { %v776_v60 = vpop.f32.mrf.mxu0  ;;  %v971_v28 = vld [vmem:[#allocation2 + $0x1b0] ss:$2 sm:$0xff]  ;;  %v1043_v29 = vld [vmem:[#allocation2 + $0x1b1] ss:$2 sm:$0xff] }
 0x16b   : > { %v1147_v62 = vsel %vm1120_vm0, %v1145_v50, %v1146_v59  ;;  %v1198_v0 = vmax.f32 %v1085_v35, %v1146_v59  ;;  %903 = vst [vmem:[#allocation2 + $0x1d0] sm:$0xff] %v776_v60  ;;  %v1087_v44 = vmax.f32 %v971_v28, %v1043_v29  ;;  %v5387_v50 = vld [vmem:[%s11684_s3 + $0x2e0] sm:$0xff] }
 0x16c   : > { %v1197_v2 = vmax.f32 %v1084_v56, %v1147_v62  ;;  %v7360_v3 = vpop.f32.mrf.mxu0  ;;  %v8843_v56 = vld [vmem:[#allocation3 + $0x21] sm:$0xff]  ;;  %v5386_v62 = vld [vmem:[%s11684_s3 + $0x2d8] sm:$0xff] }
 0x16d   : > { %v8801_v4 = vld [vmem:[#allocation3 + $0x73] sm:$0xff]  ;;  %v1229_v8 = vadd.f32 %v8508_v49, %v1198_v0  ;;  %906 = vst [vmem:[#allocation2 + $0x1e8] sm:$0xff] %v7360_v3  ;;  %v5383_v28 = vld [vmem:[%s11684_s3 + $0x2c0] sm:$0xff] }
 0x16e   : > { %v8803_v6 = vld [vmem:[#allocation3 + $0x74] sm:$0xff]  ;;  %1480 = vmatprep.mubr.f32.mxu1 %v8801_v4  ;;  %v973_v9 = vld [vmem:[#allocation2 + $0x1c0] ss:$2 sm:$0xff]  ;;  %v1045_v10 = vld [vmem:[#allocation2 + $0x1c1] ss:$2 sm:$0xff]  ;;  %v8811_v11 = vadd.f32 %v8508_v49, %v1197_v2  ;;  %v786_v12 = vpop.f32.mrf.mxu0 }
 0x16f   : > { %v8805_v7 = vld [vmem:[#allocation3 + $0x72] sm:$0xff]  ;;  %2205 = vmatprep.mubr.f32.mxu0 %v8803_v6  ;;  %v1088_v16 = vmax.f32 %v973_v9, %v1045_v10  ;;  %v1253_v17 = vmax.f32 %v1229_v8, 0.0  ;;  %905 = vst [vmem:[#allocation2 + $0x1e0] sm:$0xff] %v786_v12 }
 0x170   : > { %1481 = vmatmul.mubr.f32.gmra.mxu1 %v8805_v7  ;;  %2206 = vmatmul.mubr.f32.gmra.mxu0 %v8803_v6  ;;  %v1252_v18 = vmax.f32 %v8811_v11, 0.0  ;;  %v7363_v19 = vpop.f32.mrf.mxu0  ;;  %v5385_v3 = vld [vmem:[%s11684_s3 + $0x2d0] sm:$0xff] }
 0x171   : > { %1550 = vmatprep.mubr.f32.mxu1 %v1292_v14  ;;  %1277 = vst [vmem:[#allocation3 + $0x88] sm:$0xf] %v1253_v17  ;;  %908 = vst [vmem:[#allocation2 + $0x1f8] sm:$0xff] %v7363_v19  ;;  %v1148_v40 = vrot.slane %v1088_v16, 4  ;;  %v5369_v12 = vld [vmem:[%s11684_s3 + $0x250] sm:$0xff]  ;;  %v5384_v19 = vld [vmem:[%s11684_s3 + $0x2c8] sm:$0xff] }
 0x172   : > { %1276 = vst [vmem:[#allocation3 + $0x80] sm:$0xff] %v1252_v18  ;;  %v975_v32 = vld [vmem:[#allocation2 + $0x1d0] ss:$2 sm:$0xff]  ;;  %v1047_v34 = vld [vmem:[#allocation2 + $0x1d1] ss:$2 sm:$0xff]  ;;  %v796_v35 = vpop.f32.mrf.mxu0 }
 0x173   : > { %v1089_v42 = vmax.f32 %v975_v32, %v1047_v34  ;;  %907 = vst [vmem:[#allocation2 + $0x1f0] sm:$0xff] %v796_v35  ;;  %v8868_v17 = vld [vmem:[#allocation3 + $0x31] sm:$0xff]  ;;  %v8890_v35 = vld [vmem:[#allocation3 + $0x41] sm:$0xff] }
 0x174   : > { %1551 = vmatmul.mubr.f32.vlgmr.msra.gmra.mxu1 %v1236_v61  ;;  %v7366_v47 = vpop.f32.mrf.mxu0  ;;  %v5598_v32 = vld [vmem:[%s11684_s3 + $0x978] sm:$0xff] }
 0x175   : > { %6220 = vmatpush3.msra.mxu1 %v5374_v22  ;;  %1555 = vmatprep.mubr.f32.mxu1 %v8826_v36  ;;  %v1149_v61 = vrot.slane %v1089_v42, 4  ;;  %910 = vst [vmem:[#allocation2 + $0x208] sm:$0xff] %v7366_v47 }
 0x176   : > { %6221 = vmatprep.subr.mxu1 %v5389_v30  ;;  %v806_v54 = vpop.f32.mrf.mxu0  ;;  %v1049_v22 = vld [vmem:[#allocation2 + $0x1e1] ss:$2 sm:$0xff] }
 0x177   : > { %6222 = vmatpush3.msra.mxu1 %v5373_v39  ;;  %v1200_v59 = vmax.f32 %v1088_v16, %v1149_v61  ;;  %v1150_v60 = vsel %vm1120_vm0, %v1148_v40, %v1149_v61  ;;  %909 = vst [vmem:[#allocation2 + $0x200] sm:$0xff] %v806_v54  ;;  %v5367_v39 = vld [vmem:[%s11684_s3 + $0x240] sm:$0xff]  ;;  %v5382_v40 = vld [vmem:[%s11684_s3 + $0x2b8] sm:$0xff] }
 0x178   : > { %6223 = vmatprep.subr.mxu1 %v5388_v46  ;;  %1556 = vmatmul.mubr.f32.gmra.mxu1 %v1238_v26  ;;  %v1199_v0 = vmax.f32 %v1087_v44, %v1150_v60  ;;  %v5370_v26 = vld [vmem:[%s11684_s3 + $0x258] sm:$0xff]  ;;  %v5612_v46 = vld [vmem:[%s11684_s3 + $0x9e8] sm:$0xff]  ;;  %v8925_v54 = vld [vmem:[%s11683_s2] ss:$0 sm:$0xff] }
 0x179   : > { %6224 = vmatpush3.msra.mxu1 %v5372_v58  ;;  %1560 = vmatprep.mubr.f32.mxu1 %v8843_v56  ;;  %v2077_v21 = vld [vmem:[#allocation3 + $0x84] sm:$0xff]  ;;  %v1231_v2 = vadd.f32 %v8508_v49, %v1200_v59  ;;  %v5366_v44 = vld [vmem:[%s11684_s3 + $0x238] sm:$0xff] }
 0x17a   : > { %6225 = vmatprep.subr.mxu1 %v5387_v50  ;;  %2210 = vmatprep.mubr.f32.mxu0 %v2077_v21  ;;  %v979_v8 = vld [vmem:[#allocation2 + $0x1f0] ss:$2 sm:$0xff]  ;;  %v1051_v9 = vld [vmem:[#allocation2 + $0x1f1] ss:$2 sm:$0xff]  ;;  %v8861_v10 = vadd.f32 %v8508_v49, %v1199_v0  ;;  %v5596_v50 = vld [vmem:[%s11684_s3 + $0x968] sm:$0xff] }
 0x17b   : > { %6226 = vmatpush3.msra.mxu1 %v5371_v57  ;;  %v1091_v14 = vmax.f32 %v979_v8, %v1051_v9  ;;  %v1255_v16 = vmax.f32 %v1231_v2, 0.0  ;;  %2211 = vmatmul.mubr.f32.gmra.mxu0 %v2077_v21  ;;  %v8928_v59 = vld [vmem:[#allocation3 + $0x51] sm:$0xff]  ;;  %v5380_v60 = vld [vmem:[%s11684_s3 + $0x2a8] sm:$0xff] }
 0x17c   : > { %6227 = vmatprep.subr.mxu1 %v5386_v62  ;;  %1561 = vmatmul.mubr.f32.gmra.mxu1 %v1240_v5  ;;  %v1254_v49 = vmax.f32 %v8861_v10, 0.0  ;;  %v977_v5 = vld [vmem:[#allocation2 + $0x1e0] ss:$2 sm:$0xff]  ;;  %v5594_v8 = vld [vmem:[%s11684_s3 + $0x958] sm:$0xff] }
 0x17d   : > { %6228 = vmatpush3.msra.mxu1 %v5370_v26  ;;  %1565 = vmatprep.mubr.f32.mxu1 %v8868_v17  ;;  %1279 = vst [vmem:[#allocation3 + $0x98] sm:$0xf] %v1255_v16  ;;  %v1151_v34 = vrot.slane %v1091_v14, 4  ;;  %v5595_v62 = vld [vmem:[%s11684_s3 + $0x960] sm:$0xff]  ;;  %v7369_v26 = vpop.f32.mrf.mxu0  ;;  %v5364_v2 = vld [vmem:[%s11684_s3 + $0x228] sm:$0xff] }
 0x17e   : > { %6229 = vmatprep.subr.mxu1 %v5385_v3  ;;  %2500 = vmatprep.mubr.f32.mxu0 %v8634_v41  ;;  %1278 = vst [vmem:[#allocation3 + $0x90] sm:$0xff] %v1254_v49  ;;  %v981_v29 = vld [vmem:[#allocation2 + $0x200] ss:$2 sm:$0xff]  ;;  %v1053_v30 = vld [vmem:[#allocation2 + $0x201] ss:$2 sm:$0xff]  ;;  %v5610_v3 = vld [vmem:[%s11684_s3 + $0x9d8] sm:$0xff] }
 0x17f   : > { %6230 = vmatpush3.msra.mxu1 %v5369_v12  ;;  %v1092_v41 = vmax.f32 %v981_v29, %v1053_v30  ;;  %2501 = vmatmul.mubr.f32.vlgmr.msra.gmra.mxu0 %v8636_v43  ;;  %v5597_v43 = vld [vmem:[%s11684_s3 + $0x970] sm:$0xff]  ;;  %912 = vst [vmem:[#allocation2 + $0x218] sm:$0xff] %v7369_v26  ;;  %v8965_v9 = vld [vmem:[#allocation3 + $0x61] sm:$0xff]  ;;  %v816_v20 = vpop.f32.mrf.mxu0  ;;  %v5586_v26 = vld [vmem:[%s11684_s3 + $0x918] sm:$0xff] }
 0x180   : > { %6231 = vmatprep.subr.mxu1 %v5384_v19  ;;  %1566 = vmatmul.mubr.f32.gmra.mxu1 %v1242_v55  ;;  %v1090_v55 = vmax.f32 %v977_v5, %v1049_v22  ;;  %v5363_v12 = vld [vmem:[%s11684_s3 + $0x220] sm:$0xff]  ;;  %911 = vst [vmem:[#allocation2 + $0x210] sm:$0xff] %v816_v20  ;;  %v5362_v19 = vld [vmem:[%s11684_s3 + $0x218] sm:$0xff]  ;;  %v5377_v5 = vld [vmem:[%s11684_s3 + $0x290] sm:$0xff] }
 0x181   : > { %6232 = vmatpush3.msra.mxu1 %v5368_v63  ;;  %1570 = vmatprep.mubr.f32.mxu1 %v8890_v35  ;;  %v1152_v42 = vrot.slane %v1092_v41, 4  ;;  %v7372_v16 = vpop.f32.mrf.mxu0  ;;  %v5608_v63 = vld [vmem:[%s11684_s3 + $0x9c8] sm:$0xff]  ;;  %v5361_v29 = vld [vmem:[%s11684_s3 + $0x210] sm:$0xff]  ;;  %v5607_v30 = vld [vmem:[%s11684_s3 + $0x9c0] sm:$0xff] }
 0x182   : > { %6233 = vmatprep.subr.mxu1 %v5383_v28  ;;  %2505 = vmatprep.mubr.f32.mxu0 %v8708_v31  ;;  %v5381_v31 = vld [vmem:[%s11684_s3 + $0x2b0] sm:$0xff]  ;;  %914 = vst [vmem:[#allocation2 + $0x228] sm:$0xff] %v7372_v16  ;;  %v5360_v41 = vld [vmem:[%s11684_s3 + $0x208] sm:$0xff] }
 0x183   : > { %6612 = vmatpush3.msra.mxu0 %v5598_v32  ;;  %6234 = vmatpush3.msra.mxu1 %v5367_v39  ;;  %v1202_v47 = vmax.f32 %v1091_v14, %v1152_v42  ;;  %v1153_v58 = vsel %vm1120_vm0, %v1151_v34, %v1152_v42  ;;  %v5609_v14 = vld [vmem:[%s11684_s3 + $0x9d0] sm:$0xff]  ;;  %v826_v22 = vpop.f32.mrf.mxu0  ;;  %v5591_v32 = vld [vmem:[%s11684_s3 + $0x940] sm:$0xff]  ;;  %v5606_v39 = vld [vmem:[%s11684_s3 + $0x9b8] sm:$0xff] }
 0x184   : > { %6613 = vmatprep.subr.mxu0 %v5613_v48  ;;  %6235 = vmatprep.subr.mxu1 %v5382_v40  ;;  %v1201_v61 = vmax.f32 %v1090_v55, %v1153_v58  ;;  %v8995_v28 = vld [vmem:[#allocation3 + $0x71] sm:$0xff]  ;;  %913 = vst [vmem:[#allocation2 + $0x220] sm:$0xff] %v826_v22  ;;  %v5375_v48 = vld [vmem:[%s11684_s3 + $0x280] sm:$0xff]  ;;  %v5416_v22 = vld [vmem:[%s11684_s3 + $0x3c8] sm:$0xff] }
 0x185   : > { %6614 = vmatpush3.msra.mxu0 %v5597_v43  ;;  %1571 = vmatmul.mubr.f32.gmra.mxu1 %v1244_v45  ;;  %v1233_v57 = vadd.f32 %v8925_v54, %v1202_v47  ;;  %v7375_v34 = vpop.f32.mrf.mxu0  ;;  %v1591_v40 = vld [vmem:[#allocation3 + $0x4] sm:$0xff]  ;;  %v5605_v42 = vld [vmem:[%s11684_s3 + $0x9b0] sm:$0xff] }
 0x186   : > { %2506 = vmatmul.mubr.f32.gmra.mxu0 %v8710_v33  ;;  %6236 = vmatpush3.msra.mxu1 %v5366_v44  ;;  %v5611_v33 = vld [vmem:[%s11684_s3 + $0x9e0] sm:$0xff]  ;;  %v8937_v45 = vadd.f32 %v8925_v54, %v1201_v61  ;;  %916 = vst [vmem:[#allocation2 + $0x238] sm:$0xff] %v7375_v34  ;;  %v5589_v44 = vld [vmem:[%s11684_s3 + $0x930] sm:$0xff]  ;;  %v5604_v47 = vld [vmem:[%s11684_s3 + $0x9a8] sm:$0xff] }
 0x187   : > { %6615 = vmatprep.subr.mxu0 %v5612_v46  ;;  %1575 = vmatprep.mubr.f32.mxu1 %v8928_v59  ;;  %v1257_v0 = vmax.f32 %v1233_v57, 0.0  ;;  %v836_v55 = vpop.f32.mrf.mxu0  ;;  %v5359_v43 = vld [vmem:[%s11684_s3 + $0x200] sm:$0xff]  ;;  %v5406_v46 = vld [vmem:[%s11684_s3 + $0x378] sm:$0xff]  ;;  %v5421_v58 = vld [vmem:[%s11684_s3 + $0x3f0] sm:$0xff] }
 0x188   : > { %6237 = vmatprep.subr.mxu1 %v5381_v31  ;;  %2510 = vmatprep.mubr.f32.mxu0 %v8752_v13  ;;  %v1256_v21 = vmax.f32 %v8937_v45, 0.0  ;;  %v5379_v13 = vld [vmem:[%s11684_s3 + $0x2a0] sm:$0xff]  ;;  %915 = vst [vmem:[#allocation2 + $0x230] sm:$0xff] %v836_v55  ;;  %v5405_v31 = vld [vmem:[%s11684_s3 + $0x370] sm:$0xff]  ;;  %v5420_v57 = vld [vmem:[%s11684_s3 + $0x3e8] sm:$0xff] }
 0x189   : > { %6616 = vmatpush3.msra.mxu0 %v5596_v50  ;;  %6238 = vmatpush3.msra.mxu1 %v5365_v38  ;;  %1281 = vst [vmem:[#allocation3 + $0xa8] sm:$0xf] %v1257_v0  ;;  %v1592_v61 = vld [vmem:[#allocation3 + $0x14] sm:$0xff]  ;;  %v5603_v50 = vld [vmem:[%s11684_s3 + $0x9a0] sm:$0xff]  ;;  %v5448_v45 = vld [vmem:[%s11684_s3 + $0x4c8] sm:$0xff] }
 0x18a   : > { %6617 = vmatprep.subr.mxu0 %v5611_v33  ;;  %6239 = vmatprep.subr.mxu1 %v5380_v60  ;;  %1280 = vst [vmem:[#allocation3 + $0xa0] sm:$0xff] %v1256_v21  ;;  %v5587_v38 = vld [vmem:[%s11684_s3 + $0x920] sm:$0xff]  ;;  %v5404_v60 = vld [vmem:[%s11684_s3 + $0x368] sm:$0xff]  ;;  %v2394_v20 = vld [vmem:[#allocation3 + $0x92] sm:$0xff] }
 0x18b   : > { %6618 = vmatpush3.msra.mxu0 %v5595_v62  ;;  %1576 = vmatmul.mubr.f32.gmra.mxu1 %v1246_v25  ;;  %v5593_v25 = vld [vmem:[%s11684_s3 + $0x950] sm:$0xff]  ;;  %v2393_v33 = vld [vmem:[#allocation3 + $0x82] sm:$0xff]  ;;  %v5602_v62 = vld [vmem:[%s11684_s3 + $0x998] sm:$0xff] }
 0x18c   : > { %2511 = vmatmul.mubr.f32.gmra.mxu0 %v8754_v15  ;;  %6240 = vmatpush3.msra.mxu1 %v5364_v2  ;;  %v5378_v15 = vld [vmem:[%s11684_s3 + $0x298] sm:$0xff]  ;;  %v5419_v0 = vld [vmem:[%s11684_s3 + $0x3e0] sm:$0xff]  ;;  %v5417_v16 = vld [vmem:[%s11684_s3 + $0x3d0] sm:$0xff] }
 0x18d   : > { %6619 = vmatprep.subr.mxu0 %v5610_v3  ;;  %1580 = vmatprep.mubr.f32.mxu1 %v8965_v9  ;;  %v5403_v2 = vld [vmem:[%s11684_s3 + $0x360] sm:$0xff]  ;;  %v5677_v55 = vld [vmem:[%s11684_s3 + $0xbf0] sm:$0xff] }
 0x18e   : > { %6241 = vmatprep.subr.mxu1 %v5379_v13  ;;  %2515 = vmatprep.mubr.f32.mxu0 %v8769_v51  ;;  %v5592_v51 = vld [vmem:[%s11684_s3 + $0x948] sm:$0xff]  ;;  %v5601_v13 = vld [vmem:[%s11684_s3 + $0x990] sm:$0xff]  ;;  %v5415_v34 = vld [vmem:[%s11684_s3 + $0x3c0] sm:$0xff] }
 0x18f   : > { %6620 = vmatpush3.msra.mxu0 %v5594_v8  ;;  %6242 = vmatpush3.msra.mxu1 %v5363_v12  ;;  %v1593_v3 = vld [vmem:[#allocation3 + $0x24] sm:$0xff]  ;;  %v5418_v8 = vld [vmem:[%s11684_s3 + $0x3d8] sm:$0xff] }
 0x190   : > { %6621 = vmatprep.subr.mxu0 %v5609_v14  ;;  %6243 = vmatprep.subr.mxu1 %v5378_v15  ;;  %v2402_v12 = vld [vmem:[#allocation3 + $0x93] sm:$0xff] }
 0x191   : > { %6622 = vmatpush3.msra.mxu0 %v5593_v25  ;;  %1581 = vmatmul.mubr.f32.gmra.mxu1 %v8781_v1  ;;  %v5585_v14 = vld [vmem:[%s11684_s3 + $0x910] sm:$0xff]  ;;  %v5402_v15 = vld [vmem:[%s11684_s3 + $0x358] sm:$0xff]  ;;  %v5600_v25 = vld [vmem:[%s11684_s3 + $0x988] sm:$0xff] }
 0x192   : > { %2516 = vmatmul.mubr.f32.gmra.mxu0 %v8773_v53  ;;  %6244 = vmatpush3.msra.mxu1 %v5362_v19  ;;  %v5376_v53 = vld [vmem:[%s11684_s3 + $0x288] sm:$0xff]  ;;  %v9289_v11 = vld [vmem:[#allocation3 + $0x91] sm:$0xff] }
 0x193   : > { %6623 = vmatprep.subr.mxu0 %v5608_v63  ;;  %1585 = vmatprep.mubr.f32.mxu1 %v8995_v28  ;;  %v5584_v19 = vld [vmem:[%s11684_s3 + $0x908] sm:$0xff]  ;;  %v9099_v63 = vld [vmem:[#allocation3 + $0x34] sm:$0xff] }
 0x194   : > { %6245 = vmatprep.subr.mxu1 %v5377_v5  ;;  %2520 = vmatprep.mubr.f32.mxu0 %v8785_v23  ;;  %v5590_v23 = vld [vmem:[%s11684_s3 + $0x938] sm:$0xff]  ;;  %v5401_v5 = vld [vmem:[%s11684_s3 + $0x350] sm:$0xff]  ;;  %v2719_v10 = vld [vmem:[#allocation3 + $0xa1] sm:$0xff] }
 0x195   : > { %6624 = vmatpush3.msra.mxu0 %v5592_v51  ;;  %6246 = vmatpush3.msra.mxu1 %v5361_v29  ;;  %v5599_v51 = vld [vmem:[%s11684_s3 + $0x980] sm:$0xff] }
 0x196   : > { %6625 = vmatprep.subr.mxu0 %v5607_v30  ;;  %6247 = vmatprep.subr.mxu1 %v5376_v53  ;;  %v5583_v29 = vld [vmem:[%s11684_s3 + $0x900] sm:$0xff]  ;;  %v5400_v30 = vld [vmem:[%s11684_s3 + $0x348] sm:$0xff]  ;;  %v5678_v53 = vld [vmem:[%s11684_s3 + $0xbf8] sm:$0xff] }
 0x197   : > { %6626 = vmatpush3.msra.mxu0 %v5591_v32  ;;  %1586 = vmatmul.mubr.f32.gmra.mxu1 %v8797_v37  ;;  %v9121_v32 = vld [vmem:[#allocation3 + $0x30] sm:$0xff] }
 0x198   : > { %2521 = vmatmul.mubr.f32.gmra.mxu0 %v8789_v27  ;;  %6248 = vmatpush3.msra.mxu1 %v5360_v41  ;;  %v5422_v27 = vld [vmem:[%s11684_s3 + $0x3f8] sm:$0xff] }
 0x199   : > { %6627 = vmatprep.subr.mxu0 %v5606_v39  ;;  %6249 = vmatprep.subr.mxu1 %v5375_v48  ;;  %v5662_v41 = vld [vmem:[%s11684_s3 + $0xb78] sm:$0xff]  ;;  %v9131_v39 = vld [vmem:[#allocation3 + $0x44] sm:$0xff] }
 0x19a   : > { %1696 = vmatprep.mubr.f32.mxu1 %v1591_v40  ;;  %2525 = vmatprep.mubr.f32.mxu0 %v8801_v4  ;;  %v5588_v4 = vld [vmem:[%s11684_s3 + $0x928] sm:$0xff]  ;;  %v5399_v48 = vld [vmem:[%s11684_s3 + $0x340] sm:$0xff] }
 0x19b   : > { %6628 = vmatpush3.msra.mxu0 %v5590_v23  ;;  %6250 = vmatpush3.msra.mxu1 %v5359_v43  ;;  %v5414_v23 = vld [vmem:[%s11684_s3 + $0x3b8] sm:$0xff] }
 0x19c   : > { %6629 = vmatprep.subr.mxu0 %v5605_v42  ;;  %6275 = vmatprep.subr.mxu1 %v5422_v27  ;;  %v5398_v43 = vld [vmem:[%s11684_s3 + $0x338] sm:$0xff]  ;;  %v5676_v42 = vld [vmem:[%s11684_s3 + $0xbe8] sm:$0xff]  ;;  %v9153_v27 = vld [vmem:[#allocation3 + $0x40] sm:$0xff] }
 0x19d   : > { %6630 = vmatpush3.msra.mxu0 %v5589_v44  ;;  %1697 = vmatmul.mubr.f32.vlgmr.msra.gmra.mxu1 %v1591_v40  ;;  %v5661_v40 = vld [vmem:[%s11684_s3 + $0xb70] sm:$0xff] }
 0x19e   : > { %2526 = vmatmul.mubr.f32.gmra.mxu0 %v8805_v7  ;;  %6276 = vmatpush3.msra.mxu1 %v5406_v46  ;;  %v2401_v7 = vld [vmem:[#allocation3 + $0x83] sm:$0xff]  ;;  %v5413_v44 = vld [vmem:[%s11684_s3 + $0x3b0] sm:$0xff] }
 0x19f   : > { %6631 = vmatprep.subr.mxu0 %v5604_v47  ;;  %1701 = vmatprep.mubr.f32.mxu1 %v1592_v61  ;;  %v5660_v46 = vld [vmem:[%s11684_s3 + $0xb68] sm:$0xff]  ;;  %v5397_v47 = vld [vmem:[%s11684_s3 + $0x330] sm:$0xff] }
 0x1a0   : > { %6277 = vmatprep.subr.mxu1 %v5421_v58  ;;  %6632 = vmatpush3.msra.mxu0 %v5588_v4  ;;  %v5675_v58 = vld [vmem:[%s11684_s3 + $0xbe0] sm:$0xff]  ;;  %v5412_v4 = vld [vmem:[%s11684_s3 + $0x3a8] sm:$0xff] }
 0x1a1   : > { %6278 = vmatpush3.msra.mxu1 %v5405_v31  ;;  %6633 = vmatprep.subr.mxu0 %v5603_v50  ;;  %v5659_v31 = vld [vmem:[%s11684_s3 + $0xb60] sm:$0xff]  ;;  %v5674_v50 = vld [vmem:[%s11684_s3 + $0xbd8] sm:$0xff] }
 0x1a2   : > { %6279 = vmatprep.subr.mxu1 %v5420_v57  ;;  %2530 = vmatprep.mubr.f32.mxu0 %v2401_v7  ;;  %v9183_v57 = vld [vmem:[#allocation3 + $0x50] sm:$0xff]  ;;  %v5411_v7 = vld [vmem:[%s11684_s3 + $0x3a0] sm:$0xff] }
 0x1a3   : > { %6634 = vmatpush3.msra.mxu0 %v5587_v38  ;;  %1702 = vmatmul.mubr.f32.gmra.mxu1 %v1592_v61  ;;  %v5396_v61 = vld [vmem:[%s11684_s3 + $0x328] sm:$0xff]  ;;  %v5658_v38 = vld [vmem:[%s11684_s3 + $0xb58] sm:$0xff] }
 0x1a4   : > { %2531 = vmatmul.mubr.f32.gmra.mxu0 %v2393_v33  ;;  %6280 = vmatpush3.msra.mxu1 %v5404_v60  ;;  %v5395_v33 = vld [vmem:[%s11684_s3 + $0x320] sm:$0xff]  ;;  %v5673_v60 = vld [vmem:[%s11684_s3 + $0xbd0] sm:$0xff] }
 0x1a5   : > { %6635 = vmatprep.subr.mxu0 %v5602_v62  ;;  %1706 = vmatprep.mubr.f32.mxu1 %v1593_v3  ;;  %v5657_v62 = vld [vmem:[%s11684_s3 + $0xb50] sm:$0xff] }
 0x1a6   : > { %6281 = vmatprep.subr.mxu1 %v5419_v0  ;;  %6636 = vmatpush3.msra.mxu0 %v5586_v26  ;;  %v5394_v0 = vld [vmem:[%s11684_s3 + $0x318] sm:$0xff]  ;;  %v5672_v26 = vld [vmem:[%s11684_s3 + $0xbc8] sm:$0xff] }
 0x1a7   : > { %6282 = vmatpush3.msra.mxu1 %v5403_v2  ;;  %6637 = vmatprep.subr.mxu0 %v5601_v13  ;;  %v5409_v2 = vld [vmem:[%s11684_s3 + $0x390] sm:$0xff] }
 0x1a8   : > { %6283 = vmatprep.subr.mxu1 %v5418_v8  ;;  %2535 = vmatprep.mubr.f32.mxu0 %v2402_v12  ;;  %v5393_v13 = vld [vmem:[%s11684_s3 + $0x310] sm:$0xff]  ;;  %v5671_v8 = vld [vmem:[%s11684_s3 + $0xbc0] sm:$0xff]  ;;  %v5392_v12 = vld [vmem:[%s11684_s3 + $0x308] sm:$0xff] }
 0x1a9   : > { %6638 = vmatpush3.msra.mxu0 %v5585_v14  ;;  %1707 = vmatmul.mubr.f32.gmra.mxu1 %v1593_v3  ;;  %v5656_v3 = vld [vmem:[%s11684_s3 + $0xb48] sm:$0xff]  ;;  %v5670_v14 = vld [vmem:[%s11684_s3 + $0xbb8] sm:$0xff] }
 0x1aa   : > { %2536 = vmatmul.mubr.f32.gmra.mxu0 %v2394_v20  ;;  %6284 = vmatpush3.msra.mxu1 %v5402_v15  ;;  %v5407_v20 = vld [vmem:[%s11684_s3 + $0x380] sm:$0xff]  ;;  %v5654_v15 = vld [vmem:[%s11684_s3 + $0xb38] sm:$0xff] }
 0x1ab   : > { %6639 = vmatprep.subr.mxu0 %v5600_v25  ;;  %1711 = vmatprep.mubr.f32.mxu1 %v9099_v63  ;;  %v5391_v25 = vld [vmem:[%s11684_s3 + $0x300] sm:$0xff] }
 0x1ac   : > { %6285 = vmatprep.subr.mxu1 %v5417_v16  ;;  %6640 = vmatpush3.msra.mxu0 %v5584_v19  ;;  %v5669_v16 = vld [vmem:[%s11684_s3 + $0xbb0] sm:$0xff] }
 0x1ad   : > { %2817 = vmatprep.mubr.f32.mxu0 %v8868_v17  ;;  %6286 = vmatpush3.msra.mxu1 %v5401_v5  ;;  %v5653_v19 = vld [vmem:[%s11684_s3 + $0xb30] sm:$0xff]  ;;  %v5438_v5 = vld [vmem:[%s11684_s3 + $0x478] sm:$0xff] }
 0x1ae   : > { %6641 = vmatprep.subr.mxu0 %v5599_v51  ;;  %6287 = vmatprep.subr.mxu1 %v5416_v22  ;;  %v5668_v51 = vld [vmem:[%s11684_s3 + $0xba8] sm:$0xff]  ;;  %v5453_v22 = vld [vmem:[%s11684_s3 + $0x4f0] sm:$0xff] }
 0x1af   : > { %6642 = vmatpush3.msra.mxu0 %v5583_v29  ;;  %1712 = vmatmul.mubr.f32.gmra.mxu1 %v9099_v63  ;;  %v5652_v29 = vld [vmem:[%s11684_s3 + $0xb28] sm:$0xff] }
 0x1b0   : > { %2818 = vmatmul.mubr.f32.vlgmr.msra.gmra.mxu0 %v9121_v32  ;;  %6288 = vmatpush3.msra.mxu1 %v5400_v30  ;;  %v5437_v30 = vld [vmem:[%s11684_s3 + $0x470] sm:$0xff] }
 0x1b1   : > { %6723 = vmatprep.subr.mxu0 %v5678_v53  ;;  %1716 = vmatprep.mubr.f32.mxu1 %v9131_v39  ;;  %v5667_v53 = vld [vmem:[%s11684_s3 + $0xba0] sm:$0xff] }
 0x1b2   : > { %6289 = vmatprep.subr.mxu1 %v5415_v34  ;;  %2822 = vmatprep.mubr.f32.mxu0 %v8890_v35  ;;  %v5452_v34 = vld [vmem:[%s11684_s3 + $0x4e8] sm:$0xff] }
 0x1b3   : > { %6724 = vmatpush3.msra.mxu0 %v5662_v41  ;;  %6290 = vmatpush3.msra.mxu1 %v5399_v48  ;;  %v5436_v41 = vld [vmem:[%s11684_s3 + $0x468] sm:$0xff]  ;;  %v5666_v48 = vld [vmem:[%s11684_s3 + $0xb98] sm:$0xff] }
 0x1b4   : > { %6725 = vmatprep.subr.mxu0 %v5677_v55  ;;  %6291 = vmatprep.subr.mxu1 %v5414_v23  ;;  %v5451_v55 = vld [vmem:[%s11684_s3 + $0x4e0] sm:$0xff]  ;;  %v5650_v23 = vld [vmem:[%s11684_s3 + $0xb18] sm:$0xff] }
 0x1b5   : > { %6726 = vmatpush3.msra.mxu0 %v5661_v40  ;;  %1717 = vmatmul.mubr.f32.gmra.mxu1 %v9131_v39  ;;  %v5435_v40 = vld [vmem:[%s11684_s3 + $0x460] sm:$0xff] }
 0x1b6   : > { %2823 = vmatmul.mubr.f32.gmra.mxu0 %v9153_v27  ;;  %6292 = vmatpush3.msra.mxu1 %v5398_v43  ;;  %v5665_v43 = vld [vmem:[%s11684_s3 + $0xb90] sm:$0xff] }
 0x1b7   : > { %6727 = vmatprep.subr.mxu0 %v5676_v42  ;;  %1721 = vmatprep.mubr.f32.mxu1 %v8771_v52  ;;  %v5450_v42 = vld [vmem:[%s11684_s3 + $0x4d8] sm:$0xff] }
 0x1b8   : > { %6293 = vmatprep.subr.mxu1 %v5413_v44  ;;  %2827 = vmatprep.mubr.f32.mxu0 %v8928_v59  ;;  %v5434_v44 = vld [vmem:[%s11684_s3 + $0x458] sm:$0xff] }
 0x1b9   : > { %6728 = vmatpush3.msra.mxu0 %v5660_v46  ;;  %6294 = vmatpush3.msra.mxu1 %v5397_v47  ;;  %v5664_v46 = vld [vmem:[%s11684_s3 + $0xb88] sm:$0xff] }
 0x1ba   : > { %6729 = vmatprep.subr.mxu0 %v5675_v58  ;;  %6295 = vmatprep.subr.mxu1 %v5412_v4  ;;  %v5648_v47 = vld [vmem:[%s11684_s3 + $0xb08] sm:$0xff]  ;;  %v5433_v58 = vld [vmem:[%s11684_s3 + $0x450] sm:$0xff]  ;;  %v5663_v4 = vld [vmem:[%s11684_s3 + $0xb80] sm:$0xff] }
 0x1bb   : > { %6730 = vmatpush3.msra.mxu0 %v5659_v31  ;;  %1722 = vmatmul.mubr.f32.gmra.mxu1 %v8771_v52  ;;  %v5410_v52 = vld [vmem:[%s11684_s3 + $0x398] sm:$0xff]  ;;  %v5432_v31 = vld [vmem:[%s11684_s3 + $0x448] sm:$0xff] }
 0x1bc   : > { %2828 = vmatmul.mubr.f32.gmra.mxu0 %v9183_v57  ;;  %6296 = vmatpush3.msra.mxu1 %v5396_v61  ;;  %v5447_v61 = vld [vmem:[%s11684_s3 + $0x4c0] sm:$0xff] }
 0x1bd   : > { %6731 = vmatprep.subr.mxu0 %v5674_v50  ;;  %1726 = vmatprep.mubr.f32.mxu1 %v8787_v24  ;;  %v5726_v50 = vld [vmem:[%s11684_s3 + $0xd78] sm:$0xff] }
 0x1be   : > { %6297 = vmatprep.subr.mxu1 %v5411_v7  ;;  %2832 = vmatprep.mubr.f32.mxu0 %v8965_v9  ;;  %v5431_v7 = vld [vmem:[%s11684_s3 + $0x440] sm:$0xff] }
 0x1bf   : > { %6732 = vmatpush3.msra.mxu0 %v5658_v38  ;;  %6298 = vmatpush3.msra.mxu1 %v5395_v33  ;;  %v5741_v38 = vld [vmem:[%s11684_s3 + $0xdf0] sm:$0xff] }
 0x1c0   : > { %6733 = vmatprep.subr.mxu0 %v5673_v60  ;;  %6299 = vmatprep.subr.mxu1 %v5410_v52  ;;  %v5725_v33 = vld [vmem:[%s11684_s3 + $0xd70] sm:$0xff]  ;;  %v5430_v60 = vld [vmem:[%s11684_s3 + $0x438] sm:$0xff] }
 0x1c1   : > { %6734 = vmatpush3.msra.mxu0 %v5657_v62  ;;  %1727 = vmatmul.mubr.f32.gmra.mxu1 %v8787_v24  ;;  %v5655_v24 = vld [vmem:[%s11684_s3 + $0xb40] sm:$0xff]  ;;  %v5445_v52 = vld [vmem:[%s11684_s3 + $0x4b0] sm:$0xff]  ;;  %v5724_v62 = vld [vmem:[%s11684_s3 + $0xd68] sm:$0xff] }
 0x1c2   : > { %2833 = vmatmul.mubr.f32.gmra.mxu0 %v8781_v1  ;;  %6300 = vmatpush3.msra.mxu1 %v5394_v0  ;;  %v5408_v1 = vld [vmem:[%s11684_s3 + $0x388] sm:$0xff]  ;;  %v5429_v0 = vld [vmem:[%s11684_s3 + $0x430] sm:$0xff] }
 0x1c3   : > { %6735 = vmatprep.subr.mxu0 %v5672_v26  ;;  %1731 = vmatprep.mubr.f32.mxu1 %v8803_v6  ;;  %v5739_v26 = vld [vmem:[%s11684_s3 + $0xde0] sm:$0xff] }
 0x1c4   : > { %6301 = vmatprep.subr.mxu1 %v5409_v2  ;;  %2837 = vmatprep.mubr.f32.mxu0 %v8995_v28  ;;  %v9403_v2 = vld [vmem:[#allocation3 + $0x54] sm:$0xff] }
 0x1c5   : > { %6736 = vmatpush3.msra.mxu0 %v5656_v3  ;;  %6302 = vmatpush3.msra.mxu1 %v5393_v13  ;;  %v5723_v3 = vld [vmem:[%s11684_s3 + $0xd60] sm:$0xff] }
 0x1c6   : > { %6737 = vmatprep.subr.mxu0 %v5671_v8  ;;  %6303 = vmatprep.subr.mxu1 %v5408_v1  ;;  %v5738_v8 = vld [vmem:[%s11684_s3 + $0xdd8] sm:$0xff] }
 0x1c7   : > { %6738 = vmatpush3.msra.mxu0 %v5655_v24  ;;  %1732 = vmatmul.mubr.f32.gmra.mxu1 %v8803_v6  ;;  %v5454_v6 = vld [vmem:[%s11684_s3 + $0x4f8] sm:$0xff]  ;;  %v9418_v24 = vld [vmem:[#allocation3 + $0x60] sm:$0xff] }
 0x1c8   : > { %2838 = vmatmul.mubr.f32.gmra.mxu0 %v8797_v37  ;;  %6304 = vmatpush3.msra.mxu1 %v5392_v12  ;;  %v9259_v37 = vld [vmem:[#allocation3 + $0x81] sm:$0xff] }
 0x1c9   : > { %6739 = vmatprep.subr.mxu0 %v5670_v14  ;;  %6305 = vmatprep.subr.mxu1 %v5407_v20  ;;  %v5443_v12 = vld [vmem:[%s11684_s3 + $0x4a0] sm:$0xff]  ;;  %v5722_v20 = vld [vmem:[%s11684_s3 + $0xd58] sm:$0xff] }
 0x1ca   : > { %1859 = vmatprep.mubr.f32.mxu1 %v8826_v36  ;;  %6740 = vmatpush3.msra.mxu0 %v5654_v15  ;;  %v1746_v36 = vld [vmem:[#allocation3 + $0x10] sm:$0xff]  ;;  %v5427_v15 = vld [vmem:[%s11684_s3 + $0x420] sm:$0xff] }
 0x1cb   : > { %6306 = vmatpush3.msra.mxu1 %v5391_v25  ;;  %6741 = vmatprep.subr.mxu0 %v5669_v16  ;;  %v5737_v25 = vld [vmem:[%s11684_s3 + $0xdd0] sm:$0xff]  ;;  %v9437_v16 = vld [vmem:[#allocation3 + $0x64] sm:$0xff] }
 0x1cc   : > { %6331 = vmatprep.subr.mxu1 %v5454_v6  ;;  %2842 = vmatprep.mubr.f32.mxu0 %v9259_v37  ;;  %v5442_v6 = vld [vmem:[%s11684_s3 + $0x498] sm:$0xff] }
 0x1cd   : > { %6742 = vmatpush3.msra.mxu0 %v5653_v19  ;;  %1860 = vmatmul.mubr.f32.vlgmr.msra.gmra.mxu1 %v1746_v36  ;;  %v5721_v19 = vld [vmem:[%s11684_s3 + $0xd50] sm:$0xff] }
 0x1ce   : > { %2843 = vmatmul.mubr.f32.gmra.mxu0 %v1252_v18  ;;  %6332 = vmatpush3.msra.mxu1 %v5438_v5  ;;  %v5651_v18 = vld [vmem:[%s11684_s3 + $0xb20] sm:$0xff]  ;;  %v5736_v5 = vld [vmem:[%s11684_s3 + $0xdc8] sm:$0xff]  ;;  %v5441_v36 = vld [vmem:[%s11684_s3 + $0x490] sm:$0xff] }
 0x1cf   : > { %6743 = vmatprep.subr.mxu0 %v5668_v51  ;;  %1864 = vmatprep.mubr.f32.mxu1 %v8843_v56  ;;  %v9301_v56 = vld [vmem:[#allocation3 + $0x20] sm:$0xff]  ;;  %v9452_v51 = vld [vmem:[#allocation3 + $0x70] sm:$0xff] }
 0x1d0   : > { %6333 = vmatprep.subr.mxu1 %v5453_v22  ;;  %6744 = vmatpush3.msra.mxu0 %v5652_v29  ;;  %v5720_v22 = vld [vmem:[%s11684_s3 + $0xd48] sm:$0xff]  ;;  %v5425_v29 = vld [vmem:[%s11684_s3 + $0x410] sm:$0xff] }
 0x1d1   : > { %6334 = vmatpush3.msra.mxu1 %v5437_v30  ;;  %6745 = vmatprep.subr.mxu0 %v5667_v53  ;;  %v5735_v30 = vld [vmem:[%s11684_s3 + $0xdc0] sm:$0xff]  ;;  %v9469_v53 = vld [vmem:[#allocation3 + $0x74] sm:$0xff] }
 0x1d2   : > { %6335 = vmatprep.subr.mxu1 %v5452_v34  ;;  %2847 = vmatprep.mubr.f32.mxu0 %v9289_v11  ;;  %v5440_v34 = vld [vmem:[%s11684_s3 + $0x488] sm:$0xff] }
 0x1d3   : > { %6746 = vmatpush3.msra.mxu0 %v5651_v18  ;;  %1865 = vmatmul.mubr.f32.gmra.mxu1 %v9301_v56  ;;  %v5719_v18 = vld [vmem:[%s11684_s3 + $0xd40] sm:$0xff] }
 0x1d4   : > { %2848 = vmatmul.mubr.f32.gmra.mxu0 %v1254_v49  ;;  %6336 = vmatpush3.msra.mxu1 %v5436_v41  ;;  %v5649_v49 = vld [vmem:[%s11684_s3 + $0xb10] sm:$0xff] }
 0x1d5   : > { %6747 = vmatprep.subr.mxu0 %v5666_v48  ;;  %1869 = vmatprep.mubr.f32.mxu1 %v8868_v17  ;;  %v5449_v17 = vld [vmem:[%s11684_s3 + $0x4d0] sm:$0xff]  ;;  %v5424_v48 = vld [vmem:[%s11684_s3 + $0x408] sm:$0xff] }
 0x1d6   : > { %6337 = vmatprep.subr.mxu1 %v5451_v55  ;;  %6748 = vmatpush3.msra.mxu0 %v5650_v23  ;;  %v5734_v55 = vld [vmem:[%s11684_s3 + $0xdb8] sm:$0xff]  ;;  %v5439_v23 = vld [vmem:[%s11684_s3 + $0x480] sm:$0xff] }
 0x1d7   : > { %6338 = vmatpush3.msra.mxu1 %v5435_v40  ;;  %6749 = vmatprep.subr.mxu0 %v5665_v43  ;;  %v987_v40 = vld [vmem:[#allocation2 + $0x230] ss:$2 sm:$0xff]  ;;  %v1059_v43 = vld [vmem:[#allocation2 + $0x231] ss:$2 sm:$0xff] }
 0x1d8   : > { %6339 = vmatprep.subr.mxu1 %v5450_v42  ;;  %2852 = vmatprep.mubr.f32.mxu0 %v2719_v10  ;;  %v9487_v10 = vld [vmem:[#allocation3 + $0x80] sm:$0xff] }
 0x1d9   : > { %6750 = vmatpush3.msra.mxu0 %v5649_v49  ;;  %1870 = vmatmul.mubr.f32.gmra.mxu1 %v9121_v32  ;;  %v985_v49 = vld [vmem:[#allocation2 + $0x220] ss:$2 sm:$0xff] }
 0x1da   : > { %2853 = vmatmul.mubr.f32.gmra.mxu0 %v1256_v21  ;;  %6340 = vmatpush3.msra.mxu1 %v5434_v44  ;;  %v5647_v21 = vld [vmem:[%s11684_s3 + $0xb00] sm:$0xff] }
 0x1db   : > { %6751 = vmatprep.subr.mxu0 %v5664_v46  ;;  %1874 = vmatprep.mubr.f32.mxu1 %v8890_v35  ;;  %v5742_v35 = vld [vmem:[%s11684_s3 + $0xdf8] sm:$0xff]  ;;  %v1057_v44 = vld [vmem:[#allocation2 + $0x221] ss:$2 sm:$0xff] }
 0x1dc   : > { %6341 = vmatprep.subr.mxu1 %v5449_v17  ;;  %6752 = vmatpush3.msra.mxu0 %v5648_v47  ;;  %v5718_v17 = vld [vmem:[%s11684_s3 + $0xd38] sm:$0xff] }
 0x1dd   : > { %3133 = vmatprep.mubr.f32.mxu0 %v9099_v63  ;;  %6342 = vmatpush3.msra.mxu1 %v5433_v58  ;;  %v1916_v47 = vld [vmem:[#allocation3 + $0x13] sm:$0xff]  ;;  %v5423_v58 = vld [vmem:[%s11684_s3 + $0x400] sm:$0xff] }
 0x1de   : > { %6753 = vmatprep.subr.mxu0 %v5663_v4  ;;  %6343 = vmatprep.subr.mxu1 %v5448_v45  ;;  %v5733_v4 = vld [vmem:[%s11684_s3 + $0xdb0] sm:$0xff]  ;;  %v1095_v45 = vmax.f32 %v987_v40, %v1059_v43  ;;  %v9572_v40 = vpop.f32.mrf.mxu1 }
 0x1df   : > { %6754 = vmatpush3.msra.mxu0 %v5647_v21  ;;  %1875 = vmatmul.mubr.f32.gmra.mxu1 %v9153_v27  ;;  %v9502_v21 = vld [vmem:[#allocation3 + $0x84] sm:$0xff] }
 0x1e0   : > { %3134 = vmatmul.mubr.f32.vlgmr.msra.gmra.mxu0 %v9099_v63  ;;  %6344 = vmatpush3.msra.mxu1 %v5432_v31  ;;  %v5446_v63 = vld [vmem:[%s11684_s3 + $0x4b8] sm:$0xff] }
 0x1e1   : > { %6835 = vmatprep.subr.mxu0 %v5742_v35  ;;  %1879 = vmatprep.mubr.f32.mxu1 %v8928_v59  ;;  %v5740_v59 = vld [vmem:[%s11684_s3 + $0xde8] sm:$0xff]  ;;  %v5518_v31 = vld [vmem:[%s11684_s3 + $0x6f8] sm:$0xff]  ;;  %v5717_v35 = vld [vmem:[%s11684_s3 + $0xd30] sm:$0xff] }
 0x1e2   : > { %6345 = vmatprep.subr.mxu1 %v5447_v61  ;;  %3138 = vmatprep.mubr.f32.mxu0 %v9131_v39  ;;  %v1094_v61 = vmax.f32 %v985_v49, %v1057_v44  ;;  %v5728_v49 = vld [vmem:[%s11684_s3 + $0xd88] sm:$0xff]  ;;  %v9580_v44 = vld [vmem:[#allocation3 + $0x32] sm:$0xff] }
 0x1e3   : > { %6836 = vmatpush3.msra.mxu0 %v5726_v50  ;;  %6346 = vmatpush3.msra.mxu1 %v5431_v7  ;;  %v5502_v50 = vld [vmem:[%s11684_s3 + $0x678] sm:$0xff]  ;;  %v5732_v7 = vld [vmem:[%s11684_s3 + $0xda8] sm:$0xff] }
 0x1e4   : > { %6837 = vmatprep.subr.mxu0 %v5741_v38  ;;  %6347 = vmatprep.subr.mxu1 %v5446_v63  ;;  %v983_v38 = vld [vmem:[#allocation2 + $0x210] ss:$2 sm:$0xff]  ;;  %v1055_v63 = vld [vmem:[#allocation2 + $0x211] ss:$2 sm:$0xff] }
 0x1e5   : > { %6838 = vmatpush3.msra.mxu0 %v5725_v33  ;;  %1880 = vmatmul.mubr.f32.gmra.mxu1 %v9183_v57  ;;  %v1908_v33 = vld [vmem:[#allocation3 + $0x12] sm:$0xff] }
 0x1e6   : > { %3139 = vmatmul.mubr.f32.gmra.mxu0 %v9131_v39  ;;  %6348 = vmatpush3.msra.mxu1 %v5430_v60  ;;  %v5444_v39 = vld [vmem:[%s11684_s3 + $0x4a8] sm:$0xff]  ;;  %v5517_v60 = vld [vmem:[%s11684_s3 + $0x6f0] sm:$0xff] }
 0x1e7   : > { %6839 = vmatprep.subr.mxu0 %v5740_v59  ;;  %1884 = vmatprep.mubr.f32.mxu1 %v8965_v9  ;;  %v5428_v9 = vld [vmem:[%s11684_s3 + $0x428] sm:$0xff]  ;;  %v1155_v59 = vrot.slane %v1095_v45, 4  ;;  %v5497_v45 = vld [vmem:[%s11684_s3 + $0x650] sm:$0xff] }
 0x1e8   : > { %6349 = vmatprep.subr.mxu1 %v5445_v52  ;;  %v6419_v13 = vpop.f32.mrf.mxu0  ;;  %3143 = vmatprep.mubr.f32.mxu0 %v9403_v2  ;;  %v5716_v52 = vld [vmem:[%s11684_s3 + $0xd28] sm:$0xff] }
 0x1e9   : > { %6840 = vmatpush3.msra.mxu0 %v5724_v62  ;;  %6350 = vmatpush3.msra.mxu1 %v5429_v0  ;;  %v5501_v62 = vld [vmem:[%s11684_s3 + $0x670] sm:$0xff]  ;;  %v1154_v0 = vrot.slane %v1094_v61, 4 }
 0x1ea   : > { %6841 = vmatprep.subr.mxu0 %v5739_v26  ;;  %v6420_v1 = vpop.f32.mrf.mxu0  ;;  %6351 = vmatprep.subr.mxu1 %v5444_v39  ;;  %v1917_v26 = vld [vmem:[#allocation3 + $0x23] sm:$0xff] }
 0x1eb   : > { %6842 = vmatpush3.msra.mxu0 %v5723_v3  ;;  %v9423_v14 = vadd.f32 %v6420_v1, %v6419_v13  ;;  %1885 = vmatmul.mubr.f32.gmra.mxu1 %v9418_v24  ;;  %v5731_v39 = vld [vmem:[%s11684_s3 + $0xda0] sm:$0xff]  ;;  %v5516_v3 = vld [vmem:[%s11684_s3 + $0x6e8] sm:$0xff]  ;;  %v1093_v13 = vmax.f32 %v983_v38, %v1055_v63 }
 0x1ec   : > { %3144 = vmatmul.mubr.f32.gmra.mxu0 %v9403_v2  ;;  %6352 = vmatpush3.msra.mxu1 %v5428_v9  ;;  %v9533_v9 = vld [vmem:[#allocation3 + $0x94] sm:$0xff]  ;;  %v5496_v38 = vld [vmem:[%s11684_s3 + $0x648] sm:$0xff] }
 0x1ed   : > { %6843 = vmatprep.subr.mxu0 %v5738_v8  ;;  %1889 = vmatprep.mubr.f32.mxu1 %v8995_v28  ;;  %v5426_v28 = vld [vmem:[%s11684_s3 + $0x418] sm:$0xff]  ;;  %v5715_v8 = vld [vmem:[%s11684_s3 + $0xd20] sm:$0xff] }
 0x1ee   : > { %6353 = vmatprep.subr.mxu1 %v5443_v12  ;;  %3148 = vmatprep.mubr.f32.mxu0 %v9437_v16  ;;  %v1204_v12 = vmax.f32 %v1094_v61, %v1155_v59  ;;  %v5711_v61 = vld [vmem:[%s11684_s3 + $0xd00] sm:$0xff] }
 0x1ef   : > { %6844 = vmatpush3.msra.mxu0 %v5722_v20  ;;  %6354 = vmatpush3.msra.mxu1 %v5427_v15  ;;  %v5500_v20 = vld [vmem:[%s11684_s3 + $0x668] sm:$0xff]  ;;  %v5730_v15 = vld [vmem:[%s11684_s3 + $0xd98] sm:$0xff] }
 0x1f0   : > { %6845 = vmatprep.subr.mxu0 %v5737_v25  ;;  %6355 = vmatprep.subr.mxu1 %v5442_v6  ;;  %v1156_v6 = vsel %vm1120_vm0, %v1154_v0, %v1155_v59 }
 0x1f1   : > { %6846 = vmatpush3.msra.mxu0 %v5721_v19  ;;  %1890 = vmatmul.mubr.f32.gmra.mxu1 %v9452_v51  ;;  %v1909_v19 = vld [vmem:[#allocation3 + $0x22] sm:$0xff] }
 0x1f2   : > { %3149 = vmatmul.mubr.f32.gmra.mxu0 %v9437_v16  ;;  %6356 = vmatpush3.msra.mxu1 %v5426_v28  ;;  %v5515_v28 = vld [vmem:[%s11684_s3 + $0x6e0] sm:$0xff] }
 0x1f3   : > { %6847 = vmatprep.subr.mxu0 %v5736_v5  ;;  %1894 = vmatprep.mubr.f32.mxu1 %v9259_v37 }
 0x1f4   : > { %6357 = vmatprep.subr.mxu1 %v5441_v36  ;;  %v6422_v41 = vpop.f32.mrf.mxu0  ;;  %3153 = vmatprep.mubr.f32.mxu0 %v9469_v53  ;;  %v1203_v36 = vmax.f32 %v1093_v13, %v1156_v6  ;;  %v9638_v13 = vld [vmem:[#allocation3 + $0x52] sm:$0xff]  ;;  %v9660_v6 = vld [vmem:[#allocation3 + $0x62] sm:$0xff] }
 0x1f5   : > { %6848 = vmatpush3.msra.mxu0 %v5720_v22  ;;  %6358 = vmatpush3.msra.mxu1 %v5425_v29  ;;  %v5714_v22 = vld [vmem:[%s11684_s3 + $0xd18] sm:$0xff]  ;;  %v5499_v29 = vld [vmem:[%s11684_s3 + $0x660] sm:$0xff] }
 0x1f6   : > { %6849 = vmatprep.subr.mxu0 %v5735_v30  ;;  %v6423_v42 = vpop.f32.mrf.mxu0  ;;  %6359 = vmatprep.subr.mxu1 %v5440_v34  ;;  %v9558_v30 = vld [vmem:[#allocation3 + $0x33] sm:$0xff] }
 0x1f7   : > { %6850 = vmatpush3.msra.mxu0 %v5719_v18  ;;  %v9489_v46 = vadd.f32 %v6423_v42, %v6422_v41  ;;  %1895 = vmatmul.mubr.f32.gmra.mxu1 %v9487_v10  ;;  %v5729_v34 = vld [vmem:[%s11684_s3 + $0xd90] sm:$0xff]  ;;  %v5514_v18 = vld [vmem:[%s11684_s3 + $0x6d8] sm:$0xff]  ;;  %v1234_v41 = vadd.f32 %v8925_v54, %v1203_v36 }
 0x1f8   : > { %3154 = vmatmul.mubr.f32.gmra.mxu0 %v9469_v53  ;;  %6360 = vmatpush3.msra.mxu1 %v5424_v48  ;;  %v1235_v48 = vadd.f32 %v8925_v54, %v1204_v12  ;;  %v5498_v54 = vld [vmem:[%s11684_s3 + $0x658] sm:$0xff]  ;;  %v9648_v12 = vld [vmem:[#allocation3 + $0x63] sm:$0xff] }
 0x1f9   : > { %6851 = vmatprep.subr.mxu0 %v5734_v55  ;;  %6361 = vmatprep.subr.mxu1 %v5439_v23  ;;  %v3035_v55 = vld [vmem:[#allocation3 + $0xa4] sm:$0xff]  ;;  %v5713_v23 = vld [vmem:[%s11684_s3 + $0xd10] sm:$0xff]  ;;  %v1258_v43 = vmax.f32 %v1234_v41, 0.0 }
 0x1fa   : > { %2021 = vmatprep.mubr.f32.mxu1 %v1916_v47  ;;  %3158 = vmatprep.mubr.f32.mxu0 %v9502_v21  ;;  %v1259_v42 = vmax.f32 %v1235_v48, 0.0  ;;  %v5712_v47 = vld [vmem:[%s11684_s3 + $0xd08] sm:$0xff]  ;;  %v9682_v48 = vld [vmem:[#allocation3 + $0x72] sm:$0xff] }
 0x1fb   : > { %6852 = vmatpush3.msra.mxu0 %v5718_v17  ;;  %6362 = vmatpush3.msra.mxu1 %v5423_v58  ;;  %v5513_v17 = vld [vmem:[%s11684_s3 + $0x6d0] sm:$0xff]  ;;  %1282 = vst [vmem:[#allocation3 + $0xb0] sm:$0xff] %v1258_v43  ;;  %v9589_v58 = vpop.f32.mrf.mxu1 }
 0x1fc   : > { %6853 = vmatprep.subr.mxu0 %v5733_v4  ;;  %6443 = vmatprep.subr.mxu1 %v5518_v31  ;;  %1283 = vst [vmem:[#allocation3 + $0xb8] sm:$0xf] %v1259_v42  ;;  %v9591_v4 = vld [vmem:[#allocation3 + $0x43] sm:$0xff]  ;;  %v5489_v43 = vld [vmem:[%s11684_s3 + $0x610] sm:$0xff] }
 0x1fd   : > { %6854 = vmatpush3.msra.mxu0 %v5717_v35  ;;  %2022 = vmatmul.mubr.f32.vlgmr.msra.gmra.mxu1 %v1908_v33  ;;  %v5727_v31 = vld [vmem:[%s11684_s3 + $0xd80] sm:$0xff]  ;;  %v5512_v35 = vld [vmem:[%s11684_s3 + $0x6c8] sm:$0xff] }
 0x1fe   : > { %3159 = vmatmul.mubr.f32.gmra.mxu0 %v9502_v21  ;;  %6444 = vmatpush3.msra.mxu1 %v5502_v50  ;;  %v9606_v50 = vpop.f32.mrf.mxu1  ;;  %v9612_v33 = vld [vmem:[#allocation3 + $0x42] sm:$0xff] }
 0x1ff   : > { %6855 = vmatprep.subr.mxu0 %v5732_v7  ;;  %2026 = vmatprep.mubr.f32.mxu1 %v1917_v26  ;;  %v5510_v26 = vld [vmem:[%s11684_s3 + $0x6b8] sm:$0xff] }
 0x200   : > { %6445 = vmatprep.subr.mxu1 %v5517_v60  ;;  %v6425_v1 = vpop.f32.mrf.mxu0  ;;  %6856 = vmatpush3.msra.mxu0 %v5716_v52  ;;  %v5511_v60 = vld [vmem:[%s11684_s3 + $0x6c0] sm:$0xff]  ;;  %v9621_v52 = vld [vmem:[#allocation3 + $0x53] sm:$0xff]  ;;  %v9626_v0 = vpop.f32.mrf.mxu1 }
 0x201   : > { %6446 = vmatpush3.msra.mxu1 %v5501_v62  ;;  %6857 = vmatprep.subr.mxu0 %v5731_v39  ;;  %v5495_v62 = vld [vmem:[%s11684_s3 + $0x640] sm:$0xff]  ;;  %v5494_v39 = vld [vmem:[%s11684_s3 + $0x638] sm:$0xff] }
 0x202   : > { %6447 = vmatprep.subr.mxu1 %v5516_v3  ;;  %v6426_v25 = vpop.f32.mrf.mxu0  ;;  %3163 = vmatprep.mubr.f32.mxu0 %v9533_v9  ;;  %v9636_v3 = vpop.f32.mrf.mxu1 }
 0x203   : > { %6858 = vmatpush3.msra.mxu0 %v5715_v8  ;;  %v9549_v5 = vadd.f32 %v6426_v25, %v6425_v1  ;;  %2027 = vmatmul.mubr.f32.gmra.mxu1 %v1909_v19  ;;  %v5509_v8 = vld [vmem:[%s11684_s3 + $0x6b0] sm:$0xff]  ;;  %v5507_v19 = vld [vmem:[%s11684_s3 + $0x6a0] sm:$0xff] }
 0x204   : > { %3164 = vmatmul.mubr.f32.gmra.mxu0 %v9533_v9  ;;  %6448 = vmatpush3.msra.mxu1 %v5500_v20  ;;  %v5493_v1 = vld [vmem:[%s11684_s3 + $0x630] sm:$0xff]  ;;  %v5508_v20 = vld [vmem:[%s11684_s3 + $0x6a8] sm:$0xff]  ;;  %v9657_v25 = vpop.f32.mrf.mxu1 }
 0x205   : > { %6859 = vmatprep.subr.mxu0 %v5730_v15  ;;  %2031 = vmatprep.mubr.f32.mxu1 %v9558_v30  ;;  %v5492_v15 = vld [vmem:[%s11684_s3 + $0x628] sm:$0xff] }
 0x206   : > { %6449 = vmatprep.subr.mxu1 %v5515_v28  ;;  %6860 = vmatpush3.msra.mxu0 %v5714_v22  ;;  %v5491_v28 = vld [vmem:[%s11684_s3 + $0x620] sm:$0xff]  ;;  %v9669_v36 = vpop.f32.mrf.mxu1 }
 0x207   : > { %6450 = vmatpush3.msra.mxu1 %v5499_v29  ;;  %6861 = vmatprep.subr.mxu0 %v5729_v34  ;;  %v9672_v29 = vld [vmem:[#allocation3 + $0x73] sm:$0xff] }
 0x208   : > { %6451 = vmatprep.subr.mxu1 %v5514_v18  ;;  %3168 = vmatprep.mubr.f32.mxu0 %v3035_v55  ;;  %v5506_v34 = vld [vmem:[%s11684_s3 + $0x698] sm:$0xff]  ;;  %v9693_v42 = vpop.f32.mrf.mxu1 }
 0x209   : > { %6862 = vmatpush3.msra.mxu0 %v5713_v23  ;;  %2032 = vmatmul.mubr.f32.gmra.mxu1 %v9580_v44  ;;  %v5490_v18 = vld [vmem:[%s11684_s3 + $0x618] sm:$0xff] }
 0x20a   : > { %3169 = vmatmul.mubr.f32.gmra.mxu0 %v3035_v55  ;;  %6452 = vmatpush3.msra.mxu1 %v5498_v54  ;;  %v5505_v55 = vld [vmem:[%s11684_s3 + $0x690] sm:$0xff]  ;;  %v9696_v54 = vld [vmem:[#allocation3 + $0x83] sm:$0xff] }
 0x20b   : > { %6863 = vmatprep.subr.mxu0 %v5728_v49  ;;  %2036 = vmatprep.mubr.f32.mxu1 %v9591_v4  ;;  %v5504_v49 = vld [vmem:[%s11684_s3 + $0x688] sm:$0xff] }
 0x20c   : > { %6453 = vmatprep.subr.mxu1 %v5513_v17  ;;  %v6428_v7 = vpop.f32.mrf.mxu0  ;;  %6864 = vmatpush3.msra.mxu0 %v5712_v47  ;;  %v5488_v17 = vld [vmem:[%s11684_s3 + $0x608] sm:$0xff]  ;;  %v9705_v47 = vpop.f32.mrf.mxu1 }
 0x20d   : > { %3458 = vmatprep.mubr.f32.mxu0 %v9591_v4  ;;  %6454 = vmatpush3.msra.mxu1 %v5497_v45  ;;  %v9708_v45 = vld [vmem:[#allocation3 + $0x82] sm:$0xff] }
 0x20e   : > { %6865 = vmatprep.subr.mxu0 %v5727_v31  ;;  %v6429_v63 = vpop.f32.mrf.mxu0  ;;  %6455 = vmatprep.subr.mxu1 %v5512_v35  ;;  %v5503_v31 = vld [vmem:[%s11684_s3 + $0x680] sm:$0xff] }
 0x20f   : > { %6866 = vmatpush3.msra.mxu0 %v5711_v61  ;;  %v9617_v59 = vadd.f32 %v6429_v63, %v6428_v7  ;;  %2037 = vmatmul.mubr.f32.gmra.mxu1 %v9612_v33  ;;  %v5487_v35 = vld [vmem:[%s11684_s3 + $0x600] sm:$0xff]  ;;  %v9717_v61 = vld [vmem:[#allocation3 + $0x93] sm:$0xff] }
 0x210   : > { %3459 = vmatmul.mubr.f32.vlgmr.msra.gmra.mxu0 %v9612_v33  ;;  %6456 = vmatpush3.msra.mxu1 %v5496_v38  ;;  %v2233_v7 = vld [vmem:[#allocation3 + $0x21] sm:$0xff]  ;;  %v5582_v38 = vld [vmem:[%s11684_s3 + $0x8f8] sm:$0xff] }
 0x211   : > { %2041 = vmatprep.mubr.f32.mxu1 %v9621_v52  ;;  %6457 = vmatprep.subr.mxu1 %v5511_v60  ;;  %v5566_v63 = vld [vmem:[%s11684_s3 + $0x878] sm:$0xff]  ;;  %v9726_v60 = vpop.f32.mrf.mxu1 }
 0x212   : > { %3463 = vmatprep.mubr.f32.mxu0 %v9621_v52  ;;  %6458 = vmatpush3.msra.mxu1 %v5495_v62  ;;  %v5581_v62 = vld [vmem:[%s11684_s3 + $0x8f0] sm:$0xff] }
 0x213   : > { %6459 = vmatprep.subr.mxu1 %v5510_v26  ;;  %2042 = vmatmul.mubr.f32.gmra.mxu1 %v9638_v13  ;;  %v9732_v26 = vld [vmem:[#allocation3 + $0x92] sm:$0xff] }
 0x214   : > { %6460 = vmatpush3.msra.mxu1 %v5494_v39  ;;  %3464 = vmatmul.mubr.f32.gmra.mxu0 %v9638_v13  ;;  %v2234_v39 = vld [vmem:[#allocation3 + $0x31] sm:$0xff] }
 0x215   : > { %2046 = vmatprep.mubr.f32.mxu1 %v9648_v12  ;;  %6461 = vmatprep.subr.mxu1 %v5509_v8  ;;  %v5565_v8 = vld [vmem:[%s11684_s3 + $0x870] sm:$0xff] }
 0x216   : > { %3468 = vmatprep.mubr.f32.mxu0 %v9648_v12  ;;  %6462 = vmatpush3.msra.mxu1 %v5493_v1 }
 0x217   : > { %6463 = vmatprep.subr.mxu1 %v5508_v20  ;;  %2047 = vmatmul.mubr.f32.gmra.mxu1 %v9660_v6 }
 0x218   : > { %v6431_v22 = vpop.f32.mrf.mxu0  ;;  %6464 = vmatpush3.msra.mxu1 %v5492_v15  ;;  %3469 = vmatmul.mubr.f32.gmra.mxu0 %v9660_v6  ;;  %v9738_v1 = vpop.f32.mrf.mxu1  ;;  %v9740_v15 = vld [vmem:[#allocation3 + $0xa3] sm:$0xff] }
 0x219   : > { %2051 = vmatprep.mubr.f32.mxu1 %v9672_v29  ;;  %6465 = vmatprep.subr.mxu1 %v5507_v19  ;;  %v5580_v19 = vld [vmem:[%s11684_s3 + $0x8e8] sm:$0xff] }
 0x21a   : > { %v6432_v41 = vpop.f32.mrf.mxu0  ;;  %3473 = vmatprep.mubr.f32.mxu0 %v9672_v29  ;;  %6466 = vmatpush3.msra.mxu1 %v5491_v28 }
 0x21b   : > { %v9687_v23 = vadd.f32 %v6432_v41, %v6431_v22  ;;  %6467 = vmatprep.subr.mxu1 %v5506_v34  ;;  %2052 = vmatmul.mubr.f32.gmra.mxu1 %v9682_v48  ;;  %v5579_v22 = vld [vmem:[%s11684_s3 + $0x8e0] sm:$0xff] }
 0x21c   : > { %6468 = vmatpush3.msra.mxu1 %v5490_v18  ;;  %3474 = vmatmul.mubr.f32.gmra.mxu0 %v9682_v48  ;;  %v9755_v18 = vld [vmem:[#allocation3 + $0xa2] sm:$0xff] }
 0x21d   : > { %2056 = vmatprep.mubr.f32.mxu1 %v9696_v54  ;;  %6469 = vmatprep.subr.mxu1 %v5505_v55  ;;  %v9758_v41 = vld [vmem:[#allocation3 + $0x41] sm:$0xff] }
 0x21e   : > { %3478 = vmatprep.mubr.f32.mxu0 %v9696_v54  ;;  %6470 = vmatpush3.msra.mxu1 %v5489_v43  ;;  %v5563_v55 = vld [vmem:[%s11684_s3 + $0x860] sm:$0xff]  ;;  %v9763_v43 = vpop.f32.mrf.mxu1 }
 0x21f   : > { %6471 = vmatprep.subr.mxu1 %v5504_v49  ;;  %2057 = vmatmul.mubr.f32.gmra.mxu1 %v9708_v45  ;;  %v3360_v49 = vld [vmem:[#allocation3 + $0xb3] sm:$0xff] }
 0x220   : > { %6472 = vmatpush3.msra.mxu1 %v5488_v17  ;;  %3479 = vmatmul.mubr.f32.gmra.mxu0 %v9708_v45  ;;  %v5578_v17 = vld [vmem:[%s11684_s3 + $0x8d8] sm:$0xff] }
 0x221   : > { %6473 = vmatprep.subr.mxu1 %v5503_v31  ;;  %2338 = vmatprep.mubr.f32.mxu1 %v2233_v7  ;;  %v3352_v7 = vld [vmem:[#allocation3 + $0xb2] sm:$0xff] }
 0x222   : > { %6474 = vmatpush3.msra.mxu1 %v5487_v35  ;;  %3483 = vmatprep.mubr.f32.mxu0 %v9717_v61  ;;  %v5577_v35 = vld [vmem:[%s11684_s3 + $0x8d0] sm:$0xff] }
 0x223   : > { %6555 = vmatprep.subr.mxu1 %v5582_v38  ;;  %2339 = vmatmul.mubr.f32.vlgmr.msra.gmra.mxu1 %v9301_v56  ;;  %v5564_v56 = vld [vmem:[%s11684_s3 + $0x868] sm:$0xff]  ;;  %v9779_v38 = vld [vmem:[#allocation3 + $0x51] sm:$0xff] }
 0x224   : > { %v6434_v20 = vpop.f32.mrf.mxu0  ;;  %6556 = vmatpush3.msra.mxu1 %v5566_v63  ;;  %2343 = vmatprep.mubr.f32.mxu1 %v2234_v39  ;;  %v9772_v31 = vpop.f32.mrf.mxu1  ;;  %v5561_v63 = vld [vmem:[%s11684_s3 + $0x850] sm:$0xff]  ;;  %v5560_v39 = vld [vmem:[%s11684_s3 + $0x848] sm:$0xff] }
 0x225   : > { %6557 = vmatprep.subr.mxu1 %v5581_v62  ;;  %3484 = vmatmul.mubr.f32.gmra.mxu0 %v9732_v26  ;;  %v5576_v62 = vld [vmem:[%s11684_s3 + $0x8c8] sm:$0xff] }
 0x226   : > { %v6435_v28 = vpop.f32.mrf.mxu0  ;;  %6558 = vmatpush3.msra.mxu1 %v5565_v8  ;;  %3488 = vmatprep.mubr.f32.mxu0 %v9740_v15  ;;  %v9791_v8 = vpop.f32.mrf.mxu1 }
 0x227   : > { %v9752_v34 = vadd.f32 %v6435_v28, %v6434_v20  ;;  %6559 = vmatprep.subr.mxu1 %v5580_v19  ;;  %2344 = vmatmul.mubr.f32.gmra.mxu1 %v9121_v32  ;;  %v5562_v32 = vld [vmem:[%s11684_s3 + $0x858] sm:$0xff]  ;;  %v9797_v20 = vld [vmem:[#allocation3 + $0x61] sm:$0xff] }
 0x228   : > { %6560 = vmatpush3.msra.mxu1 %v5564_v56  ;;  %2348 = vmatprep.mubr.f32.mxu1 %v9758_v41  ;;  %v5559_v19 = vld [vmem:[%s11684_s3 + $0x840] sm:$0xff] }
 0x229   : > { %6561 = vmatprep.subr.mxu1 %v5579_v22  ;;  %3489 = vmatmul.mubr.f32.gmra.mxu0 %v9755_v18  ;;  %v5574_v22 = vld [vmem:[%s11684_s3 + $0x8b8] sm:$0xff] }
 0x22a   : > { %6562 = vmatpush3.msra.mxu1 %v5563_v55  ;;  %3493 = vmatprep.mubr.f32.mxu0 %v3360_v49 }
 0x22b   : > { %6563 = vmatprep.subr.mxu1 %v5578_v17  ;;  %2349 = vmatmul.mubr.f32.gmra.mxu1 %v9153_v27  ;;  %v5575_v27 = vld [vmem:[%s11684_s3 + $0x8c0] sm:$0xff]  ;;  %v5573_v17 = vld [vmem:[%s11684_s3 + $0x8b0] sm:$0xff] }
 0x22c   : > { %6564 = vmatpush3.msra.mxu1 %v5562_v32  ;;  %2353 = vmatprep.mubr.f32.mxu1 %v9779_v38 }
 0x22d   : > { %6565 = vmatprep.subr.mxu1 %v5577_v35  ;;  %3494 = vmatmul.mubr.f32.gmra.mxu0 %v3352_v7  ;;  %v9819_v35 = vld [vmem:[#allocation3 + $0x71] sm:$0xff] }
 0x22e   : > { %6566 = vmatpush3.msra.mxu1 %v5561_v63  ;;  %v5557_v7 = vld [vmem:[%s11684_s3 + $0x830] sm:$0xff] }
 0x22f   : > { %6567 = vmatprep.subr.mxu1 %v5576_v62  ;;  %2354 = vmatmul.mubr.f32.gmra.mxu1 %v9183_v57  ;;  %v5558_v57 = vld [vmem:[%s11684_s3 + $0x838] sm:$0xff]  ;;  %v5572_v62 = vld [vmem:[%s11684_s3 + $0x8a8] sm:$0xff] }
 0x230   : > { %v9802_v56 = vpop.f32.mrf.mxu1  ;;  %v6437_v28 = vpop.f32.mrf.mxu0  ;;  %6568 = vmatpush3.msra.mxu1 %v5560_v39  ;;  %2358 = vmatprep.mubr.f32.mxu1 %v9797_v20  ;;  %v5556_v39 = vld [vmem:[%s11684_s3 + $0x828] sm:$0xff] }
 0x231   : > { %6569 = vmatprep.subr.mxu1 %v5575_v27  ;;  %v6141_v27 = vadd.f32 %v9589_v58, %v9572_v40  ;;  %v5570_v40 = vld [vmem:[%s11684_s3 + $0x898] sm:$0xff] }
 0x232   : > { %v9811_v55 = vpop.f32.mrf.mxu1  ;;  %v6438_v49 = vpop.f32.mrf.mxu0  ;;  %6570 = vmatpush3.msra.mxu1 %v5559_v19  ;;  %v5571_v19 = vld [vmem:[%s11684_s3 + $0x8a0] sm:$0xff] }
 0x233   : > { %v9816_v32 = vadd.f32 %v6438_v49, %v6437_v28  ;;  %6571 = vmatprep.subr.mxu1 %v5574_v22  ;;  %2359 = vmatmul.mubr.f32.gmra.mxu1 %v9418_v24  ;;  %v5555_v22 = vld [vmem:[%s11684_s3 + $0x820] sm:$0xff]  ;;  %v5554_v49 = vld [vmem:[%s11684_s3 + $0x818] sm:$0xff] }
 0x234   : > { %v6195_v63 = vpop.f32.mrf.mxu1  ;;  %6572 = vmatpush3.msra.mxu1 %v5558_v57  ;;  %2363 = vmatprep.mubr.f32.mxu1 %v9819_v35 }
 0x235   : > { %6573 = vmatprep.subr.mxu1 %v5573_v17  ;;  %v6144_v17 = vadd.f32 %v9626_v0, %v9606_v50  ;;  %v5568_v50 = vld [vmem:[%s11684_s3 + $0x888] sm:$0xff] }
 0x236   : > { %v6196_v24 = vpop.f32.mrf.mxu1  ;;  %6574 = vmatpush3.msra.mxu1 %v5557_v7 }
 0x237   : > { %v6197_v28 = vadd.f32 %v6196_v24, %v6195_v63  ;;  %6575 = vmatprep.subr.mxu1 %v5572_v62  ;;  %2364 = vmatmul.mubr.f32.gmra.mxu1 %v9452_v51  ;;  %v5553_v63 = vld [vmem:[%s11684_s3 + $0x810] sm:$0xff] }
 0x238   : > { %v6198_v57 = vpop.f32.mrf.mxu1  ;;  %6576 = vmatpush3.msra.mxu1 %v5556_v39  ;;  %2368 = vmatprep.mubr.f32.mxu1 %v9259_v37  ;;  %v5569_v37 = vld [vmem:[%s11684_s3 + $0x890] sm:$0xff] }
 0x239   : > { %v9844_v58 = vadd.f32 %v6197_v28, %v6141_v27  ;;  %6577 = vmatprep.subr.mxu1 %v5571_v19  ;;  %v6147_v27 = vadd.f32 %v9657_v25, %v9636_v3  ;;  %v9869_v19 = vld [vmem:[#allocation3 + $0x90] sm:$0xff]  ;;  %v5646_v25 = vld [vmem:[%s11684_s3 + $0xaf8] sm:$0xff] }
 0x23a   : > { %v6199_v51 = vpop.f32.mrf.mxu1  ;;  %6578 = vmatpush3.msra.mxu1 %v5555_v22 }
 0x23b   : > { %v6200_v7 = vadd.f32 %v6199_v51, %v6198_v57  ;;  %6579 = vmatprep.subr.mxu1 %v5570_v40  ;;  %2369 = vmatmul.mubr.f32.gmra.mxu1 %v9487_v10  ;;  %v6440_v39 = vpop.f32.mrf.mxu0  ;;  %v5552_v10 = vld [vmem:[%s11684_s3 + $0x808] sm:$0xff]  ;;  %v5551_v40 = vld [vmem:[%s11684_s3 + $0x800] sm:$0xff] }
 0x23c   : > { %v6201_v62 = vpop.f32.mrf.mxu1  ;;  %6580 = vmatpush3.msra.mxu1 %v5554_v49  ;;  %2373 = vmatprep.mubr.f32.mxu1 %v9289_v11  ;;  %v5567_v11 = vld [vmem:[%s11684_s3 + $0x880] sm:$0xff] }
 0x23d   : > { %v9862_v0 = vadd.f32 %v6200_v7, %v6144_v17  ;;  %6581 = vmatprep.subr.mxu1 %v5569_v37  ;;  %v6441_v22 = vpop.f32.mrf.mxu0  ;;  %v2549_v57 = vld [vmem:[#allocation3 + $0x24] sm:$0xff]  ;;  %v5630_v37 = vld [vmem:[%s11684_s3 + $0xa78] sm:$0xff] }
 0x23e   : > { %v6202_v24 = vpop.f32.mrf.mxu1  ;;  %6582 = vmatpush3.msra.mxu1 %v5553_v63  ;;  %v9878_v49 = vadd.f32 %v6441_v22, %v6440_v39  ;;  %v6150_v63 = vadd.f32 %v9693_v42, %v9669_v36  ;;  %v5644_v36 = vld [vmem:[%s11684_s3 + $0xae8] sm:$0xff] }
 0x23f   : > { %v6203_v28 = vadd.f32 %v6202_v24, %v6201_v62  ;;  %6583 = vmatprep.subr.mxu1 %v5568_v50  ;;  %2374 = vmatmul.mubr.f32.gmra.mxu1 %v9869_v19  ;;  %v6531_v17 = vpop.f32.mrf.mxu0  ;;  %v5645_v62 = vld [vmem:[%s11684_s3 + $0xaf0] sm:$0xff] }
 0x240   : > { %v6204_v3 = vpop.f32.mrf.mxu1  ;;  %6584 = vmatpush3.msra.mxu1 %v5552_v10  ;;  %2654 = vmatprep.mubr.f32.mxu1 %v2549_v57  ;;  %v2550_v10 = vld [vmem:[#allocation3 + $0x34] sm:$0xff] }
 0x241   : > { %v9883_v51 = vadd.f32 %v6203_v28, %v6147_v27  ;;  %6585 = vmatprep.subr.mxu1 %v5567_v11  ;;  %v6532_v39 = vpop.f32.mrf.mxu0  ;;  %v5629_v24 = vld [vmem:[%s11684_s3 + $0xa70] sm:$0xff]  ;;  %v5628_v11 = vld [vmem:[%s11684_s3 + $0xa68] sm:$0xff] }
 0x242   : > { %v6205_v7 = vpop.f32.mrf.mxu1  ;;  %6586 = vmatpush3.msra.mxu1 %v5551_v40  ;;  %v9896_v27 = vadd.f32 %v6532_v39, %v6531_v17  ;;  %v9909_v40 = vld [vmem:[#allocation3 + $0x44] sm:$0xff]  ;;  %v5625_v39 = vld [vmem:[%s11684_s3 + $0xa50] sm:$0xff] }
 0x243   : > { %v6206_v50 = vadd.f32 %v6205_v7, %v6204_v3  ;;  %6667 = vmatprep.subr.mxu1 %v5646_v25  ;;  %2655 = vmatmul.mubr.f32.vlgmr.msra.gmra.mxu1 %v2549_v57  ;;  %v5643_v57 = vld [vmem:[%s11684_s3 + $0xae0] sm:$0xff]  ;;  %v5642_v7 = vld [vmem:[%s11684_s3 + $0xad8] sm:$0xff] }
 0x244   : > { %6668 = vmatpush3.msra.mxu1 %v5630_v37  ;;  %2659 = vmatprep.mubr.f32.mxu1 %v2550_v10  ;;  %v5627_v3 = vld [vmem:[%s11684_s3 + $0xa60] sm:$0xff]  ;;  %v6153_v37 = vadd.f32 %v9726_v60, %v9705_v47  ;;  %v5641_v47 = vld [vmem:[%s11684_s3 + $0xad0] sm:$0xff] }
 0x245   : > { %v9901_v42 = vadd.f32 %v6206_v50, %v6150_v63  ;;  %6669 = vmatprep.subr.mxu1 %v5645_v62  ;;  %v6207_v28 = vpop.f32.mrf.mxu1  ;;  %v5626_v50 = vld [vmem:[%s11684_s3 + $0xa58] sm:$0xff] }
 0x246   : > { %v6534_v22 = vpop.f32.mrf.mxu0  ;;  %6670 = vmatpush3.msra.mxu1 %v5629_v24 }
 0x247   : > { %6671 = vmatprep.subr.mxu1 %v5644_v36  ;;  %2660 = vmatmul.mubr.f32.gmra.mxu1 %v2550_v10  ;;  %v6208_v25 = vpop.f32.mrf.mxu1  ;;  %v5640_v36 = vld [vmem:[%s11684_s3 + $0xac8] sm:$0xff] }
 0x248   : > { %v6535_v17 = vpop.f32.mrf.mxu0  ;;  %6672 = vmatpush3.msra.mxu1 %v5628_v11  ;;  %2664 = vmatprep.mubr.f32.mxu1 %v9909_v40  ;;  %v6209_v63 = vadd.f32 %v6208_v25, %v6207_v28  ;;  %v5624_v11 = vld [vmem:[%s11684_s3 + $0xa48] sm:$0xff] }
 0x249   : > { %v9920_v62 = vadd.f32 %v6535_v17, %v6534_v22  ;;  %6673 = vmatprep.subr.mxu1 %v5643_v57  ;;  %v6156_v57 = vadd.f32 %v9763_v43, %v9738_v1  ;;  %v5638_v1 = vld [vmem:[%s11684_s3 + $0xab8] sm:$0xff] }
 0x24a   : > { %6674 = vmatpush3.msra.mxu1 %v5627_v3  ;;  %v9928_v60 = vadd.f32 %v6209_v63, %v6153_v37  ;;  %v5639_v3 = vld [vmem:[%s11684_s3 + $0xac0] sm:$0xff] }
 0x24b   : > { %6675 = vmatprep.subr.mxu1 %v5642_v7  ;;  %2665 = vmatmul.mubr.f32.gmra.mxu1 %v9909_v40  ;;  %v6210_v10 = vpop.f32.mrf.mxu1  ;;  %v5623_v37 = vld [vmem:[%s11684_s3 + $0xa40] sm:$0xff]  ;;  %v5622_v7 = vld [vmem:[%s11684_s3 + $0xa38] sm:$0xff] }
 0x24c   : > { %v6537_v24 = vpop.f32.mrf.mxu0  ;;  %6676 = vmatpush3.msra.mxu1 %v5626_v50  ;;  %2669 = vmatprep.mubr.f32.mxu1 %v9403_v2  ;;  %v5637_v50 = vld [vmem:[%s11684_s3 + $0xab0] sm:$0xff] }
 0x24d   : > { %6677 = vmatprep.subr.mxu1 %v5641_v47  ;;  %v6211_v28 = vpop.f32.mrf.mxu1  ;;  %v5621_v47 = vld [vmem:[%s11684_s3 + $0xa30] sm:$0xff] }
 0x24e   : > { %v6538_v22 = vpop.f32.mrf.mxu0  ;;  %6678 = vmatpush3.msra.mxu1 %v5625_v39  ;;  %v6212_v25 = vadd.f32 %v6211_v28, %v6210_v10 }
 0x24f   : > { %v9946_v17 = vadd.f32 %v6538_v22, %v6537_v24  ;;  %6679 = vmatprep.subr.mxu1 %v5640_v36  ;;  %2670 = vmatmul.mubr.f32.gmra.mxu1 %v9403_v2  ;;  %v6159_v24 = vadd.f32 %v9791_v8, %v9772_v31  ;;  %v5636_v36 = vld [vmem:[%s11684_s3 + $0xaa8] sm:$0xff]  ;;  %v5635_v22 = vld [vmem:[%s11684_s3 + $0xaa0] sm:$0xff] }
 0x250   : > { %6680 = vmatpush3.msra.mxu1 %v5624_v11  ;;  %2674 = vmatprep.mubr.f32.mxu1 %v9437_v16  ;;  %v9956_v43 = vadd.f32 %v6212_v25, %v6156_v57  ;;  %v5619_v31 = vld [vmem:[%s11684_s3 + $0xa20] sm:$0xff]  ;;  %v5634_v25 = vld [vmem:[%s11684_s3 + $0xa98] sm:$0xff] }
 0x251   : > { %6681 = vmatprep.subr.mxu1 %v5639_v3  ;;  %v6213_v63 = vpop.f32.mrf.mxu1 }
 0x252   : > { %v6540_v2 = vpop.f32.mrf.mxu0  ;;  %6682 = vmatpush3.msra.mxu1 %v5623_v37  ;;  %v5618_v37 = vld [vmem:[%s11684_s3 + $0xa18] sm:$0xff] }
 0x253   : > { %6683 = vmatprep.subr.mxu1 %v5638_v1  ;;  %2675 = vmatmul.mubr.f32.gmra.mxu1 %v9437_v16  ;;  %v6214_v39 = vpop.f32.mrf.mxu1  ;;  %v5620_v16 = vld [vmem:[%s11684_s3 + $0xa28] sm:$0xff] }
 0x254   : > { %v6541_v10 = vpop.f32.mrf.mxu0  ;;  %6684 = vmatpush3.msra.mxu1 %v5622_v7  ;;  %2679 = vmatprep.mubr.f32.mxu1 %v9469_v53  ;;  %v6215_v11 = vadd.f32 %v6214_v39, %v6213_v63  ;;  %v5633_v7 = vld [vmem:[%s11684_s3 + $0xa90] sm:$0xff]  ;;  %v6162_v63 = vadd.f32 %v9811_v55, %v9802_v56  ;;  %v5632_v39 = vld [vmem:[%s11684_s3 + $0xa88] sm:$0xff] }
 0x255   : > { %v9974_v28 = vadd.f32 %v6541_v10, %v6540_v2  ;;  %6685 = vmatprep.subr.mxu1 %v5637_v50  ;;  %v5616_v56 = vld [vmem:[%s11684_s3 + $0xa08] sm:$0xff] }
 0x256   : > { %6686 = vmatpush3.msra.mxu1 %v5621_v47  ;;  %v9982_v57 = vadd.f32 %v6215_v11, %v6159_v24  ;;  %v5617_v47 = vld [vmem:[%s11684_s3 + $0xa10] sm:$0xff]  ;;  %v5631_v24 = vld [vmem:[%s11684_s3 + $0xa80] sm:$0xff] }
 0x257   : > { %6687 = vmatprep.subr.mxu1 %v5636_v36  ;;  %2680 = vmatmul.mubr.f32.gmra.mxu1 %v9469_v53  ;;  %v6216_v8 = vpop.f32.mrf.mxu1  ;;  %v5615_v36 = vld [vmem:[%s11684_s3 + $0xa00] sm:$0xff] }
 0x258   : > { %v6543_v3 = vpop.f32.mrf.mxu0  ;;  %6688 = vmatpush3.msra.mxu1 %v5620_v16  ;;  %2684 = vmatprep.mubr.f32.mxu1 %v9502_v21 }
 0x259   : > { %6689 = vmatprep.subr.mxu1 %v5635_v22  ;;  %v6217_v1 = vpop.f32.mrf.mxu1  ;;  %v5710_v22 = vld [vmem:[%s11684_s3 + $0xcf8] sm:$0xff] }
 0x25a   : > { %v6544_v53 = vpop.f32.mrf.mxu0  ;;  %6690 = vmatpush3.msra.mxu1 %v5619_v31  ;;  %v6218_v2 = vadd.f32 %v6217_v1, %v6216_v8 }
 0x25b   : > { %v10000_v50 = vadd.f32 %v6544_v53, %v6543_v3  ;;  %6691 = vmatprep.subr.mxu1 %v5634_v25  ;;  %2685 = vmatmul.mubr.f32.gmra.mxu1 %v9502_v21  ;;  %v5709_v3 = vld [vmem:[%s11684_s3 + $0xcf0] sm:$0xff]  ;;  %v5708_v53 = vld [vmem:[%s11684_s3 + $0xce8] sm:$0xff] }
 0x25c   : > { %6692 = vmatpush3.msra.mxu1 %v5618_v37  ;;  %2689 = vmatprep.mubr.f32.mxu1 %v9533_v9  ;;  %v10010_v10 = vadd.f32 %v6218_v2, %v6162_v63  ;;  %v5707_v63 = vld [vmem:[%s11684_s3 + $0xce0] sm:$0xff] }
 0x25d   : > { %6693 = vmatprep.subr.mxu1 %v5633_v7  ;;  %v6251_v55 = vpop.f32.mrf.mxu1 }
 0x25e   : > { %v6546_v21 = vpop.f32.mrf.mxu0  ;;  %6694 = vmatpush3.msra.mxu1 %v5617_v47 }
 0x25f   : > { %6695 = vmatprep.subr.mxu1 %v5632_v39  ;;  %2690 = vmatmul.mubr.f32.gmra.mxu1 %v9533_v9  ;;  %v6252_v11 = vpop.f32.mrf.mxu1  ;;  %v5694_v9 = vld [vmem:[%s11684_s3 + $0xc78] sm:$0xff] }
 0x260   : > { %v6547_v16 = vpop.f32.mrf.mxu0  ;;  %6696 = vmatpush3.msra.mxu1 %v5616_v56  ;;  %2979 = vmatprep.mubr.f32.mxu1 %v9558_v30  ;;  %v6253_v31 = vadd.f32 %v6252_v11, %v6251_v55  ;;  %v5693_v30 = vld [vmem:[%s11684_s3 + $0xc70] sm:$0xff]  ;;  %v5706_v39 = vld [vmem:[%s11684_s3 + $0xcd8] sm:$0xff]  ;;  %v5704_v11 = vld [vmem:[%s11684_s3 + $0xcc8] sm:$0xff] }
 0x261   : > { %v10026_v8 = vadd.f32 %v6547_v16, %v6546_v21  ;;  %6697 = vmatprep.subr.mxu1 %v5631_v24  ;;  %v5690_v55 = vld [vmem:[%s11684_s3 + $0xc58] sm:$0xff]  ;;  %v5705_v24 = vld [vmem:[%s11684_s3 + $0xcd0] sm:$0xff] }
 0x262   : > { %6698 = vmatpush3.msra.mxu1 %v5615_v36  ;;  %v10035_v25 = vadd.f32 %v6253_v31, %v9844_v58  ;;  %v5692_v58 = vld [vmem:[%s11684_s3 + $0xc68] sm:$0xff]  ;;  %v5703_v31 = vld [vmem:[%s11684_s3 + $0xcc0] sm:$0xff] }
 0x263   : > { %6779 = vmatprep.subr.mxu1 %v5710_v22  ;;  %2980 = vmatmul.mubr.f32.vlgmr.msra.gmra.mxu1 %v9580_v44  ;;  %v6254_v37 = vpop.f32.mrf.mxu1 }
 0x264   : > { %v6549_v1 = vpop.f32.mrf.mxu0  ;;  %6780 = vmatpush3.msra.mxu1 %v5694_v9  ;;  %2984 = vmatprep.mubr.f32.mxu1 %v9591_v4  ;;  %v5691_v4 = vld [vmem:[%s11684_s3 + $0xc60] sm:$0xff] }
 0x265   : > { %6781 = vmatprep.subr.mxu1 %v5709_v3  ;;  %v6255_v7 = vpop.f32.mrf.mxu1 }
 0x266   : > { %v6550_v44 = vpop.f32.mrf.mxu0  ;;  %6782 = vmatpush3.msra.mxu1 %v5693_v30  ;;  %v6256_v2 = vadd.f32 %v6255_v7, %v6254_v37  ;;  %v5702_v30 = vld [vmem:[%s11684_s3 + $0xcb8] sm:$0xff]  ;;  %v5684_v7 = vld [vmem:[%s11684_s3 + $0xc28] sm:$0xff] }
 0x267   : > { %v10051_v47 = vadd.f32 %v6550_v44, %v6549_v1  ;;  %6783 = vmatprep.subr.mxu1 %v5708_v53  ;;  %2985 = vmatmul.mubr.f32.gmra.mxu1 %v9612_v33  ;;  %v5700_v53 = vld [vmem:[%s11684_s3 + $0xca8] sm:$0xff]  ;;  %v5699_v44 = vld [vmem:[%s11684_s3 + $0xca0] sm:$0xff] }
 0x268   : > { %6784 = vmatpush3.msra.mxu1 %v5692_v58  ;;  %2989 = vmatprep.mubr.f32.mxu1 %v9621_v52  ;;  %v10062_v56 = vadd.f32 %v6256_v2, %v9862_v0  ;;  %v5689_v52 = vld [vmem:[%s11684_s3 + $0xc50] sm:$0xff] }
 0x269   : > { %6785 = vmatprep.subr.mxu1 %v5707_v63  ;;  %v6257_v33 = vpop.f32.mrf.mxu1  ;;  %v5698_v63 = vld [vmem:[%s11684_s3 + $0xc98] sm:$0xff] }
 0x26a   : > { %v6552_v21 = vpop.f32.mrf.mxu0  ;;  %6786 = vmatpush3.msra.mxu1 %v5691_v4  ;;  %v5682_v4 = vld [vmem:[%s11684_s3 + $0xc18] sm:$0xff] }
 0x26b   : > { %6787 = vmatprep.subr.mxu1 %v5706_v39  ;;  %2990 = vmatmul.mubr.f32.gmra.mxu1 %v9638_v13  ;;  %v6258_v0 = vpop.f32.mrf.mxu1  ;;  %v5688_v13 = vld [vmem:[%s11684_s3 + $0xc48] sm:$0xff] }
 0x26c   : > { %v6553_v36 = vpop.f32.mrf.mxu0  ;;  %6788 = vmatpush3.msra.mxu1 %v5690_v55  ;;  %2994 = vmatprep.mubr.f32.mxu1 %v9648_v12  ;;  %v6259_v16 = vadd.f32 %v6258_v0, %v6257_v33  ;;  %v5687_v12 = vld [vmem:[%s11684_s3 + $0xc40] sm:$0xff]  ;;  %v5696_v33 = vld [vmem:[%s11684_s3 + $0xc88] sm:$0xff] }
 0x26d   : > { %v10078_v22 = vadd.f32 %v6553_v36, %v6552_v21  ;;  %6789 = vmatprep.subr.mxu1 %v5705_v24  ;;  %v5758_v36 = vld [vmem:[%s11684_s3 + $0xe78] sm:$0xff] }
 0x26e   : > { %6790 = vmatpush3.msra.mxu1 %v5689_v52  ;;  %v10087_v9 = vadd.f32 %v6259_v16, %v9883_v51  ;;  %v5686_v51 = vld [vmem:[%s11684_s3 + $0xc38] sm:$0xff]  ;;  %v5773_v16 = vld [vmem:[%s11684_s3 + $0xef0] sm:$0xff] }
 0x26f   : > { %6791 = vmatprep.subr.mxu1 %v5704_v11  ;;  %2995 = vmatmul.mubr.f32.gmra.mxu1 %v9660_v6  ;;  %v6260_v3 = vpop.f32.mrf.mxu1  ;;  %v5701_v6 = vld [vmem:[%s11684_s3 + $0xcb0] sm:$0xff]  ;;  %v5774_v52 = vld [vmem:[%s11684_s3 + $0xef8] sm:$0xff]  ;;  %v3183_v11 = vld [vmem:[#allocation3 + $0x40] sm:$0xff] }
 0x270   : > { %6792 = vmatpush3.msra.mxu1 %v5688_v13  ;;  %2999 = vmatprep.mubr.f32.mxu1 %v9672_v29  ;;  %v5685_v29 = vld [vmem:[%s11684_s3 + $0xc30] sm:$0xff]  ;;  %v5772_v13 = vld [vmem:[%s11684_s3 + $0xee8] sm:$0xff] }
 0x271   : > { %6793 = vmatprep.subr.mxu1 %v5703_v31  ;;  %v6261_v37 = vpop.f32.mrf.mxu1 }
 0x272   : > { %6794 = vmatpush3.msra.mxu1 %v5687_v12  ;;  %v6262_v1 = vadd.f32 %v6261_v37, %v6260_v3  ;;  %v5756_v12 = vld [vmem:[%s11684_s3 + $0xe68] sm:$0xff]  ;;  %v3184_v3 = vld [vmem:[#allocation3 + $0x50] sm:$0xff] }
 0x273   : > { %6795 = vmatprep.subr.mxu1 %v5702_v30  ;;  %3000 = vmatmul.mubr.f32.gmra.mxu1 %v9682_v48  ;;  %v5771_v30 = vld [vmem:[%s11684_s3 + $0xee0] sm:$0xff] }
 0x274   : > { %6796 = vmatpush3.msra.mxu1 %v5686_v51  ;;  %3004 = vmatprep.mubr.f32.mxu1 %v9696_v54  ;;  %v10112_v58 = vadd.f32 %v6262_v1, %v9901_v42  ;;  %v5683_v54 = vld [vmem:[%s11684_s3 + $0xc20] sm:$0xff] }
 0x275   : > { %6797 = vmatprep.subr.mxu1 %v5701_v6  ;;  %v6263_v48 = vpop.f32.mrf.mxu1  ;;  %v5770_v6 = vld [vmem:[%s11684_s3 + $0xed8] sm:$0xff] }
 0x276   : > { %6798 = vmatpush3.msra.mxu1 %v5685_v29  ;;  %v3185_v29 = vld [vmem:[#allocation3 + $0x60] sm:$0xff] }
 0x277   : > { %6799 = vmatprep.subr.mxu1 %v5700_v53  ;;  %3005 = vmatmul.mubr.f32.gmra.mxu1 %v9708_v45  ;;  %v6264_v42 = vpop.f32.mrf.mxu1  ;;  %v5697_v45 = vld [vmem:[%s11684_s3 + $0xc90] sm:$0xff] }
 0x278   : > { %6800 = vmatpush3.msra.mxu1 %v5684_v7  ;;  %3009 = vmatprep.mubr.f32.mxu1 %v9717_v61  ;;  %v6265_v2 = vadd.f32 %v6264_v42, %v6263_v48  ;;  %v5681_v61 = vld [vmem:[%s11684_s3 + $0xc10] sm:$0xff]  ;;  %v5768_v48 = vld [vmem:[%s11684_s3 + $0xec8] sm:$0xff] }
 0x279   : > { %6801 = vmatprep.subr.mxu1 %v5699_v44  ;;  %v5769_v53 = vld [vmem:[%s11684_s3 + $0xed0] sm:$0xff] }
 0x27a   : > { %6802 = vmatpush3.msra.mxu1 %v5683_v54  ;;  %v10135_v39 = vadd.f32 %v6265_v2, %v9928_v60  ;;  %v5680_v60 = vld [vmem:[%s11684_s3 + $0xc08] sm:$0xff]  ;;  %v5767_v2 = vld [vmem:[%s11684_s3 + $0xec0] sm:$0xff] }
 0x27b   : > { %6803 = vmatprep.subr.mxu1 %v5698_v63  ;;  %3010 = vmatmul.mubr.f32.gmra.mxu1 %v9732_v26  ;;  %v6266_v55 = vpop.f32.mrf.mxu1  ;;  %v5695_v26 = vld [vmem:[%s11684_s3 + $0xc80] sm:$0xff]  ;;  %v5752_v54 = vld [vmem:[%s11684_s3 + $0xe48] sm:$0xff]  ;;  %v3186_v63 = vld [vmem:[#allocation3 + $0x70] sm:$0xff] }
 0x27c   : > { %6804 = vmatpush3.msra.mxu1 %v5682_v4  ;;  %3014 = vmatprep.mubr.f32.mxu1 %v9740_v15  ;;  %v5679_v15 = vld [vmem:[%s11684_s3 + $0xc00] sm:$0xff] }
 0x27d   : > { %6805 = vmatprep.subr.mxu1 %v5697_v45  ;;  %v6267_v21 = vpop.f32.mrf.mxu1  ;;  %v5766_v45 = vld [vmem:[%s11684_s3 + $0xeb8] sm:$0xff] }
 0x27e   : > { %6806 = vmatpush3.msra.mxu1 %v5681_v61  ;;  %v6268_v24 = vadd.f32 %v6267_v21, %v6266_v55  ;;  %v5750_v55 = vld [vmem:[%s11684_s3 + $0xe38] sm:$0xff] }
 0x27f   : > { %6807 = vmatprep.subr.mxu1 %v5696_v33  ;;  %3015 = vmatmul.mubr.f32.gmra.mxu1 %v9755_v18  ;;  %v3187_v33 = vld [vmem:[#allocation3 + $0x80] sm:$0xff] }
 0x280   : > { %6808 = vmatpush3.msra.mxu1 %v5680_v60  ;;  %3296 = vmatprep.mubr.f32.mxu1 %v9758_v41  ;;  %v10160_v0 = vadd.f32 %v6268_v24, %v9956_v43  ;;  %v5757_v41 = vld [vmem:[%s11684_s3 + $0xe70] sm:$0xff] }
 0x281   : > { %6809 = vmatprep.subr.mxu1 %v5695_v26  ;;  %v6269_v18 = vpop.f32.mrf.mxu1  ;;  %v5765_v60 = vld [vmem:[%s11684_s3 + $0xeb0] sm:$0xff] }
 0x282   : > { %6810 = vmatpush3.msra.mxu1 %v5679_v15  ;;  %v3196_v26 = vld [vmem:[#allocation3 + $0x91] sm:$0xff] }
 0x283   : > { %6891 = vmatprep.subr.mxu1 %v5774_v52  ;;  %3297 = vmatmul.mubr.f32.vlgmr.msra.gmra.mxu1 %v3183_v11  ;;  %v6270_v43 = vpop.f32.mrf.mxu1  ;;  %v5749_v24 = vld [vmem:[%s11684_s3 + $0xe30] sm:$0xff]  ;;  %v5764_v52 = vld [vmem:[%s11684_s3 + $0xea8] sm:$0xff] }
 0x284   : > { %6892 = vmatpush3.msra.mxu1 %v5758_v36  ;;  %3301 = vmatprep.mubr.f32.mxu1 %v9779_v38  ;;  %v6271_v31 = vadd.f32 %v6270_v43, %v6269_v18  ;;  %v5755_v38 = vld [vmem:[%s11684_s3 + $0xe60] sm:$0xff]  ;;  %v5762_v43 = vld [vmem:[%s11684_s3 + $0xe98] sm:$0xff] }
 0x285   : > { %6893 = vmatprep.subr.mxu1 %v5773_v16  ;;  %v5763_v18 = vld [vmem:[%s11684_s3 + $0xea0] sm:$0xff] }
 0x286   : > { %6894 = vmatpush3.msra.mxu1 %v5757_v41  ;;  %v10182_v51 = vadd.f32 %v6271_v31, %v9982_v57  ;;  %v5754_v57 = vld [vmem:[%s11684_s3 + $0xe58] sm:$0xff]  ;;  %v3197_v16 = vld [vmem:[#allocation3 + $0xa1] sm:$0xff] }
 0x287   : > { %6895 = vmatprep.subr.mxu1 %v5772_v13  ;;  %3302 = vmatmul.mubr.f32.gmra.mxu1 %v3184_v3  ;;  %v6272_v37 = vpop.f32.mrf.mxu1  ;;  %v5747_v41 = vld [vmem:[%s11684_s3 + $0xe20] sm:$0xff]  ;;  %v5746_v31 = vld [vmem:[%s11684_s3 + $0xe18] sm:$0xff]  ;;  %v5761_v3 = vld [vmem:[%s11684_s3 + $0xe90] sm:$0xff] }
 0x288   : > { %6896 = vmatpush3.msra.mxu1 %v5756_v12  ;;  %3306 = vmatprep.mubr.f32.mxu1 %v9797_v20  ;;  %v5753_v20 = vld [vmem:[%s11684_s3 + $0xe50] sm:$0xff]  ;;  %v3189_v12 = vld [vmem:[#allocation3 + $0xa0] sm:$0xff] }
 0x289   : > { %6897 = vmatprep.subr.mxu1 %v5771_v30  ;;  %v6273_v1 = vpop.f32.mrf.mxu1  ;;  %v3198_v30 = vld [vmem:[#allocation3 + $0xb1] sm:$0xff] }
 0x28a   : > { %6898 = vmatpush3.msra.mxu1 %v5755_v38  ;;  %v6274_v7 = vadd.f32 %v6273_v1, %v6272_v37  ;;  %v5760_v37 = vld [vmem:[%s11684_s3 + $0xe88] sm:$0xff]  ;;  %v5759_v1 = vld [vmem:[%s11684_s3 + $0xe80] sm:$0xff] }
 0x28b   : > { %6899 = vmatprep.subr.mxu1 %v5770_v6  ;;  %3307 = vmatmul.mubr.f32.gmra.mxu1 %v3185_v29 }
 0x28c   : > { %6900 = vmatpush3.msra.mxu1 %v5754_v57  ;;  %3311 = vmatprep.mubr.f32.mxu1 %v9819_v35  ;;  %v10205_v44 = vadd.f32 %v6274_v7, %v10010_v10  ;;  %v3195_v35 = vld [vmem:[#allocation3 + $0x81] sm:$0xff] }
 0x28d   : > { %6901 = vmatprep.subr.mxu1 %v5769_v53  ;;  %v6307_v42 = vpop.f32.mrf.mxu1  ;;  %v5751_v10 = vld [vmem:[%s11684_s3 + $0xe40] sm:$0xff]  ;;  %v5744_v57 = vld [vmem:[%s11684_s3 + $0xe08] sm:$0xff]  ;;  %v8017_v53 = vld [vmem:[#allocation3 + $0xb0] sm:$0xff] }
 0x28e   : > { %6902 = vmatpush3.msra.mxu1 %v5753_v20  ;;  %v5743_v7 = vld [vmem:[%s11684_s3 + $0xe00] sm:$0xff] }
 0x28f   : > { %6903 = vmatprep.subr.mxu1 %v5768_v48  ;;  %3312 = vmatmul.mubr.f32.gmra.mxu1 %v3186_v63  ;;  %v6308_v4 = vpop.f32.mrf.mxu1 }
 0x290   : > { %6904 = vmatpush3.msra.mxu1 %v5752_v54  ;;  %3316 = vmatprep.mubr.f32.mxu1 %v3195_v35  ;;  %v6309_v61 = vadd.f32 %v6308_v4, %v6307_v42  ;;  %v3508_v42 = vld [vmem:[#allocation3 + $0x54] sm:$0xff] }
 0x291   : > { %6905 = vmatprep.subr.mxu1 %v5767_v2  ;;  %v3509_v2 = vld [vmem:[#allocation3 + $0x64] sm:$0xff] }
 0x292   : > { %6906 = vmatpush3.msra.mxu1 %v5751_v10  ;;  %v10226_v21 = vadd.f32 %v6309_v61, %v10035_v25  ;;  %v5748_v25 = vld [vmem:[%s11684_s3 + $0xe28] sm:$0xff] }
 0x293   : > { %6907 = vmatprep.subr.mxu1 %v5766_v45  ;;  %3317 = vmatmul.mubr.f32.gmra.mxu1 %v3187_v33  ;;  %v6310_v15 = vpop.f32.mrf.mxu1  ;;  %v3510_v45 = vld [vmem:[#allocation3 + $0x74] sm:$0xff] }
 0x294   : > { %6908 = vmatpush3.msra.mxu1 %v5750_v55  ;;  %3321 = vmatprep.mubr.f32.mxu1 %v3196_v26  ;;  %v3512_v26 = vld [vmem:[#allocation3 + $0x94] sm:$0xff] }
 0x295   : > { %6909 = vmatprep.subr.mxu1 %v5765_v60  ;;  %v6311_v36 = vpop.f32.mrf.mxu1 }
 0x296   : > { %6910 = vmatpush3.msra.mxu1 %v5749_v24  ;;  %v6312_v11 = vadd.f32 %v6311_v36, %v6310_v15 }
 0x297   : > { %6911 = vmatprep.subr.mxu1 %v5764_v52  ;;  %3322 = vmatmul.mubr.f32.gmra.mxu1 %v9869_v19 }
 0x298   : > { %6912 = vmatpush3.msra.mxu1 %v5748_v25  ;;  %3326 = vmatprep.mubr.f32.mxu1 %v3197_v16  ;;  %v10248_v13 = vadd.f32 %v6312_v11, %v10062_v56  ;;  %v5745_v56 = vld [vmem:[%s11684_s3 + $0xe10] sm:$0xff] }
 0x299   : > { %6913 = vmatprep.subr.mxu1 %v5763_v18  ;;  %v6313_v19 = vpop.f32.mrf.mxu1  ;;  %v3514_v11 = vld [vmem:[#allocation3 + $0xb4] sm:$0xff] }
 0x29a   : > { %6914 = vmatpush3.msra.mxu1 %v5747_v41 }
 0x29b   : > { %6915 = vmatprep.subr.mxu1 %v5762_v43  ;;  %3327 = vmatmul.mubr.f32.gmra.mxu1 %v3189_v12  ;;  %v6314_v38 = vpop.f32.mrf.mxu1 }
 0x29c   : > { %6916 = vmatpush3.msra.mxu1 %v5746_v31  ;;  %3331 = vmatprep.mubr.f32.mxu1 %v3198_v30  ;;  %v6315_v6 = vadd.f32 %v6314_v38, %v6313_v19  ;;  %v10283_v30 = vpop.f32.mrf.mxu0 }
 0x29d   : > { %6917 = vmatprep.subr.mxu1 %v5761_v3 }
 0x29e   : > { %6918 = vmatpush3.msra.mxu1 %v5745_v56  ;;  %v10269_v29 = vadd.f32 %v6315_v6, %v10087_v9  ;;  %v10287_v6 = vpop.f32.mrf.mxu0 }
 0x29f   : > { %6919 = vmatprep.subr.mxu1 %v5760_v37  ;;  %3332 = vmatmul.mubr.f32.gmra.mxu1 %v8017_v53  ;;  %v6316_v20 = vpop.f32.mrf.mxu1 }
 0x2a0   : > { %6920 = vmatpush3.msra.mxu1 %v5744_v57  ;;  %3612 = vmatprep.mubr.f32.mxu1 %v9909_v40  ;;  %v10290_v53 = vpop.f32.mrf.mxu0 }
 0x2a1   : > { %6921 = vmatprep.subr.mxu1 %v5759_v1  ;;  %v6317_v48 = vpop.f32.mrf.mxu1 }
 0x2a2   : > { %6922 = vmatpush3.msra.mxu1 %v5743_v7  ;;  %v6318_v54 = vadd.f32 %v6317_v48, %v6316_v20  ;;  %v10295_v48 = vpop.f32.mrf.mxu0 }
 0x2a3   : > { %3613 = vmatmul.mubr.f32.vlgmr.msra.gmra.mxu1 %v9909_v40  ;;  %v3511_v40 = vld [vmem:[#allocation3 + $0x84] sm:$0xff] }
 0x2a4   : > { %3617 = vmatprep.mubr.f32.mxu1 %v3508_v42  ;;  %v1903_v9 = vadd.f32 %v6318_v54, %v10112_v58 }
 0x2a5   : > { %v6319_v63 = vpop.f32.mrf.mxu1 }
 0x2a7   : > { %3618 = vmatmul.mubr.f32.gmra.mxu1 %v3508_v42  ;;  %v6320_v35 = vpop.f32.mrf.mxu1 }
 0x2a8   : > { %3622 = vmatprep.mubr.f32.mxu1 %v3509_v2  ;;  %v6321_v10 = vadd.f32 %v6320_v35, %v6319_v63 }
 0x2aa   : > { %v1904_v4 = vadd.f32 %v6321_v10, %v10135_v39  ;;  %v3513_v39 = vld [vmem:[#allocation3 + $0xa4] sm:$0xff] }
 0x2ab   : > { %3623 = vmatmul.mubr.f32.gmra.mxu1 %v3509_v2  ;;  %v6322_v61 = vpop.f32.mrf.mxu1  ;;  %v10300_v2 = vpop.f32.mrf.mxu0 }
 0x2ac   : > { %3627 = vmatprep.mubr.f32.mxu1 %v3510_v45 }
 0x2ad   : > { %v6323_v55 = vpop.f32.mrf.mxu1 }
 0x2ae   : > { %v6324_v33 = vadd.f32 %v6323_v55, %v6322_v61  ;;  %v10305_v61 = vpop.f32.mrf.mxu0 }
 0x2af   : > { %3628 = vmatmul.mubr.f32.gmra.mxu1 %v3510_v45 }
 0x2b0   : > { %3632 = vmatprep.mubr.f32.mxu1 %v3511_v40  ;;  %v1905_v60 = vadd.f32 %v6324_v33, %v10160_v0 }
 0x2b1   : > { %v6325_v58 = vpop.f32.mrf.mxu1 }
 0x2b3   : > { %3633 = vmatmul.mubr.f32.gmra.mxu1 %v3511_v40  ;;  %v6326_v24 = vpop.f32.mrf.mxu1 }
 0x2b4   : > { %3637 = vmatprep.mubr.f32.mxu1 %v3512_v26  ;;  %v6327_v15 = vadd.f32 %v6326_v24, %v6325_v58 }
 0x2b6   : > { %v1906_v52 = vadd.f32 %v6327_v15, %v10182_v51 }
 0x2b7   : > { %3638 = vmatmul.mubr.f32.gmra.mxu1 %v3512_v26  ;;  %v6328_v25 = vpop.f32.mrf.mxu1 }
 0x2b8   : > { %3642 = vmatprep.mubr.f32.mxu1 %v3513_v39 }
 0x2b9   : > { %v6329_v36 = vpop.f32.mrf.mxu1 }
 0x2ba   : > { %v6330_v18 = vadd.f32 %v6329_v36, %v6328_v25 }
 0x2bb   : > { %3643 = vmatmul.mubr.f32.gmra.mxu1 %v3513_v39 }
 0x2bc   : > { %3647 = vmatprep.mubr.f32.mxu1 %v3514_v11  ;;  %v1907_v16 = vadd.f32 %v6330_v18, %v10205_v44 }
 0x2bd   : > { %v6363_v0 = vpop.f32.mrf.mxu1 }
 0x2bf   : > { %3648 = vmatmul.mubr.f32.gmra.mxu1 %v3514_v11  ;;  %v6364_v41 = vpop.f32.mrf.mxu1 }
 0x2c0   : > { %v6365_v43 = vadd.f32 %v6364_v41, %v6363_v0 }
 0x2c2   : > { %v2062_v31 = vadd.f32 %v6365_v43, %v10226_v21 }
 0x2c3   : > { %v6366_v19 = vpop.f32.mrf.mxu1 }
 0x2c4   : > { %v2216_v51 = vadd.f32 %v9423_v14, %v2062_v31 }
 0x2c5   : > { %v6367_v12 = vpop.f32.mrf.mxu1 }
 0x2c6   : > { %v6368_v3 = vadd.f32 %v6367_v12, %v6366_v19  ;;  %v5790_v12 = vld [vmem:[%s11686_s5 + $0xf0] sm:$0xff] }
 0x2c8   : > { %v2063_v56 = vadd.f32 %v6368_v3, %v10248_v13  ;;  %v3738_v3 = vld [vmem:[%s11686_s5 + $0x70] sm:$0xff] }
 0x2c9   : > { %v6369_v38 = vpop.f32.mrf.mxu1 }
 0x2ca   : > { %v2217_v37 = vadd.f32 %v9489_v46, %v2063_v56 }
 0x2cb   : > { %v6370_v44 = vpop.f32.mrf.mxu1 }
 0x2cc   : > { %v6371_v57 = vadd.f32 %v6370_v44, %v6369_v38  ;;  %v5789_v38 = vld [vmem:[%s11686_s5 + $0xe8] sm:$0xff] }
 0x2cd   : > { %v3737_v44 = vld [vmem:[%s11686_s5 + $0x68] sm:$0xff] }
 0x2ce   : > { %v2064_v1 = vadd.f32 %v6371_v57, %v10269_v29 }
 0x2cf   : > { %v6372_v21 = vpop.f32.mrf.mxu1 }
 0x2d0   : > { %v10293_v14 = vadd.f32 %v9549_v5, %v2064_v1 }
 0x2d1   : > { %v6373_v7 = vpop.f32.mrf.mxu1 }
 0x2d2   : > { %v6374_v20 = vadd.f32 %v6373_v7, %v6372_v21  ;;  %v5788_v7 = vld [vmem:[%s11686_s5 + $0xe0] sm:$0xff] }
 0x2d3   : > { %v6375_v13 = vpop.f32.mrf.mxu1 }
 0x2d4   : > { %v2065_v54 = vadd.f32 %v6374_v20, %v1903_v9  ;;  %v3736_v20 = vld [vmem:[%s11686_s5 + $0x60] sm:$0xff] }
 0x2d5   : > { %v6376_v42 = vpop.f32.mrf.mxu1 }
 0x2d6   : > { %v6377_v46 = vadd.f32 %v6376_v42, %v6375_v13  ;;  %v10298_v63 = vadd.f32 %v9617_v59, %v2065_v54  ;;  %v10310_v59 = vpop.f32.mrf.mxu0  ;;  %v5787_v54 = vld [vmem:[%s11686_s5 + $0xd8] sm:$0xff] }
 0x2d7   : > { %v6378_v29 = vpop.f32.mrf.mxu1  ;;  %v3735_v42 = vld [vmem:[%s11686_s5 + $0x58] sm:$0xff] }
 0x2d8   : > { %v2066_v35 = vadd.f32 %v6377_v46, %v1904_v4 }
 0x2d9   : > { %v6379_v10 = vpop.f32.mrf.mxu1 }
 0x2da   : > { %v6380_v45 = vadd.f32 %v6379_v10, %v6378_v29  ;;  %v10303_v5 = vadd.f32 %v9687_v23, %v2066_v35  ;;  %v10315_v23 = vpop.f32.mrf.mxu0  ;;  %v5786_v10 = vld [vmem:[%s11686_s5 + $0xd0] sm:$0xff] }
 0x2db   : > { %v6381_v55 = vpop.f32.mrf.mxu1 }
 0x2dc   : > { %v2067_v33 = vadd.f32 %v6380_v45, %v1905_v60  ;;  %v3734_v45 = vld [vmem:[%s11686_s5 + $0x50] sm:$0xff] }
 0x2dd   : > { %v6382_v40 = vpop.f32.mrf.mxu1 }
 0x2de   : > { %v6383_v9 = vadd.f32 %v6382_v40, %v6381_v55  ;;  %v10308_v58 = vadd.f32 %v9752_v34, %v2067_v33  ;;  %v10320_v34 = vpop.f32.mrf.mxu0  ;;  %v5785_v33 = vld [vmem:[%s11686_s5 + $0xc8] sm:$0xff] }
 0x2df   : > { %v6384_v26 = vpop.f32.mrf.mxu1  ;;  %v3733_v40 = vld [vmem:[%s11686_s5 + $0x48] sm:$0xff] }
 0x2e0   : > { %v2068_v24 = vadd.f32 %v6383_v9, %v1906_v52  ;;  %v11691_v52 = vmov 0.0   ;;  %v10333_v19 = vpop.f32.mrf.mxu0 }
 0x2e1   : > { %v6385_v15 = vpop.f32.mrf.mxu1  ;;  %7376 = vmatprep.subr.mxu0 %v11691_v52  ;;  %7411 = vmatprep.subr.mxu1 %v11691_v52 }
 0x2e2   : > { %v6386_v4 = vadd.f32 %v6385_v15, %v6384_v26  ;;  %v10313_v39 = vadd.f32 %v9816_v32, %v2068_v24  ;;  %v5791_v32 = vld [vmem:[%s11686_s5 + $0xf8] sm:$0xff]  ;;  %v5784_v15 = vld [vmem:[%s11686_s5 + $0xc0] sm:$0xff]  ;;  %7408 = vmatprep.mubr.msk.f32.mxu0 %vm8081_vm1, %v11691_v52  ;;  %7443 = vmatprep.mubr.msk.f32.mxu1 %vm8081_vm1, %v11691_v52 }
 0x2e3   : > { %v6475_v25 = vpop.f32.mrf.mxu1  ;;  %7377 = vmatpush3.msra.mxu0 %v5791_v32  ;;  %v3730_v32 = vld [vmem:[%s11686_s5 + $0x30] sm:$0xff] }
 0x2e4   : > { %v2069_v36 = vadd.f32 %v6386_v4, %v1907_v16  ;;  %v3739_v16 = vld [vmem:[%s11686_s5 + $0x78] sm:$0xff]  ;;  %7378 = vmatprep.subr.mxu0 %v11691_v52  ;;  %v3732_v4 = vld [vmem:[%s11686_s5 + $0x40] sm:$0xff] }
 0x2e5   : > { %v6476_v18 = vpop.f32.mrf.mxu1  ;;  %7412 = vmatpush3.msra.mxu1 %v3739_v16  ;;  %7379 = vmatpush3.msra.mxu0 %v5790_v12 }
 0x2e6   : > { %v6477_v60 = vadd.f32 %v6476_v18, %v6475_v25  ;;  %v10318_v11 = vadd.f32 %v9878_v49, %v2069_v36  ;;  %7413 = vmatprep.subr.mxu1 %v11691_v52  ;;  %7380 = vmatprep.subr.mxu0 %v11691_v52  ;;  %v5783_v36 = vld [vmem:[%s11686_s5 + $0xb8] sm:$0xff] }
 0x2e7   : > { %v6478_v0 = vpop.f32.mrf.mxu1  ;;  %7414 = vmatpush3.msra.mxu1 %v3738_v3  ;;  %7381 = vmatpush3.msra.mxu0 %v5789_v38  ;;  %v3731_v18 = vld [vmem:[%s11686_s5 + $0x38] sm:$0xff]  ;;  %v3728_v38 = vld [vmem:[%s11686_s5 + $0x20] sm:$0xff] }
 0x2e8   : > { %v2379_v41 = vadd.f32 %v6477_v60, %v2216_v51  ;;  %7415 = vmatprep.subr.mxu1 %v11691_v52  ;;  %7382 = vmatprep.subr.mxu0 %v11691_v52 }
 0x2e9   : > { %v6479_v43 = vpop.f32.mrf.mxu1  ;;  %7416 = vmatpush3.msra.mxu1 %v3737_v44  ;;  %7383 = vmatpush3.msra.mxu0 %v5788_v7 }
 0x2ea   : > { %v6480_v49 = vadd.f32 %v6479_v43, %v6478_v0  ;;  %v10331_v31 = vadd.f32 %v9896_v27, %v2379_v41  ;;  %7417 = vmatprep.subr.mxu1 %v11691_v52  ;;  %7384 = vmatprep.subr.mxu0 %v11691_v52  ;;  %v5782_v43 = vld [vmem:[%s11686_s5 + $0xb0] sm:$0xff] }
 0x2eb   : > { %v6481_v51 = vpop.f32.mrf.mxu1  ;;  %7418 = vmatpush3.msra.mxu1 %v3736_v20  ;;  %7385 = vmatpush3.msra.mxu0 %v5787_v54  ;;  %v3726_v54 = vld [vmem:[%s11686_s5 + $0x10] sm:$0xff] }
 0x2ec   : > { %v2380_v56 = vadd.f32 %v6480_v49, %v2217_v37  ;;  %v10354_v37 = vpop.f32.mrf.mxu0  ;;  %7419 = vmatprep.subr.mxu1 %v11691_v52  ;;  %7386 = vmatprep.subr.mxu0 %v11691_v52  ;;  %v5781_v49 = vld [vmem:[%s11686_s5 + $0xa8] sm:$0xff] }
 0x2ed   : > { %v6482_v27 = vpop.f32.mrf.mxu1  ;;  %7420 = vmatpush3.msra.mxu1 %v3735_v42  ;;  %7387 = vmatpush3.msra.mxu0 %v5786_v10 }
 0x2ee   : > { %v6483_v57 = vadd.f32 %v6482_v27, %v6481_v51  ;;  %v10352_v1 = vadd.f32 %v9920_v62, %v2380_v56  ;;  %7421 = vmatprep.subr.mxu1 %v11691_v52  ;;  %7388 = vmatprep.subr.mxu0 %v11691_v52  ;;  %v3729_v51 = vld [vmem:[%s11686_s5 + $0x28] sm:$0xff]  ;;  %v5780_v27 = vld [vmem:[%s11686_s5 + $0xa0] sm:$0xff] }
 0x2ef   : > { %v6484_v21 = vpop.f32.mrf.mxu1  ;;  %7422 = vmatpush3.msra.mxu1 %v3734_v45  ;;  %7389 = vmatpush3.msra.mxu0 %v5785_v33  ;;  %v3724_v33 = vld [vmem:[%s11686_s5] sm:$0xff] }
 0x2f0   : > { %v2381_v62 = vadd.f32 %v6483_v57, %v10293_v14  ;;  %v10376_v14 = vpop.f32.mrf.mxu0  ;;  %7423 = vmatprep.subr.mxu1 %v11691_v52  ;;  %7390 = vmatprep.subr.mxu0 %v11691_v52  ;;  %v5779_v57 = vld [vmem:[%s11686_s5 + $0x98] sm:$0xff] }
 0x2f1   : > { %v6485_v13 = vpop.f32.mrf.mxu1  ;;  %7424 = vmatpush3.msra.mxu1 %v3733_v40  ;;  %7391 = vmatpush3.msra.mxu0 %v5784_v15 }
 0x2f2   : > { %v6486_v46 = vadd.f32 %v6485_v13, %v6484_v21  ;;  %v10374_v29 = vadd.f32 %v9946_v17, %v2381_v62  ;;  %7425 = vmatprep.subr.mxu1 %v11691_v52  ;;  %7392 = vmatprep.subr.mxu0 %v11691_v52  ;;  %v3727_v21 = vld [vmem:[%s11686_s5 + $0x18] sm:$0xff]  ;;  %v5778_v13 = vld [vmem:[%s11686_s5 + $0x90] sm:$0xff] }
 0x2f3   : > { %v6487_v35 = vpop.f32.mrf.mxu1  ;;  %7426 = vmatpush3.msra.mxu1 %v3732_v4  ;;  %7393 = vmatpush3.msra.mxu0 %v5783_v36 }
 0x2f4   : > { %v2382_v17 = vadd.f32 %v6486_v46, %v10298_v63  ;;  %v10398_v63 = vpop.f32.mrf.mxu0  ;;  %7427 = vmatprep.subr.mxu1 %v11691_v52  ;;  %7394 = vmatprep.subr.mxu0 %v11691_v52  ;;  %v5777_v46 = vld [vmem:[%s11686_s5 + $0x88] sm:$0xff] }
 0x2f5   : > { %v6488_v55 = vpop.f32.mrf.mxu1  ;;  %11695 = vst [vmem:[#allocation9_spill] sm:$0xff] %v10398_v63  ;;  %7428 = vmatpush3.msra.mxu1 %v3731_v18  ;;  %7395 = vmatpush3.msra.mxu0 %v5782_v43 }
 0x2f6   : > { %v6489_v9 = vadd.f32 %v6488_v55, %v6487_v35  ;;  %v10396_v26 = vadd.f32 %v9974_v28, %v2382_v17  ;;  %7429 = vmatprep.subr.mxu1 %v11691_v52  ;;  %7396 = vmatprep.subr.mxu0 %v11691_v52  ;;  %v3725_v35 = vld [vmem:[%s11686_s5 + $0x8] sm:$0xff]  ;;  %v5776_v55 = vld [vmem:[%s11686_s5 + $0x80] sm:$0xff] }
 0x2f7   : > { %v6490_v24 = vpop.f32.mrf.mxu1  ;;  %7430 = vmatpush3.msra.mxu1 %v3730_v32  ;;  %7397 = vmatpush3.msra.mxu0 %v5781_v49 }
 0x2f8   : > { %v2383_v28 = vadd.f32 %v6489_v9, %v10303_v5  ;;  %v10420_v5 = vpop.f32.mrf.mxu0  ;;  %7431 = vmatprep.subr.mxu1 %v11691_v52  ;;  %7398 = vmatprep.subr.mxu0 %v11691_v52 }
 0x2f9   : > { %v6491_v25 = vpop.f32.mrf.mxu1  ;;  %11696 = vst [vmem:[#allocation10_spill] sm:$0xff] %v10420_v5  ;;  %7432 = vmatpush3.msra.mxu1 %v3729_v51  ;;  %7399 = vmatpush3.msra.mxu0 %v5780_v27  ;;  %v6648_v5 = vadd.f32 %v10295_v48, %v10290_v53 }
 0x2fa   : > { %v6492_v60 = vadd.f32 %v6491_v25, %v6490_v24  ;;  %v10418_v0 = vadd.f32 %v10000_v50, %v2383_v28  ;;  %7433 = vmatprep.subr.mxu1 %v11691_v52  ;;  %7400 = vmatprep.subr.mxu0 %v11691_v52 }
 0x2fb   : > { %v6493_v41 = vpop.f32.mrf.mxu1  ;;  %7434 = vmatpush3.msra.mxu1 %v3728_v38  ;;  %7401 = vmatpush3.msra.mxu0 %v5779_v57 }
 0x2fc   : > { %v2384_v50 = vadd.f32 %v6492_v60, %v10308_v58  ;;  %v10442_v58 = vpop.f32.mrf.mxu0  ;;  %7435 = vmatprep.subr.mxu1 %v11691_v52  ;;  %7402 = vmatprep.subr.mxu0 %v11691_v52 }
 0x2fd   : > { %v6494_v16 = vpop.f32.mrf.mxu1  ;;  %11697 = vst [vmem:[#allocation11_spill] sm:$0xff] %v10442_v58  ;;  %7436 = vmatpush3.msra.mxu1 %v3727_v21  ;;  %7403 = vmatpush3.msra.mxu0 %v5778_v13 }
 0x2fe   : > { %v6495_v12 = vadd.f32 %v6494_v16, %v6493_v41  ;;  %v10440_v3 = vadd.f32 %v10026_v8, %v2384_v50  ;;  %7437 = vmatprep.subr.mxu1 %v11691_v52  ;;  %7404 = vmatprep.subr.mxu0 %v11691_v52 }
 0x2ff   : > { %v6496_v56 = vpop.f32.mrf.mxu1  ;;  %7438 = vmatpush3.msra.mxu1 %v3726_v54  ;;  %7405 = vmatpush3.msra.mxu0 %v5777_v46 }
 0x300   : > { %v2385_v8 = vadd.f32 %v6495_v12, %v10313_v39  ;;  %v10464_v39 = vpop.f32.mrf.mxu0  ;;  %7439 = vmatprep.subr.mxu1 %v11691_v52  ;;  %7406 = vmatprep.subr.mxu0 %v11691_v52 }
 0x301   : > { %v6497_v44 = vpop.f32.mrf.mxu1  ;;  %11698 = vst [vmem:[#allocation12_spill] sm:$0xff] %v10464_v39  ;;  %7440 = vmatpush3.msra.mxu1 %v3725_v35  ;;  %7407 = vmatpush3.msra.mxu0 %v5776_v55 }
 0x302   : > { %v6498_v7 = vadd.f32 %v6497_v44, %v6496_v56  ;;  %v10462_v20 = vadd.f32 %v10051_v47, %v2385_v8  ;;  %7441 = vmatprep.subr.mxu1 %v11691_v52  ;;  %7446 = vmatprep.subr.mxu0 %v11691_v52 }
 0x303   : > { %v6587_v62 = vpop.f32.mrf.mxu1  ;;  %7442 = vmatpush3.msra.mxu1 %v3724_v33 }
 0x304   : > { %v2386_v47 = vadd.f32 %v6498_v7, %v10318_v11  ;;  %v10484_v11 = vpop.f32.mrf.mxu0  ;;  %7481 = vmatprep.subr.mxu1 %v11691_v52 }
 0x305   : > { %v6588_v42 = vpop.f32.mrf.mxu1 }
 0x306   : > { %v6589_v10 = vadd.f32 %v6588_v42, %v6587_v62  ;;  %v2548_v45 = vadd.f32 %v10078_v22, %v2386_v47  ;;  %v10503_v24 = vpop.f32.mrf.mxu0 }
 0x307   : > { %v6590_v17 = vpop.f32.mrf.mxu1 }
 0x308   : > { %v10495_v40 = vadd.f32 %v6589_v10, %v10331_v31  ;;  %v10508_v25 = vpop.f32.mrf.mxu0 }
 0x309   : > { %v6591_v22 = vpop.f32.mrf.mxu1 }
 0x30a   : > { %v6592_v9 = vadd.f32 %v6591_v22, %v6590_v17  ;;  %v10513_v43 = vpop.f32.mrf.mxu0 }
 0x30b   : > { %v6593_v15 = vpop.f32.mrf.mxu1  ;;  %v6760_v48 = vadd.f32 %v10513_v43, %v10508_v25 }
 0x30c   : > { %v10506_v31 = vadd.f32 %v6592_v9, %v10352_v1  ;;  %v10518_v1 = vpop.f32.mrf.mxu0 }
 0x30d   : > { %v6594_v4 = vpop.f32.mrf.mxu1 }
 0x30e   : > { %v6595_v28 = vadd.f32 %v6594_v4, %v6593_v15 }
 0x30f   : > { %v6596_v36 = vpop.f32.mrf.mxu1 }
 0x310   : > { %v10511_v18 = vadd.f32 %v6595_v28, %v10374_v29  ;;  %v10523_v29 = vpop.f32.mrf.mxu0 }
 0x311   : > { %v6597_v60 = vpop.f32.mrf.mxu1 }
 0x312   : > { %v6598_v41 = vadd.f32 %v6597_v60, %v6596_v36 }
 0x313   : > { %v6599_v32 = vpop.f32.mrf.mxu1 }
 0x314   : > { %v10516_v50 = vadd.f32 %v6598_v41, %v10396_v26  ;;  %v10528_v26 = vpop.f32.mrf.mxu0 }
 0x315   : > { %v6600_v16 = vpop.f32.mrf.mxu1 }
 0x316   : > { %v6601_v49 = vadd.f32 %v6600_v16, %v6599_v32 }
 0x317   : > { %v6602_v51 = vpop.f32.mrf.mxu1 }
 0x318   : > { %v10521_v12 = vadd.f32 %v6601_v49, %v10418_v0  ;;  %v10533_v0 = vpop.f32.mrf.mxu0 }
 0x319   : > { %v6603_v56 = vpop.f32.mrf.mxu1 }
 0x31a   : > { %v6604_v27 = vadd.f32 %v6603_v56, %v6602_v51  ;;  %v10537_v46 = vpop.f32.mrf.mxu0 }
 0x31b   : > { %v6605_v38 = vpop.f32.mrf.mxu1 }
 0x31c   : > { %v10526_v8 = vadd.f32 %v6604_v27, %v10440_v3  ;;  %v10539_v10 = vpop.f32.mrf.mxu0 }
 0x31d   : > { %v6606_v44 = vpop.f32.mrf.mxu1 }
 0x31e   : > { %v6607_v57 = vadd.f32 %v6606_v44, %v6605_v38  ;;  %v10541_v33 = vpop.f32.mrf.mxu0 }
 0x31f   : > { %v6608_v21 = vpop.f32.mrf.mxu1  ;;  %11701 = vst [vmem:[#allocation15_spill] sm:$0xff] %v10541_v33 }
 0x320   : > { %v10531_v7 = vadd.f32 %v6607_v57, %v10462_v20  ;;  %v10543_v9 = vpop.f32.mrf.mxu0 }
 0x321   : > { %v6609_v62 = vpop.f32.mrf.mxu1  ;;  %11702 = vst [vmem:[#allocation16_spill] sm:$0xff] %v10543_v9 }
 0x322   : > { %11699 = vst [vmem:[#allocation13_spill] sm:$0xff] %v10531_v7  ;;  %v6610_v13 = vadd.f32 %v6609_v62, %v6608_v21 }
 0x323   : > { %v6699_v54 = vpop.f32.mrf.mxu1 }
 0x324   : > { %v10535_v47 = vadd.f32 %v6610_v13, %v2548_v45  ;;  %v10549_v45 = vpop.f32.mrf.mxu0 }
 0x325   : > { %v6700_v42 = vpop.f32.mrf.mxu1  ;;  %11703 = vst [vmem:[#allocation17_spill] sm:$0xff] %v10549_v45 }
 0x326   : > { %11700 = vst [vmem:[#allocation14_spill] sm:$0xff] %v10535_v47  ;;  %v10555_v60 = vpop.f32.mrf.mxu0  ;;  %v6701_v33 = vadd.f32 %v6700_v42, %v6699_v54 }
 0x327   : > { %v6702_v3 = vpop.f32.mrf.mxu1  ;;  %11704 = vst [vmem:[#allocation18_spill] sm:$0xff] %v10555_v60 }
 0x328   : > { %v10561_v16 = vpop.f32.mrf.mxu0 }
 0x329   : > { %v6703_v35 = vpop.f32.mrf.mxu1  ;;  %11707 = vst [vmem:[#allocation21_spill] sm:$0xff] %v10561_v16 }
 0x32a   : > { %v10567_v56 = vpop.f32.mrf.mxu0 }
 0x32b   : > { %v6705_v17 = vpop.f32.mrf.mxu1  ;;  %11710 = vst [vmem:[#allocation24_spill] sm:$0xff] %v10567_v56  ;;  %v6645_v56 = vadd.f32 %v10287_v6, %v10283_v30  ;;  %v2859_v30 = vadd.f32 %v6648_v5, %v10506_v31  ;;  %v6654_v5 = vadd.f32 %v10315_v23, %v10310_v59 }
 0x32c   : > { %v6867_v44 = vpop.f32.mrf.mxu0 }
 0x32d   : > { %v6706_v55 = vpop.f32.mrf.mxu1  ;;  %v2858_v58 = vadd.f32 %v6645_v56, %v10495_v40  ;;  %v6651_v40 = vadd.f32 %v10305_v61, %v10300_v2 }
 0x32e   : > { %v6868_v62 = vpop.f32.mrf.mxu0 }
 0x32f   : > { %v6708_v20 = vpop.f32.mrf.mxu1  ;;  %v3020_v63 = vadd.f32 %v6701_v33, %v2858_v58  ;;  %v2860_v58 = vadd.f32 %v6651_v40, %v10511_v18 }
 0x330   : > { %v6870_v47 = vpop.f32.mrf.mxu0 }
 0x331   : > { %v6709_v22 = vpop.f32.mrf.mxu1 }
 0x332   : > { %v6871_v7 = vpop.f32.mrf.mxu0  ;;  %v6710_v2 = vadd.f32 %v6709_v22, %v6708_v20 }
 0x333   : > { %v10545_v15 = vpop.f32.mrf.mxu1  ;;  %v6872_v59 = vadd.f32 %v6871_v7, %v6870_v47 }
 0x335   : > { %v10547_v4 = vpop.f32.mrf.mxu1 }
 0x336   : > { %v6713_v20 = vadd.f32 %v10547_v4, %v10545_v15 }
 0x337   : > { %v10551_v28 = vpop.f32.mrf.mxu1 }
 0x339   : > { %v10553_v36 = vpop.f32.mrf.mxu1 }
 0x33a   : > { %v6716_v4 = vadd.f32 %v10553_v36, %v10551_v28 }
 0x33b   : > { %v10557_v41 = vpop.f32.mrf.mxu1 }
 0x33c   : > { %11705 = vst [vmem:[#allocation19_spill] sm:$0xff] %v10557_v41 }
 0x33d   : > { %v10559_v32 = vpop.f32.mrf.mxu1 }
 0x33e   : > { %11706 = vst [vmem:[#allocation20_spill] sm:$0xff] %v10559_v32 }
 0x33f   : > { %v10563_v49 = vpop.f32.mrf.mxu1 }
 0x340   : > { %11708 = vst [vmem:[#allocation22_spill] sm:$0xff] %v10563_v49  ;;  %v6873_v49 = vpop.f32.mrf.mxu0 }
 0x341   : > { %v10565_v51 = vpop.f32.mrf.mxu1 }
 0x342   : > { %11709 = vst [vmem:[#allocation23_spill] sm:$0xff] %v10565_v51  ;;  %v6874_v32 = vpop.f32.mrf.mxu0 }
 0x343   : > { %v6811_v27 = vpop.f32.mrf.mxu1  ;;  %v6875_v7 = vadd.f32 %v6874_v32, %v6873_v49  ;;  %v11718_v49 = vld [vmem:[#allocation9_spill] sm:$0xff]  ;;  %v11720_v28 = vld [vmem:[#allocation19_spill] sm:$0xff] }
 0x344   : > { %v6876_v54 = vpop.f32.mrf.mxu0 }
 0x345   : > { %v6812_v38 = vpop.f32.mrf.mxu1  ;;  %v11721_v36 = vld [vmem:[#allocation20_spill] sm:$0xff] }
 0x346   : > { %v6813_v6 = vadd.f32 %v6812_v38, %v6811_v27  ;;  %v6877_v31 = vpop.f32.mrf.mxu0 }
 0x347   : > { %v6814_v57 = vpop.f32.mrf.mxu1 }
 0x348   : > { %v6879_v23 = vpop.f32.mrf.mxu0 }
 0x349   : > { %v6815_v21 = vpop.f32.mrf.mxu1 }
 0x34a   : > { %v6880_v47 = vpop.f32.mrf.mxu0 }
 0x34b   : > { %v6817_v13 = vpop.f32.mrf.mxu1 }
 0x34d   : > { %v6818_v52 = vpop.f32.mrf.mxu1 }
 0x34e   : > { %v6819_v43 = vadd.f32 %v6818_v52, %v6817_v13 }
 0x34f   : > { %v6820_v60 = vpop.f32.mrf.mxu1 }
 0x351   : > { %v6821_v45 = vpop.f32.mrf.mxu1 }
 0x352   : > { %v6822_v38 = vadd.f32 %v6821_v45, %v6820_v60 }
 0x353   : > { %v10569_v9 = vpop.f32.mrf.mxu1 }
 0x354   : > { %11711 = vst [vmem:[#allocation25_spill] sm:$0xff] %v10569_v9  ;;  %v6704_v9 = vadd.f32 %v6703_v35, %v6702_v3  ;;  %v6869_v35 = vadd.f32 %v6868_v62, %v6867_v44 }
 0x355   : > { %v10571_v16 = vpop.f32.mrf.mxu1 }
 0x356   : > { %11712 = vst [vmem:[#allocation26_spill] sm:$0xff] %v10571_v16  ;;  %v3021_v56 = vadd.f32 %v6704_v9, %v2859_v30  ;;  %v6657_v9 = vadd.f32 %v10333_v19, %v10320_v34  ;;  %v6660_v19 = vadd.f32 %v10376_v14, %v10354_v37 }
 0x357   : > { %v10573_v51 = vpop.f32.mrf.mxu1 }
 0x358   : > { %11713 = vst [vmem:[#allocation27_spill] sm:$0xff] %v10573_v51  ;;  %v6757_v51 = vadd.f32 %v10503_v24, %v10484_v11  ;;  %v6816_v24 = vadd.f32 %v6815_v21, %v6814_v57  ;;  %v3175_v61 = vadd.f32 %v6760_v48, %v3021_v56  ;;  %v2863_v45 = vadd.f32 %v6660_v19, %v10526_v8  ;;  %v11722_v8 = vld [vmem:[#allocation11_spill] sm:$0xff] }
 0x359   : > { %v10577_v39 = vpop.f32.mrf.mxu1  ;;  %v6719_v56 = vadd.f32 %v11721_v36, %v11720_v28 }
 0x35a   : > { %11714 = vst [vmem:[#allocation28_spill] sm:$0xff] %v10577_v39  ;;  %v3174_v39 = vadd.f32 %v6757_v51, %v3020_v63  ;;  %v6763_v63 = vadd.f32 %v10523_v29, %v10518_v1  ;;  %v3338_v25 = vadd.f32 %v6816_v24, %v3175_v61  ;;  %v2862_v1 = vadd.f32 %v6657_v9, %v10521_v12  ;;  %v11723_v24 = vld [vmem:[#allocation12_spill] sm:$0xff]  ;;  %v11726_v61 = vld [vmem:[#allocation13_spill] sm:$0xff] }
 0x35b   : > { %v10580_v41 = vpop.f32.mrf.mxu1  ;;  %v6769_v12 = vadd.f32 %v10539_v10, %v10537_v46  ;;  %v11716_v13 = vld [vmem:[#allocation25_spill] sm:$0xff]  ;;  %v3025_v46 = vadd.f32 %v6716_v4, %v2863_v45 }
 0x35c   : > { %11715 = vst [vmem:[#allocation29_spill] sm:$0xff] %v10580_v41  ;;  %v6707_v41 = vadd.f32 %v6706_v55, %v6705_v17  ;;  %v3337_v11 = vadd.f32 %v6813_v6, %v3174_v39  ;;  %v2861_v17 = vadd.f32 %v6654_v5, %v10516_v50  ;;  %v6766_v50 = vadd.f32 %v10533_v0, %v10528_v26  ;;  %v6882_v0 = vpop.f32.mrf.mxu0  ;;  %v11719_v6 = vld [vmem:[#allocation10_spill] sm:$0xff] }
 0x35d   : > { %v10584_v16 = vpop.f32.mrf.mxu1  ;;  %v3500_v44 = vadd.f32 %v6872_v59, %v3338_v25  ;;  %v3024_v15 = vadd.f32 %v6713_v20, %v2862_v1  ;;  %v11717_v30 = vld [vmem:[#allocation26_spill] sm:$0xff]  ;;  %v6663_v40 = vadd.f32 %v11719_v6, %v11718_v49  ;;  %v6666_v5 = vadd.f32 %v11723_v24, %v11722_v8  ;;  %v11730_v20 = vld [vmem:[#allocation23_spill] sm:$0xff]  ;;  %v11731_v1 = vld [vmem:[#allocation17_spill] sm:$0xff] }
 0x35e   : > { %v3022_v33 = vadd.f32 %v6707_v41, %v2860_v58  ;;  %v3499_v18 = vadd.f32 %v6869_v35, %v3337_v11  ;;  %v3023_v27 = vadd.f32 %v6710_v2, %v2861_v17  ;;  %v6825_v37 = vadd.f32 %v11717_v30, %v11716_v13  ;;  %v11725_v35 = vld [vmem:[#allocation16_spill] sm:$0xff]  ;;  %v6883_v2 = vpop.f32.mrf.mxu0  ;;  %v10642_v6 = vld [vmem:[%s11685_s4] ss:$0 sm:$0xff] }
 0x35f   : > { %v10589_v42 = vpop.f32.mrf.mxu1  ;;  %v6878_v58 = vadd.f32 %v6877_v31, %v6876_v54  ;;  %v3178_v10 = vadd.f32 %v6769_v12, %v3024_v15  ;;  %v11727_v25 = vld [vmem:[#allocation27_spill] sm:$0xff] }
 0x360   : > { %v3176_v22 = vadd.f32 %v6763_v63, %v3022_v33  ;;  %v3177_v21 = vadd.f32 %v6766_v50, %v3023_v27  ;;  %v2864_v63 = vadd.f32 %v6663_v40, %v11726_v61  ;;  %v6885_v31 = vpop.f32.mrf.mxu0  ;;  %v11729_v27 = vld [vmem:[#allocation22_spill] sm:$0xff] }
 0x361   : > { %v10593_v53 = vpop.f32.mrf.mxu1 }
 0x362   : > { %v3339_v29 = vadd.f32 %v6819_v43, %v3176_v22  ;;  %v3340_v62 = vadd.f32 %v6822_v38, %v3177_v21  ;;  %v11728_v43 = vld [vmem:[#allocation28_spill] sm:$0xff]  ;;  %v3026_v9 = vadd.f32 %v6719_v56, %v2864_v63  ;;  %v6722_v22 = vadd.f32 %v11730_v20, %v11729_v27  ;;  %v11733_v38 = vld [vmem:[#allocation14_spill] sm:$0xff] }
 0x363   : > { %v6923_v3 = vpop.f32.mrf.mxu1  ;;  %v6834_v28 = vadd.f32 %v10593_v53, %v10589_v42  ;;  %v5807_v27 = vld [vmem:[%s11686_s5 + $0x178] sm:$0xff] }
 0x364   : > { %v3501_v14 = vadd.f32 %v6875_v7, %v3339_v29  ;;  %v5823_v20 = vld [vmem:[%s11686_s5 + $0x1f8] sm:$0xff] }
 0x365   : > { %v6924_v55 = vpop.f32.mrf.mxu1 }
 0x366   : > { %v6925_v39 = vadd.f32 %v6924_v55, %v6923_v3  ;;  %v11724_v3 = vld [vmem:[#allocation15_spill] sm:$0xff]  ;;  %v3341_v55 = vadd.f32 %v6825_v37, %v3178_v10  ;;  %v11735_v37 = vld [vmem:[#allocation21_spill] sm:$0xff] }
 0x367   : > { %v6926_v51 = vpop.f32.mrf.mxu1  ;;  %v6772_v33 = vadd.f32 %v11725_v35, %v11724_v3 }
 0x368   : > { %v3653_v41 = vadd.f32 %v6925_v39, %v3499_v18  ;;  %v6828_v18 = vadd.f32 %v11728_v43, %v11727_v25  ;;  %v3502_v39 = vadd.f32 %v6878_v58, %v3340_v62 }
 0x369   : > { %v6927_v52 = vpop.f32.mrf.mxu1 }
 0x36a   : > { %3661 = vst [vmem:[#allocation4] sm:$0xff] %v3653_v41  ;;  %v6928_v34 = vadd.f32 %v6927_v52, %v6926_v51  ;;  %v6881_v51 = vadd.f32 %v6880_v47, %v6879_v23  ;;  %v3179_v41 = vadd.f32 %v6772_v33, %v3025_v46  ;;  %v11732_v52 = vld [vmem:[#allocation18_spill] sm:$0xff] }
 0x36b   : > { %v6929_v57 = vpop.f32.mrf.mxu1  ;;  %v6775_v29 = vadd.f32 %v11732_v52, %v11731_v1  ;;  %v5806_v52 = vld [vmem:[%s11686_s5 + $0x170] sm:$0xff] }
 0x36c   : > { %v3654_v26 = vadd.f32 %v6928_v34, %v3500_v44  ;;  %v2865_v44 = vadd.f32 %v6666_v5, %v11733_v38  ;;  %v11734_v34 = vld [vmem:[#allocation29_spill] sm:$0xff]  ;;  %v3342_v4 = vadd.f32 %v6828_v18, %v3179_v41  ;;  %v3503_v23 = vadd.f32 %v6881_v51, %v3341_v55 }
 0x36d   : > { %v6930_v60 = vpop.f32.mrf.mxu1  ;;  %v6831_v19 = vadd.f32 %v10584_v16, %v11734_v34  ;;  %v3180_v12 = vadd.f32 %v6775_v29, %v3026_v9  ;;  %v5822_v29 = vld [vmem:[%s11686_s5 + $0x1f0] sm:$0xff]  ;;  %v5805_v34 = vld [vmem:[%s11686_s5 + $0x168] sm:$0xff] }
 0x36e   : > { %3662 = vst [vmem:[#allocation4 + $0x8] sm:$0xff] %v3654_v26  ;;  %v6931_v32 = vadd.f32 %v6930_v60, %v6929_v57  ;;  %v6886_v26 = vpop.f32.mrf.mxu0  ;;  %v6884_v60 = vadd.f32 %v6883_v2, %v6882_v0  ;;  %v3027_v62 = vadd.f32 %v6722_v22, %v2865_v44  ;;  %v11737_v44 = vmov 0.0  }
 0x36f   : > { %v6932_v48 = vpop.f32.mrf.mxu1  ;;  %v3343_v16 = vadd.f32 %v6831_v19, %v3180_v12  ;;  %v5821_v19 = vld [vmem:[%s11686_s5 + $0x1e8] sm:$0xff] }
 0x370   : > { %v3655_v11 = vadd.f32 %v6931_v32, %v3501_v14  ;;  %v11736_v14 = vld [vmem:[#allocation24_spill] sm:$0xff]  ;;  %v6888_v49 = vpop.f32.mrf.mxu0  ;;  %v3504_v0 = vadd.f32 %v6884_v60, %v3342_v4 }
 0x371   : > { %v6933_v17 = vpop.f32.mrf.mxu1  ;;  %v6778_v32 = vadd.f32 %v11736_v14, %v11735_v37  ;;  %v5802_v60 = vld [vmem:[%s11686_s5 + $0x150] sm:$0xff]  ;;  %v5817_v37 = vld [vmem:[%s11686_s5 + $0x1c8] sm:$0xff]  ;;  %v5800_v14 = vld [vmem:[%s11686_s5 + $0x140] sm:$0xff] }
 0x372   : > { %3663 = vst [vmem:[#allocation4 + $0x10] sm:$0xff] %v3655_v11  ;;  %v6934_v54 = vadd.f32 %v6933_v17, %v6932_v48  ;;  %v6887_v48 = vadd.f32 %v6886_v26, %v6885_v31  ;;  %v6889_v8 = vpop.f32.mrf.mxu0  ;;  %v5819_v26 = vld [vmem:[%s11686_s5 + $0x1d8] sm:$0xff] }
 0x373   : > { %v6935_v59 = vpop.f32.mrf.mxu1  ;;  %v3181_v46 = vadd.f32 %v6778_v32, %v3027_v62  ;;  %v6890_v63 = vadd.f32 %v6889_v8, %v6888_v49  ;;  %v5818_v62 = vld [vmem:[%s11686_s5 + $0x1d0] sm:$0xff]  ;;  %v5816_v32 = vld [vmem:[%s11686_s5 + $0x1c0] sm:$0xff] }
 0x374   : > { %v3656_v50 = vadd.f32 %v6934_v54, %v3502_v39  ;;  %v3505_v3 = vadd.f32 %v6887_v48, %v3343_v16  ;;  %v5799_v16 = vld [vmem:[%s11686_s5 + $0x138] sm:$0xff]  ;;  %v5796_v48 = vld [vmem:[%s11686_s5 + $0x120] sm:$0xff]  ;;  %v5810_v8 = vld [vmem:[%s11686_s5 + $0x190] sm:$0xff] }
 0x375   : > { %v3669_v7 = vld [vmem:[#allocation4] ss:$2 sm:$0xff]  ;;  %v3677_v57 = vld [vmem:[#allocation4 + $0x1] ss:$2 sm:$0xff]  ;;  %v6936_v15 = vpop.f32.mrf.mxu1  ;;  %v3344_v33 = vadd.f32 %v6834_v28, %v3181_v46  ;;  %v5795_v46 = vld [vmem:[%s11686_s5 + $0x118] sm:$0xff] }
 0x376   : > { %v3684_v21 = vmax.f32 %v3669_v7, %v3677_v57  ;;  %3664 = vst [vmem:[#allocation4 + $0x18] sm:$0xff] %v3656_v50  ;;  %v6937_v47 = vadd.f32 %v6936_v15, %v6935_v59  ;;  %v5804_v7 = vld [vmem:[%s11686_s5 + $0x160] sm:$0xff] }
 0x377   : > { %v6938_v45 = vpop.f32.mrf.mxu1  ;;  %v3506_v18 = vadd.f32 %v6890_v63, %v3344_v33  ;;  %v5820_v57 = vld [vmem:[%s11686_s5 + $0x1e0] sm:$0xff]  ;;  %v5839_v33 = vld [vmem:[%s11686_s5 + $0x278] sm:$0xff]  ;;  %v5854_v63 = vld [vmem:[%s11686_s5 + $0x2f0] sm:$0xff] }
 0x378   : > { %v3692_v13 = vrot.slane %v3684_v21, 4  ;;  %v3657_v30 = vadd.f32 %v6937_v47, %v3503_v23  ;;  %v5803_v47 = vld [vmem:[%s11686_s5 + $0x158] sm:$0xff] }
 0x379   : > { %v6939_v40 = vpop.f32.mrf.mxu1 }
 0x37a   : > { %v3700_v36 = vmax.f32 %v3684_v21, %v3692_v13  ;;  %3665 = vst [vmem:[#allocation4 + $0x20] sm:$0xff] %v3657_v30  ;;  %v6940_v56 = vadd.f32 %v6939_v40, %v6938_v45  ;;  %v5801_v30 = vld [vmem:[%s11686_s5 + $0x148] sm:$0xff]  ;;  %v5815_v40 = vld [vmem:[%s11686_s5 + $0x1b8] sm:$0xff] }
 0x37b   : > { %v6941_v58 = vpop.f32.mrf.mxu1 }
 0x37c   : > { %v3711_v10 = vadd.f32 %v10642_v6, %v3700_v36  ;;  %v3658_v11 = vadd.f32 %v6940_v56, %v3504_v0  ;;  %v5814_v36 = vld [vmem:[%s11686_s5 + $0x1b0] sm:$0xff]  ;;  %v5797_v0 = vld [vmem:[%s11686_s5 + $0x128] sm:$0xff] }
 0x37d   : > { %v3671_v24 = vld [vmem:[#allocation4 + $0x10] ss:$2 sm:$0xff]  ;;  %v3679_v5 = vld [vmem:[#allocation4 + $0x11] ss:$2 sm:$0xff]  ;;  %v6942_v35 = vpop.f32.mrf.mxu1  ;;  %v5813_v56 = vld [vmem:[%s11686_s5 + $0x1a8] sm:$0xff] }
 0x37e   : > { %v3715_v2 = vmax.f32 %v3711_v10, 0.0  ;;  %v3685_v61 = vmax.f32 %v3671_v24, %v3679_v5  ;;  %3666 = vst [vmem:[#allocation4 + $0x28] sm:$0xff] %v3658_v11  ;;  %v6943_v42 = vadd.f32 %v6942_v35, %v6941_v58  ;;  %v5812_v58 = vld [vmem:[%s11686_s5 + $0x1a0] sm:$0xff]  ;;  %v5811_v10 = vld [vmem:[%s11686_s5 + $0x198] sm:$0xff]  ;;  %v5794_v11 = vld [vmem:[%s11686_s5 + $0x110] sm:$0xff] }
 0x37f   : > { %v6944_v53 = vpop.f32.mrf.mxu1  ;;  %v5793_v24 = vld [vmem:[%s11686_s5 + $0x108] sm:$0xff]  ;;  %v5808_v35 = vld [vmem:[%s11686_s5 + $0x180] sm:$0xff] }
 0x380   : > { %3719 = vst [vmem:[#allocation5] sm:$0xf] %v3715_v2  ;;  %v3693_v17 = vrot.slane %v3685_v61, 4  ;;  %v3659_v55 = vadd.f32 %v6943_v42, %v3505_v3  ;;  %v5809_v5 = vld [vmem:[%s11686_s5 + $0x188] sm:$0xff]  ;;  %v5792_v3 = vld [vmem:[%s11686_s5 + $0x100] sm:$0xff]  ;;  %v5855_v42 = vld [vmem:[%s11686_s5 + $0x2f8] sm:$0xff] }
 0x381   : > { %v6945_v25 = vpop.f32.mrf.mxu1 }
 0x382   : > { %v3701_v43 = vmax.f32 %v3685_v61, %v3693_v17  ;;  %3667 = vst [vmem:[#allocation4 + $0x30] sm:$0xff] %v3659_v55  ;;  %v6946_v39 = vadd.f32 %v6945_v25, %v6944_v53  ;;  %v5838_v53 = vld [vmem:[%s11686_s5 + $0x270] sm:$0xff]  ;;  %v5837_v17 = vld [vmem:[%s11686_s5 + $0x268] sm:$0xff]  ;;  %v5836_v25 = vld [vmem:[%s11686_s5 + $0x260] sm:$0xff] }
 0x383   : > { %v5853_v55 = vld [vmem:[%s11686_s5 + $0x2e8] sm:$0xff] }
 0x384   : > { %v3660_v54 = vadd.f32 %v6946_v39, %v3506_v18  ;;  %v3712_v31 = vadd.f32 %v10642_v6, %v3701_v43  ;;  %v5852_v43 = vld [vmem:[%s11686_s5 + $0x2e0] sm:$0xff]  ;;  %v5835_v18 = vld [vmem:[%s11686_s5 + $0x258] sm:$0xff] }
 0x385   : > { %v3673_v9 = vld [vmem:[#allocation4 + $0x20] ss:$2 sm:$0xff]  ;;  %v3681_v59 = vld [vmem:[#allocation4 + $0x21] ss:$2 sm:$0xff]  ;;  %v5851_v39 = vld [vmem:[%s11686_s5 + $0x2d8] sm:$0xff] }
 0x386   : > { %v3686_v51 = vmax.f32 %v3673_v9, %v3681_v59  ;;  %3668 = vst [vmem:[#allocation4 + $0x38] sm:$0xff] %v3660_v54  ;;  %v3716_v22 = vmax.f32 %v3712_v31, 0.0  ;;  %v5834_v54 = vld [vmem:[%s11686_s5 + $0x250] sm:$0xff]  ;;  %v5833_v9 = vld [vmem:[%s11686_s5 + $0x248] sm:$0xff] }
 0x387   : > { %v3740_v41 = vld [vmem:[#allocation5 + $0x1] sm:$0x1]  ;;  %v3723_v50 = vld [vmem:[#allocation5] sm:$0x1]  ;;  %v3898_v2 = vld [vmem:[#allocation5 + $0x2] sm:$0x1] }
 0x388   : > { %v3694_v1 = vrot.slane %v3686_v51, 4  ;;  %7409 = vmatmul.mubr.f32.vlgmr.msra.gmra.mxu0 %v3740_v41  ;;  %7444 = vmatmul.mubr.f32.vlgmr.msra.gmra.mxu1 %v3723_v50  ;;  %3720 = vst [vmem:[#allocation5 + $0x4] sm:$0xf] %v3716_v22  ;;  %v3987_v61 = vld [vmem:[#allocation5 + $0x3] sm:$0x1]  ;;  %v5850_v31 = vld [vmem:[%s11686_s5 + $0x2d0] sm:$0xff] }
 0x389   : > { %7447 = vmatpush3.msra.mxu0 %v5807_v27  ;;  %7482 = vmatpush3.msra.mxu1 %v5823_v20  ;;  %v5849_v59 = vld [vmem:[%s11686_s5 + $0x2c8] sm:$0xff]  ;;  %v5848_v27 = vld [vmem:[%s11686_s5 + $0x2c0] sm:$0xff]  ;;  %v5831_v20 = vld [vmem:[%s11686_s5 + $0x238] sm:$0xff] }
 0x38a   : > { %v3702_v38 = vmax.f32 %v3686_v51, %v3694_v1  ;;  %7448 = vmatprep.subr.mxu0 %v11737_v44  ;;  %7483 = vmatprep.subr.mxu1 %v11737_v44  ;;  %v5832_v51 = vld [vmem:[%s11686_s5 + $0x240] sm:$0xff]  ;;  %v5847_v22 = vld [vmem:[%s11686_s5 + $0x2b8] sm:$0xff]  ;;  %v5830_v41 = vld [vmem:[%s11686_s5 + $0x230] sm:$0xff] }
 0x38b   : > { %7449 = vmatpush3.msra.mxu0 %v5806_v52  ;;  %7484 = vmatpush3.msra.mxu1 %v5822_v29  ;;  %v5846_v50 = vld [vmem:[%s11686_s5 + $0x2b0] sm:$0xff]  ;;  %v5829_v1 = vld [vmem:[%s11686_s5 + $0x228] sm:$0xff]  ;;  %v5828_v29 = vld [vmem:[%s11686_s5 + $0x220] sm:$0xff] }
 0x38c   : > { %7450 = vmatprep.subr.mxu0 %v11737_v44  ;;  %7485 = vmatprep.subr.mxu1 %v11737_v44  ;;  %v3713_v15 = vadd.f32 %v10642_v6, %v3702_v38  ;;  %v5845_v52 = vld [vmem:[%s11686_s5 + $0x2a8] sm:$0xff]  ;;  %v5844_v38 = vld [vmem:[%s11686_s5 + $0x2a0] sm:$0xff] }
 0x38d   : > { %v3675_v4 = vld [vmem:[#allocation4 + $0x30] ss:$2 sm:$0xff]  ;;  %v3683_v21 = vld [vmem:[#allocation4 + $0x31] ss:$2 sm:$0xff]  ;;  %7451 = vmatpush3.msra.mxu0 %v5805_v34  ;;  %7486 = vmatpush3.msra.mxu1 %v5821_v19 }
 0x38e   : > { %v3687_v23 = vmax.f32 %v3675_v4, %v3683_v21  ;;  %7452 = vmatprep.subr.mxu0 %v11737_v44  ;;  %7487 = vmatprep.subr.mxu1 %v11737_v44  ;;  %v3717_v12 = vmax.f32 %v3713_v15, 0.0  ;;  %v5827_v34 = vld [vmem:[%s11686_s5 + $0x218] sm:$0xff]  ;;  %v5825_v15 = vld [vmem:[%s11686_s5 + $0x208] sm:$0xff]  ;;  %v5824_v21 = vld [vmem:[%s11686_s5 + $0x200] sm:$0xff] }
 0x38f   : > { %7453 = vmatpush3.msra.mxu0 %v5804_v7  ;;  %7488 = vmatpush3.msra.mxu1 %v5820_v57  ;;  %v5843_v19 = vld [vmem:[%s11686_s5 + $0x298] sm:$0xff]  ;;  %v5826_v7 = vld [vmem:[%s11686_s5 + $0x210] sm:$0xff]  ;;  %v5841_v4 = vld [vmem:[%s11686_s5 + $0x288] sm:$0xff] }
 0x390   : > { %v3695_v45 = vrot.slane %v3687_v23, 4  ;;  %7454 = vmatprep.subr.mxu0 %v11737_v44  ;;  %7489 = vmatprep.subr.mxu1 %v11737_v44  ;;  %3721 = vst [vmem:[#allocation5 + $0x8] sm:$0xf] %v3717_v12  ;;  %v5842_v57 = vld [vmem:[%s11686_s5 + $0x290] sm:$0xff]  ;;  %v4166_v12 = vld [vmem:[#allocation5 + $0x5] sm:$0x1] }
 0x391   : > { %7455 = vmatpush3.msra.mxu0 %v5803_v47  ;;  %7490 = vmatpush3.msra.mxu1 %v5819_v26  ;;  %v5871_v47 = vld [vmem:[%s11686_s5 + $0x378] sm:$0xff]  ;;  %v4077_v26 = vld [vmem:[#allocation5 + $0x4] sm:$0x1] }
 0x392   : > { %v3703_v13 = vmax.f32 %v3687_v23, %v3695_v45  ;;  %7456 = vmatprep.subr.mxu0 %v11737_v44  ;;  %7491 = vmatprep.subr.mxu1 %v11737_v44  ;;  %v5840_v23 = vld [vmem:[%s11686_s5 + $0x280] sm:$0xff]  ;;  %v5887_v45 = vld [vmem:[%s11686_s5 + $0x3f8] sm:$0xff] }
 0x393   : > { %7457 = vmatpush3.msra.mxu0 %v5802_v60  ;;  %7492 = vmatpush3.msra.mxu1 %v5818_v62  ;;  %v5870_v60 = vld [vmem:[%s11686_s5 + $0x370] sm:$0xff] }
 0x394   : > { %7458 = vmatprep.subr.mxu0 %v11737_v44  ;;  %7493 = vmatprep.subr.mxu1 %v11737_v44  ;;  %v3714_v49 = vadd.f32 %v10642_v6, %v3703_v13  ;;  %v5798_v6 = vld [vmem:[%s11686_s5 + $0x130] sm:$0xff]  ;;  %v5869_v13 = vld [vmem:[%s11686_s5 + $0x368] sm:$0xff] }
 0x395   : > { %7459 = vmatpush3.msra.mxu0 %v5801_v30  ;;  %7494 = vmatpush3.msra.mxu1 %v5817_v37  ;;  %v5886_v62 = vld [vmem:[%s11686_s5 + $0x3f0] sm:$0xff]  ;;  %v5885_v30 = vld [vmem:[%s11686_s5 + $0x3e8] sm:$0xff]  ;;  %v5868_v37 = vld [vmem:[%s11686_s5 + $0x360] sm:$0xff] }
 0x396   : > { %7460 = vmatprep.subr.mxu0 %v11737_v44  ;;  %7495 = vmatprep.subr.mxu1 %v11737_v44  ;;  %v3718_v28 = vmax.f32 %v3714_v49, 0.0  ;;  %v5883_v49 = vld [vmem:[%s11686_s5 + $0x3d8] sm:$0xff] }
 0x397   : > { %7461 = vmatpush3.msra.mxu0 %v5800_v14  ;;  %7496 = vmatpush3.msra.mxu1 %v5816_v32  ;;  %v5884_v14 = vld [vmem:[%s11686_s5 + $0x3e0] sm:$0xff]  ;;  %v5867_v32 = vld [vmem:[%s11686_s5 + $0x358] sm:$0xff] }
 0x398   : > { %7462 = vmatprep.subr.mxu0 %v11737_v44  ;;  %7497 = vmatprep.subr.mxu1 %v11737_v44  ;;  %3722 = vst [vmem:[#allocation5 + $0xc] sm:$0xf] %v3718_v28  ;;  %v5865_v28 = vld [vmem:[%s11686_s5 + $0x348] sm:$0xff] }
 0x399   : > { %7463 = vmatpush3.msra.mxu0 %v5799_v16  ;;  %7498 = vmatpush3.msra.mxu1 %v5815_v40  ;;  %v5866_v16 = vld [vmem:[%s11686_s5 + $0x350] sm:$0xff] }
 0x39a   : > { %7464 = vmatprep.subr.mxu0 %v11737_v44  ;;  %7499 = vmatprep.subr.mxu1 %v11737_v44  ;;  %v5882_v40 = vld [vmem:[%s11686_s5 + $0x3d0] sm:$0xff] }
 0x39b   : > { %7465 = vmatpush3.msra.mxu0 %v5798_v6  ;;  %7500 = vmatpush3.msra.mxu1 %v5814_v36  ;;  %v5881_v6 = vld [vmem:[%s11686_s5 + $0x3c8] sm:$0xff]  ;;  %v5864_v36 = vld [vmem:[%s11686_s5 + $0x340] sm:$0xff] }
 0x39c   : > { %7466 = vmatprep.subr.mxu0 %v11737_v44  ;;  %7501 = vmatprep.subr.mxu1 %v11737_v44 }
 0x39d   : > { %7467 = vmatpush3.msra.mxu0 %v5797_v0  ;;  %7502 = vmatpush3.msra.mxu1 %v5813_v56  ;;  %v5880_v0 = vld [vmem:[%s11686_s5 + $0x3c0] sm:$0xff]  ;;  %v5863_v56 = vld [vmem:[%s11686_s5 + $0x338] sm:$0xff] }
 0x39e   : > { %7468 = vmatprep.subr.mxu0 %v11737_v44  ;;  %7503 = vmatprep.subr.mxu1 %v11737_v44 }
 0x39f   : > { %7469 = vmatpush3.msra.mxu0 %v5796_v48  ;;  %7504 = vmatpush3.msra.mxu1 %v5812_v58  ;;  %v5879_v48 = vld [vmem:[%s11686_s5 + $0x3b8] sm:$0xff]  ;;  %v5862_v58 = vld [vmem:[%s11686_s5 + $0x330] sm:$0xff] }
 0x3a0   : > { %7470 = vmatprep.subr.mxu0 %v11737_v44  ;;  %7505 = vmatprep.subr.mxu1 %v11737_v44 }
 0x3a1   : > { %7471 = vmatpush3.msra.mxu0 %v5795_v46  ;;  %7506 = vmatpush3.msra.mxu1 %v5811_v10  ;;  %v5878_v46 = vld [vmem:[%s11686_s5 + $0x3b0] sm:$0xff]  ;;  %v5861_v10 = vld [vmem:[%s11686_s5 + $0x328] sm:$0xff] }
 0x3a2   : > { %7472 = vmatprep.subr.mxu0 %v11737_v44  ;;  %7507 = vmatprep.subr.mxu1 %v11737_v44 }
 0x3a3   : > { %7473 = vmatpush3.msra.mxu0 %v5794_v11  ;;  %7508 = vmatpush3.msra.mxu1 %v5810_v8  ;;  %v5877_v11 = vld [vmem:[%s11686_s5 + $0x3a8] sm:$0xff]  ;;  %v5860_v8 = vld [vmem:[%s11686_s5 + $0x320] sm:$0xff] }
 0x3a4   : > { %7474 = vmatprep.subr.mxu0 %v11737_v44  ;;  %7509 = vmatprep.subr.mxu1 %v11737_v44 }
 0x3a5   : > { %7475 = vmatpush3.msra.mxu0 %v5793_v24  ;;  %7510 = vmatpush3.msra.mxu1 %v5809_v5  ;;  %v5876_v24 = vld [vmem:[%s11686_s5 + $0x3a0] sm:$0xff]  ;;  %v5859_v5 = vld [vmem:[%s11686_s5 + $0x318] sm:$0xff] }
 0x3a6   : > { %7476 = vmatprep.subr.mxu0 %v11737_v44  ;;  %7511 = vmatprep.subr.mxu1 %v11737_v44 }
 0x3a7   : > { %7477 = vmatpush3.msra.mxu0 %v5792_v3  ;;  %7478 = vmatprep.mubr.msk.f32.mxu0 %vm8081_vm1, %v11737_v44  ;;  %v5875_v3 = vld [vmem:[%s11686_s5 + $0x398] sm:$0xff] }
 0x3a8   : > { %7512 = vmatpush3.msra.mxu1 %v5808_v35  ;;  %7513 = vmatprep.mubr.msk.f32.mxu1 %vm8081_vm1, %v11737_v44  ;;  %v5858_v35 = vld [vmem:[%s11686_s5 + $0x310] sm:$0xff] }
 0x3a9   : > { %7479 = vmatmul.mubr.f32.vlgmr.msra.gmra.mxu0 %v3898_v2  ;;  %7514 = vmatmul.mubr.f32.vlgmr.msra.gmra.mxu1 %v3987_v61  ;;  %v5857_v2 = vld [vmem:[%s11686_s5 + $0x308] sm:$0xff] }
 0x3aa   : > { %7516 = vmatprep.subr.mxu0 %v11737_v44  ;;  %7551 = vmatprep.subr.mxu1 %v11737_v44  ;;  %v5873_v61 = vld [vmem:[%s11686_s5 + $0x388] sm:$0xff] }
 0x3ab   : > { %7517 = vmatpush3.msra.mxu0 %v5839_v33  ;;  %7552 = vmatpush3.msra.mxu1 %v5855_v42  ;;  %v5874_v33 = vld [vmem:[%s11686_s5 + $0x390] sm:$0xff]  ;;  %v5856_v42 = vld [vmem:[%s11686_s5 + $0x300] sm:$0xff] }
 0x3ac   : > { %7518 = vmatprep.subr.mxu0 %v11737_v44  ;;  %7553 = vmatprep.subr.mxu1 %v11737_v44 }
 0x3ad   : > { %7519 = vmatpush3.msra.mxu0 %v5838_v53  ;;  %7554 = vmatpush3.msra.mxu1 %v5854_v63  ;;  %v5872_v53 = vld [vmem:[%s11686_s5 + $0x380] sm:$0xff]  ;;  %v5903_v63 = vld [vmem:[%s11686_s5 + $0x478] sm:$0xff] }
 0x3ae   : > { %7520 = vmatprep.subr.mxu0 %v11737_v44  ;;  %7555 = vmatprep.subr.mxu1 %v11737_v44 }
 0x3af   : > { %7521 = vmatpush3.msra.mxu0 %v5837_v17  ;;  %7556 = vmatpush3.msra.mxu1 %v5853_v55  ;;  %v4255_v17 = vld [vmem:[#allocation5 + $0x6] sm:$0x1]  ;;  %v4344_v55 = vld [vmem:[#allocation5 + $0x7] sm:$0x1] }
 0x3b0   : > { %7522 = vmatprep.subr.mxu0 %v11737_v44  ;;  %7557 = vmatprep.subr.mxu1 %v11737_v44 }
 0x3b1   : > { %7523 = vmatpush3.msra.mxu0 %v5836_v25  ;;  %7558 = vmatpush3.msra.mxu1 %v5852_v43  ;;  %v5919_v25 = vld [vmem:[%s11686_s5 + $0x4f8] sm:$0xff]  ;;  %v5902_v43 = vld [vmem:[%s11686_s5 + $0x470] sm:$0xff] }
 0x3b2   : > { %7524 = vmatprep.subr.mxu0 %v11737_v44  ;;  %7559 = vmatprep.subr.mxu1 %v11737_v44 }
 0x3b3   : > { %7525 = vmatpush3.msra.mxu0 %v5835_v18  ;;  %7560 = vmatpush3.msra.mxu1 %v5851_v39  ;;  %v5918_v18 = vld [vmem:[%s11686_s5 + $0x4f0] sm:$0xff]  ;;  %v5901_v39 = vld [vmem:[%s11686_s5 + $0x468] sm:$0xff] }
 0x3b4   : > { %7526 = vmatprep.subr.mxu0 %v11737_v44  ;;  %7561 = vmatprep.subr.mxu1 %v11737_v44 }
 0x3b5   : > { %7527 = vmatpush3.msra.mxu0 %v5834_v54  ;;  %7562 = vmatpush3.msra.mxu1 %v5850_v31  ;;  %v5917_v54 = vld [vmem:[%s11686_s5 + $0x4e8] sm:$0xff]  ;;  %v5900_v31 = vld [vmem:[%s11686_s5 + $0x460] sm:$0xff] }
 0x3b6   : > { %7528 = vmatprep.subr.mxu0 %v11737_v44  ;;  %7563 = vmatprep.subr.mxu1 %v11737_v44 }
 0x3b7   : > { %7529 = vmatpush3.msra.mxu0 %v5833_v9  ;;  %7564 = vmatpush3.msra.mxu1 %v5849_v59  ;;  %v5916_v9 = vld [vmem:[%s11686_s5 + $0x4e0] sm:$0xff]  ;;  %v5899_v59 = vld [vmem:[%s11686_s5 + $0x458] sm:$0xff] }
 0x3b8   : > { %7530 = vmatprep.subr.mxu0 %v11737_v44  ;;  %7565 = vmatprep.subr.mxu1 %v11737_v44 }
 0x3b9   : > { %7531 = vmatpush3.msra.mxu0 %v5832_v51  ;;  %7566 = vmatpush3.msra.mxu1 %v5848_v27  ;;  %v5915_v51 = vld [vmem:[%s11686_s5 + $0x4d8] sm:$0xff]  ;;  %v5898_v27 = vld [vmem:[%s11686_s5 + $0x450] sm:$0xff] }
 0x3ba   : > { %7532 = vmatprep.subr.mxu0 %v11737_v44  ;;  %7567 = vmatprep.subr.mxu1 %v11737_v44 }
 0x3bb   : > { %7533 = vmatpush3.msra.mxu0 %v5831_v20  ;;  %7568 = vmatpush3.msra.mxu1 %v5847_v22  ;;  %v5914_v20 = vld [vmem:[%s11686_s5 + $0x4d0] sm:$0xff]  ;;  %v5897_v22 = vld [vmem:[%s11686_s5 + $0x448] sm:$0xff] }
 0x3bc   : > { %7534 = vmatprep.subr.mxu0 %v11737_v44  ;;  %7569 = vmatprep.subr.mxu1 %v11737_v44 }
 0x3bd   : > { %7535 = vmatpush3.msra.mxu0 %v5830_v41  ;;  %7570 = vmatpush3.msra.mxu1 %v5846_v50  ;;  %v5913_v41 = vld [vmem:[%s11686_s5 + $0x4c8] sm:$0xff]  ;;  %v5896_v50 = vld [vmem:[%s11686_s5 + $0x440] sm:$0xff] }
 0x3be   : > { %7536 = vmatprep.subr.mxu0 %v11737_v44  ;;  %7571 = vmatprep.subr.mxu1 %v11737_v44 }
 0x3bf   : > { %7537 = vmatpush3.msra.mxu0 %v5829_v1  ;;  %7572 = vmatpush3.msra.mxu1 %v5845_v52  ;;  %v5912_v1 = vld [vmem:[%s11686_s5 + $0x4c0] sm:$0xff]  ;;  %v5895_v52 = vld [vmem:[%s11686_s5 + $0x438] sm:$0xff] }
 0x3c0   : > { %7538 = vmatprep.subr.mxu0 %v11737_v44  ;;  %7573 = vmatprep.subr.mxu1 %v11737_v44 }
 0x3c1   : > { %7539 = vmatpush3.msra.mxu0 %v5828_v29  ;;  %7574 = vmatpush3.msra.mxu1 %v5844_v38  ;;  %v5911_v29 = vld [vmem:[%s11686_s5 + $0x4b8] sm:$0xff]  ;;  %v5894_v38 = vld [vmem:[%s11686_s5 + $0x430] sm:$0xff] }
 0x3c2   : > { %7540 = vmatprep.subr.mxu0 %v11737_v44  ;;  %7575 = vmatprep.subr.mxu1 %v11737_v44 }
 0x3c3   : > { %7541 = vmatpush3.msra.mxu0 %v5827_v34  ;;  %7576 = vmatpush3.msra.mxu1 %v5843_v19  ;;  %v5910_v34 = vld [vmem:[%s11686_s5 + $0x4b0] sm:$0xff]  ;;  %v5893_v19 = vld [vmem:[%s11686_s5 + $0x428] sm:$0xff] }
 0x3c4   : > { %7542 = vmatprep.subr.mxu0 %v11737_v44  ;;  %7577 = vmatprep.subr.mxu1 %v11737_v44 }
 0x3c5   : > { %7543 = vmatpush3.msra.mxu0 %v5826_v7  ;;  %7578 = vmatpush3.msra.mxu1 %v5842_v57  ;;  %v5909_v7 = vld [vmem:[%s11686_s5 + $0x4a8] sm:$0xff]  ;;  %v5892_v57 = vld [vmem:[%s11686_s5 + $0x420] sm:$0xff] }
 0x3c6   : > { %7544 = vmatprep.subr.mxu0 %v11737_v44  ;;  %7579 = vmatprep.subr.mxu1 %v11737_v44 }
 0x3c7   : > { %7545 = vmatpush3.msra.mxu0 %v5825_v15  ;;  %7580 = vmatpush3.msra.mxu1 %v5841_v4  ;;  %v5908_v15 = vld [vmem:[%s11686_s5 + $0x4a0] sm:$0xff]  ;;  %v5891_v4 = vld [vmem:[%s11686_s5 + $0x418] sm:$0xff] }
 0x3c8   : > { %7546 = vmatprep.subr.mxu0 %v11737_v44  ;;  %7581 = vmatprep.subr.mxu1 %v11737_v44 }
 0x3c9   : > { %7547 = vmatpush3.msra.mxu0 %v5824_v21  ;;  %7548 = vmatprep.mubr.msk.f32.mxu0 %vm8081_vm1, %v11737_v44  ;;  %v5907_v21 = vld [vmem:[%s11686_s5 + $0x498] sm:$0xff] }
 0x3ca   : > { %7582 = vmatpush3.msra.mxu1 %v5840_v23  ;;  %7583 = vmatprep.mubr.msk.f32.mxu1 %vm8081_vm1, %v11737_v44  ;;  %v5890_v23 = vld [vmem:[%s11686_s5 + $0x410] sm:$0xff] }
 0x3cb   : > { %7549 = vmatmul.mubr.f32.vlgmr.msra.gmra.mxu0 %v4077_v26  ;;  %7584 = vmatmul.mubr.f32.vlgmr.msra.gmra.mxu1 %v4166_v12  ;;  %v5889_v26 = vld [vmem:[%s11686_s5 + $0x408] sm:$0xff] }
 0x3cc   : > { %7586 = vmatprep.subr.mxu0 %v11737_v44  ;;  %7621 = vmatprep.subr.mxu1 %v11737_v44  ;;  %v5905_v12 = vld [vmem:[%s11686_s5 + $0x488] sm:$0xff] }
 0x3cd   : > { %7587 = vmatpush3.msra.mxu0 %v5871_v47  ;;  %7622 = vmatpush3.msra.mxu1 %v5887_v45  ;;  %v5906_v47 = vld [vmem:[%s11686_s5 + $0x490] sm:$0xff]  ;;  %v5888_v45 = vld [vmem:[%s11686_s5 + $0x400] sm:$0xff] }
 0x3ce   : > { %7588 = vmatprep.subr.mxu0 %v11737_v44  ;;  %7623 = vmatprep.subr.mxu1 %v11737_v44 }
 0x3cf   : > { %7589 = vmatpush3.msra.mxu0 %v5870_v60  ;;  %7624 = vmatpush3.msra.mxu1 %v5886_v62  ;;  %v5904_v60 = vld [vmem:[%s11686_s5 + $0x480] sm:$0xff]  ;;  %v5935_v62 = vld [vmem:[%s11686_s5 + $0x578] sm:$0xff] }
 0x3d0   : > { %7590 = vmatprep.subr.mxu0 %v11737_v44  ;;  %7625 = vmatprep.subr.mxu1 %v11737_v44 }
 0x3d1   : > { %7591 = vmatpush3.msra.mxu0 %v5869_v13  ;;  %7626 = vmatpush3.msra.mxu1 %v5885_v30  ;;  %v4434_v13 = vld [vmem:[#allocation5 + $0x8] sm:$0x1]  ;;  %v4523_v30 = vld [vmem:[#allocation5 + $0x9] sm:$0x1] }
 0x3d2   : > { %7592 = vmatprep.subr.mxu0 %v11737_v44  ;;  %7627 = vmatprep.subr.mxu1 %v11737_v44 }
 0x3d3   : > { %7593 = vmatpush3.msra.mxu0 %v5868_v37  ;;  %7628 = vmatpush3.msra.mxu1 %v5884_v14  ;;  %v5951_v37 = vld [vmem:[%s11686_s5 + $0x5f8] sm:$0xff]  ;;  %v5934_v14 = vld [vmem:[%s11686_s5 + $0x570] sm:$0xff] }
 0x3d4   : > { %7594 = vmatprep.subr.mxu0 %v11737_v44  ;;  %7629 = vmatprep.subr.mxu1 %v11737_v44 }
 0x3d5   : > { %7595 = vmatpush3.msra.mxu0 %v5867_v32  ;;  %7630 = vmatpush3.msra.mxu1 %v5883_v49  ;;  %v5950_v32 = vld [vmem:[%s11686_s5 + $0x5f0] sm:$0xff]  ;;  %v5933_v49 = vld [vmem:[%s11686_s5 + $0x568] sm:$0xff] }
 0x3d6   : > { %7596 = vmatprep.subr.mxu0 %v11737_v44  ;;  %7631 = vmatprep.subr.mxu1 %v11737_v44 }
 0x3d7   : > { %7597 = vmatpush3.msra.mxu0 %v5866_v16  ;;  %7632 = vmatpush3.msra.mxu1 %v5882_v40  ;;  %v5949_v16 = vld [vmem:[%s11686_s5 + $0x5e8] sm:$0xff]  ;;  %v5932_v40 = vld [vmem:[%s11686_s5 + $0x560] sm:$0xff] }
 0x3d8   : > { %7598 = vmatprep.subr.mxu0 %v11737_v44  ;;  %7633 = vmatprep.subr.mxu1 %v11737_v44 }
 0x3d9   : > { %7599 = vmatpush3.msra.mxu0 %v5865_v28  ;;  %7634 = vmatpush3.msra.mxu1 %v5881_v6  ;;  %v5948_v28 = vld [vmem:[%s11686_s5 + $0x5e0] sm:$0xff]  ;;  %v5931_v6 = vld [vmem:[%s11686_s5 + $0x558] sm:$0xff] }
 0x3da   : > { %7600 = vmatprep.subr.mxu0 %v11737_v44  ;;  %7635 = vmatprep.subr.mxu1 %v11737_v44 }
 0x3db   : > { %7601 = vmatpush3.msra.mxu0 %v5864_v36  ;;  %7636 = vmatpush3.msra.mxu1 %v5880_v0  ;;  %v5947_v36 = vld [vmem:[%s11686_s5 + $0x5d8] sm:$0xff]  ;;  %v5930_v0 = vld [vmem:[%s11686_s5 + $0x550] sm:$0xff] }
 0x3dc   : > { %7602 = vmatprep.subr.mxu0 %v11737_v44  ;;  %7637 = vmatprep.subr.mxu1 %v11737_v44 }
 0x3dd   : > { %7603 = vmatpush3.msra.mxu0 %v5863_v56  ;;  %7638 = vmatpush3.msra.mxu1 %v5879_v48  ;;  %v5946_v56 = vld [vmem:[%s11686_s5 + $0x5d0] sm:$0xff]  ;;  %v5929_v48 = vld [vmem:[%s11686_s5 + $0x548] sm:$0xff] }
 0x3de   : > { %7604 = vmatprep.subr.mxu0 %v11737_v44  ;;  %7639 = vmatprep.subr.mxu1 %v11737_v44 }
 0x3df   : > { %7605 = vmatpush3.msra.mxu0 %v5862_v58  ;;  %7640 = vmatpush3.msra.mxu1 %v5878_v46  ;;  %v5945_v58 = vld [vmem:[%s11686_s5 + $0x5c8] sm:$0xff]  ;;  %v5928_v46 = vld [vmem:[%s11686_s5 + $0x540] sm:$0xff] }
 0x3e0   : > { %7606 = vmatprep.subr.mxu0 %v11737_v44  ;;  %7641 = vmatprep.subr.mxu1 %v11737_v44 }
 0x3e1   : > { %7607 = vmatpush3.msra.mxu0 %v5861_v10  ;;  %7642 = vmatpush3.msra.mxu1 %v5877_v11  ;;  %v5944_v10 = vld [vmem:[%s11686_s5 + $0x5c0] sm:$0xff]  ;;  %v5927_v11 = vld [vmem:[%s11686_s5 + $0x538] sm:$0xff] }
 0x3e2   : > { %7608 = vmatprep.subr.mxu0 %v11737_v44  ;;  %7643 = vmatprep.subr.mxu1 %v11737_v44 }
 0x3e3   : > { %7609 = vmatpush3.msra.mxu0 %v5860_v8  ;;  %7644 = vmatpush3.msra.mxu1 %v5876_v24  ;;  %v5943_v8 = vld [vmem:[%s11686_s5 + $0x5b8] sm:$0xff]  ;;  %v5926_v24 = vld [vmem:[%s11686_s5 + $0x530] sm:$0xff] }
 0x3e4   : > { %7610 = vmatprep.subr.mxu0 %v11737_v44  ;;  %7645 = vmatprep.subr.mxu1 %v11737_v44 }
 0x3e5   : > { %7611 = vmatpush3.msra.mxu0 %v5859_v5  ;;  %7646 = vmatpush3.msra.mxu1 %v5875_v3  ;;  %v5942_v5 = vld [vmem:[%s11686_s5 + $0x5b0] sm:$0xff]  ;;  %v5925_v3 = vld [vmem:[%s11686_s5 + $0x528] sm:$0xff] }
 0x3e6   : > { %7612 = vmatprep.subr.mxu0 %v11737_v44  ;;  %7647 = vmatprep.subr.mxu1 %v11737_v44 }
 0x3e7   : > { %7613 = vmatpush3.msra.mxu0 %v5858_v35  ;;  %7648 = vmatpush3.msra.mxu1 %v5874_v33  ;;  %v5941_v35 = vld [vmem:[%s11686_s5 + $0x5a8] sm:$0xff]  ;;  %v5924_v33 = vld [vmem:[%s11686_s5 + $0x520] sm:$0xff] }
 0x3e8   : > { %7614 = vmatprep.subr.mxu0 %v11737_v44  ;;  %7649 = vmatprep.subr.mxu1 %v11737_v44 }
 0x3e9   : > { %7615 = vmatpush3.msra.mxu0 %v5857_v2  ;;  %7650 = vmatpush3.msra.mxu1 %v5873_v61  ;;  %v5940_v2 = vld [vmem:[%s11686_s5 + $0x5a0] sm:$0xff]  ;;  %v5923_v61 = vld [vmem:[%s11686_s5 + $0x518] sm:$0xff] }
 0x3ea   : > { %7616 = vmatprep.subr.mxu0 %v11737_v44  ;;  %7651 = vmatprep.subr.mxu1 %v11737_v44 }
 0x3eb   : > { %7617 = vmatpush3.msra.mxu0 %v5856_v42  ;;  %7618 = vmatprep.mubr.msk.f32.mxu0 %vm8081_vm1, %v11737_v44  ;;  %v5939_v42 = vld [vmem:[%s11686_s5 + $0x598] sm:$0xff] }
 0x3ec   : > { %7652 = vmatpush3.msra.mxu1 %v5872_v53  ;;  %7653 = vmatprep.mubr.msk.f32.mxu1 %vm8081_vm1, %v11737_v44  ;;  %v5922_v53 = vld [vmem:[%s11686_s5 + $0x510] sm:$0xff] }
 0x3ed   : > { %7619 = vmatmul.mubr.f32.vlgmr.msra.gmra.mxu0 %v4255_v17  ;;  %7654 = vmatmul.mubr.f32.vlgmr.msra.gmra.mxu1 %v4344_v55  ;;  %v5921_v17 = vld [vmem:[%s11686_s5 + $0x508] sm:$0xff] }
 0x3ee   : > { %7656 = vmatprep.subr.mxu0 %v11737_v44  ;;  %7691 = vmatprep.subr.mxu1 %v11737_v44  ;;  %v5937_v55 = vld [vmem:[%s11686_s5 + $0x588] sm:$0xff] }
 0x3ef   : > { %7657 = vmatpush3.msra.mxu0 %v5903_v63  ;;  %7692 = vmatpush3.msra.mxu1 %v5919_v25  ;;  %v5938_v63 = vld [vmem:[%s11686_s5 + $0x590] sm:$0xff]  ;;  %v5920_v25 = vld [vmem:[%s11686_s5 + $0x500] sm:$0xff] }
 0x3f0   : > { %7658 = vmatprep.subr.mxu0 %v11737_v44  ;;  %7693 = vmatprep.subr.mxu1 %v11737_v44 }
 0x3f1   : > { %7659 = vmatpush3.msra.mxu0 %v5902_v43  ;;  %7694 = vmatpush3.msra.mxu1 %v5918_v18  ;;  %v5936_v43 = vld [vmem:[%s11686_s5 + $0x580] sm:$0xff]  ;;  %v4612_v18 = vld [vmem:[#allocation5 + $0xa] sm:$0x1] }
 0x3f2   : > { %7660 = vmatprep.subr.mxu0 %v11737_v44  ;;  %7695 = vmatprep.subr.mxu1 %v11737_v44 }
 0x3f3   : > { %7661 = vmatpush3.msra.mxu0 %v5901_v39  ;;  %7696 = vmatpush3.msra.mxu1 %v5917_v54  ;;  %v4701_v39 = vld [vmem:[#allocation5 + $0xb] sm:$0x1]  ;;  %v5967_v54 = vld [vmem:[%s11686_s5 + $0x678] sm:$0xff] }
 0x3f4   : > { %7662 = vmatprep.subr.mxu0 %v11737_v44  ;;  %7697 = vmatprep.subr.mxu1 %v11737_v44 }
 0x3f5   : > { %7663 = vmatpush3.msra.mxu0 %v5900_v31  ;;  %7698 = vmatpush3.msra.mxu1 %v5916_v9  ;;  %v5983_v31 = vld [vmem:[%s11686_s5 + $0x6f8] sm:$0xff]  ;;  %v5966_v9 = vld [vmem:[%s11686_s5 + $0x670] sm:$0xff] }
 0x3f6   : > { %7664 = vmatprep.subr.mxu0 %v11737_v44  ;;  %7699 = vmatprep.subr.mxu1 %v11737_v44 }
 0x3f7   : > { %7665 = vmatpush3.msra.mxu0 %v5899_v59  ;;  %7700 = vmatpush3.msra.mxu1 %v5915_v51  ;;  %v5982_v59 = vld [vmem:[%s11686_s5 + $0x6f0] sm:$0xff]  ;;  %v5965_v51 = vld [vmem:[%s11686_s5 + $0x668] sm:$0xff] }
 0x3f8   : > { %7666 = vmatprep.subr.mxu0 %v11737_v44  ;;  %7701 = vmatprep.subr.mxu1 %v11737_v44 }
 0x3f9   : > { %7667 = vmatpush3.msra.mxu0 %v5898_v27  ;;  %7702 = vmatpush3.msra.mxu1 %v5914_v20  ;;  %v5981_v27 = vld [vmem:[%s11686_s5 + $0x6e8] sm:$0xff]  ;;  %v5964_v20 = vld [vmem:[%s11686_s5 + $0x660] sm:$0xff] }
 0x3fa   : > { %7668 = vmatprep.subr.mxu0 %v11737_v44  ;;  %7703 = vmatprep.subr.mxu1 %v11737_v44 }
 0x3fb   : > { %7669 = vmatpush3.msra.mxu0 %v5897_v22  ;;  %7704 = vmatpush3.msra.mxu1 %v5913_v41  ;;  %v5980_v22 = vld [vmem:[%s11686_s5 + $0x6e0] sm:$0xff]  ;;  %v5963_v41 = vld [vmem:[%s11686_s5 + $0x658] sm:$0xff] }
 0x3fc   : > { %7670 = vmatprep.subr.mxu0 %v11737_v44  ;;  %7705 = vmatprep.subr.mxu1 %v11737_v44 }
 0x3fd   : > { %7671 = vmatpush3.msra.mxu0 %v5896_v50  ;;  %7706 = vmatpush3.msra.mxu1 %v5912_v1  ;;  %v5979_v50 = vld [vmem:[%s11686_s5 + $0x6d8] sm:$0xff]  ;;  %v5962_v1 = vld [vmem:[%s11686_s5 + $0x650] sm:$0xff] }
 0x3fe   : > { %7672 = vmatprep.subr.mxu0 %v11737_v44  ;;  %7707 = vmatprep.subr.mxu1 %v11737_v44 }
 0x3ff   : > { %7673 = vmatpush3.msra.mxu0 %v5895_v52  ;;  %7708 = vmatpush3.msra.mxu1 %v5911_v29  ;;  %v5978_v52 = vld [vmem:[%s11686_s5 + $0x6d0] sm:$0xff]  ;;  %v5961_v29 = vld [vmem:[%s11686_s5 + $0x648] sm:$0xff] }
 0x400   : > { %7674 = vmatprep.subr.mxu0 %v11737_v44  ;;  %7709 = vmatprep.subr.mxu1 %v11737_v44 }
 0x401   : > { %7675 = vmatpush3.msra.mxu0 %v5894_v38  ;;  %7710 = vmatpush3.msra.mxu1 %v5910_v34  ;;  %v5977_v38 = vld [vmem:[%s11686_s5 + $0x6c8] sm:$0xff]  ;;  %v5960_v34 = vld [vmem:[%s11686_s5 + $0x640] sm:$0xff] }
 0x402   : > { %7676 = vmatprep.subr.mxu0 %v11737_v44  ;;  %7711 = vmatprep.subr.mxu1 %v11737_v44 }
 0x403   : > { %7677 = vmatpush3.msra.mxu0 %v5893_v19  ;;  %7712 = vmatpush3.msra.mxu1 %v5909_v7  ;;  %v5976_v19 = vld [vmem:[%s11686_s5 + $0x6c0] sm:$0xff]  ;;  %v5959_v7 = vld [vmem:[%s11686_s5 + $0x638] sm:$0xff] }
 0x404   : > { %7678 = vmatprep.subr.mxu0 %v11737_v44  ;;  %7713 = vmatprep.subr.mxu1 %v11737_v44 }
 0x405   : > { %7679 = vmatpush3.msra.mxu0 %v5892_v57  ;;  %7714 = vmatpush3.msra.mxu1 %v5908_v15  ;;  %v5975_v57 = vld [vmem:[%s11686_s5 + $0x6b8] sm:$0xff]  ;;  %v5958_v15 = vld [vmem:[%s11686_s5 + $0x630] sm:$0xff] }
 0x406   : > { %7680 = vmatprep.subr.mxu0 %v11737_v44  ;;  %7715 = vmatprep.subr.mxu1 %v11737_v44 }
 0x407   : > { %7681 = vmatpush3.msra.mxu0 %v5891_v4  ;;  %7716 = vmatpush3.msra.mxu1 %v5907_v21  ;;  %v5974_v4 = vld [vmem:[%s11686_s5 + $0x6b0] sm:$0xff]  ;;  %v5957_v21 = vld [vmem:[%s11686_s5 + $0x628] sm:$0xff] }
 0x408   : > { %7682 = vmatprep.subr.mxu0 %v11737_v44  ;;  %7717 = vmatprep.subr.mxu1 %v11737_v44 }
 0x409   : > { %7683 = vmatpush3.msra.mxu0 %v5890_v23  ;;  %7718 = vmatpush3.msra.mxu1 %v5906_v47  ;;  %v5973_v23 = vld [vmem:[%s11686_s5 + $0x6a8] sm:$0xff]  ;;  %v5956_v47 = vld [vmem:[%s11686_s5 + $0x620] sm:$0xff] }
 0x40a   : > { %7684 = vmatprep.subr.mxu0 %v11737_v44  ;;  %7719 = vmatprep.subr.mxu1 %v11737_v44 }
 0x40b   : > { %7685 = vmatpush3.msra.mxu0 %v5889_v26  ;;  %7720 = vmatpush3.msra.mxu1 %v5905_v12  ;;  %v5972_v26 = vld [vmem:[%s11686_s5 + $0x6a0] sm:$0xff]  ;;  %v5955_v12 = vld [vmem:[%s11686_s5 + $0x618] sm:$0xff] }
 0x40c   : > { %7686 = vmatprep.subr.mxu0 %v11737_v44  ;;  %7721 = vmatprep.subr.mxu1 %v11737_v44 }
 0x40d   : > { %7687 = vmatpush3.msra.mxu0 %v5888_v45  ;;  %7688 = vmatprep.mubr.msk.f32.mxu0 %vm8081_vm1, %v11737_v44  ;;  %v5971_v45 = vld [vmem:[%s11686_s5 + $0x698] sm:$0xff] }
 0x40e   : > { %7722 = vmatpush3.msra.mxu1 %v5904_v60  ;;  %7723 = vmatprep.mubr.msk.f32.mxu1 %vm8081_vm1, %v11737_v44 }
 0x40f   : > { %7689 = vmatmul.mubr.f32.vlgmr.msra.gmra.mxu0 %v4434_v13  ;;  %7724 = vmatmul.mubr.f32.vlgmr.msra.gmra.mxu1 %v4523_v30  ;;  %v5954_v30 = vld [vmem:[%s11686_s5 + $0x610] sm:$0xff] }
 0x410   : > { %7726 = vmatprep.subr.mxu0 %v11737_v44  ;;  %7761 = vmatprep.subr.mxu1 %v11737_v44 }
 0x411   : > { %7727 = vmatpush3.msra.mxu0 %v5935_v62  ;;  %7762 = vmatpush3.msra.mxu1 %v5951_v37  ;;  %v5970_v37 = vld [vmem:[%s11686_s5 + $0x690] sm:$0xff] }
 0x412   : > { %7728 = vmatprep.subr.mxu0 %v11737_v44  ;;  %7763 = vmatprep.subr.mxu1 %v11737_v44 }
 0x413   : > { %7729 = vmatpush3.msra.mxu0 %v5934_v14  ;;  %7764 = vmatpush3.msra.mxu1 %v5950_v32 }
 0x414   : > { %7730 = vmatprep.subr.mxu0 %v11737_v44  ;;  %7765 = vmatprep.subr.mxu1 %v11737_v44 }
 0x415   : > { %7731 = vmatpush3.msra.mxu0 %v5933_v49  ;;  %7766 = vmatpush3.msra.mxu1 %v5949_v16  ;;  %v5953_v49 = vld [vmem:[%s11686_s5 + $0x608] sm:$0xff] }
 0x416   : > { %7732 = vmatprep.subr.mxu0 %v11737_v44  ;;  %7767 = vmatprep.subr.mxu1 %v11737_v44  ;;  %v5969_v16 = vld [vmem:[%s11686_s5 + $0x688] sm:$0xff] }
 0x417   : > { %7733 = vmatpush3.msra.mxu0 %v5932_v40  ;;  %7768 = vmatpush3.msra.mxu1 %v5948_v28  ;;  %v5952_v40 = vld [vmem:[%s11686_s5 + $0x600] sm:$0xff] }
 0x418   : > { %7734 = vmatprep.subr.mxu0 %v11737_v44  ;;  %7769 = vmatprep.subr.mxu1 %v11737_v44  ;;  %v5968_v28 = vld [vmem:[%s11686_s5 + $0x680] sm:$0xff] }
 0x419   : > { %7735 = vmatpush3.msra.mxu0 %v5931_v6  ;;  %7770 = vmatpush3.msra.mxu1 %v5947_v36  ;;  %v4791_v6 = vld [vmem:[#allocation5 + $0xc] sm:$0x1]  ;;  %v4880_v36 = vld [vmem:[#allocation5 + $0xd] sm:$0x1] }
 0x41a   : > { %7736 = vmatprep.subr.mxu0 %v11737_v44  ;;  %7771 = vmatprep.subr.mxu1 %v11737_v44 }
 0x41b   : > { %7737 = vmatpush3.msra.mxu0 %v5930_v0  ;;  %7772 = vmatpush3.msra.mxu1 %v5946_v56  ;;  %v5999_v0 = vld [vmem:[%s11686_s5 + $0x778] sm:$0xff] }
 0x41c   : > { %7738 = vmatprep.subr.mxu0 %v11737_v44  ;;  %7773 = vmatprep.subr.mxu1 %v11737_v44  ;;  %v6015_v56 = vld [vmem:[%s11686_s5 + $0x7f8] sm:$0xff] }
 0x41d   : > { %7739 = vmatpush3.msra.mxu0 %v5929_v48  ;;  %7774 = vmatpush3.msra.mxu1 %v5945_v58  ;;  %v5998_v48 = vld [vmem:[%s11686_s5 + $0x770] sm:$0xff] }
 0x41e   : > { %7740 = vmatprep.subr.mxu0 %v11737_v44  ;;  %7775 = vmatprep.subr.mxu1 %v11737_v44  ;;  %v6014_v58 = vld [vmem:[%s11686_s5 + $0x7f0] sm:$0xff] }
 0x41f   : > { %7741 = vmatpush3.msra.mxu0 %v5928_v46  ;;  %7776 = vmatpush3.msra.mxu1 %v5944_v10  ;;  %v5997_v46 = vld [vmem:[%s11686_s5 + $0x768] sm:$0xff] }
 0x420   : > { %7742 = vmatprep.subr.mxu0 %v11737_v44  ;;  %7777 = vmatprep.subr.mxu1 %v11737_v44  ;;  %v6013_v10 = vld [vmem:[%s11686_s5 + $0x7e8] sm:$0xff] }
 0x421   : > { %7743 = vmatpush3.msra.mxu0 %v5927_v11  ;;  %7778 = vmatpush3.msra.mxu1 %v5943_v8  ;;  %v5996_v11 = vld [vmem:[%s11686_s5 + $0x760] sm:$0xff] }
 0x422   : > { %7744 = vmatprep.subr.mxu0 %v11737_v44  ;;  %7779 = vmatprep.subr.mxu1 %v11737_v44  ;;  %v6012_v8 = vld [vmem:[%s11686_s5 + $0x7e0] sm:$0xff] }
 0x423   : > { %7745 = vmatpush3.msra.mxu0 %v5926_v24  ;;  %7780 = vmatpush3.msra.mxu1 %v5942_v5  ;;  %v5995_v24 = vld [vmem:[%s11686_s5 + $0x758] sm:$0xff] }
 0x424   : > { %7746 = vmatprep.subr.mxu0 %v11737_v44  ;;  %7781 = vmatprep.subr.mxu1 %v11737_v44  ;;  %v6011_v5 = vld [vmem:[%s11686_s5 + $0x7d8] sm:$0xff] }
 0x425   : > { %7747 = vmatpush3.msra.mxu0 %v5925_v3  ;;  %7782 = vmatpush3.msra.mxu1 %v5941_v35  ;;  %v5994_v3 = vld [vmem:[%s11686_s5 + $0x750] sm:$0xff] }
 0x426   : > { %7748 = vmatprep.subr.mxu0 %v11737_v44  ;;  %7783 = vmatprep.subr.mxu1 %v11737_v44  ;;  %v6010_v35 = vld [vmem:[%s11686_s5 + $0x7d0] sm:$0xff] }
 0x427   : > { %7749 = vmatpush3.msra.mxu0 %v5924_v33  ;;  %7784 = vmatpush3.msra.mxu1 %v5940_v2  ;;  %v5993_v33 = vld [vmem:[%s11686_s5 + $0x748] sm:$0xff] }
 0x428   : > { %7750 = vmatprep.subr.mxu0 %v11737_v44  ;;  %7785 = vmatprep.subr.mxu1 %v11737_v44  ;;  %v6009_v2 = vld [vmem:[%s11686_s5 + $0x7c8] sm:$0xff] }
 0x429   : > { %7751 = vmatpush3.msra.mxu0 %v5923_v61  ;;  %7786 = vmatpush3.msra.mxu1 %v5939_v42  ;;  %v5992_v61 = vld [vmem:[%s11686_s5 + $0x740] sm:$0xff] }
 0x42a   : > { %7752 = vmatprep.subr.mxu0 %v11737_v44  ;;  %7787 = vmatprep.subr.mxu1 %v11737_v44  ;;  %v6008_v42 = vld [vmem:[%s11686_s5 + $0x7c0] sm:$0xff] }
 0x42b   : > { %7753 = vmatpush3.msra.mxu0 %v5922_v53  ;;  %7788 = vmatpush3.msra.mxu1 %v5938_v63  ;;  %v5991_v53 = vld [vmem:[%s11686_s5 + $0x738] sm:$0xff] }
 0x42c   : > { %7754 = vmatprep.subr.mxu0 %v11737_v44  ;;  %7789 = vmatprep.subr.mxu1 %v11737_v44  ;;  %v6007_v63 = vld [vmem:[%s11686_s5 + $0x7b8] sm:$0xff] }
 0x42d   : > { %7755 = vmatpush3.msra.mxu0 %v5921_v17  ;;  %7790 = vmatpush3.msra.mxu1 %v5937_v55  ;;  %v5990_v17 = vld [vmem:[%s11686_s5 + $0x730] sm:$0xff] }
 0x42e   : > { %7756 = vmatprep.subr.mxu0 %v11737_v44  ;;  %7791 = vmatprep.subr.mxu1 %v11737_v44  ;;  %v6006_v55 = vld [vmem:[%s11686_s5 + $0x7b0] sm:$0xff] }
 0x42f   : > { %7757 = vmatpush3.msra.mxu0 %v5920_v25  ;;  %7758 = vmatprep.mubr.msk.f32.mxu0 %vm8081_vm1, %v11737_v44  ;;  %v5989_v25 = vld [vmem:[%s11686_s5 + $0x728] sm:$0xff] }
 0x430   : > { %7792 = vmatpush3.msra.mxu1 %v5936_v43  ;;  %7793 = vmatprep.mubr.msk.f32.mxu1 %vm8081_vm1, %v11737_v44  ;;  %v6005_v43 = vld [vmem:[%s11686_s5 + $0x7a8] sm:$0xff] }
 0x431   : > { %7759 = vmatmul.mubr.f32.vlgmr.msra.gmra.mxu0 %v4612_v18  ;;  %7794 = vmatmul.mubr.f32.vlgmr.msra.gmra.mxu1 %v4701_v39  ;;  %v5988_v18 = vld [vmem:[%s11686_s5 + $0x720] sm:$0xff] }
 0x432   : > { %7796 = vmatprep.subr.mxu0 %v11737_v44  ;;  %7831 = vmatprep.subr.mxu1 %v11737_v44  ;;  %v6004_v39 = vld [vmem:[%s11686_s5 + $0x7a0] sm:$0xff] }
 0x433   : > { %7797 = vmatpush3.msra.mxu0 %v5967_v54  ;;  %7832 = vmatpush3.msra.mxu1 %v5983_v31 }
 0x434   : > { %7798 = vmatprep.subr.mxu0 %v11737_v44  ;;  %7833 = vmatprep.subr.mxu1 %v11737_v44 }
 0x435   : > { %7799 = vmatpush3.msra.mxu0 %v5966_v9  ;;  %7834 = vmatpush3.msra.mxu1 %v5982_v59  ;;  %v5987_v9 = vld [vmem:[%s11686_s5 + $0x718] sm:$0xff] }
 0x436   : > { %7800 = vmatprep.subr.mxu0 %v11737_v44  ;;  %7835 = vmatprep.subr.mxu1 %v11737_v44  ;;  %v6003_v59 = vld [vmem:[%s11686_s5 + $0x798] sm:$0xff] }
 0x437   : > { %7801 = vmatpush3.msra.mxu0 %v5965_v51  ;;  %7836 = vmatpush3.msra.mxu1 %v5981_v27 }
 0x438   : > { %7802 = vmatprep.subr.mxu0 %v11737_v44  ;;  %7837 = vmatprep.subr.mxu1 %v11737_v44 }
 0x439   : > { %7803 = vmatpush3.msra.mxu0 %v5964_v20  ;;  %7838 = vmatpush3.msra.mxu1 %v5980_v22  ;;  %v5986_v22 = vld [vmem:[%s11686_s5 + $0x710] sm:$0xff] }
 0x43a   : > { %7804 = vmatprep.subr.mxu0 %v11737_v44  ;;  %7839 = vmatprep.subr.mxu1 %v11737_v44 }
 0x43b   : > { %7805 = vmatpush3.msra.mxu0 %v5963_v41  ;;  %7840 = vmatpush3.msra.mxu1 %v5979_v50  ;;  %v6002_v41 = vld [vmem:[%s11686_s5 + $0x790] sm:$0xff] }
 0x43c   : > { %7806 = vmatprep.subr.mxu0 %v11737_v44  ;;  %7841 = vmatprep.subr.mxu1 %v11737_v44 }
 0x43d   : > { %7807 = vmatpush3.msra.mxu0 %v5962_v1  ;;  %7842 = vmatpush3.msra.mxu1 %v5978_v52  ;;  %v5985_v1 = vld [vmem:[%s11686_s5 + $0x708] sm:$0xff] }
 0x43e   : > { %7808 = vmatprep.subr.mxu0 %v11737_v44  ;;  %7843 = vmatprep.subr.mxu1 %v11737_v44  ;;  %v6001_v52 = vld [vmem:[%s11686_s5 + $0x788] sm:$0xff] }
 0x43f   : > { %7809 = vmatpush3.msra.mxu0 %v5961_v29  ;;  %7844 = vmatpush3.msra.mxu1 %v5977_v38  ;;  %v5984_v29 = vld [vmem:[%s11686_s5 + $0x700] sm:$0xff] }
 0x440   : > { %7810 = vmatprep.subr.mxu0 %v11737_v44  ;;  %7845 = vmatprep.subr.mxu1 %v11737_v44  ;;  %v6000_v38 = vld [vmem:[%s11686_s5 + $0x780] sm:$0xff] }
 0x441   : > { %7811 = vmatpush3.msra.mxu0 %v5960_v34  ;;  %7846 = vmatpush3.msra.mxu1 %v5976_v19  ;;  %v4969_v34 = vld [vmem:[#allocation5 + $0xe] sm:$0x1]  ;;  %v5058_v19 = vld [vmem:[#allocation5 + $0xf] sm:$0x1] }
 0x442   : > { %7812 = vmatprep.subr.mxu0 %v11737_v44  ;;  %7847 = vmatprep.subr.mxu1 %v11737_v44 }
 0x443   : > { %7813 = vmatpush3.msra.mxu0 %v5959_v7  ;;  %7848 = vmatpush3.msra.mxu1 %v5975_v57 }
 0x444   : > { %7814 = vmatprep.subr.mxu0 %v11737_v44  ;;  %7849 = vmatprep.subr.mxu1 %v11737_v44 }
 0x445   : > { %7815 = vmatpush3.msra.mxu0 %v5958_v15  ;;  %7850 = vmatpush3.msra.mxu1 %v5974_v4 }
 0x446   : > { %7816 = vmatprep.subr.mxu0 %v11737_v44  ;;  %7851 = vmatprep.subr.mxu1 %v11737_v44 }
 0x447   : > { %7817 = vmatpush3.msra.mxu0 %v5957_v21  ;;  %7852 = vmatpush3.msra.mxu1 %v5973_v23 }
 0x448   : > { %7818 = vmatprep.subr.mxu0 %v11737_v44  ;;  %7853 = vmatprep.subr.mxu1 %v11737_v44  ;;  %v3824_v60 = vpop.f32.mrf.mxu0  ;;  %v3894_v62 = vpop.f32.mrf.mxu1 }
 0x449   : > { %7819 = vmatpush3.msra.mxu0 %v5956_v47  ;;  %7854 = vmatpush3.msra.mxu1 %v5972_v26  ;;  %v11410_v13 = vadd.f32 %v3894_v62, %v3824_v60  ;;  %v5165_v47 = vld [vmem:[%s11688_s7 + $0x78] sm:$0xff]  ;;  %v5164_v26 = vld [vmem:[%s11688_s7 + $0x70] sm:$0xff] }
 0x44a   : > { %7820 = vmatprep.subr.mxu0 %v11737_v44  ;;  %7855 = vmatprep.subr.mxu1 %v11737_v44  ;;  %v7410_v14 = vpop.f32.mrf.mxu0  ;;  %v7445_v32 = vpop.f32.mrf.mxu1  ;;  %v5161_v60 = vld [vmem:[%s11688_s7 + $0x58] sm:$0xff]  ;;  %v5160_v62 = vld [vmem:[%s11688_s7 + $0x50] sm:$0xff] }
 0x44b   : > { %7821 = vmatpush3.msra.mxu0 %v5955_v12  ;;  %7856 = vmatpush3.msra.mxu1 %v5971_v45  ;;  %v5163_v12 = vld [vmem:[%s11688_s7 + $0x68] sm:$0xff]  ;;  %v5162_v45 = vld [vmem:[%s11688_s7 + $0x60] sm:$0xff]  ;;  %v5156_v14 = vld [vmem:[%s11688_s7 + $0x30] sm:$0xff] }
 0x44c   : > { %7822 = vmatprep.subr.mxu0 %v11737_v44  ;;  %7857 = vmatprep.subr.mxu1 %v11737_v44  ;;  %v5155_v32 = vld [vmem:[%s11688_s7 + $0x28] sm:$0xff] }
 0x44d   : > { %7823 = vmatpush3.msra.mxu0 %v5954_v30  ;;  %7858 = vmatpush3.msra.mxu1 %v5970_v37  ;;  %v5158_v30 = vld [vmem:[%s11688_s7 + $0x40] sm:$0xff]  ;;  %v5157_v37 = vld [vmem:[%s11688_s7 + $0x38] sm:$0xff] }
 0x44e   : > { %7824 = vmatprep.subr.mxu0 %v11737_v44  ;;  %7859 = vmatprep.subr.mxu1 %v11737_v44 }
 0x44f   : > { %7825 = vmatpush3.msra.mxu0 %v5953_v49  ;;  %7860 = vmatpush3.msra.mxu1 %v5969_v16 }
 0x450   : > { %7826 = vmatprep.subr.mxu0 %v11737_v44  ;;  %7861 = vmatprep.subr.mxu1 %v11737_v44 }
 0x451   : > { %7827 = vmatpush3.msra.mxu0 %v5952_v40  ;;  %7828 = vmatprep.mubr.msk.f32.mxu0 %vm8081_vm1, %v11737_v44 }
 0x452   : > { %7862 = vmatpush3.msra.mxu1 %v5968_v28  ;;  %7863 = vmatprep.mubr.msk.f32.mxu1 %vm8081_vm1, %v11737_v44 }
 0x453   : > { %7829 = vmatmul.mubr.f32.vlgmr.msra.gmra.mxu0 %v4791_v6  ;;  %7864 = vmatmul.mubr.f32.vlgmr.msra.gmra.mxu1 %v4880_v36 }
 0x454   : > { %7866 = vmatprep.subr.mxu0 %v11737_v44  ;;  %7901 = vmatprep.subr.mxu1 %v11737_v44 }
 0x455   : > { %7867 = vmatpush3.msra.mxu0 %v5999_v0  ;;  %7902 = vmatpush3.msra.mxu1 %v6015_v56  ;;  %v5154_v0 = vld [vmem:[%s11688_s7 + $0x20] sm:$0xff]  ;;  %v5153_v56 = vld [vmem:[%s11688_s7 + $0x18] sm:$0xff] }
 0x456   : > { %7868 = vmatprep.subr.mxu0 %v11737_v44  ;;  %7903 = vmatprep.subr.mxu1 %v11737_v44 }
 0x457   : > { %7869 = vmatpush3.msra.mxu0 %v5998_v48  ;;  %7904 = vmatpush3.msra.mxu1 %v6014_v58  ;;  %v5152_v48 = vld [vmem:[%s11688_s7 + $0x10] sm:$0xff]  ;;  %v5151_v58 = vld [vmem:[%s11688_s7 + $0x8] sm:$0xff] }
 0x458   : > { %7870 = vmatprep.subr.mxu0 %v11737_v44  ;;  %7905 = vmatprep.subr.mxu1 %v11737_v44 }
 0x459   : > { %7871 = vmatpush3.msra.mxu0 %v5997_v46  ;;  %7906 = vmatpush3.msra.mxu1 %v6013_v10  ;;  %v5150_v46 = vld [vmem:[%s11688_s7] sm:$0xff] }
 0x45a   : > { %7872 = vmatprep.subr.mxu0 %v11737_v44  ;;  %7907 = vmatprep.subr.mxu1 %v11737_v44 }
 0x45b   : > { %7873 = vmatpush3.msra.mxu0 %v5996_v11  ;;  %7908 = vmatpush3.msra.mxu1 %v6012_v8 }
 0x45c   : > { %7874 = vmatprep.subr.mxu0 %v11737_v44  ;;  %7909 = vmatprep.subr.mxu1 %v11737_v44 }
 0x45d   : > { %7875 = vmatpush3.msra.mxu0 %v5995_v24  ;;  %7910 = vmatpush3.msra.mxu1 %v6011_v5 }
 0x45e   : > { %7876 = vmatprep.subr.mxu0 %v11737_v44  ;;  %7911 = vmatprep.subr.mxu1 %v11737_v44 }
 0x45f   : > { %7877 = vmatpush3.msra.mxu0 %v5994_v3  ;;  %7912 = vmatpush3.msra.mxu1 %v6010_v35 }
 0x460   : > { %7878 = vmatprep.subr.mxu0 %v11737_v44  ;;  %7913 = vmatprep.subr.mxu1 %v11737_v44 }
 0x461   : > { %7879 = vmatpush3.msra.mxu0 %v5993_v33  ;;  %7914 = vmatpush3.msra.mxu1 %v6009_v2 }
 0x462   : > { %7880 = vmatprep.subr.mxu0 %v11737_v44  ;;  %7915 = vmatprep.subr.mxu1 %v11737_v44 }
 0x463   : > { %7881 = vmatpush3.msra.mxu0 %v5992_v61  ;;  %7916 = vmatpush3.msra.mxu1 %v6008_v42 }
 0x464   : > { %7882 = vmatprep.subr.mxu0 %v11737_v44  ;;  %7917 = vmatprep.subr.mxu1 %v11737_v44 }
 0x465   : > { %7883 = vmatpush3.msra.mxu0 %v5991_v53  ;;  %7918 = vmatpush3.msra.mxu1 %v6007_v63 }
 0x466   : > { %7884 = vmatprep.subr.mxu0 %v11737_v44  ;;  %7919 = vmatprep.subr.mxu1 %v11737_v44 }
 0x467   : > { %7885 = vmatpush3.msra.mxu0 %v5990_v17  ;;  %7920 = vmatpush3.msra.mxu1 %v6006_v55 }
 0x468   : > { %7886 = vmatprep.subr.mxu0 %v11737_v44  ;;  %7921 = vmatprep.subr.mxu1 %v11737_v44 }
 0x469   : > { %7887 = vmatpush3.msra.mxu0 %v5989_v25  ;;  %7922 = vmatpush3.msra.mxu1 %v6005_v43  ;;  %v3982_v54 = vpop.f32.mrf.mxu0  ;;  %v4071_v31 = vpop.f32.mrf.mxu1 }
 0x46a   : > { %7888 = vmatprep.subr.mxu0 %v11737_v44  ;;  %7923 = vmatprep.subr.mxu1 %v11737_v44  ;;  %v3986_v51 = vadd.f32 %v3982_v54, %v11410_v13  ;;  %v5159_v13 = vld [vmem:[%s11688_s7 + $0x48] sm:$0xff] }
 0x46b   : > { %7889 = vmatpush3.msra.mxu0 %v5988_v18  ;;  %7924 = vmatpush3.msra.mxu1 %v6004_v39  ;;  %v7480_v27 = vpop.f32.mrf.mxu0  ;;  %v7515_v20 = vpop.f32.mrf.mxu1 }
 0x46c   : > { %7890 = vmatprep.subr.mxu0 %v11737_v44  ;;  %7925 = vmatprep.subr.mxu1 %v11737_v44  ;;  %v4075_v50 = vadd.f32 %v4071_v31, %v3986_v51  ;;  %v5147_v31 = vld [vmem:[%s11687_s6] sm:$0x1] }
 0x46d   : > { %7891 = vmatpush3.msra.mxu0 %v5987_v9  ;;  %7926 = vmatpush3.msra.mxu1 %v6003_v59 }
 0x46e   : > { %7892 = vmatprep.subr.mxu0 %v11737_v44  ;;  %7927 = vmatprep.subr.mxu1 %v11737_v44 }
 0x46f   : > { %7893 = vmatpush3.msra.mxu0 %v5986_v22  ;;  %7928 = vmatpush3.msra.mxu1 %v6002_v41  ;;  %v5166_v22 = vld [vmem:[%s11689_s8] sm:$0x1] }
 0x470   : > { %7894 = vmatprep.subr.mxu0 %v11737_v44  ;;  %7929 = vmatprep.subr.mxu1 %v11737_v44 }
 0x471   : > { %7895 = vmatpush3.msra.mxu0 %v5985_v1  ;;  %7930 = vmatpush3.msra.mxu1 %v6001_v52 }
 0x472   : > { %7896 = vmatprep.subr.mxu0 %v11737_v44  ;;  %7931 = vmatprep.subr.mxu1 %v11737_v44 }
 0x473   : > { %7897 = vmatpush3.msra.mxu0 %v5984_v29  ;;  %7898 = vmatprep.mubr.msk.f32.mxu0 %vm8081_vm1, %v11737_v44 }
 0x474   : > { %7932 = vmatpush3.msra.mxu1 %v6000_v38  ;;  %7933 = vmatprep.mubr.msk.f32.mxu1 %vm8081_vm1, %v11737_v44 }
 0x475   : > { %7899 = vmatmul.mubr.f32.vlgmr.msra.gmra.mxu0 %v4969_v34  ;;  %7934 = vmatmul.mubr.f32.vlgmr.msra.gmra.mxu1 %v5058_v19 }
 0x476   : > { %7936 = vmatprep.subr.mxu0 %v11737_v44  ;;  %7968 = vmatprep.mubr.msk.f32.mxu0 %vm8081_vm1, %v11737_v44 }
 0x477   : > { %7937 = vmatpush3.msra.mxu0 %v5165_v47 }
 0x478   : > { %7938 = vmatprep.subr.mxu0 %v11737_v44 }
 0x479   : > { %7939 = vmatpush3.msra.mxu0 %v5164_v26 }
 0x47a   : > { %7940 = vmatprep.subr.mxu0 %v11737_v44 }
 0x47b   : > { %7941 = vmatpush3.msra.mxu0 %v5163_v12 }
 0x47c   : > { %7942 = vmatprep.subr.mxu0 %v11737_v44 }
 0x47d   : > { %7943 = vmatpush3.msra.mxu0 %v5162_v45 }
 0x47e   : > { %7944 = vmatprep.subr.mxu0 %v11737_v44 }
 0x47f   : > { %7945 = vmatpush3.msra.mxu0 %v5161_v60 }
 0x480   : > { %7946 = vmatprep.subr.mxu0 %v11737_v44 }
 0x481   : > { %7947 = vmatpush3.msra.mxu0 %v5160_v62 }
 0x482   : > { %7948 = vmatprep.subr.mxu0 %v11737_v44 }
 0x483   : > { %7949 = vmatpush3.msra.mxu0 %v5159_v13 }
 0x484   : > { %7950 = vmatprep.subr.mxu0 %v11737_v44 }
 0x485   : > { %7951 = vmatpush3.msra.mxu0 %v5158_v30 }
 0x486   : > { %7952 = vmatprep.subr.mxu0 %v11737_v44 }
 0x487   : > { %7953 = vmatpush3.msra.mxu0 %v5157_v37 }
 0x488   : > { %7954 = vmatprep.subr.mxu0 %v11737_v44 }
 0x489   : > { %7955 = vmatpush3.msra.mxu0 %v5156_v14 }
 0x48a   : > { %7956 = vmatprep.subr.mxu0 %v11737_v44 }
 0x48b   : > { %v4161_v7 = vpop.f32.mrf.mxu0  ;;  %v4250_v57 = vpop.f32.mrf.mxu1  ;;  %7957 = vmatpush3.msra.mxu0 %v5155_v32 }
 0x48c   : > { %v4165_v15 = vadd.f32 %v4161_v7, %v4075_v50  ;;  %7958 = vmatprep.subr.mxu0 %v11737_v44 }
 0x48d   : > { %v7550_v4 = vpop.f32.mrf.mxu0  ;;  %v7585_v21 = vpop.f32.mrf.mxu1  ;;  %7959 = vmatpush3.msra.mxu0 %v5154_v0 }
 0x48e   : > { %v4254_v23 = vadd.f32 %v4250_v57, %v4165_v15  ;;  %7960 = vmatprep.subr.mxu0 %v11737_v44 }
 0x48f   : > { %7961 = vmatpush3.msra.mxu0 %v5153_v56 }
 0x490   : > { %7962 = vmatprep.subr.mxu0 %v11737_v44 }
 0x491   : > { %7963 = vmatpush3.msra.mxu0 %v5152_v48 }
 0x492   : > { %7964 = vmatprep.subr.mxu0 %v11737_v44 }
 0x493   : > { %7965 = vmatpush3.msra.mxu0 %v5151_v58 }
 0x494   : > { %7966 = vmatprep.subr.mxu0 %v11737_v44 }
 0x495   : > { %7967 = vmatpush3.msra.mxu0 %v5150_v46 }
 0x4ad   : > { %v4339_v49 = vpop.f32.mrf.mxu0  ;;  %v4428_v16 = vpop.f32.mrf.mxu1 }
 0x4ae   : > { %v4343_v40 = vadd.f32 %v4339_v49, %v4254_v23 }
 0x4af   : > { %v7620_v28 = vpop.f32.mrf.mxu0  ;;  %v7655_v6 = vpop.f32.mrf.mxu1 }
 0x4b0   : > { %v4432_v36 = vadd.f32 %v4428_v16, %v4343_v40 }
 0x4cf   : > { %v4518_v10 = vpop.f32.mrf.mxu0  ;;  %v4607_v11 = vpop.f32.mrf.mxu1 }
 0x4d0   : > { %v4522_v8 = vadd.f32 %v4518_v10, %v4432_v36 }
 0x4d1   : > { %v7690_v24 = vpop.f32.mrf.mxu0  ;;  %v7725_v5 = vpop.f32.mrf.mxu1 }
 0x4d2   : > { %v4611_v3 = vadd.f32 %v4607_v11, %v4522_v8 }
 0x4f1   : > { %v4696_v35 = vpop.f32.mrf.mxu0  ;;  %v4785_v33 = vpop.f32.mrf.mxu1 }
 0x4f2   : > { %v4700_v44 = vadd.f32 %v4696_v35, %v4611_v3 }
 0x4f3   : > { %v7760_v2 = vpop.f32.mrf.mxu0  ;;  %v7795_v61 = vpop.f32.mrf.mxu1 }
 0x4f4   : > { %v4789_v55 = vadd.f32 %v4785_v33, %v4700_v44 }
 0x513   : > { %v4875_v42 = vpop.f32.mrf.mxu0  ;;  %v4964_v53 = vpop.f32.mrf.mxu1 }
 0x514   : > { %v4879_v25 = vadd.f32 %v4875_v42, %v4789_v55 }
 0x515   : > { %v7830_v63 = vpop.f32.mrf.mxu0  ;;  %v7865_v17 = vpop.f32.mrf.mxu1 }
 0x516   : > { %v4968_v43 = vadd.f32 %v4964_v53, %v4879_v25 }
 0x535   : > { %v5053_v18 = vpop.f32.mrf.mxu0  ;;  %v5142_v39 = vpop.f32.mrf.mxu1 }
 0x536   : > { %v5057_v54 = vadd.f32 %v5053_v18, %v4968_v43 }
 0x537   : > { %v7900_v9 = vpop.f32.mrf.mxu0  ;;  %v7935_v59 = vpop.f32.mrf.mxu1 }
 0x538   : > { %v5146_v51 = vadd.f32 %v5142_v39, %v5057_v54 }
 0x53a   : > { %v5148_v27 = vadd.f32 %v5147_v31, %v5146_v51 }
 0x53c   : > { %v5149_v20 = vmax.f32 %v5148_v27, 0.0 }
 0x53e   : > { %7969 = vmatmul.mubr.f32.vlgmr.msra.gmra.mxu0 %v5149_v20 }
 0x5fe   : > { %v5233_v41 = vpop.f32.mrf.mxu0 }
 0x5ff   : > { %v5234_v50 = vadd.f32 %v5233_v41, %v5166_v22 }
 0x600   : > { %v7970_v1 = vpop.f32.mrf.mxu0 }
 0x601   : > { %v5238_v52 = vsel %vm5237_vm2, %v5234_v50, -inf }
 0x602   : > { %5239 = vmax.xlane.f32.xlu0 %v5238_v52 }
 0x68b   : > { %v5240_v29 = vpop.xlane.xlu0 %5239 }
 0x68c   : > { %v5241_v38 = vsub.f32 %v5234_v50, %v5240_v29 }
 0x68e   : > { %v5242_v34 = vmul.f32 1.442695, %v5241_v38 }
 0x690   : > { %8012 = vpow2.f32 %v5242_v34 }
 0x69d   : > { %v8013_v19 = vpop.eup %8012 }
 0x69e   : > { %v5244_v7 = vsel %vm5237_vm2, %v8013_v19, 0.0 }
 0x69f   : > { %5245 = vadd.xlane.f32.xlu0 %v5244_v7 }
 0x728   : > { %v5246_v57 = vpop.xlane.xlu0 %5245 }
 0x729   : > { %8014 = vrcp.f32 %v5246_v57 }
 0x736   : > { %v8015_v15 = vpop.eup %8014 }
 0x737   : > { %v5248_v4 = vmul.f32 %v8015_v15, %v5246_v57 }
 0x739   : > { %v5249_v21 = vsub.f32 2.0, %v5248_v4 }
 0x73b   : > { %v5250_v23 = vmul.f32 %v8015_v15, %v5249_v21 }
 0x73d   : > { %v5251_v47 = vmul.f32 %v8013_v19, %v5250_v23 }
 0x73f   : > { %5252 = vst [vmem:[%s325_s28] sm:$0x1] %v5251_v47 }
 0x740   : > { %8031 = shalt.err (!%p8028_p3)
}
 0x741   : > { %s8032_s24 = scalar_lea.hbm %s5264_s16, 16  ;;  %s8036_s28 = scalar_lea.hbm %s11690_s9, 32 }
 0x742   : > { %p8033_p4 = scmp.ne.s32.totalorder %s5264_s16, %s8032_s24  ;;  %p8037_p9 = scmp.lt.s32.totalorder %s5264_s16, %s11690_s9 }
 0x743   : > { %p8038_p10 = scmp.lt.s32.totalorder %s8036_s28, %s8032_s24 }
 0x744   : > { %p8034_p7 = pnand %p8033_p4, %p8171_p5 }
 0x745   : > { %p8039_p11 = por %p8038_p10, %p8037_p9 }
 0x746   : > { %p8035_p8 = pneg %p8034_p7 }
 0x748   : > { %p8040_p12 = pnand %p8039_p11, %p8035_p8 }
 0x74a   : > { %8043 = shalt.err (!%p8040_p12)
}
 0x74b   : > { %7971 = dma.vmem_to_hbm [thread:$0]  (%p8171_p5), %s5267_s25, 16, %s5264_s16, %s5254_s17  }
 0x74c PF: > { %p7977_p13 = scmp.ge.s32.totalorder %s8078_s12, 2  ;;  %s5278_s21 = sand.u32 1, %s8066_s30  }
 0x74d   : > { %s5279_s22 = scalar_lea.sflag [#allocation7], %s5278_s21 }
 0x74e   : > { %p7974_p0 = pnand %p7977_p13, %p8175_p6 }
 0x750   : > { %p7975_p1 = pneg %p7974_p0 }
 0x752   : > { %8061 = dma.done.wait (%p7975_p1), %s5279_s22, 16  }
 0x753   : > { %8063 = vsyncadd (%p7975_p1), %s5279_s22, 4294967280  ;;  %p19_p2 = scmp.ge.s32.totalorder %s8158_s15, 4   ;;  %s11738_s30 = smov %s8070_s10 }
 0x754   : > { %s11739_s10 = smov %s8074_s11  ;;  %s11740_s11 = smov %s8169_s18 }
 0x755   : > { %s11741_s12 = smov %s8158_s15  ;;  %21 = sbr.rel (!%p19_p2) target bundleno = 3 (0x3), region = 205 }
 0x75a   :  { %5283 = vsyncpa [#allocation7], 1 }
 0x75b   :  { %5285 = vsyncpa [#allocation7 + $0x1], 1 }

</bundles_post_ra>
